<compile_context>
chip_gen: v5e
topology: v5e:2x2
jax: 0.10.0
libtpu: 0.0.40
codegen_flags: <defaults>
</compile_context>

<pallas_src>
import math
from functools import partial

import jax
import jax.numpy as jnp
from jax.experimental import pallas as pl
from jax.experimental.pallas import tpu as pltpu

LAMBDA_DECAY = 0.01
LAMBDA_TIME = 0.01
TIME_STEP = 0.01          # timestamp spacing; base_time fixed at 0.0
LN_EPS = 1e-5
FFN_CLAMP = 5.0
SCORE_CLAMP = 1e4

ENC_KEYS = ("wqkv", "wdown", "wupkv", "wo", "n1g", "n1b",
            "w1", "b1", "w2", "b2", "n2g", "n2b")
DEC_KEYS = ("s_wqkv", "s_wdown", "s_wupkv", "s_wo", "n1g", "n1b",
            "c_wq", "c_wdown", "c_wupkv", "c_wo", "n2g", "n2b",
            "w1", "b1", "w2", "b2", "n3g", "n3b")


# --------------------------------------------------------------------------
# In-kernel helpers (operate on values already resident in VMEM/vregs)
# --------------------------------------------------------------------------

def _layernorm(z, gamma, beta):
    mu = jnp.mean(z, axis=-1, keepdims=True)
    var = jnp.mean(jnp.square(z - mu), axis=-1, keepdims=True)
    return (z - mu) * jax.lax.rsqrt(var + LN_EPS) * gamma + beta


def _ffn(z, w1, b1, w2, b2):
    h = jnp.maximum(jnp.dot(z, w1, preferred_element_type=jnp.float32) + b1, 0.0)
    out = jnp.dot(h, w2, preferred_element_type=jnp.float32) + b2
    return jnp.clip(out, -FFN_CLAMP, FFN_CLAMP)


def _attention(q, k_rec, v_rec, w_o, decay, *, batch, num_heads, scale):
    """q:(B*Sq,D)  k_rec/v_rec:(B*Skv,D)  decay:(Sq,Skv)  ->  (B*Sq,D).

    Only the score/softmax part loops over (static) batch & heads; W_o is
    folded into the per-head accumulation so no lane-axis concat is needed.
    """
    bsq, d = q.shape
    sq = bsq // batch
    skv = k_rec.shape[0] // batch
    hd = d // num_heads
    qs = q * scale                                  # fold 1/sqrt(d_model) once
    outs = []
    for b in range(batch):                          # static unrolled
        q_b = qs[b * sq:(b + 1) * sq, :]
        k_b = k_rec[b * skv:(b + 1) * skv, :]
        v_b = v_rec[b * skv:(b + 1) * skv, :]
        acc = jnp.zeros((sq, d), jnp.float32)
        for h in range(num_heads):                  # static unrolled
            sl = slice(h * hd, (h + 1) * hd)
            # contract last dims directly (no explicit transpose of k).
            s = jax.lax.dot_general(q_b[:, sl], k_b[:, sl],
                                    (((1,), (1,)), ((), ())),
                                    preferred_element_type=jnp.float32)
            # reference: nan_to_num (identity on finite) -> clamp -> *decay
            #            -> nan_to_num -> clamp -> softmax
            s = jnp.clip(s, -SCORE_CLAMP, SCORE_CLAMP)
            s = jnp.clip(s * decay, -SCORE_CLAMP, SCORE_CLAMP)
            m = jnp.max(s, axis=-1, keepdims=True)
            p = jnp.exp(s - m)
            p = p / jnp.sum(p, axis=-1, keepdims=True)      # exact softmax
            ctx = jnp.dot(p, v_b[:, sl], preferred_element_type=jnp.float32)
            # fold output projection: concat_h(ctx_h) @ W_o == sum_h ctx_h @ W_o[h]
            acc = acc + jnp.dot(ctx, w_o[sl, :],
                                preferred_element_type=jnp.float32)
        outs.append(acc)
    return jnp.concatenate(outs, axis=0)


def _mla_self_attention(x, w_qkv, w_down, w_upkv, w_o, decay,
                        *, batch, num_heads, scale):
    d = x.shape[-1]
    qkv = jnp.dot(x, w_qkv, preferred_element_type=jnp.float32)      # (BS, 3D)
    q, k, v = qkv[:, :d], qkv[:, d:2 * d], qkv[:, 2 * d:]
    latent = jnp.dot(k + v, w_down, preferred_element_type=jnp.float32)
    kv = jnp.dot(latent, w_upkv, preferred_element_type=jnp.float32)  # (BS, 2D)
    return _attention(q, kv[:, :d], kv[:, d:], w_o, decay,
                      batch=batch, num_heads=num_heads, scale=scale)


def _mla_cross_attention(x, kv_rec, w_q, w_o, decay, *, batch, num_heads, scale):
    d = x.shape[-1]
    q = jnp.dot(x, w_q, preferred_element_type=jnp.float32)
    return _attention(q, kv_rec[:, :d], kv_rec[:, d:], w_o, decay,
                      batch=batch, num_heads=num_heads, scale=scale)


# --------------------------------------------------------------------------
# Single fused kernel: full encoder stack -> full decoder stack -> fc_out
# --------------------------------------------------------------------------

def _model_kernel(*refs, num_layers, num_heads, batch, scale):
    src_ref, tgt_ref, dce_ref, dcd_ref, dcx_ref = refs[:5]
    rest = refs[5:]
    ne, nd = len(ENC_KEYS), len(DEC_KEYS)
    enc = dict(zip(ENC_KEYS, rest[:ne]))
    dec = dict(zip(DEC_KEYS, rest[ne:ne + nd]))
    fc_w = rest[ne + nd]
    fc_b = rest[ne + nd + 1]
    logits_ref = rest[ne + nd + 2]

    decay_enc = dce_ref[...]        # (Ss, Ss) precomputed in JAX (constant)
    decay_dec = dcd_ref[...]        # (St, St)
    decay_cross = dcx_ref[...]      # (St, Ss)

    # -------- encoder stack --------
    x = src_ref[...]                # (B*Ss, D) flattened
    for l in range(num_layers):
        attn = _mla_self_attention(
            x, enc["wqkv"][l], enc["wdown"][l], enc["wupkv"][l], enc["wo"][l],
            decay_enc, batch=batch, num_heads=num_heads, scale=scale)
        z1 = _layernorm(x + attn, enc["n1g"][l], enc["n1b"][l])   # dropout = id
        ffn = _ffn(z1, enc["w1"][l], enc["b1"][l], enc["w2"][l], enc["b2"][l])
        x = _layernorm(z1 + ffn, enc["n2g"][l], enc["n2b"][l])
    mem = x                         # encoder output stays resident in VMEM

    # Cross-attention K/V reconstructions depend only on `mem`; hoist them out
    # of the decoder layer loop (computed once each, before the loop).
    cross_kv = [
        jnp.dot(jnp.dot(mem, dec["c_wdown"][l],
                        preferred_element_type=jnp.float32),
                dec["c_wupkv"][l], preferred_element_type=jnp.float32)
        for l in range(num_layers)
    ]

    # -------- decoder stack --------
    y = tgt_ref[...]                # (B*St, D) flattened
    for l in range(num_layers):
        attn = _mla_self_attention(
            y, dec["s_wqkv"][l], dec["s_wdown"][l], dec["s_wupkv"][l],
            dec["s_wo"][l], decay_dec,
            batch=batch, num_heads=num_heads, scale=scale)
        z1 = _layernorm(y + attn, dec["n1g"][l], dec["n1b"][l])
        cross = _mla_cross_attention(
            z1, cross_kv[l], dec["c_wq"][l], dec["c_wo"][l], decay_cross,
            batch=batch, num_heads=num_heads, scale=scale)
        z2 = _layernorm(z1 + cross, dec["n2g"][l], dec["n2b"][l])
        ffn = _ffn(z2, dec["w1"][l], dec["b1"][l], dec["w2"][l], dec["b2"][l])
        y = _layernorm(z2 + ffn, dec["n3g"][l], dec["n3b"][l])

    # -------- fused vocab projection (lane-dense, 128-padded) --------
    logits_ref[...] = (jnp.dot(y, fc_w[...], preferred_element_type=jnp.float32)
                       + fc_b[...])


# --------------------------------------------------------------------------
# JAX-side glue: embedding gather, positional / time encoding, decay consts
# --------------------------------------------------------------------------

def _time_decay(sq, skv):
    # exp(-lambda * |t_i - t_j|) with t_i = 0.01 * i (base cancels in the diff).
    ti = jnp.arange(sq, dtype=jnp.float32)[:, None] * TIME_STEP
    tj = jnp.arange(skv, dtype=jnp.float32)[None, :] * TIME_STEP
    return jnp.exp(-LAMBDA_DECAY * jnp.abs(ti - tj))


def _pos_encode(x):
    B, S, D = x.shape
    pos = jnp.arange(S, dtype=jnp.float32)[:, None]
    div = jnp.exp(jnp.arange(0, D, 2, dtype=jnp.float32)
                  * (-math.log(10000.0) / D))
    pe = jnp.zeros((S, D), jnp.float32)
    pe = pe.at[:, 0::2].set(jnp.sin(pos * div))
    pe = pe.at[:, 1::2].set(jnp.cos(pos * div))
    x = x + pe[None]
    # TODO(synk): reference uses wall-clock time.time() as base_time; a fixed
    # base of 0.0 is used for determinism, so timestamp(i) = 0.01 * i.
    ts = jnp.arange(S, dtype=jnp.float32) * TIME_STEP
    return x + jnp.sin(ts * LAMBDA_TIME * math.pi)[None, :, None]


def transformer_forward(params, src_ids, tgt_ids, num_heads):
    emb = params["token_embedding"]
    vocab, d_model = emb.shape
    B, Ss = src_ids.shape
    St = tgt_ids.shape[1]
    num_layers = params["enc"]["wqkv"].shape[0]
    scale = 1.0 / (math.sqrt(d_model) + 1e-8)

    src = _pos_encode(emb[src_ids]).reshape(B * Ss, d_model)
    tgt = _pos_encode(emb[tgt_ids]).reshape(B * St, d_model)

    args = [src, tgt,
            _time_decay(Ss, Ss), _time_decay(St, St), _time_decay(St, Ss)]
    args += [params["enc"][k] for k in ENC_KEYS]
    args += [params["dec"][k] for k in DEC_KEYS]
    args += [params["fc_out_w"], params["fc_out_b"]]

    vpad = params["fc_out_w"].shape[1]
    logits = pl.pallas_call(
        partial(_model_kernel, num_layers=num_layers, num_heads=num_heads,
                batch=B, scale=scale),
        out_shape=jax.ShapeDtypeStruct((B * St, vpad), jnp.float32),
        compiler_params=pltpu.CompilerParams(vmem_limit_bytes=32 * 1024 * 1024),
    )(*args)
    return logits[:, :vocab].reshape(B, St, vocab)


# --------------------------------------------------------------------------
# Deterministic parameter initialization (weights stored as (in, out),
# per-layer weights stacked along a leading "layer" axis)
# --------------------------------------------------------------------------

def _init_w(key, shape, scale=0.02):
    return jax.random.normal(key, shape, jnp.float32) * scale


def _init_attention(key, d_model, d_latent):
    ks = jax.random.split(key, 8)
    wq = _init_w(ks[0], (d_model, d_model))
    wk = _init_w(ks[1], (d_model, d_model))
    wv = _init_w(ks[2], (d_model, d_model))
    wo = _init_w(ks[3], (d_model, d_model))
    wdown = _init_w(ks[4], (d_model, d_latent))
    # ks[5] would be W_mem_kv: present in the reference module, unused in forward.
    wupk = _init_w(ks[6], (d_latent, d_model))
    wupv = _init_w(ks[7], (d_latent, d_model))
    return {"wq": wq,
            "wqkv": jnp.concatenate([wq, wk, wv], axis=1),      # (D, 3D) fused
            "wo": wo,
            "wdown": wdown,
            "wupkv": jnp.concatenate([wupk, wupv], axis=1)}     # (dl, 2D) fused


def _init_encoder_layer(key, d_model, d_latent):
    ks = jax.random.split(key, 3)
    sa = _init_attention(ks[0], d_model, d_latent)
    ones = jnp.ones((1, d_model), jnp.float32)
    zeros = jnp.zeros((1, d_model), jnp.float32)
    return {"wqkv": sa["wqkv"], "wdown": sa["wdown"], "wupkv": sa["wupkv"],
            "wo": sa["wo"],
            "n1g": ones, "n1b": zeros,
            "w1": _init_w(ks[1], (d_model, 4 * d_model)),
            "b1": jnp.zeros((1, 4 * d_model), jnp.float32),
            "w2": _init_w(ks[2], (4 * d_model, d_model)),
            "b2": zeros,
            "n2g": ones, "n2b": zeros}


def _init_decoder_layer(key, d_model, d_latent):
    ks = jax.random.split(key, 4)
    sa = _init_attention(ks[0], d_model, d_latent)
    ca = _init_attention(ks[1], d_model, d_latent)
    ones = jnp.ones((1, d_model), jnp.float32)
    zeros = jnp.zeros((1, d_model), jnp.float32)
    return {"s_wqkv": sa["wqkv"], "s_wdown": sa["wdown"],
            "s_wupkv": sa["wupkv"], "s_wo": sa["wo"],
            "n1g": ones, "n1b": zeros,
            "c_wq": ca["wq"], "c_wdown": ca["wdown"],
            "c_wupkv": ca["wupkv"], "c_wo": ca["wo"],
            "n2g": ones, "n2b": zeros,
            "w1": _init_w(ks[2], (d_model, 4 * d_model)),
            "b1": jnp.zeros((1, 4 * d_model), jnp.float32),
            "w2": _init_w(ks[3], (4 * d_model, d_model)),
            "b2": zeros,
            "n3g": ones, "n3b": zeros}


def init_transformer(key, vocab_size, d_model, num_layers, compression_factor=4):
    d_latent = d_model // compression_factor
    ks = jax.random.split(key, 2 + 2 * num_layers)
    enc_layers = [_init_encoder_layer(ks[2 + i], d_model, d_latent)
                  for i in range(num_layers)]
    dec_layers = [_init_decoder_layer(ks[2 + num_layers + i], d_model, d_latent)
                  for i in range(num_layers)]
    enc = {k: jnp.stack([lyr[k] for lyr in enc_layers]) for k in ENC_KEYS}
    dec = {k: jnp.stack([lyr[k] for lyr in dec_layers]) for k in DEC_KEYS}
    vocab_pad = ((vocab_size + 127) // 128) * 128               # lane-dense out
    fc_w = _init_w(ks[1], (d_model, vocab_size))
    fc_w_pad = (jnp.zeros((d_model, vocab_pad), jnp.float32)
                .at[:, :vocab_size].set(fc_w))
    return {"token_embedding": _init_w(ks[0], (vocab_size, d_model)),
            "enc": enc, "dec": dec,
            "fc_out_w": fc_w_pad,
            "fc_out_b": jnp.zeros((1, vocab_pad), jnp.float32)}


# --------------------------------------------------------------------------
# Main
# --------------------------------------------------------------------------

if __name__ == "__main__":
    VOCAB = 64
    D_MODEL = 32
    NUM_LAYERS = 2
    NUM_HEADS = 4
    SEQ_LEN = 8
    BATCH = 2

    root = jax.random.PRNGKey(0)
    k_params, k_src, k_tgt = jax.random.split(root, 3)

    params = init_transformer(k_params, VOCAB, D_MODEL, NUM_LAYERS)

    src_ids = jax.random.randint(k_src, (BATCH, SEQ_LEN), 0, VOCAB, dtype=jnp.int32)
    tgt_ids = jax.random.randint(k_tgt, (BATCH, SEQ_LEN), 0, VOCAB, dtype=jnp.int32)

    fwd = jax.jit(partial(transformer_forward, num_heads=NUM_HEADS))
    logits = jax.block_until_ready(fwd(params, src_ids, tgt_ids))

    assert logits.shape == (BATCH, SEQ_LEN, VOCAB), logits.shape
    assert bool(jnp.all(jnp.isfinite(logits)))
    print("KERNEL_OK")
</pallas_src>

<mosaic_0001>
module attributes {stable_mosaic.version = 11 : i64} {
  func.func @_model_kernel(%arg0: memref<16x32xf32, #tpu.memory_space<vmem>>, %arg1: memref<16x32xf32, #tpu.memory_space<vmem>>, %arg2: memref<8x8xf32, #tpu.memory_space<vmem>>, %arg3: memref<8x8xf32, #tpu.memory_space<vmem>>, %arg4: memref<8x8xf32, #tpu.memory_space<vmem>>, %arg5: memref<2x32x96xf32, #tpu.memory_space<vmem>>, %arg6: memref<2x32x8xf32, #tpu.memory_space<vmem>>, %arg7: memref<2x8x64xf32, #tpu.memory_space<vmem>>, %arg8: memref<2x32x32xf32, #tpu.memory_space<vmem>>, %arg9: memref<2x1x32xf32, #tpu.memory_space<vmem>>, %arg10: memref<2x1x32xf32, #tpu.memory_space<vmem>>, %arg11: memref<2x32x128xf32, #tpu.memory_space<vmem>>, %arg12: memref<2x1x128xf32, #tpu.memory_space<vmem>>, %arg13: memref<2x128x32xf32, #tpu.memory_space<vmem>>, %arg14: memref<2x1x32xf32, #tpu.memory_space<vmem>>, %arg15: memref<2x1x32xf32, #tpu.memory_space<vmem>>, %arg16: memref<2x1x32xf32, #tpu.memory_space<vmem>>, %arg17: memref<2x32x96xf32, #tpu.memory_space<vmem>>, %arg18: memref<2x32x8xf32, #tpu.memory_space<vmem>>, %arg19: memref<2x8x64xf32, #tpu.memory_space<vmem>>, %arg20: memref<2x32x32xf32, #tpu.memory_space<vmem>>, %arg21: memref<2x1x32xf32, #tpu.memory_space<vmem>>, %arg22: memref<2x1x32xf32, #tpu.memory_space<vmem>>, %arg23: memref<2x32x32xf32, #tpu.memory_space<vmem>>, %arg24: memref<2x32x8xf32, #tpu.memory_space<vmem>>, %arg25: memref<2x8x64xf32, #tpu.memory_space<vmem>>, %arg26: memref<2x32x32xf32, #tpu.memory_space<vmem>>, %arg27: memref<2x1x32xf32, #tpu.memory_space<vmem>>, %arg28: memref<2x1x32xf32, #tpu.memory_space<vmem>>, %arg29: memref<2x32x128xf32, #tpu.memory_space<vmem>>, %arg30: memref<2x1x128xf32, #tpu.memory_space<vmem>>, %arg31: memref<2x128x32xf32, #tpu.memory_space<vmem>>, %arg32: memref<2x1x32xf32, #tpu.memory_space<vmem>>, %arg33: memref<2x1x32xf32, #tpu.memory_space<vmem>>, %arg34: memref<2x1x32xf32, #tpu.memory_space<vmem>>, %arg35: memref<32x128xf32, #tpu.memory_space<vmem>>, %arg36: memref<1x128xf32, #tpu.memory_space<vmem>>, %arg37: memref<16x128xf32, #tpu.memory_space<vmem>>) attributes {dimension_semantics = [], scalar_prefetch = 0 : i64, scratch_operands = 0 : i64, tpu.core_type = #tpu.core_type<tc>} {
    %c0 = arith.constant 0 : index
    %c0_0 = arith.constant 0 : index
    %0 = vector.load %arg2[%c0, %c0_0] : memref<8x8xf32, #tpu.memory_space<vmem>>, vector<8x8xf32>
    %c0_1 = arith.constant 0 : index
    %c0_2 = arith.constant 0 : index
    %1 = vector.load %arg3[%c0_1, %c0_2] : memref<8x8xf32, #tpu.memory_space<vmem>>, vector<8x8xf32>
    %c0_3 = arith.constant 0 : index
    %c0_4 = arith.constant 0 : index
    %2 = vector.load %arg4[%c0_3, %c0_4] : memref<8x8xf32, #tpu.memory_space<vmem>>, vector<8x8xf32>
    %c0_5 = arith.constant 0 : index
    %c0_6 = arith.constant 0 : index
    %3 = vector.load %arg0[%c0_5, %c0_6] : memref<16x32xf32, #tpu.memory_space<vmem>>, vector<16x32xf32>
    %c0_7 = arith.constant 0 : index
    %c0_8 = arith.constant 0 : index
    %c0_9 = arith.constant 0 : index
    %4 = vector.load %arg5[%c0_7, %c0_8, %c0_9] : memref<2x32x96xf32, #tpu.memory_space<vmem>>, vector<1x32x96xf32>
    %5 = vector.shape_cast %4 : vector<1x32x96xf32> to vector<32x96xf32>
    %c0_10 = arith.constant 0 : index
    %c0_11 = arith.constant 0 : index
    %c0_12 = arith.constant 0 : index
    %6 = vector.load %arg6[%c0_10, %c0_11, %c0_12] : memref<2x32x8xf32, #tpu.memory_space<vmem>>, vector<1x32x8xf32>
    %7 = vector.shape_cast %6 : vector<1x32x8xf32> to vector<32x8xf32>
    %c0_13 = arith.constant 0 : index
    %c0_14 = arith.constant 0 : index
    %c0_15 = arith.constant 0 : index
    %8 = vector.load %arg7[%c0_13, %c0_14, %c0_15] : memref<2x8x64xf32, #tpu.memory_space<vmem>>, vector<1x8x64xf32>
    %9 = vector.shape_cast %8 : vector<1x8x64xf32> to vector<8x64xf32>
    %c0_16 = arith.constant 0 : index
    %c0_17 = arith.constant 0 : index
    %c0_18 = arith.constant 0 : index
    %10 = vector.load %arg8[%c0_16, %c0_17, %c0_18] : memref<2x32x32xf32, #tpu.memory_space<vmem>>, vector<1x32x32xf32>
    %11 = vector.shape_cast %10 : vector<1x32x32xf32> to vector<32x32xf32>
    %cst = arith.constant dense<0.000000e+00> : vector<16x96xf32>
    %12 = tpu.matmul %3, %5, %cst {dimension_numbers = #tpu.dot_dimension_numbers<[1], [0], [0], [1], [0, 0, 1, 1], [], []>} : vector<16x32xf32>, vector<32x96xf32>, vector<16x96xf32> -> vector<16x96xf32>
    %13 = vector.extract_strided_slice %12 {offsets = [0, 0], sizes = [16, 32], strides = [1, 1]} : vector<16x96xf32> to vector<16x32xf32>
    %14 = vector.extract_strided_slice %12 {offsets = [0, 32], sizes = [16, 32], strides = [1, 1]} : vector<16x96xf32> to vector<16x32xf32>
    %15 = vector.extract_strided_slice %12 {offsets = [0, 64], sizes = [16, 32], strides = [1, 1]} : vector<16x96xf32> to vector<16x32xf32>
    %16 = arith.addf %14, %15 : vector<16x32xf32>
    %cst_19 = arith.constant dense<0.000000e+00> : vector<16x8xf32>
    %17 = tpu.matmul %16, %7, %cst_19 {dimension_numbers = #tpu.dot_dimension_numbers<[1], [0], [0], [1], [0, 0, 1, 1], [], []>} : vector<16x32xf32>, vector<32x8xf32>, vector<16x8xf32> -> vector<16x8xf32>
    %cst_20 = arith.constant dense<0.000000e+00> : vector<16x64xf32>
    %18 = tpu.matmul %17, %9, %cst_20 {dimension_numbers = #tpu.dot_dimension_numbers<[1], [0], [0], [1], [0, 0, 1, 1], [], []>} : vector<16x8xf32>, vector<8x64xf32>, vector<16x64xf32> -> vector<16x64xf32>
    %19 = vector.extract_strided_slice %18 {offsets = [0, 0], sizes = [16, 32], strides = [1, 1]} : vector<16x64xf32> to vector<16x32xf32>
    %20 = vector.extract_strided_slice %18 {offsets = [0, 32], sizes = [16, 32], strides = [1, 1]} : vector<16x64xf32> to vector<16x32xf32>
    %cst_21 = arith.constant 0.176776692 : f32
    %21 = vector.broadcast %cst_21 : f32 to vector<16x32xf32>
    %22 = arith.mulf %13, %21 : vector<16x32xf32>
    %23 = vector.extract_strided_slice %22 {offsets = [0, 0], sizes = [8, 32], strides = [1, 1]} : vector<16x32xf32> to vector<8x32xf32>
    %24 = vector.extract_strided_slice %19 {offsets = [0, 0], sizes = [8, 32], strides = [1, 1]} : vector<16x32xf32> to vector<8x32xf32>
    %25 = vector.extract_strided_slice %20 {offsets = [0, 0], sizes = [8, 32], strides = [1, 1]} : vector<16x32xf32> to vector<8x32xf32>
    %cst_22 = arith.constant 0.000000e+00 : f32
    %26 = vector.broadcast %cst_22 : f32 to vector<8x32xf32>
    %27 = vector.extract_strided_slice %23 {offsets = [0, 0], sizes = [8, 8], strides = [1, 1]} : vector<8x32xf32> to vector<8x8xf32>
    %28 = vector.extract_strided_slice %24 {offsets = [0, 0], sizes = [8, 8], strides = [1, 1]} : vector<8x32xf32> to vector<8x8xf32>
    %cst_23 = arith.constant dense<0.000000e+00> : vector<8x8xf32>
    %29 = tpu.matmul %27, %28, %cst_23 {dimension_numbers = #tpu.dot_dimension_numbers<[1], [1], [0], [0], [0, 0, 1, 0], [], []>} : vector<8x8xf32>, vector<8x8xf32>, vector<8x8xf32> -> vector<8x8xf32>
    %cst_24 = arith.constant -1.000000e+04 : f32
    %cst_25 = arith.constant 1.000000e+04 : f32
    %30 = vector.broadcast %cst_24 : f32 to vector<8x8xf32>
    %31 = arith.maximumf %30, %29 : vector<8x8xf32>
    %32 = vector.broadcast %cst_25 : f32 to vector<8x8xf32>
    %33 = arith.minimumf %32, %31 : vector<8x8xf32>
    %34 = arith.mulf %33, %0 : vector<8x8xf32>
    %cst_26 = arith.constant -1.000000e+04 : f32
    %cst_27 = arith.constant 1.000000e+04 : f32
    %35 = vector.broadcast %cst_26 : f32 to vector<8x8xf32>
    %36 = arith.maximumf %35, %34 : vector<8x8xf32>
    %37 = vector.broadcast %cst_27 : f32 to vector<8x8xf32>
    %38 = arith.minimumf %37, %36 : vector<8x8xf32>
    %cst_28 = arith.constant dense<0xFF800000> : vector<8xf32>
    %39 = vector.multi_reduction <maximumf>, %38, %cst_28 [1] : vector<8x8xf32> to vector<8xf32>
    %40 = vector.shape_cast %39 : vector<8xf32> to vector<8x1xf32>
    %41 = vector.broadcast %40 : vector<8x1xf32> to vector<8x8xf32>
    %42 = arith.subf %38, %41 : vector<8x8xf32>
    %43 = math.exp %42 : vector<8x8xf32>
    %cst_29 = arith.constant dense<0.000000e+00> : vector<8xf32>
    %44 = vector.multi_reduction <add>, %43, %cst_29 [1] : vector<8x8xf32> to vector<8xf32>
    %45 = vector.shape_cast %44 : vector<8xf32> to vector<8x1xf32>
    %46 = vector.broadcast %45 : vector<8x1xf32> to vector<8x8xf32>
    %47 = arith.divf %43, %46 : vector<8x8xf32>
    %48 = vector.extract_strided_slice %25 {offsets = [0, 0], sizes = [8, 8], strides = [1, 1]} : vector<8x32xf32> to vector<8x8xf32>
    %cst_30 = arith.constant dense<0.000000e+00> : vector<8x8xf32>
    %49 = tpu.matmul %47, %48, %cst_30 {dimension_numbers = #tpu.dot_dimension_numbers<[1], [0], [0], [1], [0, 0, 1, 1], [], []>} : vector<8x8xf32>, vector<8x8xf32>, vector<8x8xf32> -> vector<8x8xf32>
    %50 = vector.extract_strided_slice %11 {offsets = [0, 0], sizes = [8, 32], strides = [1, 1]} : vector<32x32xf32> to vector<8x32xf32>
    %cst_31 = arith.constant dense<0.000000e+00> : vector<8x32xf32>
    %51 = tpu.matmul %49, %50, %cst_31 {dimension_numbers = #tpu.dot_dimension_numbers<[1], [0], [0], [1], [0, 0, 1, 1], [], []>} : vector<8x8xf32>, vector<8x32xf32>, vector<8x32xf32> -> vector<8x32xf32>
    %52 = arith.addf %26, %51 : vector<8x32xf32>
    %53 = vector.extract_strided_slice %23 {offsets = [0, 8], sizes = [8, 8], strides = [1, 1]} : vector<8x32xf32> to vector<8x8xf32>
    %54 = vector.extract_strided_slice %24 {offsets = [0, 8], sizes = [8, 8], strides = [1, 1]} : vector<8x32xf32> to vector<8x8xf32>
    %cst_32 = arith.constant dense<0.000000e+00> : vector<8x8xf32>
    %55 = tpu.matmul %53, %54, %cst_32 {dimension_numbers = #tpu.dot_dimension_numbers<[1], [1], [0], [0], [0, 0, 1, 0], [], []>} : vector<8x8xf32>, vector<8x8xf32>, vector<8x8xf32> -> vector<8x8xf32>
    %cst_33 = arith.constant -1.000000e+04 : f32
    %cst_34 = arith.constant 1.000000e+04 : f32
    %56 = vector.broadcast %cst_33 : f32 to vector<8x8xf32>
    %57 = arith.maximumf %56, %55 : vector<8x8xf32>
    %58 = vector.broadcast %cst_34 : f32 to vector<8x8xf32>
    %59 = arith.minimumf %58, %57 : vector<8x8xf32>
    %60 = arith.mulf %59, %0 : vector<8x8xf32>
    %cst_35 = arith.constant -1.000000e+04 : f32
    %cst_36 = arith.constant 1.000000e+04 : f32
    %61 = vector.broadcast %cst_35 : f32 to vector<8x8xf32>
    %62 = arith.maximumf %61, %60 : vector<8x8xf32>
    %63 = vector.broadcast %cst_36 : f32 to vector<8x8xf32>
    %64 = arith.minimumf %63, %62 : vector<8x8xf32>
    %cst_37 = arith.constant dense<0xFF800000> : vector<8xf32>
    %65 = vector.multi_reduction <maximumf>, %64, %cst_37 [1] : vector<8x8xf32> to vector<8xf32>
    %66 = vector.shape_cast %65 : vector<8xf32> to vector<8x1xf32>
    %67 = vector.broadcast %66 : vector<8x1xf32> to vector<8x8xf32>
    %68 = arith.subf %64, %67 : vector<8x8xf32>
    %69 = math.exp %68 : vector<8x8xf32>
    %cst_38 = arith.constant dense<0.000000e+00> : vector<8xf32>
    %70 = vector.multi_reduction <add>, %69, %cst_38 [1] : vector<8x8xf32> to vector<8xf32>
    %71 = vector.shape_cast %70 : vector<8xf32> to vector<8x1xf32>
    %72 = vector.broadcast %71 : vector<8x1xf32> to vector<8x8xf32>
    %73 = arith.divf %69, %72 : vector<8x8xf32>
    %74 = vector.extract_strided_slice %25 {offsets = [0, 8], sizes = [8, 8], strides = [1, 1]} : vector<8x32xf32> to vector<8x8xf32>
    %cst_39 = arith.constant dense<0.000000e+00> : vector<8x8xf32>
    %75 = tpu.matmul %73, %74, %cst_39 {dimension_numbers = #tpu.dot_dimension_numbers<[1], [0], [0], [1], [0, 0, 1, 1], [], []>} : vector<8x8xf32>, vector<8x8xf32>, vector<8x8xf32> -> vector<8x8xf32>
    %76 = vector.extract_strided_slice %11 {offsets = [8, 0], sizes = [8, 32], strides = [1, 1]} : vector<32x32xf32> to vector<8x32xf32>
    %cst_40 = arith.constant dense<0.000000e+00> : vector<8x32xf32>
    %77 = tpu.matmul %75, %76, %cst_40 {dimension_numbers = #tpu.dot_dimension_numbers<[1], [0], [0], [1], [0, 0, 1, 1], [], []>} : vector<8x8xf32>, vector<8x32xf32>, vector<8x32xf32> -> vector<8x32xf32>
    %78 = arith.addf %52, %77 : vector<8x32xf32>
    %79 = vector.extract_strided_slice %23 {offsets = [0, 16], sizes = [8, 8], strides = [1, 1]} : vector<8x32xf32> to vector<8x8xf32>
    %80 = vector.extract_strided_slice %24 {offsets = [0, 16], sizes = [8, 8], strides = [1, 1]} : vector<8x32xf32> to vector<8x8xf32>
    %cst_41 = arith.constant dense<0.000000e+00> : vector<8x8xf32>
    %81 = tpu.matmul %79, %80, %cst_41 {dimension_numbers = #tpu.dot_dimension_numbers<[1], [1], [0], [0], [0, 0, 1, 0], [], []>} : vector<8x8xf32>, vector<8x8xf32>, vector<8x8xf32> -> vector<8x8xf32>
    %cst_42 = arith.constant -1.000000e+04 : f32
    %cst_43 = arith.constant 1.000000e+04 : f32
    %82 = vector.broadcast %cst_42 : f32 to vector<8x8xf32>
    %83 = arith.maximumf %82, %81 : vector<8x8xf32>
    %84 = vector.broadcast %cst_43 : f32 to vector<8x8xf32>
    %85 = arith.minimumf %84, %83 : vector<8x8xf32>
    %86 = arith.mulf %85, %0 : vector<8x8xf32>
    %cst_44 = arith.constant -1.000000e+04 : f32
    %cst_45 = arith.constant 1.000000e+04 : f32
    %87 = vector.broadcast %cst_44 : f32 to vector<8x8xf32>
    %88 = arith.maximumf %87, %86 : vector<8x8xf32>
    %89 = vector.broadcast %cst_45 : f32 to vector<8x8xf32>
    %90 = arith.minimumf %89, %88 : vector<8x8xf32>
    %cst_46 = arith.constant dense<0xFF800000> : vector<8xf32>
    %91 = vector.multi_reduction <maximumf>, %90, %cst_46 [1] : vector<8x8xf32> to vector<8xf32>
    %92 = vector.shape_cast %91 : vector<8xf32> to vector<8x1xf32>
    %93 = vector.broadcast %92 : vector<8x1xf32> to vector<8x8xf32>
    %94 = arith.subf %90, %93 : vector<8x8xf32>
    %95 = math.exp %94 : vector<8x8xf32>
    %cst_47 = arith.constant dense<0.000000e+00> : vector<8xf32>
    %96 = vector.multi_reduction <add>, %95, %cst_47 [1] : vector<8x8xf32> to vector<8xf32>
    %97 = vector.shape_cast %96 : vector<8xf32> to vector<8x1xf32>
    %98 = vector.broadcast %97 : vector<8x1xf32> to vector<8x8xf32>
    %99 = arith.divf %95, %98 : vector<8x8xf32>
    %100 = vector.extract_strided_slice %25 {offsets = [0, 16], sizes = [8, 8], strides = [1, 1]} : vector<8x32xf32> to vector<8x8xf32>
    %cst_48 = arith.constant dense<0.000000e+00> : vector<8x8xf32>
    %101 = tpu.matmul %99, %100, %cst_48 {dimension_numbers = #tpu.dot_dimension_numbers<[1], [0], [0], [1], [0, 0, 1, 1], [], []>} : vector<8x8xf32>, vector<8x8xf32>, vector<8x8xf32> -> vector<8x8xf32>
    %102 = vector.extract_strided_slice %11 {offsets = [16, 0], sizes = [8, 32], strides = [1, 1]} : vector<32x32xf32> to vector<8x32xf32>
    %cst_49 = arith.constant dense<0.000000e+00> : vector<8x32xf32>
    %103 = tpu.matmul %101, %102, %cst_49 {dimension_numbers = #tpu.dot_dimension_numbers<[1], [0], [0], [1], [0, 0, 1, 1], [], []>} : vector<8x8xf32>, vector<8x32xf32>, vector<8x32xf32> -> vector<8x32xf32>
    %104 = arith.addf %78, %103 : vector<8x32xf32>
    %105 = vector.extract_strided_slice %23 {offsets = [0, 24], sizes = [8, 8], strides = [1, 1]} : vector<8x32xf32> to vector<8x8xf32>
    %106 = vector.extract_strided_slice %24 {offsets = [0, 24], sizes = [8, 8], strides = [1, 1]} : vector<8x32xf32> to vector<8x8xf32>
    %cst_50 = arith.constant dense<0.000000e+00> : vector<8x8xf32>
    %107 = tpu.matmul %105, %106, %cst_50 {dimension_numbers = #tpu.dot_dimension_numbers<[1], [1], [0], [0], [0, 0, 1, 0], [], []>} : vector<8x8xf32>, vector<8x8xf32>, vector<8x8xf32> -> vector<8x8xf32>
    %cst_51 = arith.constant -1.000000e+04 : f32
    %cst_52 = arith.constant 1.000000e+04 : f32
    %108 = vector.broadcast %cst_51 : f32 to vector<8x8xf32>
    %109 = arith.maximumf %108, %107 : vector<8x8xf32>
    %110 = vector.broadcast %cst_52 : f32 to vector<8x8xf32>
    %111 = arith.minimumf %110, %109 : vector<8x8xf32>
    %112 = arith.mulf %111, %0 : vector<8x8xf32>
    %cst_53 = arith.constant -1.000000e+04 : f32
    %cst_54 = arith.constant 1.000000e+04 : f32
    %113 = vector.broadcast %cst_53 : f32 to vector<8x8xf32>
    %114 = arith.maximumf %113, %112 : vector<8x8xf32>
    %115 = vector.broadcast %cst_54 : f32 to vector<8x8xf32>
    %116 = arith.minimumf %115, %114 : vector<8x8xf32>
    %cst_55 = arith.constant dense<0xFF800000> : vector<8xf32>
    %117 = vector.multi_reduction <maximumf>, %116, %cst_55 [1] : vector<8x8xf32> to vector<8xf32>
    %118 = vector.shape_cast %117 : vector<8xf32> to vector<8x1xf32>
    %119 = vector.broadcast %118 : vector<8x1xf32> to vector<8x8xf32>
    %120 = arith.subf %116, %119 : vector<8x8xf32>
    %121 = math.exp %120 : vector<8x8xf32>
    %cst_56 = arith.constant dense<0.000000e+00> : vector<8xf32>
    %122 = vector.multi_reduction <add>, %121, %cst_56 [1] : vector<8x8xf32> to vector<8xf32>
    %123 = vector.shape_cast %122 : vector<8xf32> to vector<8x1xf32>
    %124 = vector.broadcast %123 : vector<8x1xf32> to vector<8x8xf32>
    %125 = arith.divf %121, %124 : vector<8x8xf32>
    %126 = vector.extract_strided_slice %25 {offsets = [0, 24], sizes = [8, 8], strides = [1, 1]} : vector<8x32xf32> to vector<8x8xf32>
    %cst_57 = arith.constant dense<0.000000e+00> : vector<8x8xf32>
    %127 = tpu.matmul %125, %126, %cst_57 {dimension_numbers = #tpu.dot_dimension_numbers<[1], [0], [0], [1], [0, 0, 1, 1], [], []>} : vector<8x8xf32>, vector<8x8xf32>, vector<8x8xf32> -> vector<8x8xf32>
    %128 = vector.extract_strided_slice %11 {offsets = [24, 0], sizes = [8, 32], strides = [1, 1]} : vector<32x32xf32> to vector<8x32xf32>
    %cst_58 = arith.constant dense<0.000000e+00> : vector<8x32xf32>
    %129 = tpu.matmul %127, %128, %cst_58 {dimension_numbers = #tpu.dot_dimension_numbers<[1], [0], [0], [1], [0, 0, 1, 1], [], []>} : vector<8x8xf32>, vector<8x32xf32>, vector<8x32xf32> -> vector<8x32xf32>
    %130 = arith.addf %104, %129 : vector<8x32xf32>
    %131 = vector.extract_strided_slice %22 {offsets = [8, 0], sizes = [8, 32], strides = [1, 1]} : vector<16x32xf32> to vector<8x32xf32>
    %132 = vector.extract_strided_slice %19 {offsets = [8, 0], sizes = [8, 32], strides = [1, 1]} : vector<16x32xf32> to vector<8x32xf32>
    %133 = vector.extract_strided_slice %20 {offsets = [8, 0], sizes = [8, 32], strides = [1, 1]} : vector<16x32xf32> to vector<8x32xf32>
    %cst_59 = arith.constant 0.000000e+00 : f32
    %134 = vector.broadcast %cst_59 : f32 to vector<8x32xf32>
    %135 = vector.extract_strided_slice %131 {offsets = [0, 0], sizes = [8, 8], strides = [1, 1]} : vector<8x32xf32> to vector<8x8xf32>
    %136 = vector.extract_strided_slice %132 {offsets = [0, 0], sizes = [8, 8], strides = [1, 1]} : vector<8x32xf32> to vector<8x8xf32>
    %cst_60 = arith.constant dense<0.000000e+00> : vector<8x8xf32>
    %137 = tpu.matmul %135, %136, %cst_60 {dimension_numbers = #tpu.dot_dimension_numbers<[1], [1], [0], [0], [0, 0, 1, 0], [], []>} : vector<8x8xf32>, vector<8x8xf32>, vector<8x8xf32> -> vector<8x8xf32>
    %cst_61 = arith.constant -1.000000e+04 : f32
    %cst_62 = arith.constant 1.000000e+04 : f32
    %138 = vector.broadcast %cst_61 : f32 to vector<8x8xf32>
    %139 = arith.maximumf %138, %137 : vector<8x8xf32>
    %140 = vector.broadcast %cst_62 : f32 to vector<8x8xf32>
    %141 = arith.minimumf %140, %139 : vector<8x8xf32>
    %142 = arith.mulf %141, %0 : vector<8x8xf32>
    %cst_63 = arith.constant -1.000000e+04 : f32
    %cst_64 = arith.constant 1.000000e+04 : f32
    %143 = vector.broadcast %cst_63 : f32 to vector<8x8xf32>
    %144 = arith.maximumf %143, %142 : vector<8x8xf32>
    %145 = vector.broadcast %cst_64 : f32 to vector<8x8xf32>
    %146 = arith.minimumf %145, %144 : vector<8x8xf32>
    %cst_65 = arith.constant dense<0xFF800000> : vector<8xf32>
    %147 = vector.multi_reduction <maximumf>, %146, %cst_65 [1] : vector<8x8xf32> to vector<8xf32>
    %148 = vector.shape_cast %147 : vector<8xf32> to vector<8x1xf32>
    %149 = vector.broadcast %148 : vector<8x1xf32> to vector<8x8xf32>
    %150 = arith.subf %146, %149 : vector<8x8xf32>
    %151 = math.exp %150 : vector<8x8xf32>
    %cst_66 = arith.constant dense<0.000000e+00> : vector<8xf32>
    %152 = vector.multi_reduction <add>, %151, %cst_66 [1] : vector<8x8xf32> to vector<8xf32>
    %153 = vector.shape_cast %152 : vector<8xf32> to vector<8x1xf32>
    %154 = vector.broadcast %153 : vector<8x1xf32> to vector<8x8xf32>
    %155 = arith.divf %151, %154 : vector<8x8xf32>
    %156 = vector.extract_strided_slice %133 {offsets = [0, 0], sizes = [8, 8], strides = [1, 1]} : vector<8x32xf32> to vector<8x8xf32>
    %cst_67 = arith.constant dense<0.000000e+00> : vector<8x8xf32>
    %157 = tpu.matmul %155, %156, %cst_67 {dimension_numbers = #tpu.dot_dimension_numbers<[1], [0], [0], [1], [0, 0, 1, 1], [], []>} : vector<8x8xf32>, vector<8x8xf32>, vector<8x8xf32> -> vector<8x8xf32>
    %158 = vector.extract_strided_slice %11 {offsets = [0, 0], sizes = [8, 32], strides = [1, 1]} : vector<32x32xf32> to vector<8x32xf32>
    %cst_68 = arith.constant dense<0.000000e+00> : vector<8x32xf32>
    %159 = tpu.matmul %157, %158, %cst_68 {dimension_numbers = #tpu.dot_dimension_numbers<[1], [0], [0], [1], [0, 0, 1, 1], [], []>} : vector<8x8xf32>, vector<8x32xf32>, vector<8x32xf32> -> vector<8x32xf32>
    %160 = arith.addf %134, %159 : vector<8x32xf32>
    %161 = vector.extract_strided_slice %131 {offsets = [0, 8], sizes = [8, 8], strides = [1, 1]} : vector<8x32xf32> to vector<8x8xf32>
    %162 = vector.extract_strided_slice %132 {offsets = [0, 8], sizes = [8, 8], strides = [1, 1]} : vector<8x32xf32> to vector<8x8xf32>
    %cst_69 = arith.constant dense<0.000000e+00> : vector<8x8xf32>
    %163 = tpu.matmul %161, %162, %cst_69 {dimension_numbers = #tpu.dot_dimension_numbers<[1], [1], [0], [0], [0, 0, 1, 0], [], []>} : vector<8x8xf32>, vector<8x8xf32>, vector<8x8xf32> -> vector<8x8xf32>
    %cst_70 = arith.constant -1.000000e+04 : f32
    %cst_71 = arith.constant 1.000000e+04 : f32
    %164 = vector.broadcast %cst_70 : f32 to vector<8x8xf32>
    %165 = arith.maximumf %164, %163 : vector<8x8xf32>
    %166 = vector.broadcast %cst_71 : f32 to vector<8x8xf32>
    %167 = arith.minimumf %166, %165 : vector<8x8xf32>
    %168 = arith.mulf %167, %0 : vector<8x8xf32>
    %cst_72 = arith.constant -1.000000e+04 : f32
    %cst_73 = arith.constant 1.000000e+04 : f32
    %169 = vector.broadcast %cst_72 : f32 to vector<8x8xf32>
    %170 = arith.maximumf %169, %168 : vector<8x8xf32>
    %171 = vector.broadcast %cst_73 : f32 to vector<8x8xf32>
    %172 = arith.minimumf %171, %170 : vector<8x8xf32>
    %cst_74 = arith.constant dense<0xFF800000> : vector<8xf32>
    %173 = vector.multi_reduction <maximumf>, %172, %cst_74 [1] : vector<8x8xf32> to vector<8xf32>
    %174 = vector.shape_cast %173 : vector<8xf32> to vector<8x1xf32>
    %175 = vector.broadcast %174 : vector<8x1xf32> to vector<8x8xf32>
    %176 = arith.subf %172, %175 : vector<8x8xf32>
    %177 = math.exp %176 : vector<8x8xf32>
    %cst_75 = arith.constant dense<0.000000e+00> : vector<8xf32>
    %178 = vector.multi_reduction <add>, %177, %cst_75 [1] : vector<8x8xf32> to vector<8xf32>
    %179 = vector.shape_cast %178 : vector<8xf32> to vector<8x1xf32>
    %180 = vector.broadcast %179 : vector<8x1xf32> to vector<8x8xf32>
    %181 = arith.divf %177, %180 : vector<8x8xf32>
    %182 = vector.extract_strided_slice %133 {offsets = [0, 8], sizes = [8, 8], strides = [1, 1]} : vector<8x32xf32> to vector<8x8xf32>
    %cst_76 = arith.constant dense<0.000000e+00> : vector<8x8xf32>
    %183 = tpu.matmul %181, %182, %cst_76 {dimension_numbers = #tpu.dot_dimension_numbers<[1], [0], [0], [1], [0, 0, 1, 1], [], []>} : vector<8x8xf32>, vector<8x8xf32>, vector<8x8xf32> -> vector<8x8xf32>
    %184 = vector.extract_strided_slice %11 {offsets = [8, 0], sizes = [8, 32], strides = [1, 1]} : vector<32x32xf32> to vector<8x32xf32>
    %cst_77 = arith.constant dense<0.000000e+00> : vector<8x32xf32>
    %185 = tpu.matmul %183, %184, %cst_77 {dimension_numbers = #tpu.dot_dimension_numbers<[1], [0], [0], [1], [0, 0, 1, 1], [], []>} : vector<8x8xf32>, vector<8x32xf32>, vector<8x32xf32> -> vector<8x32xf32>
    %186 = arith.addf %160, %185 : vector<8x32xf32>
    %187 = vector.extract_strided_slice %131 {offsets = [0, 16], sizes = [8, 8], strides = [1, 1]} : vector<8x32xf32> to vector<8x8xf32>
    %188 = vector.extract_strided_slice %132 {offsets = [0, 16], sizes = [8, 8], strides = [1, 1]} : vector<8x32xf32> to vector<8x8xf32>
    %cst_78 = arith.constant dense<0.000000e+00> : vector<8x8xf32>
    %189 = tpu.matmul %187, %188, %cst_78 {dimension_numbers = #tpu.dot_dimension_numbers<[1], [1], [0], [0], [0, 0, 1, 0], [], []>} : vector<8x8xf32>, vector<8x8xf32>, vector<8x8xf32> -> vector<8x8xf32>
    %cst_79 = arith.constant -1.000000e+04 : f32
    %cst_80 = arith.constant 1.000000e+04 : f32
    %190 = vector.broadcast %cst_79 : f32 to vector<8x8xf32>
    %191 = arith.maximumf %190, %189 : vector<8x8xf32>
    %192 = vector.broadcast %cst_80 : f32 to vector<8x8xf32>
    %193 = arith.minimumf %192, %191 : vector<8x8xf32>
    %194 = arith.mulf %193, %0 : vector<8x8xf32>
    %cst_81 = arith.constant -1.000000e+04 : f32
    %cst_82 = arith.constant 1.000000e+04 : f32
    %195 = vector.broadcast %cst_81 : f32 to vector<8x8xf32>
    %196 = arith.maximumf %195, %194 : vector<8x8xf32>
    %197 = vector.broadcast %cst_82 : f32 to vector<8x8xf32>
    %198 = arith.minimumf %197, %196 : vector<8x8xf32>
    %cst_83 = arith.constant dense<0xFF800000> : vector<8xf32>
    %199 = vector.multi_reduction <maximumf>, %198, %cst_83 [1] : vector<8x8xf32> to vector<8xf32>
    %200 = vector.shape_cast %199 : vector<8xf32> to vector<8x1xf32>
    %201 = vector.broadcast %200 : vector<8x1xf32> to vector<8x8xf32>
    %202 = arith.subf %198, %201 : vector<8x8xf32>
    %203 = math.exp %202 : vector<8x8xf32>
    %cst_84 = arith.constant dense<0.000000e+00> : vector<8xf32>
    %204 = vector.multi_reduction <add>, %203, %cst_84 [1] : vector<8x8xf32> to vector<8xf32>
    %205 = vector.shape_cast %204 : vector<8xf32> to vector<8x1xf32>
    %206 = vector.broadcast %205 : vector<8x1xf32> to vector<8x8xf32>
    %207 = arith.divf %203, %206 : vector<8x8xf32>
    %208 = vector.extract_strided_slice %133 {offsets = [0, 16], sizes = [8, 8], strides = [1, 1]} : vector<8x32xf32> to vector<8x8xf32>
    %cst_85 = arith.constant dense<0.000000e+00> : vector<8x8xf32>
    %209 = tpu.matmul %207, %208, %cst_85 {dimension_numbers = #tpu.dot_dimension_numbers<[1], [0], [0], [1], [0, 0, 1, 1], [], []>} : vector<8x8xf32>, vector<8x8xf32>, vector<8x8xf32> -> vector<8x8xf32>
    %210 = vector.extract_strided_slice %11 {offsets = [16, 0], sizes = [8, 32], strides = [1, 1]} : vector<32x32xf32> to vector<8x32xf32>
    %cst_86 = arith.constant dense<0.000000e+00> : vector<8x32xf32>
    %211 = tpu.matmul %209, %210, %cst_86 {dimension_numbers = #tpu.dot_dimension_numbers<[1], [0], [0], [1], [0, 0, 1, 1], [], []>} : vector<8x8xf32>, vector<8x32xf32>, vector<8x32xf32> -> vector<8x32xf32>
    %212 = arith.addf %186, %211 : vector<8x32xf32>
    %213 = vector.extract_strided_slice %131 {offsets = [0, 24], sizes = [8, 8], strides = [1, 1]} : vector<8x32xf32> to vector<8x8xf32>
    %214 = vector.extract_strided_slice %132 {offsets = [0, 24], sizes = [8, 8], strides = [1, 1]} : vector<8x32xf32> to vector<8x8xf32>
    %cst_87 = arith.constant dense<0.000000e+00> : vector<8x8xf32>
    %215 = tpu.matmul %213, %214, %cst_87 {dimension_numbers = #tpu.dot_dimension_numbers<[1], [1], [0], [0], [0, 0, 1, 0], [], []>} : vector<8x8xf32>, vector<8x8xf32>, vector<8x8xf32> -> vector<8x8xf32>
    %cst_88 = arith.constant -1.000000e+04 : f32
    %cst_89 = arith.constant 1.000000e+04 : f32
    %216 = vector.broadcast %cst_88 : f32 to vector<8x8xf32>
    %217 = arith.maximumf %216, %215 : vector<8x8xf32>
    %218 = vector.broadcast %cst_89 : f32 to vector<8x8xf32>
    %219 = arith.minimumf %218, %217 : vector<8x8xf32>
    %220 = arith.mulf %219, %0 : vector<8x8xf32>
    %cst_90 = arith.constant -1.000000e+04 : f32
    %cst_91 = arith.constant 1.000000e+04 : f32
    %221 = vector.broadcast %cst_90 : f32 to vector<8x8xf32>
    %222 = arith.maximumf %221, %220 : vector<8x8xf32>
    %223 = vector.broadcast %cst_91 : f32 to vector<8x8xf32>
    %224 = arith.minimumf %223, %222 : vector<8x8xf32>
    %cst_92 = arith.constant dense<0xFF800000> : vector<8xf32>
    %225 = vector.multi_reduction <maximumf>, %224, %cst_92 [1] : vector<8x8xf32> to vector<8xf32>
    %226 = vector.shape_cast %225 : vector<8xf32> to vector<8x1xf32>
    %227 = vector.broadcast %226 : vector<8x1xf32> to vector<8x8xf32>
    %228 = arith.subf %224, %227 : vector<8x8xf32>
    %229 = math.exp %228 : vector<8x8xf32>
    %cst_93 = arith.constant dense<0.000000e+00> : vector<8xf32>
    %230 = vector.multi_reduction <add>, %229, %cst_93 [1] : vector<8x8xf32> to vector<8xf32>
    %231 = vector.shape_cast %230 : vector<8xf32> to vector<8x1xf32>
    %232 = vector.broadcast %231 : vector<8x1xf32> to vector<8x8xf32>
    %233 = arith.divf %229, %232 : vector<8x8xf32>
    %234 = vector.extract_strided_slice %133 {offsets = [0, 24], sizes = [8, 8], strides = [1, 1]} : vector<8x32xf32> to vector<8x8xf32>
    %cst_94 = arith.constant dense<0.000000e+00> : vector<8x8xf32>
    %235 = tpu.matmul %233, %234, %cst_94 {dimension_numbers = #tpu.dot_dimension_numbers<[1], [0], [0], [1], [0, 0, 1, 1], [], []>} : vector<8x8xf32>, vector<8x8xf32>, vector<8x8xf32> -> vector<8x8xf32>
    %236 = vector.extract_strided_slice %11 {offsets = [24, 0], sizes = [8, 32], strides = [1, 1]} : vector<32x32xf32> to vector<8x32xf32>
    %cst_95 = arith.constant dense<0.000000e+00> : vector<8x32xf32>
    %237 = tpu.matmul %235, %236, %cst_95 {dimension_numbers = #tpu.dot_dimension_numbers<[1], [0], [0], [1], [0, 0, 1, 1], [], []>} : vector<8x8xf32>, vector<8x32xf32>, vector<8x32xf32> -> vector<8x32xf32>
    %238 = arith.addf %212, %237 : vector<8x32xf32>
    %239 = tpu.concatenate %130, %238 in 0 : vector<8x32xf32>, vector<8x32xf32> -> vector<16x32xf32>
    %240 = arith.addf %3, %239 : vector<16x32xf32>
    %c0_96 = arith.constant 0 : index
    %c0_97 = arith.constant 0 : index
    %c0_98 = arith.constant 0 : index
    %241 = vector.load %arg9[%c0_96, %c0_97, %c0_98] : memref<2x1x32xf32, #tpu.memory_space<vmem>>, vector<1x1x32xf32>
    %242 = vector.shape_cast %241 : vector<1x1x32xf32> to vector<1x32xf32>
    %c0_99 = arith.constant 0 : index
    %c0_100 = arith.constant 0 : index
    %c0_101 = arith.constant 0 : index
    %243 = vector.load %arg10[%c0_99, %c0_100, %c0_101] : memref<2x1x32xf32, #tpu.memory_space<vmem>>, vector<1x1x32xf32>
    %244 = vector.shape_cast %243 : vector<1x1x32xf32> to vector<1x32xf32>
    %cst_102 = arith.constant dense<0.000000e+00> : vector<16xf32>
    %245 = vector.multi_reduction <add>, %240, %cst_102 [1] : vector<16x32xf32> to vector<16xf32>
    %246 = vector.shape_cast %245 : vector<16xf32> to vector<16x1xf32>
    %cst_103 = arith.constant 3.200000e+01 : f32
    %247 = vector.broadcast %cst_103 : f32 to vector<16x1xf32>
    %248 = arith.divf %246, %247 : vector<16x1xf32>
    %249 = vector.broadcast %248 : vector<16x1xf32> to vector<16x32xf32>
    %250 = arith.subf %240, %249 : vector<16x32xf32>
    %251 = arith.mulf %250, %250 : vector<16x32xf32>
    %cst_104 = arith.constant dense<0.000000e+00> : vector<16xf32>
    %252 = vector.multi_reduction <add>, %251, %cst_104 [1] : vector<16x32xf32> to vector<16xf32>
    %253 = vector.shape_cast %252 : vector<16xf32> to vector<16x1xf32>
    %cst_105 = arith.constant 3.200000e+01 : f32
    %254 = vector.broadcast %cst_105 : f32 to vector<16x1xf32>
    %255 = arith.divf %253, %254 : vector<16x1xf32>
    %256 = vector.broadcast %248 : vector<16x1xf32> to vector<16x32xf32>
    %257 = arith.subf %240, %256 : vector<16x32xf32>
    %cst_106 = arith.constant 9.99999974E-6 : f32
    %258 = vector.broadcast %cst_106 : f32 to vector<16x1xf32>
    %259 = arith.addf %255, %258 : vector<16x1xf32>
    %260 = math.rsqrt %259 : vector<16x1xf32>
    %261 = vector.broadcast %260 : vector<16x1xf32> to vector<16x32xf32>
    %262 = arith.mulf %257, %261 : vector<16x32xf32>
    %263 = vector.broadcast %242 : vector<1x32xf32> to vector<16x32xf32>
    %264 = arith.mulf %262, %263 : vector<16x32xf32>
    %265 = vector.broadcast %244 : vector<1x32xf32> to vector<16x32xf32>
    %266 = arith.addf %264, %265 : vector<16x32xf32>
    %c0_107 = arith.constant 0 : index
    %c0_108 = arith.constant 0 : index
    %c0_109 = arith.constant 0 : index
    %267 = vector.load %arg11[%c0_107, %c0_108, %c0_109] : memref<2x32x128xf32, #tpu.memory_space<vmem>>, vector<1x32x128xf32>
    %268 = vector.shape_cast %267 : vector<1x32x128xf32> to vector<32x128xf32>
    %c0_110 = arith.constant 0 : index
    %c0_111 = arith.constant 0 : index
    %c0_112 = arith.constant 0 : index
    %269 = vector.load %arg12[%c0_110, %c0_111, %c0_112] : memref<2x1x128xf32, #tpu.memory_space<vmem>>, vector<1x1x128xf32>
    %270 = vector.shape_cast %269 : vector<1x1x128xf32> to vector<1x128xf32>
    %c0_113 = arith.constant 0 : index
    %c0_114 = arith.constant 0 : index
    %c0_115 = arith.constant 0 : index
    %271 = vector.load %arg13[%c0_113, %c0_114, %c0_115] : memref<2x128x32xf32, #tpu.memory_space<vmem>>, vector<1x128x32xf32>
    %272 = vector.shape_cast %271 : vector<1x128x32xf32> to vector<128x32xf32>
    %c0_116 = arith.constant 0 : index
    %c0_117 = arith.constant 0 : index
    %c0_118 = arith.constant 0 : index
    %273 = vector.load %arg14[%c0_116, %c0_117, %c0_118] : memref<2x1x32xf32, #tpu.memory_space<vmem>>, vector<1x1x32xf32>
    %274 = vector.shape_cast %273 : vector<1x1x32xf32> to vector<1x32xf32>
    %cst_119 = arith.constant dense<0.000000e+00> : vector<16x128xf32>
    %275 = tpu.matmul %266, %268, %cst_119 {dimension_numbers = #tpu.dot_dimension_numbers<[1], [0], [0], [1], [0, 0, 1, 1], [], []>} : vector<16x32xf32>, vector<32x128xf32>, vector<16x128xf32> -> vector<16x128xf32>
    %276 = vector.broadcast %270 : vector<1x128xf32> to vector<16x128xf32>
    %277 = arith.addf %275, %276 : vector<16x128xf32>
    %cst_120 = arith.constant 0.000000e+00 : f32
    %278 = vector.broadcast %cst_120 : f32 to vector<16x128xf32>
    %279 = arith.maximumf %277, %278 : vector<16x128xf32>
    %cst_121 = arith.constant dense<0.000000e+00> : vector<16x32xf32>
    %280 = tpu.matmul %279, %272, %cst_121 {dimension_numbers = #tpu.dot_dimension_numbers<[1], [0], [0], [1], [0, 0, 1, 1], [], []>} : vector<16x128xf32>, vector<128x32xf32>, vector<16x32xf32> -> vector<16x32xf32>
    %281 = vector.broadcast %274 : vector<1x32xf32> to vector<16x32xf32>
    %282 = arith.addf %280, %281 : vector<16x32xf32>
    %cst_122 = arith.constant -5.000000e+00 : f32
    %cst_123 = arith.constant 5.000000e+00 : f32
    %283 = vector.broadcast %cst_122 : f32 to vector<16x32xf32>
    %284 = arith.maximumf %283, %282 : vector<16x32xf32>
    %285 = vector.broadcast %cst_123 : f32 to vector<16x32xf32>
    %286 = arith.minimumf %285, %284 : vector<16x32xf32>
    %287 = arith.addf %266, %286 : vector<16x32xf32>
    %c0_124 = arith.constant 0 : index
    %c0_125 = arith.constant 0 : index
    %c0_126 = arith.constant 0 : index
    %288 = vector.load %arg15[%c0_124, %c0_125, %c0_126] : memref<2x1x32xf32, #tpu.memory_space<vmem>>, vector<1x1x32xf32>
    %289 = vector.shape_cast %288 : vector<1x1x32xf32> to vector<1x32xf32>
    %c0_127 = arith.constant 0 : index
    %c0_128 = arith.constant 0 : index
    %c0_129 = arith.constant 0 : index
    %290 = vector.load %arg16[%c0_127, %c0_128, %c0_129] : memref<2x1x32xf32, #tpu.memory_space<vmem>>, vector<1x1x32xf32>
    %291 = vector.shape_cast %290 : vector<1x1x32xf32> to vector<1x32xf32>
    %cst_130 = arith.constant dense<0.000000e+00> : vector<16xf32>
    %292 = vector.multi_reduction <add>, %287, %cst_130 [1] : vector<16x32xf32> to vector<16xf32>
    %293 = vector.shape_cast %292 : vector<16xf32> to vector<16x1xf32>
    %cst_131 = arith.constant 3.200000e+01 : f32
    %294 = vector.broadcast %cst_131 : f32 to vector<16x1xf32>
    %295 = arith.divf %293, %294 : vector<16x1xf32>
    %296 = vector.broadcast %295 : vector<16x1xf32> to vector<16x32xf32>
    %297 = arith.subf %287, %296 : vector<16x32xf32>
    %298 = arith.mulf %297, %297 : vector<16x32xf32>
    %cst_132 = arith.constant dense<0.000000e+00> : vector<16xf32>
    %299 = vector.multi_reduction <add>, %298, %cst_132 [1] : vector<16x32xf32> to vector<16xf32>
    %300 = vector.shape_cast %299 : vector<16xf32> to vector<16x1xf32>
    %cst_133 = arith.constant 3.200000e+01 : f32
    %301 = vector.broadcast %cst_133 : f32 to vector<16x1xf32>
    %302 = arith.divf %300, %301 : vector<16x1xf32>
    %303 = vector.broadcast %295 : vector<16x1xf32> to vector<16x32xf32>
    %304 = arith.subf %287, %303 : vector<16x32xf32>
    %cst_134 = arith.constant 9.99999974E-6 : f32
    %305 = vector.broadcast %cst_134 : f32 to vector<16x1xf32>
    %306 = arith.addf %302, %305 : vector<16x1xf32>
    %307 = math.rsqrt %306 : vector<16x1xf32>
    %308 = vector.broadcast %307 : vector<16x1xf32> to vector<16x32xf32>
    %309 = arith.mulf %304, %308 : vector<16x32xf32>
    %310 = vector.broadcast %289 : vector<1x32xf32> to vector<16x32xf32>
    %311 = arith.mulf %309, %310 : vector<16x32xf32>
    %312 = vector.broadcast %291 : vector<1x32xf32> to vector<16x32xf32>
    %313 = arith.addf %311, %312 : vector<16x32xf32>
    %c1 = arith.constant 1 : index
    %c0_135 = arith.constant 0 : index
    %c0_136 = arith.constant 0 : index
    %314 = vector.load %arg5[%c1, %c0_135, %c0_136] : memref<2x32x96xf32, #tpu.memory_space<vmem>>, vector<1x32x96xf32>
    %315 = vector.shape_cast %314 : vector<1x32x96xf32> to vector<32x96xf32>
    %c1_137 = arith.constant 1 : index
    %c0_138 = arith.constant 0 : index
    %c0_139 = arith.constant 0 : index
    %316 = vector.load %arg6[%c1_137, %c0_138, %c0_139] : memref<2x32x8xf32, #tpu.memory_space<vmem>>, vector<1x32x8xf32>
    %317 = vector.shape_cast %316 : vector<1x32x8xf32> to vector<32x8xf32>
    %c1_140 = arith.constant 1 : index
    %c0_141 = arith.constant 0 : index
    %c0_142 = arith.constant 0 : index
    %318 = vector.load %arg7[%c1_140, %c0_141, %c0_142] : memref<2x8x64xf32, #tpu.memory_space<vmem>>, vector<1x8x64xf32>
    %319 = vector.shape_cast %318 : vector<1x8x64xf32> to vector<8x64xf32>
    %c1_143 = arith.constant 1 : index
    %c0_144 = arith.constant 0 : index
    %c0_145 = arith.constant 0 : index
    %320 = vector.load %arg8[%c1_143, %c0_144, %c0_145] : memref<2x32x32xf32, #tpu.memory_space<vmem>>, vector<1x32x32xf32>
    %321 = vector.shape_cast %320 : vector<1x32x32xf32> to vector<32x32xf32>
    %cst_146 = arith.constant dense<0.000000e+00> : vector<16x96xf32>
    %322 = tpu.matmul %313, %315, %cst_146 {dimension_numbers = #tpu.dot_dimension_numbers<[1], [0], [0], [1], [0, 0, 1, 1], [], []>} : vector<16x32xf32>, vector<32x96xf32>, vector<16x96xf32> -> vector<16x96xf32>
    %323 = vector.extract_strided_slice %322 {offsets = [0, 0], sizes = [16, 32], strides = [1, 1]} : vector<16x96xf32> to vector<16x32xf32>
    %324 = vector.extract_strided_slice %322 {offsets = [0, 32], sizes = [16, 32], strides = [1, 1]} : vector<16x96xf32> to vector<16x32xf32>
    %325 = vector.extract_strided_slice %322 {offsets = [0, 64], sizes = [16, 32], strides = [1, 1]} : vector<16x96xf32> to vector<16x32xf32>
    %326 = arith.addf %324, %325 : vector<16x32xf32>
    %cst_147 = arith.constant dense<0.000000e+00> : vector<16x8xf32>
    %327 = tpu.matmul %326, %317, %cst_147 {dimension_numbers = #tpu.dot_dimension_numbers<[1], [0], [0], [1], [0, 0, 1, 1], [], []>} : vector<16x32xf32>, vector<32x8xf32>, vector<16x8xf32> -> vector<16x8xf32>
    %cst_148 = arith.constant dense<0.000000e+00> : vector<16x64xf32>
    %328 = tpu.matmul %327, %319, %cst_148 {dimension_numbers = #tpu.dot_dimension_numbers<[1], [0], [0], [1], [0, 0, 1, 1], [], []>} : vector<16x8xf32>, vector<8x64xf32>, vector<16x64xf32> -> vector<16x64xf32>
    %329 = vector.extract_strided_slice %328 {offsets = [0, 0], sizes = [16, 32], strides = [1, 1]} : vector<16x64xf32> to vector<16x32xf32>
    %330 = vector.extract_strided_slice %328 {offsets = [0, 32], sizes = [16, 32], strides = [1, 1]} : vector<16x64xf32> to vector<16x32xf32>
    %cst_149 = arith.constant 0.176776692 : f32
    %331 = vector.broadcast %cst_149 : f32 to vector<16x32xf32>
    %332 = arith.mulf %323, %331 : vector<16x32xf32>
    %333 = vector.extract_strided_slice %332 {offsets = [0, 0], sizes = [8, 32], strides = [1, 1]} : vector<16x32xf32> to vector<8x32xf32>
    %334 = vector.extract_strided_slice %329 {offsets = [0, 0], sizes = [8, 32], strides = [1, 1]} : vector<16x32xf32> to vector<8x32xf32>
    %335 = vector.extract_strided_slice %330 {offsets = [0, 0], sizes = [8, 32], strides = [1, 1]} : vector<16x32xf32> to vector<8x32xf32>
    %cst_150 = arith.constant 0.000000e+00 : f32
    %336 = vector.broadcast %cst_150 : f32 to vector<8x32xf32>
    %337 = vector.extract_strided_slice %333 {offsets = [0, 0], sizes = [8, 8], strides = [1, 1]} : vector<8x32xf32> to vector<8x8xf32>
    %338 = vector.extract_strided_slice %334 {offsets = [0, 0], sizes = [8, 8], strides = [1, 1]} : vector<8x32xf32> to vector<8x8xf32>
    %cst_151 = arith.constant dense<0.000000e+00> : vector<8x8xf32>
    %339 = tpu.matmul %337, %338, %cst_151 {dimension_numbers = #tpu.dot_dimension_numbers<[1], [1], [0], [0], [0, 0, 1, 0], [], []>} : vector<8x8xf32>, vector<8x8xf32>, vector<8x8xf32> -> vector<8x8xf32>
    %cst_152 = arith.constant -1.000000e+04 : f32
    %cst_153 = arith.constant 1.000000e+04 : f32
    %340 = vector.broadcast %cst_152 : f32 to vector<8x8xf32>
    %341 = arith.maximumf %340, %339 : vector<8x8xf32>
    %342 = vector.broadcast %cst_153 : f32 to vector<8x8xf32>
    %343 = arith.minimumf %342, %341 : vector<8x8xf32>
    %344 = arith.mulf %343, %0 : vector<8x8xf32>
    %cst_154 = arith.constant -1.000000e+04 : f32
    %cst_155 = arith.constant 1.000000e+04 : f32
    %345 = vector.broadcast %cst_154 : f32 to vector<8x8xf32>
    %346 = arith.maximumf %345, %344 : vector<8x8xf32>
    %347 = vector.broadcast %cst_155 : f32 to vector<8x8xf32>
    %348 = arith.minimumf %347, %346 : vector<8x8xf32>
    %cst_156 = arith.constant dense<0xFF800000> : vector<8xf32>
    %349 = vector.multi_reduction <maximumf>, %348, %cst_156 [1] : vector<8x8xf32> to vector<8xf32>
    %350 = vector.shape_cast %349 : vector<8xf32> to vector<8x1xf32>
    %351 = vector.broadcast %350 : vector<8x1xf32> to vector<8x8xf32>
    %352 = arith.subf %348, %351 : vector<8x8xf32>
    %353 = math.exp %352 : vector<8x8xf32>
    %cst_157 = arith.constant dense<0.000000e+00> : vector<8xf32>
    %354 = vector.multi_reduction <add>, %353, %cst_157 [1] : vector<8x8xf32> to vector<8xf32>
    %355 = vector.shape_cast %354 : vector<8xf32> to vector<8x1xf32>
    %356 = vector.broadcast %355 : vector<8x1xf32> to vector<8x8xf32>
    %357 = arith.divf %353, %356 : vector<8x8xf32>
    %358 = vector.extract_strided_slice %335 {offsets = [0, 0], sizes = [8, 8], strides = [1, 1]} : vector<8x32xf32> to vector<8x8xf32>
    %cst_158 = arith.constant dense<0.000000e+00> : vector<8x8xf32>
    %359 = tpu.matmul %357, %358, %cst_158 {dimension_numbers = #tpu.dot_dimension_numbers<[1], [0], [0], [1], [0, 0, 1, 1], [], []>} : vector<8x8xf32>, vector<8x8xf32>, vector<8x8xf32> -> vector<8x8xf32>
    %360 = vector.extract_strided_slice %321 {offsets = [0, 0], sizes = [8, 32], strides = [1, 1]} : vector<32x32xf32> to vector<8x32xf32>
    %cst_159 = arith.constant dense<0.000000e+00> : vector<8x32xf32>
    %361 = tpu.matmul %359, %360, %cst_159 {dimension_numbers = #tpu.dot_dimension_numbers<[1], [0], [0], [1], [0, 0, 1, 1], [], []>} : vector<8x8xf32>, vector<8x32xf32>, vector<8x32xf32> -> vector<8x32xf32>
    %362 = arith.addf %336, %361 : vector<8x32xf32>
    %363 = vector.extract_strided_slice %333 {offsets = [0, 8], sizes = [8, 8], strides = [1, 1]} : vector<8x32xf32> to vector<8x8xf32>
    %364 = vector.extract_strided_slice %334 {offsets = [0, 8], sizes = [8, 8], strides = [1, 1]} : vector<8x32xf32> to vector<8x8xf32>
    %cst_160 = arith.constant dense<0.000000e+00> : vector<8x8xf32>
    %365 = tpu.matmul %363, %364, %cst_160 {dimension_numbers = #tpu.dot_dimension_numbers<[1], [1], [0], [0], [0, 0, 1, 0], [], []>} : vector<8x8xf32>, vector<8x8xf32>, vector<8x8xf32> -> vector<8x8xf32>
    %cst_161 = arith.constant -1.000000e+04 : f32
    %cst_162 = arith.constant 1.000000e+04 : f32
    %366 = vector.broadcast %cst_161 : f32 to vector<8x8xf32>
    %367 = arith.maximumf %366, %365 : vector<8x8xf32>
    %368 = vector.broadcast %cst_162 : f32 to vector<8x8xf32>
    %369 = arith.minimumf %368, %367 : vector<8x8xf32>
    %370 = arith.mulf %369, %0 : vector<8x8xf32>
    %cst_163 = arith.constant -1.000000e+04 : f32
    %cst_164 = arith.constant 1.000000e+04 : f32
    %371 = vector.broadcast %cst_163 : f32 to vector<8x8xf32>
    %372 = arith.maximumf %371, %370 : vector<8x8xf32>
    %373 = vector.broadcast %cst_164 : f32 to vector<8x8xf32>
    %374 = arith.minimumf %373, %372 : vector<8x8xf32>
    %cst_165 = arith.constant dense<0xFF800000> : vector<8xf32>
    %375 = vector.multi_reduction <maximumf>, %374, %cst_165 [1] : vector<8x8xf32> to vector<8xf32>
    %376 = vector.shape_cast %375 : vector<8xf32> to vector<8x1xf32>
    %377 = vector.broadcast %376 : vector<8x1xf32> to vector<8x8xf32>
    %378 = arith.subf %374, %377 : vector<8x8xf32>
    %379 = math.exp %378 : vector<8x8xf32>
    %cst_166 = arith.constant dense<0.000000e+00> : vector<8xf32>
    %380 = vector.multi_reduction <add>, %379, %cst_166 [1] : vector<8x8xf32> to vector<8xf32>
    %381 = vector.shape_cast %380 : vector<8xf32> to vector<8x1xf32>
    %382 = vector.broadcast %381 : vector<8x1xf32> to vector<8x8xf32>
    %383 = arith.divf %379, %382 : vector<8x8xf32>
    %384 = vector.extract_strided_slice %335 {offsets = [0, 8], sizes = [8, 8], strides = [1, 1]} : vector<8x32xf32> to vector<8x8xf32>
    %cst_167 = arith.constant dense<0.000000e+00> : vector<8x8xf32>
    %385 = tpu.matmul %383, %384, %cst_167 {dimension_numbers = #tpu.dot_dimension_numbers<[1], [0], [0], [1], [0, 0, 1, 1], [], []>} : vector<8x8xf32>, vector<8x8xf32>, vector<8x8xf32> -> vector<8x8xf32>
    %386 = vector.extract_strided_slice %321 {offsets = [8, 0], sizes = [8, 32], strides = [1, 1]} : vector<32x32xf32> to vector<8x32xf32>
    %cst_168 = arith.constant dense<0.000000e+00> : vector<8x32xf32>
    %387 = tpu.matmul %385, %386, %cst_168 {dimension_numbers = #tpu.dot_dimension_numbers<[1], [0], [0], [1], [0, 0, 1, 1], [], []>} : vector<8x8xf32>, vector<8x32xf32>, vector<8x32xf32> -> vector<8x32xf32>
    %388 = arith.addf %362, %387 : vector<8x32xf32>
    %389 = vector.extract_strided_slice %333 {offsets = [0, 16], sizes = [8, 8], strides = [1, 1]} : vector<8x32xf32> to vector<8x8xf32>
    %390 = vector.extract_strided_slice %334 {offsets = [0, 16], sizes = [8, 8], strides = [1, 1]} : vector<8x32xf32> to vector<8x8xf32>
    %cst_169 = arith.constant dense<0.000000e+00> : vector<8x8xf32>
    %391 = tpu.matmul %389, %390, %cst_169 {dimension_numbers = #tpu.dot_dimension_numbers<[1], [1], [0], [0], [0, 0, 1, 0], [], []>} : vector<8x8xf32>, vector<8x8xf32>, vector<8x8xf32> -> vector<8x8xf32>
    %cst_170 = arith.constant -1.000000e+04 : f32
    %cst_171 = arith.constant 1.000000e+04 : f32
    %392 = vector.broadcast %cst_170 : f32 to vector<8x8xf32>
    %393 = arith.maximumf %392, %391 : vector<8x8xf32>
    %394 = vector.broadcast %cst_171 : f32 to vector<8x8xf32>
    %395 = arith.minimumf %394, %393 : vector<8x8xf32>
    %396 = arith.mulf %395, %0 : vector<8x8xf32>
    %cst_172 = arith.constant -1.000000e+04 : f32
    %cst_173 = arith.constant 1.000000e+04 : f32
    %397 = vector.broadcast %cst_172 : f32 to vector<8x8xf32>
    %398 = arith.maximumf %397, %396 : vector<8x8xf32>
    %399 = vector.broadcast %cst_173 : f32 to vector<8x8xf32>
    %400 = arith.minimumf %399, %398 : vector<8x8xf32>
    %cst_174 = arith.constant dense<0xFF800000> : vector<8xf32>
    %401 = vector.multi_reduction <maximumf>, %400, %cst_174 [1] : vector<8x8xf32> to vector<8xf32>
    %402 = vector.shape_cast %401 : vector<8xf32> to vector<8x1xf32>
    %403 = vector.broadcast %402 : vector<8x1xf32> to vector<8x8xf32>
    %404 = arith.subf %400, %403 : vector<8x8xf32>
    %405 = math.exp %404 : vector<8x8xf32>
    %cst_175 = arith.constant dense<0.000000e+00> : vector<8xf32>
    %406 = vector.multi_reduction <add>, %405, %cst_175 [1] : vector<8x8xf32> to vector<8xf32>
    %407 = vector.shape_cast %406 : vector<8xf32> to vector<8x1xf32>
    %408 = vector.broadcast %407 : vector<8x1xf32> to vector<8x8xf32>
    %409 = arith.divf %405, %408 : vector<8x8xf32>
    %410 = vector.extract_strided_slice %335 {offsets = [0, 16], sizes = [8, 8], strides = [1, 1]} : vector<8x32xf32> to vector<8x8xf32>
    %cst_176 = arith.constant dense<0.000000e+00> : vector<8x8xf32>
    %411 = tpu.matmul %409, %410, %cst_176 {dimension_numbers = #tpu.dot_dimension_numbers<[1], [0], [0], [1], [0, 0, 1, 1], [], []>} : vector<8x8xf32>, vector<8x8xf32>, vector<8x8xf32> -> vector<8x8xf32>
    %412 = vector.extract_strided_slice %321 {offsets = [16, 0], sizes = [8, 32], strides = [1, 1]} : vector<32x32xf32> to vector<8x32xf32>
    %cst_177 = arith.constant dense<0.000000e+00> : vector<8x32xf32>
    %413 = tpu.matmul %411, %412, %cst_177 {dimension_numbers = #tpu.dot_dimension_numbers<[1], [0], [0], [1], [0, 0, 1, 1], [], []>} : vector<8x8xf32>, vector<8x32xf32>, vector<8x32xf32> -> vector<8x32xf32>
    %414 = arith.addf %388, %413 : vector<8x32xf32>
    %415 = vector.extract_strided_slice %333 {offsets = [0, 24], sizes = [8, 8], strides = [1, 1]} : vector<8x32xf32> to vector<8x8xf32>
    %416 = vector.extract_strided_slice %334 {offsets = [0, 24], sizes = [8, 8], strides = [1, 1]} : vector<8x32xf32> to vector<8x8xf32>
    %cst_178 = arith.constant dense<0.000000e+00> : vector<8x8xf32>
    %417 = tpu.matmul %415, %416, %cst_178 {dimension_numbers = #tpu.dot_dimension_numbers<[1], [1], [0], [0], [0, 0, 1, 0], [], []>} : vector<8x8xf32>, vector<8x8xf32>, vector<8x8xf32> -> vector<8x8xf32>
    %cst_179 = arith.constant -1.000000e+04 : f32
    %cst_180 = arith.constant 1.000000e+04 : f32
    %418 = vector.broadcast %cst_179 : f32 to vector<8x8xf32>
    %419 = arith.maximumf %418, %417 : vector<8x8xf32>
    %420 = vector.broadcast %cst_180 : f32 to vector<8x8xf32>
    %421 = arith.minimumf %420, %419 : vector<8x8xf32>
    %422 = arith.mulf %421, %0 : vector<8x8xf32>
    %cst_181 = arith.constant -1.000000e+04 : f32
    %cst_182 = arith.constant 1.000000e+04 : f32
    %423 = vector.broadcast %cst_181 : f32 to vector<8x8xf32>
    %424 = arith.maximumf %423, %422 : vector<8x8xf32>
    %425 = vector.broadcast %cst_182 : f32 to vector<8x8xf32>
    %426 = arith.minimumf %425, %424 : vector<8x8xf32>
    %cst_183 = arith.constant dense<0xFF800000> : vector<8xf32>
    %427 = vector.multi_reduction <maximumf>, %426, %cst_183 [1] : vector<8x8xf32> to vector<8xf32>
    %428 = vector.shape_cast %427 : vector<8xf32> to vector<8x1xf32>
    %429 = vector.broadcast %428 : vector<8x1xf32> to vector<8x8xf32>
    %430 = arith.subf %426, %429 : vector<8x8xf32>
    %431 = math.exp %430 : vector<8x8xf32>
    %cst_184 = arith.constant dense<0.000000e+00> : vector<8xf32>
    %432 = vector.multi_reduction <add>, %431, %cst_184 [1] : vector<8x8xf32> to vector<8xf32>
    %433 = vector.shape_cast %432 : vector<8xf32> to vector<8x1xf32>
    %434 = vector.broadcast %433 : vector<8x1xf32> to vector<8x8xf32>
    %435 = arith.divf %431, %434 : vector<8x8xf32>
    %436 = vector.extract_strided_slice %335 {offsets = [0, 24], sizes = [8, 8], strides = [1, 1]} : vector<8x32xf32> to vector<8x8xf32>
    %cst_185 = arith.constant dense<0.000000e+00> : vector<8x8xf32>
    %437 = tpu.matmul %435, %436, %cst_185 {dimension_numbers = #tpu.dot_dimension_numbers<[1], [0], [0], [1], [0, 0, 1, 1], [], []>} : vector<8x8xf32>, vector<8x8xf32>, vector<8x8xf32> -> vector<8x8xf32>
    %438 = vector.extract_strided_slice %321 {offsets = [24, 0], sizes = [8, 32], strides = [1, 1]} : vector<32x32xf32> to vector<8x32xf32>
    %cst_186 = arith.constant dense<0.000000e+00> : vector<8x32xf32>
    %439 = tpu.matmul %437, %438, %cst_186 {dimension_numbers = #tpu.dot_dimension_numbers<[1], [0], [0], [1], [0, 0, 1, 1], [], []>} : vector<8x8xf32>, vector<8x32xf32>, vector<8x32xf32> -> vector<8x32xf32>
    %440 = arith.addf %414, %439 : vector<8x32xf32>
    %441 = vector.extract_strided_slice %332 {offsets = [8, 0], sizes = [8, 32], strides = [1, 1]} : vector<16x32xf32> to vector<8x32xf32>
    %442 = vector.extract_strided_slice %329 {offsets = [8, 0], sizes = [8, 32], strides = [1, 1]} : vector<16x32xf32> to vector<8x32xf32>
    %443 = vector.extract_strided_slice %330 {offsets = [8, 0], sizes = [8, 32], strides = [1, 1]} : vector<16x32xf32> to vector<8x32xf32>
    %cst_187 = arith.constant 0.000000e+00 : f32
    %444 = vector.broadcast %cst_187 : f32 to vector<8x32xf32>
    %445 = vector.extract_strided_slice %441 {offsets = [0, 0], sizes = [8, 8], strides = [1, 1]} : vector<8x32xf32> to vector<8x8xf32>
    %446 = vector.extract_strided_slice %442 {offsets = [0, 0], sizes = [8, 8], strides = [1, 1]} : vector<8x32xf32> to vector<8x8xf32>
    %cst_188 = arith.constant dense<0.000000e+00> : vector<8x8xf32>
    %447 = tpu.matmul %445, %446, %cst_188 {dimension_numbers = #tpu.dot_dimension_numbers<[1], [1], [0], [0], [0, 0, 1, 0], [], []>} : vector<8x8xf32>, vector<8x8xf32>, vector<8x8xf32> -> vector<8x8xf32>
    %cst_189 = arith.constant -1.000000e+04 : f32
    %cst_190 = arith.constant 1.000000e+04 : f32
    %448 = vector.broadcast %cst_189 : f32 to vector<8x8xf32>
    %449 = arith.maximumf %448, %447 : vector<8x8xf32>
    %450 = vector.broadcast %cst_190 : f32 to vector<8x8xf32>
    %451 = arith.minimumf %450, %449 : vector<8x8xf32>
    %452 = arith.mulf %451, %0 : vector<8x8xf32>
    %cst_191 = arith.constant -1.000000e+04 : f32
    %cst_192 = arith.constant 1.000000e+04 : f32
    %453 = vector.broadcast %cst_191 : f32 to vector<8x8xf32>
    %454 = arith.maximumf %453, %452 : vector<8x8xf32>
    %455 = vector.broadcast %cst_192 : f32 to vector<8x8xf32>
    %456 = arith.minimumf %455, %454 : vector<8x8xf32>
    %cst_193 = arith.constant dense<0xFF800000> : vector<8xf32>
    %457 = vector.multi_reduction <maximumf>, %456, %cst_193 [1] : vector<8x8xf32> to vector<8xf32>
    %458 = vector.shape_cast %457 : vector<8xf32> to vector<8x1xf32>
    %459 = vector.broadcast %458 : vector<8x1xf32> to vector<8x8xf32>
    %460 = arith.subf %456, %459 : vector<8x8xf32>
    %461 = math.exp %460 : vector<8x8xf32>
    %cst_194 = arith.constant dense<0.000000e+00> : vector<8xf32>
    %462 = vector.multi_reduction <add>, %461, %cst_194 [1] : vector<8x8xf32> to vector<8xf32>
    %463 = vector.shape_cast %462 : vector<8xf32> to vector<8x1xf32>
    %464 = vector.broadcast %463 : vector<8x1xf32> to vector<8x8xf32>
    %465 = arith.divf %461, %464 : vector<8x8xf32>
    %466 = vector.extract_strided_slice %443 {offsets = [0, 0], sizes = [8, 8], strides = [1, 1]} : vector<8x32xf32> to vector<8x8xf32>
    %cst_195 = arith.constant dense<0.000000e+00> : vector<8x8xf32>
    %467 = tpu.matmul %465, %466, %cst_195 {dimension_numbers = #tpu.dot_dimension_numbers<[1], [0], [0], [1], [0, 0, 1, 1], [], []>} : vector<8x8xf32>, vector<8x8xf32>, vector<8x8xf32> -> vector<8x8xf32>
    %468 = vector.extract_strided_slice %321 {offsets = [0, 0], sizes = [8, 32], strides = [1, 1]} : vector<32x32xf32> to vector<8x32xf32>
    %cst_196 = arith.constant dense<0.000000e+00> : vector<8x32xf32>
    %469 = tpu.matmul %467, %468, %cst_196 {dimension_numbers = #tpu.dot_dimension_numbers<[1], [0], [0], [1], [0, 0, 1, 1], [], []>} : vector<8x8xf32>, vector<8x32xf32>, vector<8x32xf32> -> vector<8x32xf32>
    %470 = arith.addf %444, %469 : vector<8x32xf32>
    %471 = vector.extract_strided_slice %441 {offsets = [0, 8], sizes = [8, 8], strides = [1, 1]} : vector<8x32xf32> to vector<8x8xf32>
    %472 = vector.extract_strided_slice %442 {offsets = [0, 8], sizes = [8, 8], strides = [1, 1]} : vector<8x32xf32> to vector<8x8xf32>
    %cst_197 = arith.constant dense<0.000000e+00> : vector<8x8xf32>
    %473 = tpu.matmul %471, %472, %cst_197 {dimension_numbers = #tpu.dot_dimension_numbers<[1], [1], [0], [0], [0, 0, 1, 0], [], []>} : vector<8x8xf32>, vector<8x8xf32>, vector<8x8xf32> -> vector<8x8xf32>
    %cst_198 = arith.constant -1.000000e+04 : f32
    %cst_199 = arith.constant 1.000000e+04 : f32
    %474 = vector.broadcast %cst_198 : f32 to vector<8x8xf32>
    %475 = arith.maximumf %474, %473 : vector<8x8xf32>
    %476 = vector.broadcast %cst_199 : f32 to vector<8x8xf32>
    %477 = arith.minimumf %476, %475 : vector<8x8xf32>
    %478 = arith.mulf %477, %0 : vector<8x8xf32>
    %cst_200 = arith.constant -1.000000e+04 : f32
    %cst_201 = arith.constant 1.000000e+04 : f32
    %479 = vector.broadcast %cst_200 : f32 to vector<8x8xf32>
    %480 = arith.maximumf %479, %478 : vector<8x8xf32>
    %481 = vector.broadcast %cst_201 : f32 to vector<8x8xf32>
    %482 = arith.minimumf %481, %480 : vector<8x8xf32>
    %cst_202 = arith.constant dense<0xFF800000> : vector<8xf32>
    %483 = vector.multi_reduction <maximumf>, %482, %cst_202 [1] : vector<8x8xf32> to vector<8xf32>
    %484 = vector.shape_cast %483 : vector<8xf32> to vector<8x1xf32>
    %485 = vector.broadcast %484 : vector<8x1xf32> to vector<8x8xf32>
    %486 = arith.subf %482, %485 : vector<8x8xf32>
    %487 = math.exp %486 : vector<8x8xf32>
    %cst_203 = arith.constant dense<0.000000e+00> : vector<8xf32>
    %488 = vector.multi_reduction <add>, %487, %cst_203 [1] : vector<8x8xf32> to vector<8xf32>
    %489 = vector.shape_cast %488 : vector<8xf32> to vector<8x1xf32>
    %490 = vector.broadcast %489 : vector<8x1xf32> to vector<8x8xf32>
    %491 = arith.divf %487, %490 : vector<8x8xf32>
    %492 = vector.extract_strided_slice %443 {offsets = [0, 8], sizes = [8, 8], strides = [1, 1]} : vector<8x32xf32> to vector<8x8xf32>
    %cst_204 = arith.constant dense<0.000000e+00> : vector<8x8xf32>
    %493 = tpu.matmul %491, %492, %cst_204 {dimension_numbers = #tpu.dot_dimension_numbers<[1], [0], [0], [1], [0, 0, 1, 1], [], []>} : vector<8x8xf32>, vector<8x8xf32>, vector<8x8xf32> -> vector<8x8xf32>
    %494 = vector.extract_strided_slice %321 {offsets = [8, 0], sizes = [8, 32], strides = [1, 1]} : vector<32x32xf32> to vector<8x32xf32>
    %cst_205 = arith.constant dense<0.000000e+00> : vector<8x32xf32>
    %495 = tpu.matmul %493, %494, %cst_205 {dimension_numbers = #tpu.dot_dimension_numbers<[1], [0], [0], [1], [0, 0, 1, 1], [], []>} : vector<8x8xf32>, vector<8x32xf32>, vector<8x32xf32> -> vector<8x32xf32>
    %496 = arith.addf %470, %495 : vector<8x32xf32>
    %497 = vector.extract_strided_slice %441 {offsets = [0, 16], sizes = [8, 8], strides = [1, 1]} : vector<8x32xf32> to vector<8x8xf32>
    %498 = vector.extract_strided_slice %442 {offsets = [0, 16], sizes = [8, 8], strides = [1, 1]} : vector<8x32xf32> to vector<8x8xf32>
    %cst_206 = arith.constant dense<0.000000e+00> : vector<8x8xf32>
    %499 = tpu.matmul %497, %498, %cst_206 {dimension_numbers = #tpu.dot_dimension_numbers<[1], [1], [0], [0], [0, 0, 1, 0], [], []>} : vector<8x8xf32>, vector<8x8xf32>, vector<8x8xf32> -> vector<8x8xf32>
    %cst_207 = arith.constant -1.000000e+04 : f32
    %cst_208 = arith.constant 1.000000e+04 : f32
    %500 = vector.broadcast %cst_207 : f32 to vector<8x8xf32>
    %501 = arith.maximumf %500, %499 : vector<8x8xf32>
    %502 = vector.broadcast %cst_208 : f32 to vector<8x8xf32>
    %503 = arith.minimumf %502, %501 : vector<8x8xf32>
    %504 = arith.mulf %503, %0 : vector<8x8xf32>
    %cst_209 = arith.constant -1.000000e+04 : f32
    %cst_210 = arith.constant 1.000000e+04 : f32
    %505 = vector.broadcast %cst_209 : f32 to vector<8x8xf32>
    %506 = arith.maximumf %505, %504 : vector<8x8xf32>
    %507 = vector.broadcast %cst_210 : f32 to vector<8x8xf32>
    %508 = arith.minimumf %507, %506 : vector<8x8xf32>
    %cst_211 = arith.constant dense<0xFF800000> : vector<8xf32>
    %509 = vector.multi_reduction <maximumf>, %508, %cst_211 [1] : vector<8x8xf32> to vector<8xf32>
    %510 = vector.shape_cast %509 : vector<8xf32> to vector<8x1xf32>
    %511 = vector.broadcast %510 : vector<8x1xf32> to vector<8x8xf32>
    %512 = arith.subf %508, %511 : vector<8x8xf32>
    %513 = math.exp %512 : vector<8x8xf32>
    %cst_212 = arith.constant dense<0.000000e+00> : vector<8xf32>
    %514 = vector.multi_reduction <add>, %513, %cst_212 [1] : vector<8x8xf32> to vector<8xf32>
    %515 = vector.shape_cast %514 : vector<8xf32> to vector<8x1xf32>
    %516 = vector.broadcast %515 : vector<8x1xf32> to vector<8x8xf32>
    %517 = arith.divf %513, %516 : vector<8x8xf32>
    %518 = vector.extract_strided_slice %443 {offsets = [0, 16], sizes = [8, 8], strides = [1, 1]} : vector<8x32xf32> to vector<8x8xf32>
    %cst_213 = arith.constant dense<0.000000e+00> : vector<8x8xf32>
    %519 = tpu.matmul %517, %518, %cst_213 {dimension_numbers = #tpu.dot_dimension_numbers<[1], [0], [0], [1], [0, 0, 1, 1], [], []>} : vector<8x8xf32>, vector<8x8xf32>, vector<8x8xf32> -> vector<8x8xf32>
    %520 = vector.extract_strided_slice %321 {offsets = [16, 0], sizes = [8, 32], strides = [1, 1]} : vector<32x32xf32> to vector<8x32xf32>
    %cst_214 = arith.constant dense<0.000000e+00> : vector<8x32xf32>
    %521 = tpu.matmul %519, %520, %cst_214 {dimension_numbers = #tpu.dot_dimension_numbers<[1], [0], [0], [1], [0, 0, 1, 1], [], []>} : vector<8x8xf32>, vector<8x32xf32>, vector<8x32xf32> -> vector<8x32xf32>
    %522 = arith.addf %496, %521 : vector<8x32xf32>
    %523 = vector.extract_strided_slice %441 {offsets = [0, 24], sizes = [8, 8], strides = [1, 1]} : vector<8x32xf32> to vector<8x8xf32>
    %524 = vector.extract_strided_slice %442 {offsets = [0, 24], sizes = [8, 8], strides = [1, 1]} : vector<8x32xf32> to vector<8x8xf32>
    %cst_215 = arith.constant dense<0.000000e+00> : vector<8x8xf32>
    %525 = tpu.matmul %523, %524, %cst_215 {dimension_numbers = #tpu.dot_dimension_numbers<[1], [1], [0], [0], [0, 0, 1, 0], [], []>} : vector<8x8xf32>, vector<8x8xf32>, vector<8x8xf32> -> vector<8x8xf32>
    %cst_216 = arith.constant -1.000000e+04 : f32
    %cst_217 = arith.constant 1.000000e+04 : f32
    %526 = vector.broadcast %cst_216 : f32 to vector<8x8xf32>
    %527 = arith.maximumf %526, %525 : vector<8x8xf32>
    %528 = vector.broadcast %cst_217 : f32 to vector<8x8xf32>
    %529 = arith.minimumf %528, %527 : vector<8x8xf32>
    %530 = arith.mulf %529, %0 : vector<8x8xf32>
    %cst_218 = arith.constant -1.000000e+04 : f32
    %cst_219 = arith.constant 1.000000e+04 : f32
    %531 = vector.broadcast %cst_218 : f32 to vector<8x8xf32>
    %532 = arith.maximumf %531, %530 : vector<8x8xf32>
    %533 = vector.broadcast %cst_219 : f32 to vector<8x8xf32>
    %534 = arith.minimumf %533, %532 : vector<8x8xf32>
    %cst_220 = arith.constant dense<0xFF800000> : vector<8xf32>
    %535 = vector.multi_reduction <maximumf>, %534, %cst_220 [1] : vector<8x8xf32> to vector<8xf32>
    %536 = vector.shape_cast %535 : vector<8xf32> to vector<8x1xf32>
    %537 = vector.broadcast %536 : vector<8x1xf32> to vector<8x8xf32>
    %538 = arith.subf %534, %537 : vector<8x8xf32>
    %539 = math.exp %538 : vector<8x8xf32>
    %cst_221 = arith.constant dense<0.000000e+00> : vector<8xf32>
    %540 = vector.multi_reduction <add>, %539, %cst_221 [1] : vector<8x8xf32> to vector<8xf32>
    %541 = vector.shape_cast %540 : vector<8xf32> to vector<8x1xf32>
    %542 = vector.broadcast %541 : vector<8x1xf32> to vector<8x8xf32>
    %543 = arith.divf %539, %542 : vector<8x8xf32>
    %544 = vector.extract_strided_slice %443 {offsets = [0, 24], sizes = [8, 8], strides = [1, 1]} : vector<8x32xf32> to vector<8x8xf32>
    %cst_222 = arith.constant dense<0.000000e+00> : vector<8x8xf32>
    %545 = tpu.matmul %543, %544, %cst_222 {dimension_numbers = #tpu.dot_dimension_numbers<[1], [0], [0], [1], [0, 0, 1, 1], [], []>} : vector<8x8xf32>, vector<8x8xf32>, vector<8x8xf32> -> vector<8x8xf32>
    %546 = vector.extract_strided_slice %321 {offsets = [24, 0], sizes = [8, 32], strides = [1, 1]} : vector<32x32xf32> to vector<8x32xf32>
    %cst_223 = arith.constant dense<0.000000e+00> : vector<8x32xf32>
    %547 = tpu.matmul %545, %546, %cst_223 {dimension_numbers = #tpu.dot_dimension_numbers<[1], [0], [0], [1], [0, 0, 1, 1], [], []>} : vector<8x8xf32>, vector<8x32xf32>, vector<8x32xf32> -> vector<8x32xf32>
    %548 = arith.addf %522, %547 : vector<8x32xf32>
    %549 = tpu.concatenate %440, %548 in 0 : vector<8x32xf32>, vector<8x32xf32> -> vector<16x32xf32>
    %550 = arith.addf %313, %549 : vector<16x32xf32>
    %c1_224 = arith.constant 1 : index
    %c0_225 = arith.constant 0 : index
    %c0_226 = arith.constant 0 : index
    %551 = vector.load %arg9[%c1_224, %c0_225, %c0_226] : memref<2x1x32xf32, #tpu.memory_space<vmem>>, vector<1x1x32xf32>
    %552 = vector.shape_cast %551 : vector<1x1x32xf32> to vector<1x32xf32>
    %c1_227 = arith.constant 1 : index
    %c0_228 = arith.constant 0 : index
    %c0_229 = arith.constant 0 : index
    %553 = vector.load %arg10[%c1_227, %c0_228, %c0_229] : memref<2x1x32xf32, #tpu.memory_space<vmem>>, vector<1x1x32xf32>
    %554 = vector.shape_cast %553 : vector<1x1x32xf32> to vector<1x32xf32>
    %cst_230 = arith.constant dense<0.000000e+00> : vector<16xf32>
    %555 = vector.multi_reduction <add>, %550, %cst_230 [1] : vector<16x32xf32> to vector<16xf32>
    %556 = vector.shape_cast %555 : vector<16xf32> to vector<16x1xf32>
    %cst_231 = arith.constant 3.200000e+01 : f32
    %557 = vector.broadcast %cst_231 : f32 to vector<16x1xf32>
    %558 = arith.divf %556, %557 : vector<16x1xf32>
    %559 = vector.broadcast %558 : vector<16x1xf32> to vector<16x32xf32>
    %560 = arith.subf %550, %559 : vector<16x32xf32>
    %561 = arith.mulf %560, %560 : vector<16x32xf32>
    %cst_232 = arith.constant dense<0.000000e+00> : vector<16xf32>
    %562 = vector.multi_reduction <add>, %561, %cst_232 [1] : vector<16x32xf32> to vector<16xf32>
    %563 = vector.shape_cast %562 : vector<16xf32> to vector<16x1xf32>
    %cst_233 = arith.constant 3.200000e+01 : f32
    %564 = vector.broadcast %cst_233 : f32 to vector<16x1xf32>
    %565 = arith.divf %563, %564 : vector<16x1xf32>
    %566 = vector.broadcast %558 : vector<16x1xf32> to vector<16x32xf32>
    %567 = arith.subf %550, %566 : vector<16x32xf32>
    %cst_234 = arith.constant 9.99999974E-6 : f32
    %568 = vector.broadcast %cst_234 : f32 to vector<16x1xf32>
    %569 = arith.addf %565, %568 : vector<16x1xf32>
    %570 = math.rsqrt %569 : vector<16x1xf32>
    %571 = vector.broadcast %570 : vector<16x1xf32> to vector<16x32xf32>
    %572 = arith.mulf %567, %571 : vector<16x32xf32>
    %573 = vector.broadcast %552 : vector<1x32xf32> to vector<16x32xf32>
    %574 = arith.mulf %572, %573 : vector<16x32xf32>
    %575 = vector.broadcast %554 : vector<1x32xf32> to vector<16x32xf32>
    %576 = arith.addf %574, %575 : vector<16x32xf32>
    %c1_235 = arith.constant 1 : index
    %c0_236 = arith.constant 0 : index
    %c0_237 = arith.constant 0 : index
    %577 = vector.load %arg11[%c1_235, %c0_236, %c0_237] : memref<2x32x128xf32, #tpu.memory_space<vmem>>, vector<1x32x128xf32>
    %578 = vector.shape_cast %577 : vector<1x32x128xf32> to vector<32x128xf32>
    %c1_238 = arith.constant 1 : index
    %c0_239 = arith.constant 0 : index
    %c0_240 = arith.constant 0 : index
    %579 = vector.load %arg12[%c1_238, %c0_239, %c0_240] : memref<2x1x128xf32, #tpu.memory_space<vmem>>, vector<1x1x128xf32>
    %580 = vector.shape_cast %579 : vector<1x1x128xf32> to vector<1x128xf32>
    %c1_241 = arith.constant 1 : index
    %c0_242 = arith.constant 0 : index
    %c0_243 = arith.constant 0 : index
    %581 = vector.load %arg13[%c1_241, %c0_242, %c0_243] : memref<2x128x32xf32, #tpu.memory_space<vmem>>, vector<1x128x32xf32>
    %582 = vector.shape_cast %581 : vector<1x128x32xf32> to vector<128x32xf32>
    %c1_244 = arith.constant 1 : index
    %c0_245 = arith.constant 0 : index
    %c0_246 = arith.constant 0 : index
    %583 = vector.load %arg14[%c1_244, %c0_245, %c0_246] : memref<2x1x32xf32, #tpu.memory_space<vmem>>, vector<1x1x32xf32>
    %584 = vector.shape_cast %583 : vector<1x1x32xf32> to vector<1x32xf32>
    %cst_247 = arith.constant dense<0.000000e+00> : vector<16x128xf32>
    %585 = tpu.matmul %576, %578, %cst_247 {dimension_numbers = #tpu.dot_dimension_numbers<[1], [0], [0], [1], [0, 0, 1, 1], [], []>} : vector<16x32xf32>, vector<32x128xf32>, vector<16x128xf32> -> vector<16x128xf32>
    %586 = vector.broadcast %580 : vector<1x128xf32> to vector<16x128xf32>
    %587 = arith.addf %585, %586 : vector<16x128xf32>
    %cst_248 = arith.constant 0.000000e+00 : f32
    %588 = vector.broadcast %cst_248 : f32 to vector<16x128xf32>
    %589 = arith.maximumf %587, %588 : vector<16x128xf32>
    %cst_249 = arith.constant dense<0.000000e+00> : vector<16x32xf32>
    %590 = tpu.matmul %589, %582, %cst_249 {dimension_numbers = #tpu.dot_dimension_numbers<[1], [0], [0], [1], [0, 0, 1, 1], [], []>} : vector<16x128xf32>, vector<128x32xf32>, vector<16x32xf32> -> vector<16x32xf32>
    %591 = vector.broadcast %584 : vector<1x32xf32> to vector<16x32xf32>
    %592 = arith.addf %590, %591 : vector<16x32xf32>
    %cst_250 = arith.constant -5.000000e+00 : f32
    %cst_251 = arith.constant 5.000000e+00 : f32
    %593 = vector.broadcast %cst_250 : f32 to vector<16x32xf32>
    %594 = arith.maximumf %593, %592 : vector<16x32xf32>
    %595 = vector.broadcast %cst_251 : f32 to vector<16x32xf32>
    %596 = arith.minimumf %595, %594 : vector<16x32xf32>
    %597 = arith.addf %576, %596 : vector<16x32xf32>
    %c1_252 = arith.constant 1 : index
    %c0_253 = arith.constant 0 : index
    %c0_254 = arith.constant 0 : index
    %598 = vector.load %arg15[%c1_252, %c0_253, %c0_254] : memref<2x1x32xf32, #tpu.memory_space<vmem>>, vector<1x1x32xf32>
    %599 = vector.shape_cast %598 : vector<1x1x32xf32> to vector<1x32xf32>
    %c1_255 = arith.constant 1 : index
    %c0_256 = arith.constant 0 : index
    %c0_257 = arith.constant 0 : index
    %600 = vector.load %arg16[%c1_255, %c0_256, %c0_257] : memref<2x1x32xf32, #tpu.memory_space<vmem>>, vector<1x1x32xf32>
    %601 = vector.shape_cast %600 : vector<1x1x32xf32> to vector<1x32xf32>
    %cst_258 = arith.constant dense<0.000000e+00> : vector<16xf32>
    %602 = vector.multi_reduction <add>, %597, %cst_258 [1] : vector<16x32xf32> to vector<16xf32>
    %603 = vector.shape_cast %602 : vector<16xf32> to vector<16x1xf32>
    %cst_259 = arith.constant 3.200000e+01 : f32
    %604 = vector.broadcast %cst_259 : f32 to vector<16x1xf32>
    %605 = arith.divf %603, %604 : vector<16x1xf32>
    %606 = vector.broadcast %605 : vector<16x1xf32> to vector<16x32xf32>
    %607 = arith.subf %597, %606 : vector<16x32xf32>
    %608 = arith.mulf %607, %607 : vector<16x32xf32>
    %cst_260 = arith.constant dense<0.000000e+00> : vector<16xf32>
    %609 = vector.multi_reduction <add>, %608, %cst_260 [1] : vector<16x32xf32> to vector<16xf32>
    %610 = vector.shape_cast %609 : vector<16xf32> to vector<16x1xf32>
    %cst_261 = arith.constant 3.200000e+01 : f32
    %611 = vector.broadcast %cst_261 : f32 to vector<16x1xf32>
    %612 = arith.divf %610, %611 : vector<16x1xf32>
    %613 = vector.broadcast %605 : vector<16x1xf32> to vector<16x32xf32>
    %614 = arith.subf %597, %613 : vector<16x32xf32>
    %cst_262 = arith.constant 9.99999974E-6 : f32
    %615 = vector.broadcast %cst_262 : f32 to vector<16x1xf32>
    %616 = arith.addf %612, %615 : vector<16x1xf32>
    %617 = math.rsqrt %616 : vector<16x1xf32>
    %618 = vector.broadcast %617 : vector<16x1xf32> to vector<16x32xf32>
    %619 = arith.mulf %614, %618 : vector<16x32xf32>
    %620 = vector.broadcast %599 : vector<1x32xf32> to vector<16x32xf32>
    %621 = arith.mulf %619, %620 : vector<16x32xf32>
    %622 = vector.broadcast %601 : vector<1x32xf32> to vector<16x32xf32>
    %623 = arith.addf %621, %622 : vector<16x32xf32>
    %c0_263 = arith.constant 0 : index
    %c0_264 = arith.constant 0 : index
    %c0_265 = arith.constant 0 : index
    %624 = vector.load %arg24[%c0_263, %c0_264, %c0_265] : memref<2x32x8xf32, #tpu.memory_space<vmem>>, vector<1x32x8xf32>
    %625 = vector.shape_cast %624 : vector<1x32x8xf32> to vector<32x8xf32>
    %cst_266 = arith.constant dense<0.000000e+00> : vector<16x8xf32>
    %626 = tpu.matmul %623, %625, %cst_266 {dimension_numbers = #tpu.dot_dimension_numbers<[1], [0], [0], [1], [0, 0, 1, 1], [], []>} : vector<16x32xf32>, vector<32x8xf32>, vector<16x8xf32> -> vector<16x8xf32>
    %c0_267 = arith.constant 0 : index
    %c0_268 = arith.constant 0 : index
    %c0_269 = arith.constant 0 : index
    %627 = vector.load %arg25[%c0_267, %c0_268, %c0_269] : memref<2x8x64xf32, #tpu.memory_space<vmem>>, vector<1x8x64xf32>
    %628 = vector.shape_cast %627 : vector<1x8x64xf32> to vector<8x64xf32>
    %cst_270 = arith.constant dense<0.000000e+00> : vector<16x64xf32>
    %629 = tpu.matmul %626, %628, %cst_270 {dimension_numbers = #tpu.dot_dimension_numbers<[1], [0], [0], [1], [0, 0, 1, 1], [], []>} : vector<16x8xf32>, vector<8x64xf32>, vector<16x64xf32> -> vector<16x64xf32>
    %c1_271 = arith.constant 1 : index
    %c0_272 = arith.constant 0 : index
    %c0_273 = arith.constant 0 : index
    %630 = vector.load %arg24[%c1_271, %c0_272, %c0_273] : memref<2x32x8xf32, #tpu.memory_space<vmem>>, vector<1x32x8xf32>
    %631 = vector.shape_cast %630 : vector<1x32x8xf32> to vector<32x8xf32>
    %cst_274 = arith.constant dense<0.000000e+00> : vector<16x8xf32>
    %632 = tpu.matmul %623, %631, %cst_274 {dimension_numbers = #tpu.dot_dimension_numbers<[1], [0], [0], [1], [0, 0, 1, 1], [], []>} : vector<16x32xf32>, vector<32x8xf32>, vector<16x8xf32> -> vector<16x8xf32>
    %c1_275 = arith.constant 1 : index
    %c0_276 = arith.constant 0 : index
    %c0_277 = arith.constant 0 : index
    %633 = vector.load %arg25[%c1_275, %c0_276, %c0_277] : memref<2x8x64xf32, #tpu.memory_space<vmem>>, vector<1x8x64xf32>
    %634 = vector.shape_cast %633 : vector<1x8x64xf32> to vector<8x64xf32>
    %cst_278 = arith.constant dense<0.000000e+00> : vector<16x64xf32>
    %635 = tpu.matmul %632, %634, %cst_278 {dimension_numbers = #tpu.dot_dimension_numbers<[1], [0], [0], [1], [0, 0, 1, 1], [], []>} : vector<16x8xf32>, vector<8x64xf32>, vector<16x64xf32> -> vector<16x64xf32>
    %c0_279 = arith.constant 0 : index
    %c0_280 = arith.constant 0 : index
    %636 = vector.load %arg1[%c0_279, %c0_280] : memref<16x32xf32, #tpu.memory_space<vmem>>, vector<16x32xf32>
    %c0_281 = arith.constant 0 : index
    %c0_282 = arith.constant 0 : index
    %c0_283 = arith.constant 0 : index
    %637 = vector.load %arg17[%c0_281, %c0_282, %c0_283] : memref<2x32x96xf32, #tpu.memory_space<vmem>>, vector<1x32x96xf32>
    %638 = vector.shape_cast %637 : vector<1x32x96xf32> to vector<32x96xf32>
    %c0_284 = arith.constant 0 : index
    %c0_285 = arith.constant 0 : index
    %c0_286 = arith.constant 0 : index
    %639 = vector.load %arg18[%c0_284, %c0_285, %c0_286] : memref<2x32x8xf32, #tpu.memory_space<vmem>>, vector<1x32x8xf32>
    %640 = vector.shape_cast %639 : vector<1x32x8xf32> to vector<32x8xf32>
    %c0_287 = arith.constant 0 : index
    %c0_288 = arith.constant 0 : index
    %c0_289 = arith.constant 0 : index
    %641 = vector.load %arg19[%c0_287, %c0_288, %c0_289] : memref<2x8x64xf32, #tpu.memory_space<vmem>>, vector<1x8x64xf32>
    %642 = vector.shape_cast %641 : vector<1x8x64xf32> to vector<8x64xf32>
    %c0_290 = arith.constant 0 : index
    %c0_291 = arith.constant 0 : index
    %c0_292 = arith.constant 0 : index
    %643 = vector.load %arg20[%c0_290, %c0_291, %c0_292] : memref<2x32x32xf32, #tpu.memory_space<vmem>>, vector<1x32x32xf32>
    %644 = vector.shape_cast %643 : vector<1x32x32xf32> to vector<32x32xf32>
    %cst_293 = arith.constant dense<0.000000e+00> : vector<16x96xf32>
    %645 = tpu.matmul %636, %638, %cst_293 {dimension_numbers = #tpu.dot_dimension_numbers<[1], [0], [0], [1], [0, 0, 1, 1], [], []>} : vector<16x32xf32>, vector<32x96xf32>, vector<16x96xf32> -> vector<16x96xf32>
    %646 = vector.extract_strided_slice %645 {offsets = [0, 0], sizes = [16, 32], strides = [1, 1]} : vector<16x96xf32> to vector<16x32xf32>
    %647 = vector.extract_strided_slice %645 {offsets = [0, 32], sizes = [16, 32], strides = [1, 1]} : vector<16x96xf32> to vector<16x32xf32>
    %648 = vector.extract_strided_slice %645 {offsets = [0, 64], sizes = [16, 32], strides = [1, 1]} : vector<16x96xf32> to vector<16x32xf32>
    %649 = arith.addf %647, %648 : vector<16x32xf32>
    %cst_294 = arith.constant dense<0.000000e+00> : vector<16x8xf32>
    %650 = tpu.matmul %649, %640, %cst_294 {dimension_numbers = #tpu.dot_dimension_numbers<[1], [0], [0], [1], [0, 0, 1, 1], [], []>} : vector<16x32xf32>, vector<32x8xf32>, vector<16x8xf32> -> vector<16x8xf32>
    %cst_295 = arith.constant dense<0.000000e+00> : vector<16x64xf32>
    %651 = tpu.matmul %650, %642, %cst_295 {dimension_numbers = #tpu.dot_dimension_numbers<[1], [0], [0], [1], [0, 0, 1, 1], [], []>} : vector<16x8xf32>, vector<8x64xf32>, vector<16x64xf32> -> vector<16x64xf32>
    %652 = vector.extract_strided_slice %651 {offsets = [0, 0], sizes = [16, 32], strides = [1, 1]} : vector<16x64xf32> to vector<16x32xf32>
    %653 = vector.extract_strided_slice %651 {offsets = [0, 32], sizes = [16, 32], strides = [1, 1]} : vector<16x64xf32> to vector<16x32xf32>
    %cst_296 = arith.constant 0.176776692 : f32
    %654 = vector.broadcast %cst_296 : f32 to vector<16x32xf32>
    %655 = arith.mulf %646, %654 : vector<16x32xf32>
    %656 = vector.extract_strided_slice %655 {offsets = [0, 0], sizes = [8, 32], strides = [1, 1]} : vector<16x32xf32> to vector<8x32xf32>
    %657 = vector.extract_strided_slice %652 {offsets = [0, 0], sizes = [8, 32], strides = [1, 1]} : vector<16x32xf32> to vector<8x32xf32>
    %658 = vector.extract_strided_slice %653 {offsets = [0, 0], sizes = [8, 32], strides = [1, 1]} : vector<16x32xf32> to vector<8x32xf32>
    %cst_297 = arith.constant 0.000000e+00 : f32
    %659 = vector.broadcast %cst_297 : f32 to vector<8x32xf32>
    %660 = vector.extract_strided_slice %656 {offsets = [0, 0], sizes = [8, 8], strides = [1, 1]} : vector<8x32xf32> to vector<8x8xf32>
    %661 = vector.extract_strided_slice %657 {offsets = [0, 0], sizes = [8, 8], strides = [1, 1]} : vector<8x32xf32> to vector<8x8xf32>
    %cst_298 = arith.constant dense<0.000000e+00> : vector<8x8xf32>
    %662 = tpu.matmul %660, %661, %cst_298 {dimension_numbers = #tpu.dot_dimension_numbers<[1], [1], [0], [0], [0, 0, 1, 0], [], []>} : vector<8x8xf32>, vector<8x8xf32>, vector<8x8xf32> -> vector<8x8xf32>
    %cst_299 = arith.constant -1.000000e+04 : f32
    %cst_300 = arith.constant 1.000000e+04 : f32
    %663 = vector.broadcast %cst_299 : f32 to vector<8x8xf32>
    %664 = arith.maximumf %663, %662 : vector<8x8xf32>
    %665 = vector.broadcast %cst_300 : f32 to vector<8x8xf32>
    %666 = arith.minimumf %665, %664 : vector<8x8xf32>
    %667 = arith.mulf %666, %1 : vector<8x8xf32>
    %cst_301 = arith.constant -1.000000e+04 : f32
    %cst_302 = arith.constant 1.000000e+04 : f32
    %668 = vector.broadcast %cst_301 : f32 to vector<8x8xf32>
    %669 = arith.maximumf %668, %667 : vector<8x8xf32>
    %670 = vector.broadcast %cst_302 : f32 to vector<8x8xf32>
    %671 = arith.minimumf %670, %669 : vector<8x8xf32>
    %cst_303 = arith.constant dense<0xFF800000> : vector<8xf32>
    %672 = vector.multi_reduction <maximumf>, %671, %cst_303 [1] : vector<8x8xf32> to vector<8xf32>
    %673 = vector.shape_cast %672 : vector<8xf32> to vector<8x1xf32>
    %674 = vector.broadcast %673 : vector<8x1xf32> to vector<8x8xf32>
    %675 = arith.subf %671, %674 : vector<8x8xf32>
    %676 = math.exp %675 : vector<8x8xf32>
    %cst_304 = arith.constant dense<0.000000e+00> : vector<8xf32>
    %677 = vector.multi_reduction <add>, %676, %cst_304 [1] : vector<8x8xf32> to vector<8xf32>
    %678 = vector.shape_cast %677 : vector<8xf32> to vector<8x1xf32>
    %679 = vector.broadcast %678 : vector<8x1xf32> to vector<8x8xf32>
    %680 = arith.divf %676, %679 : vector<8x8xf32>
    %681 = vector.extract_strided_slice %658 {offsets = [0, 0], sizes = [8, 8], strides = [1, 1]} : vector<8x32xf32> to vector<8x8xf32>
    %cst_305 = arith.constant dense<0.000000e+00> : vector<8x8xf32>
    %682 = tpu.matmul %680, %681, %cst_305 {dimension_numbers = #tpu.dot_dimension_numbers<[1], [0], [0], [1], [0, 0, 1, 1], [], []>} : vector<8x8xf32>, vector<8x8xf32>, vector<8x8xf32> -> vector<8x8xf32>
    %683 = vector.extract_strided_slice %644 {offsets = [0, 0], sizes = [8, 32], strides = [1, 1]} : vector<32x32xf32> to vector<8x32xf32>
    %cst_306 = arith.constant dense<0.000000e+00> : vector<8x32xf32>
    %684 = tpu.matmul %682, %683, %cst_306 {dimension_numbers = #tpu.dot_dimension_numbers<[1], [0], [0], [1], [0, 0, 1, 1], [], []>} : vector<8x8xf32>, vector<8x32xf32>, vector<8x32xf32> -> vector<8x32xf32>
    %685 = arith.addf %659, %684 : vector<8x32xf32>
    %686 = vector.extract_strided_slice %656 {offsets = [0, 8], sizes = [8, 8], strides = [1, 1]} : vector<8x32xf32> to vector<8x8xf32>
    %687 = vector.extract_strided_slice %657 {offsets = [0, 8], sizes = [8, 8], strides = [1, 1]} : vector<8x32xf32> to vector<8x8xf32>
    %cst_307 = arith.constant dense<0.000000e+00> : vector<8x8xf32>
    %688 = tpu.matmul %686, %687, %cst_307 {dimension_numbers = #tpu.dot_dimension_numbers<[1], [1], [0], [0], [0, 0, 1, 0], [], []>} : vector<8x8xf32>, vector<8x8xf32>, vector<8x8xf32> -> vector<8x8xf32>
    %cst_308 = arith.constant -1.000000e+04 : f32
    %cst_309 = arith.constant 1.000000e+04 : f32
    %689 = vector.broadcast %cst_308 : f32 to vector<8x8xf32>
    %690 = arith.maximumf %689, %688 : vector<8x8xf32>
    %691 = vector.broadcast %cst_309 : f32 to vector<8x8xf32>
    %692 = arith.minimumf %691, %690 : vector<8x8xf32>
    %693 = arith.mulf %692, %1 : vector<8x8xf32>
    %cst_310 = arith.constant -1.000000e+04 : f32
    %cst_311 = arith.constant 1.000000e+04 : f32
    %694 = vector.broadcast %cst_310 : f32 to vector<8x8xf32>
    %695 = arith.maximumf %694, %693 : vector<8x8xf32>
    %696 = vector.broadcast %cst_311 : f32 to vector<8x8xf32>
    %697 = arith.minimumf %696, %695 : vector<8x8xf32>
    %cst_312 = arith.constant dense<0xFF800000> : vector<8xf32>
    %698 = vector.multi_reduction <maximumf>, %697, %cst_312 [1] : vector<8x8xf32> to vector<8xf32>
    %699 = vector.shape_cast %698 : vector<8xf32> to vector<8x1xf32>
    %700 = vector.broadcast %699 : vector<8x1xf32> to vector<8x8xf32>
    %701 = arith.subf %697, %700 : vector<8x8xf32>
    %702 = math.exp %701 : vector<8x8xf32>
    %cst_313 = arith.constant dense<0.000000e+00> : vector<8xf32>
    %703 = vector.multi_reduction <add>, %702, %cst_313 [1] : vector<8x8xf32> to vector<8xf32>
    %704 = vector.shape_cast %703 : vector<8xf32> to vector<8x1xf32>
    %705 = vector.broadcast %704 : vector<8x1xf32> to vector<8x8xf32>
    %706 = arith.divf %702, %705 : vector<8x8xf32>
    %707 = vector.extract_strided_slice %658 {offsets = [0, 8], sizes = [8, 8], strides = [1, 1]} : vector<8x32xf32> to vector<8x8xf32>
    %cst_314 = arith.constant dense<0.000000e+00> : vector<8x8xf32>
    %708 = tpu.matmul %706, %707, %cst_314 {dimension_numbers = #tpu.dot_dimension_numbers<[1], [0], [0], [1], [0, 0, 1, 1], [], []>} : vector<8x8xf32>, vector<8x8xf32>, vector<8x8xf32> -> vector<8x8xf32>
    %709 = vector.extract_strided_slice %644 {offsets = [8, 0], sizes = [8, 32], strides = [1, 1]} : vector<32x32xf32> to vector<8x32xf32>
    %cst_315 = arith.constant dense<0.000000e+00> : vector<8x32xf32>
    %710 = tpu.matmul %708, %709, %cst_315 {dimension_numbers = #tpu.dot_dimension_numbers<[1], [0], [0], [1], [0, 0, 1, 1], [], []>} : vector<8x8xf32>, vector<8x32xf32>, vector<8x32xf32> -> vector<8x32xf32>
    %711 = arith.addf %685, %710 : vector<8x32xf32>
    %712 = vector.extract_strided_slice %656 {offsets = [0, 16], sizes = [8, 8], strides = [1, 1]} : vector<8x32xf32> to vector<8x8xf32>
    %713 = vector.extract_strided_slice %657 {offsets = [0, 16], sizes = [8, 8], strides = [1, 1]} : vector<8x32xf32> to vector<8x8xf32>
    %cst_316 = arith.constant dense<0.000000e+00> : vector<8x8xf32>
    %714 = tpu.matmul %712, %713, %cst_316 {dimension_numbers = #tpu.dot_dimension_numbers<[1], [1], [0], [0], [0, 0, 1, 0], [], []>} : vector<8x8xf32>, vector<8x8xf32>, vector<8x8xf32> -> vector<8x8xf32>
    %cst_317 = arith.constant -1.000000e+04 : f32
    %cst_318 = arith.constant 1.000000e+04 : f32
    %715 = vector.broadcast %cst_317 : f32 to vector<8x8xf32>
    %716 = arith.maximumf %715, %714 : vector<8x8xf32>
    %717 = vector.broadcast %cst_318 : f32 to vector<8x8xf32>
    %718 = arith.minimumf %717, %716 : vector<8x8xf32>
    %719 = arith.mulf %718, %1 : vector<8x8xf32>
    %cst_319 = arith.constant -1.000000e+04 : f32
    %cst_320 = arith.constant 1.000000e+04 : f32
    %720 = vector.broadcast %cst_319 : f32 to vector<8x8xf32>
    %721 = arith.maximumf %720, %719 : vector<8x8xf32>
    %722 = vector.broadcast %cst_320 : f32 to vector<8x8xf32>
    %723 = arith.minimumf %722, %721 : vector<8x8xf32>
    %cst_321 = arith.constant dense<0xFF800000> : vector<8xf32>
    %724 = vector.multi_reduction <maximumf>, %723, %cst_321 [1] : vector<8x8xf32> to vector<8xf32>
    %725 = vector.shape_cast %724 : vector<8xf32> to vector<8x1xf32>
    %726 = vector.broadcast %725 : vector<8x1xf32> to vector<8x8xf32>
    %727 = arith.subf %723, %726 : vector<8x8xf32>
    %728 = math.exp %727 : vector<8x8xf32>
    %cst_322 = arith.constant dense<0.000000e+00> : vector<8xf32>
    %729 = vector.multi_reduction <add>, %728, %cst_322 [1] : vector<8x8xf32> to vector<8xf32>
    %730 = vector.shape_cast %729 : vector<8xf32> to vector<8x1xf32>
    %731 = vector.broadcast %730 : vector<8x1xf32> to vector<8x8xf32>
    %732 = arith.divf %728, %731 : vector<8x8xf32>
    %733 = vector.extract_strided_slice %658 {offsets = [0, 16], sizes = [8, 8], strides = [1, 1]} : vector<8x32xf32> to vector<8x8xf32>
    %cst_323 = arith.constant dense<0.000000e+00> : vector<8x8xf32>
    %734 = tpu.matmul %732, %733, %cst_323 {dimension_numbers = #tpu.dot_dimension_numbers<[1], [0], [0], [1], [0, 0, 1, 1], [], []>} : vector<8x8xf32>, vector<8x8xf32>, vector<8x8xf32> -> vector<8x8xf32>
    %735 = vector.extract_strided_slice %644 {offsets = [16, 0], sizes = [8, 32], strides = [1, 1]} : vector<32x32xf32> to vector<8x32xf32>
    %cst_324 = arith.constant dense<0.000000e+00> : vector<8x32xf32>
    %736 = tpu.matmul %734, %735, %cst_324 {dimension_numbers = #tpu.dot_dimension_numbers<[1], [0], [0], [1], [0, 0, 1, 1], [], []>} : vector<8x8xf32>, vector<8x32xf32>, vector<8x32xf32> -> vector<8x32xf32>
    %737 = arith.addf %711, %736 : vector<8x32xf32>
    %738 = vector.extract_strided_slice %656 {offsets = [0, 24], sizes = [8, 8], strides = [1, 1]} : vector<8x32xf32> to vector<8x8xf32>
    %739 = vector.extract_strided_slice %657 {offsets = [0, 24], sizes = [8, 8], strides = [1, 1]} : vector<8x32xf32> to vector<8x8xf32>
    %cst_325 = arith.constant dense<0.000000e+00> : vector<8x8xf32>
    %740 = tpu.matmul %738, %739, %cst_325 {dimension_numbers = #tpu.dot_dimension_numbers<[1], [1], [0], [0], [0, 0, 1, 0], [], []>} : vector<8x8xf32>, vector<8x8xf32>, vector<8x8xf32> -> vector<8x8xf32>
    %cst_326 = arith.constant -1.000000e+04 : f32
    %cst_327 = arith.constant 1.000000e+04 : f32
    %741 = vector.broadcast %cst_326 : f32 to vector<8x8xf32>
    %742 = arith.maximumf %741, %740 : vector<8x8xf32>
    %743 = vector.broadcast %cst_327 : f32 to vector<8x8xf32>
    %744 = arith.minimumf %743, %742 : vector<8x8xf32>
    %745 = arith.mulf %744, %1 : vector<8x8xf32>
    %cst_328 = arith.constant -1.000000e+04 : f32
    %cst_329 = arith.constant 1.000000e+04 : f32
    %746 = vector.broadcast %cst_328 : f32 to vector<8x8xf32>
    %747 = arith.maximumf %746, %745 : vector<8x8xf32>
    %748 = vector.broadcast %cst_329 : f32 to vector<8x8xf32>
    %749 = arith.minimumf %748, %747 : vector<8x8xf32>
    %cst_330 = arith.constant dense<0xFF800000> : vector<8xf32>
    %750 = vector.multi_reduction <maximumf>, %749, %cst_330 [1] : vector<8x8xf32> to vector<8xf32>
    %751 = vector.shape_cast %750 : vector<8xf32> to vector<8x1xf32>
    %752 = vector.broadcast %751 : vector<8x1xf32> to vector<8x8xf32>
    %753 = arith.subf %749, %752 : vector<8x8xf32>
    %754 = math.exp %753 : vector<8x8xf32>
    %cst_331 = arith.constant dense<0.000000e+00> : vector<8xf32>
    %755 = vector.multi_reduction <add>, %754, %cst_331 [1] : vector<8x8xf32> to vector<8xf32>
    %756 = vector.shape_cast %755 : vector<8xf32> to vector<8x1xf32>
    %757 = vector.broadcast %756 : vector<8x1xf32> to vector<8x8xf32>
    %758 = arith.divf %754, %757 : vector<8x8xf32>
    %759 = vector.extract_strided_slice %658 {offsets = [0, 24], sizes = [8, 8], strides = [1, 1]} : vector<8x32xf32> to vector<8x8xf32>
    %cst_332 = arith.constant dense<0.000000e+00> : vector<8x8xf32>
    %760 = tpu.matmul %758, %759, %cst_332 {dimension_numbers = #tpu.dot_dimension_numbers<[1], [0], [0], [1], [0, 0, 1, 1], [], []>} : vector<8x8xf32>, vector<8x8xf32>, vector<8x8xf32> -> vector<8x8xf32>
    %761 = vector.extract_strided_slice %644 {offsets = [24, 0], sizes = [8, 32], strides = [1, 1]} : vector<32x32xf32> to vector<8x32xf32>
    %cst_333 = arith.constant dense<0.000000e+00> : vector<8x32xf32>
    %762 = tpu.matmul %760, %761, %cst_333 {dimension_numbers = #tpu.dot_dimension_numbers<[1], [0], [0], [1], [0, 0, 1, 1], [], []>} : vector<8x8xf32>, vector<8x32xf32>, vector<8x32xf32> -> vector<8x32xf32>
    %763 = arith.addf %737, %762 : vector<8x32xf32>
    %764 = vector.extract_strided_slice %655 {offsets = [8, 0], sizes = [8, 32], strides = [1, 1]} : vector<16x32xf32> to vector<8x32xf32>
    %765 = vector.extract_strided_slice %652 {offsets = [8, 0], sizes = [8, 32], strides = [1, 1]} : vector<16x32xf32> to vector<8x32xf32>
    %766 = vector.extract_strided_slice %653 {offsets = [8, 0], sizes = [8, 32], strides = [1, 1]} : vector<16x32xf32> to vector<8x32xf32>
    %cst_334 = arith.constant 0.000000e+00 : f32
    %767 = vector.broadcast %cst_334 : f32 to vector<8x32xf32>
    %768 = vector.extract_strided_slice %764 {offsets = [0, 0], sizes = [8, 8], strides = [1, 1]} : vector<8x32xf32> to vector<8x8xf32>
    %769 = vector.extract_strided_slice %765 {offsets = [0, 0], sizes = [8, 8], strides = [1, 1]} : vector<8x32xf32> to vector<8x8xf32>
    %cst_335 = arith.constant dense<0.000000e+00> : vector<8x8xf32>
    %770 = tpu.matmul %768, %769, %cst_335 {dimension_numbers = #tpu.dot_dimension_numbers<[1], [1], [0], [0], [0, 0, 1, 0], [], []>} : vector<8x8xf32>, vector<8x8xf32>, vector<8x8xf32> -> vector<8x8xf32>
    %cst_336 = arith.constant -1.000000e+04 : f32
    %cst_337 = arith.constant 1.000000e+04 : f32
    %771 = vector.broadcast %cst_336 : f32 to vector<8x8xf32>
    %772 = arith.maximumf %771, %770 : vector<8x8xf32>
    %773 = vector.broadcast %cst_337 : f32 to vector<8x8xf32>
    %774 = arith.minimumf %773, %772 : vector<8x8xf32>
    %775 = arith.mulf %774, %1 : vector<8x8xf32>
    %cst_338 = arith.constant -1.000000e+04 : f32
    %cst_339 = arith.constant 1.000000e+04 : f32
    %776 = vector.broadcast %cst_338 : f32 to vector<8x8xf32>
    %777 = arith.maximumf %776, %775 : vector<8x8xf32>
    %778 = vector.broadcast %cst_339 : f32 to vector<8x8xf32>
    %779 = arith.minimumf %778, %777 : vector<8x8xf32>
    %cst_340 = arith.constant dense<0xFF800000> : vector<8xf32>
    %780 = vector.multi_reduction <maximumf>, %779, %cst_340 [1] : vector<8x8xf32> to vector<8xf32>
    %781 = vector.shape_cast %780 : vector<8xf32> to vector<8x1xf32>
    %782 = vector.broadcast %781 : vector<8x1xf32> to vector<8x8xf32>
    %783 = arith.subf %779, %782 : vector<8x8xf32>
    %784 = math.exp %783 : vector<8x8xf32>
    %cst_341 = arith.constant dense<0.000000e+00> : vector<8xf32>
    %785 = vector.multi_reduction <add>, %784, %cst_341 [1] : vector<8x8xf32> to vector<8xf32>
    %786 = vector.shape_cast %785 : vector<8xf32> to vector<8x1xf32>
    %787 = vector.broadcast %786 : vector<8x1xf32> to vector<8x8xf32>
    %788 = arith.divf %784, %787 : vector<8x8xf32>
    %789 = vector.extract_strided_slice %766 {offsets = [0, 0], sizes = [8, 8], strides = [1, 1]} : vector<8x32xf32> to vector<8x8xf32>
    %cst_342 = arith.constant dense<0.000000e+00> : vector<8x8xf32>
    %790 = tpu.matmul %788, %789, %cst_342 {dimension_numbers = #tpu.dot_dimension_numbers<[1], [0], [0], [1], [0, 0, 1, 1], [], []>} : vector<8x8xf32>, vector<8x8xf32>, vector<8x8xf32> -> vector<8x8xf32>
    %791 = vector.extract_strided_slice %644 {offsets = [0, 0], sizes = [8, 32], strides = [1, 1]} : vector<32x32xf32> to vector<8x32xf32>
    %cst_343 = arith.constant dense<0.000000e+00> : vector<8x32xf32>
    %792 = tpu.matmul %790, %791, %cst_343 {dimension_numbers = #tpu.dot_dimension_numbers<[1], [0], [0], [1], [0, 0, 1, 1], [], []>} : vector<8x8xf32>, vector<8x32xf32>, vector<8x32xf32> -> vector<8x32xf32>
    %793 = arith.addf %767, %792 : vector<8x32xf32>
    %794 = vector.extract_strided_slice %764 {offsets = [0, 8], sizes = [8, 8], strides = [1, 1]} : vector<8x32xf32> to vector<8x8xf32>
    %795 = vector.extract_strided_slice %765 {offsets = [0, 8], sizes = [8, 8], strides = [1, 1]} : vector<8x32xf32> to vector<8x8xf32>
    %cst_344 = arith.constant dense<0.000000e+00> : vector<8x8xf32>
    %796 = tpu.matmul %794, %795, %cst_344 {dimension_numbers = #tpu.dot_dimension_numbers<[1], [1], [0], [0], [0, 0, 1, 0], [], []>} : vector<8x8xf32>, vector<8x8xf32>, vector<8x8xf32> -> vector<8x8xf32>
    %cst_345 = arith.constant -1.000000e+04 : f32
    %cst_346 = arith.constant 1.000000e+04 : f32
    %797 = vector.broadcast %cst_345 : f32 to vector<8x8xf32>
    %798 = arith.maximumf %797, %796 : vector<8x8xf32>
    %799 = vector.broadcast %cst_346 : f32 to vector<8x8xf32>
    %800 = arith.minimumf %799, %798 : vector<8x8xf32>
    %801 = arith.mulf %800, %1 : vector<8x8xf32>
    %cst_347 = arith.constant -1.000000e+04 : f32
    %cst_348 = arith.constant 1.000000e+04 : f32
    %802 = vector.broadcast %cst_347 : f32 to vector<8x8xf32>
    %803 = arith.maximumf %802, %801 : vector<8x8xf32>
    %804 = vector.broadcast %cst_348 : f32 to vector<8x8xf32>
    %805 = arith.minimumf %804, %803 : vector<8x8xf32>
    %cst_349 = arith.constant dense<0xFF800000> : vector<8xf32>
    %806 = vector.multi_reduction <maximumf>, %805, %cst_349 [1] : vector<8x8xf32> to vector<8xf32>
    %807 = vector.shape_cast %806 : vector<8xf32> to vector<8x1xf32>
    %808 = vector.broadcast %807 : vector<8x1xf32> to vector<8x8xf32>
    %809 = arith.subf %805, %808 : vector<8x8xf32>
    %810 = math.exp %809 : vector<8x8xf32>
    %cst_350 = arith.constant dense<0.000000e+00> : vector<8xf32>
    %811 = vector.multi_reduction <add>, %810, %cst_350 [1] : vector<8x8xf32> to vector<8xf32>
    %812 = vector.shape_cast %811 : vector<8xf32> to vector<8x1xf32>
    %813 = vector.broadcast %812 : vector<8x1xf32> to vector<8x8xf32>
    %814 = arith.divf %810, %813 : vector<8x8xf32>
    %815 = vector.extract_strided_slice %766 {offsets = [0, 8], sizes = [8, 8], strides = [1, 1]} : vector<8x32xf32> to vector<8x8xf32>
    %cst_351 = arith.constant dense<0.000000e+00> : vector<8x8xf32>
    %816 = tpu.matmul %814, %815, %cst_351 {dimension_numbers = #tpu.dot_dimension_numbers<[1], [0], [0], [1], [0, 0, 1, 1], [], []>} : vector<8x8xf32>, vector<8x8xf32>, vector<8x8xf32> -> vector<8x8xf32>
    %817 = vector.extract_strided_slice %644 {offsets = [8, 0], sizes = [8, 32], strides = [1, 1]} : vector<32x32xf32> to vector<8x32xf32>
    %cst_352 = arith.constant dense<0.000000e+00> : vector<8x32xf32>
    %818 = tpu.matmul %816, %817, %cst_352 {dimension_numbers = #tpu.dot_dimension_numbers<[1], [0], [0], [1], [0, 0, 1, 1], [], []>} : vector<8x8xf32>, vector<8x32xf32>, vector<8x32xf32> -> vector<8x32xf32>
    %819 = arith.addf %793, %818 : vector<8x32xf32>
    %820 = vector.extract_strided_slice %764 {offsets = [0, 16], sizes = [8, 8], strides = [1, 1]} : vector<8x32xf32> to vector<8x8xf32>
    %821 = vector.extract_strided_slice %765 {offsets = [0, 16], sizes = [8, 8], strides = [1, 1]} : vector<8x32xf32> to vector<8x8xf32>
    %cst_353 = arith.constant dense<0.000000e+00> : vector<8x8xf32>
    %822 = tpu.matmul %820, %821, %cst_353 {dimension_numbers = #tpu.dot_dimension_numbers<[1], [1], [0], [0], [0, 0, 1, 0], [], []>} : vector<8x8xf32>, vector<8x8xf32>, vector<8x8xf32> -> vector<8x8xf32>
    %cst_354 = arith.constant -1.000000e+04 : f32
    %cst_355 = arith.constant 1.000000e+04 : f32
    %823 = vector.broadcast %cst_354 : f32 to vector<8x8xf32>
    %824 = arith.maximumf %823, %822 : vector<8x8xf32>
    %825 = vector.broadcast %cst_355 : f32 to vector<8x8xf32>
    %826 = arith.minimumf %825, %824 : vector<8x8xf32>
    %827 = arith.mulf %826, %1 : vector<8x8xf32>
    %cst_356 = arith.constant -1.000000e+04 : f32
    %cst_357 = arith.constant 1.000000e+04 : f32
    %828 = vector.broadcast %cst_356 : f32 to vector<8x8xf32>
    %829 = arith.maximumf %828, %827 : vector<8x8xf32>
    %830 = vector.broadcast %cst_357 : f32 to vector<8x8xf32>
    %831 = arith.minimumf %830, %829 : vector<8x8xf32>
    %cst_358 = arith.constant dense<0xFF800000> : vector<8xf32>
    %832 = vector.multi_reduction <maximumf>, %831, %cst_358 [1] : vector<8x8xf32> to vector<8xf32>
    %833 = vector.shape_cast %832 : vector<8xf32> to vector<8x1xf32>
    %834 = vector.broadcast %833 : vector<8x1xf32> to vector<8x8xf32>
    %835 = arith.subf %831, %834 : vector<8x8xf32>
    %836 = math.exp %835 : vector<8x8xf32>
    %cst_359 = arith.constant dense<0.000000e+00> : vector<8xf32>
    %837 = vector.multi_reduction <add>, %836, %cst_359 [1] : vector<8x8xf32> to vector<8xf32>
    %838 = vector.shape_cast %837 : vector<8xf32> to vector<8x1xf32>
    %839 = vector.broadcast %838 : vector<8x1xf32> to vector<8x8xf32>
    %840 = arith.divf %836, %839 : vector<8x8xf32>
    %841 = vector.extract_strided_slice %766 {offsets = [0, 16], sizes = [8, 8], strides = [1, 1]} : vector<8x32xf32> to vector<8x8xf32>
    %cst_360 = arith.constant dense<0.000000e+00> : vector<8x8xf32>
    %842 = tpu.matmul %840, %841, %cst_360 {dimension_numbers = #tpu.dot_dimension_numbers<[1], [0], [0], [1], [0, 0, 1, 1], [], []>} : vector<8x8xf32>, vector<8x8xf32>, vector<8x8xf32> -> vector<8x8xf32>
    %843 = vector.extract_strided_slice %644 {offsets = [16, 0], sizes = [8, 32], strides = [1, 1]} : vector<32x32xf32> to vector<8x32xf32>
    %cst_361 = arith.constant dense<0.000000e+00> : vector<8x32xf32>
    %844 = tpu.matmul %842, %843, %cst_361 {dimension_numbers = #tpu.dot_dimension_numbers<[1], [0], [0], [1], [0, 0, 1, 1], [], []>} : vector<8x8xf32>, vector<8x32xf32>, vector<8x32xf32> -> vector<8x32xf32>
    %845 = arith.addf %819, %844 : vector<8x32xf32>
    %846 = vector.extract_strided_slice %764 {offsets = [0, 24], sizes = [8, 8], strides = [1, 1]} : vector<8x32xf32> to vector<8x8xf32>
    %847 = vector.extract_strided_slice %765 {offsets = [0, 24], sizes = [8, 8], strides = [1, 1]} : vector<8x32xf32> to vector<8x8xf32>
    %cst_362 = arith.constant dense<0.000000e+00> : vector<8x8xf32>
    %848 = tpu.matmul %846, %847, %cst_362 {dimension_numbers = #tpu.dot_dimension_numbers<[1], [1], [0], [0], [0, 0, 1, 0], [], []>} : vector<8x8xf32>, vector<8x8xf32>, vector<8x8xf32> -> vector<8x8xf32>
    %cst_363 = arith.constant -1.000000e+04 : f32
    %cst_364 = arith.constant 1.000000e+04 : f32
    %849 = vector.broadcast %cst_363 : f32 to vector<8x8xf32>
    %850 = arith.maximumf %849, %848 : vector<8x8xf32>
    %851 = vector.broadcast %cst_364 : f32 to vector<8x8xf32>
    %852 = arith.minimumf %851, %850 : vector<8x8xf32>
    %853 = arith.mulf %852, %1 : vector<8x8xf32>
    %cst_365 = arith.constant -1.000000e+04 : f32
    %cst_366 = arith.constant 1.000000e+04 : f32
    %854 = vector.broadcast %cst_365 : f32 to vector<8x8xf32>
    %855 = arith.maximumf %854, %853 : vector<8x8xf32>
    %856 = vector.broadcast %cst_366 : f32 to vector<8x8xf32>
    %857 = arith.minimumf %856, %855 : vector<8x8xf32>
    %cst_367 = arith.constant dense<0xFF800000> : vector<8xf32>
    %858 = vector.multi_reduction <maximumf>, %857, %cst_367 [1] : vector<8x8xf32> to vector<8xf32>
    %859 = vector.shape_cast %858 : vector<8xf32> to vector<8x1xf32>
    %860 = vector.broadcast %859 : vector<8x1xf32> to vector<8x8xf32>
    %861 = arith.subf %857, %860 : vector<8x8xf32>
    %862 = math.exp %861 : vector<8x8xf32>
    %cst_368 = arith.constant dense<0.000000e+00> : vector<8xf32>
    %863 = vector.multi_reduction <add>, %862, %cst_368 [1] : vector<8x8xf32> to vector<8xf32>
    %864 = vector.shape_cast %863 : vector<8xf32> to vector<8x1xf32>
    %865 = vector.broadcast %864 : vector<8x1xf32> to vector<8x8xf32>
    %866 = arith.divf %862, %865 : vector<8x8xf32>
    %867 = vector.extract_strided_slice %766 {offsets = [0, 24], sizes = [8, 8], strides = [1, 1]} : vector<8x32xf32> to vector<8x8xf32>
    %cst_369 = arith.constant dense<0.000000e+00> : vector<8x8xf32>
    %868 = tpu.matmul %866, %867, %cst_369 {dimension_numbers = #tpu.dot_dimension_numbers<[1], [0], [0], [1], [0, 0, 1, 1], [], []>} : vector<8x8xf32>, vector<8x8xf32>, vector<8x8xf32> -> vector<8x8xf32>
    %869 = vector.extract_strided_slice %644 {offsets = [24, 0], sizes = [8, 32], strides = [1, 1]} : vector<32x32xf32> to vector<8x32xf32>
    %cst_370 = arith.constant dense<0.000000e+00> : vector<8x32xf32>
    %870 = tpu.matmul %868, %869, %cst_370 {dimension_numbers = #tpu.dot_dimension_numbers<[1], [0], [0], [1], [0, 0, 1, 1], [], []>} : vector<8x8xf32>, vector<8x32xf32>, vector<8x32xf32> -> vector<8x32xf32>
    %871 = arith.addf %845, %870 : vector<8x32xf32>
    %872 = tpu.concatenate %763, %871 in 0 : vector<8x32xf32>, vector<8x32xf32> -> vector<16x32xf32>
    %873 = arith.addf %636, %872 : vector<16x32xf32>
    %c0_371 = arith.constant 0 : index
    %c0_372 = arith.constant 0 : index
    %c0_373 = arith.constant 0 : index
    %874 = vector.load %arg21[%c0_371, %c0_372, %c0_373] : memref<2x1x32xf32, #tpu.memory_space<vmem>>, vector<1x1x32xf32>
    %875 = vector.shape_cast %874 : vector<1x1x32xf32> to vector<1x32xf32>
    %c0_374 = arith.constant 0 : index
    %c0_375 = arith.constant 0 : index
    %c0_376 = arith.constant 0 : index
    %876 = vector.load %arg22[%c0_374, %c0_375, %c0_376] : memref<2x1x32xf32, #tpu.memory_space<vmem>>, vector<1x1x32xf32>
    %877 = vector.shape_cast %876 : vector<1x1x32xf32> to vector<1x32xf32>
    %cst_377 = arith.constant dense<0.000000e+00> : vector<16xf32>
    %878 = vector.multi_reduction <add>, %873, %cst_377 [1] : vector<16x32xf32> to vector<16xf32>
    %879 = vector.shape_cast %878 : vector<16xf32> to vector<16x1xf32>
    %cst_378 = arith.constant 3.200000e+01 : f32
    %880 = vector.broadcast %cst_378 : f32 to vector<16x1xf32>
    %881 = arith.divf %879, %880 : vector<16x1xf32>
    %882 = vector.broadcast %881 : vector<16x1xf32> to vector<16x32xf32>
    %883 = arith.subf %873, %882 : vector<16x32xf32>
    %884 = arith.mulf %883, %883 : vector<16x32xf32>
    %cst_379 = arith.constant dense<0.000000e+00> : vector<16xf32>
    %885 = vector.multi_reduction <add>, %884, %cst_379 [1] : vector<16x32xf32> to vector<16xf32>
    %886 = vector.shape_cast %885 : vector<16xf32> to vector<16x1xf32>
    %cst_380 = arith.constant 3.200000e+01 : f32
    %887 = vector.broadcast %cst_380 : f32 to vector<16x1xf32>
    %888 = arith.divf %886, %887 : vector<16x1xf32>
    %889 = vector.broadcast %881 : vector<16x1xf32> to vector<16x32xf32>
    %890 = arith.subf %873, %889 : vector<16x32xf32>
    %cst_381 = arith.constant 9.99999974E-6 : f32
    %891 = vector.broadcast %cst_381 : f32 to vector<16x1xf32>
    %892 = arith.addf %888, %891 : vector<16x1xf32>
    %893 = math.rsqrt %892 : vector<16x1xf32>
    %894 = vector.broadcast %893 : vector<16x1xf32> to vector<16x32xf32>
    %895 = arith.mulf %890, %894 : vector<16x32xf32>
    %896 = vector.broadcast %875 : vector<1x32xf32> to vector<16x32xf32>
    %897 = arith.mulf %895, %896 : vector<16x32xf32>
    %898 = vector.broadcast %877 : vector<1x32xf32> to vector<16x32xf32>
    %899 = arith.addf %897, %898 : vector<16x32xf32>
    %c0_382 = arith.constant 0 : index
    %c0_383 = arith.constant 0 : index
    %c0_384 = arith.constant 0 : index
    %900 = vector.load %arg23[%c0_382, %c0_383, %c0_384] : memref<2x32x32xf32, #tpu.memory_space<vmem>>, vector<1x32x32xf32>
    %901 = vector.shape_cast %900 : vector<1x32x32xf32> to vector<32x32xf32>
    %c0_385 = arith.constant 0 : index
    %c0_386 = arith.constant 0 : index
    %c0_387 = arith.constant 0 : index
    %902 = vector.load %arg26[%c0_385, %c0_386, %c0_387] : memref<2x32x32xf32, #tpu.memory_space<vmem>>, vector<1x32x32xf32>
    %903 = vector.shape_cast %902 : vector<1x32x32xf32> to vector<32x32xf32>
    %cst_388 = arith.constant dense<0.000000e+00> : vector<16x32xf32>
    %904 = tpu.matmul %899, %901, %cst_388 {dimension_numbers = #tpu.dot_dimension_numbers<[1], [0], [0], [1], [0, 0, 1, 1], [], []>} : vector<16x32xf32>, vector<32x32xf32>, vector<16x32xf32> -> vector<16x32xf32>
    %905 = vector.extract_strided_slice %629 {offsets = [0, 0], sizes = [16, 32], strides = [1, 1]} : vector<16x64xf32> to vector<16x32xf32>
    %906 = vector.extract_strided_slice %629 {offsets = [0, 32], sizes = [16, 32], strides = [1, 1]} : vector<16x64xf32> to vector<16x32xf32>
    %cst_389 = arith.constant 0.176776692 : f32
    %907 = vector.broadcast %cst_389 : f32 to vector<16x32xf32>
    %908 = arith.mulf %904, %907 : vector<16x32xf32>
    %909 = vector.extract_strided_slice %908 {offsets = [0, 0], sizes = [8, 32], strides = [1, 1]} : vector<16x32xf32> to vector<8x32xf32>
    %910 = vector.extract_strided_slice %905 {offsets = [0, 0], sizes = [8, 32], strides = [1, 1]} : vector<16x32xf32> to vector<8x32xf32>
    %911 = vector.extract_strided_slice %906 {offsets = [0, 0], sizes = [8, 32], strides = [1, 1]} : vector<16x32xf32> to vector<8x32xf32>
    %cst_390 = arith.constant 0.000000e+00 : f32
    %912 = vector.broadcast %cst_390 : f32 to vector<8x32xf32>
    %913 = vector.extract_strided_slice %909 {offsets = [0, 0], sizes = [8, 8], strides = [1, 1]} : vector<8x32xf32> to vector<8x8xf32>
    %914 = vector.extract_strided_slice %910 {offsets = [0, 0], sizes = [8, 8], strides = [1, 1]} : vector<8x32xf32> to vector<8x8xf32>
    %cst_391 = arith.constant dense<0.000000e+00> : vector<8x8xf32>
    %915 = tpu.matmul %913, %914, %cst_391 {dimension_numbers = #tpu.dot_dimension_numbers<[1], [1], [0], [0], [0, 0, 1, 0], [], []>} : vector<8x8xf32>, vector<8x8xf32>, vector<8x8xf32> -> vector<8x8xf32>
    %cst_392 = arith.constant -1.000000e+04 : f32
    %cst_393 = arith.constant 1.000000e+04 : f32
    %916 = vector.broadcast %cst_392 : f32 to vector<8x8xf32>
    %917 = arith.maximumf %916, %915 : vector<8x8xf32>
    %918 = vector.broadcast %cst_393 : f32 to vector<8x8xf32>
    %919 = arith.minimumf %918, %917 : vector<8x8xf32>
    %920 = arith.mulf %919, %2 : vector<8x8xf32>
    %cst_394 = arith.constant -1.000000e+04 : f32
    %cst_395 = arith.constant 1.000000e+04 : f32
    %921 = vector.broadcast %cst_394 : f32 to vector<8x8xf32>
    %922 = arith.maximumf %921, %920 : vector<8x8xf32>
    %923 = vector.broadcast %cst_395 : f32 to vector<8x8xf32>
    %924 = arith.minimumf %923, %922 : vector<8x8xf32>
    %cst_396 = arith.constant dense<0xFF800000> : vector<8xf32>
    %925 = vector.multi_reduction <maximumf>, %924, %cst_396 [1] : vector<8x8xf32> to vector<8xf32>
    %926 = vector.shape_cast %925 : vector<8xf32> to vector<8x1xf32>
    %927 = vector.broadcast %926 : vector<8x1xf32> to vector<8x8xf32>
    %928 = arith.subf %924, %927 : vector<8x8xf32>
    %929 = math.exp %928 : vector<8x8xf32>
    %cst_397 = arith.constant dense<0.000000e+00> : vector<8xf32>
    %930 = vector.multi_reduction <add>, %929, %cst_397 [1] : vector<8x8xf32> to vector<8xf32>
    %931 = vector.shape_cast %930 : vector<8xf32> to vector<8x1xf32>
    %932 = vector.broadcast %931 : vector<8x1xf32> to vector<8x8xf32>
    %933 = arith.divf %929, %932 : vector<8x8xf32>
    %934 = vector.extract_strided_slice %911 {offsets = [0, 0], sizes = [8, 8], strides = [1, 1]} : vector<8x32xf32> to vector<8x8xf32>
    %cst_398 = arith.constant dense<0.000000e+00> : vector<8x8xf32>
    %935 = tpu.matmul %933, %934, %cst_398 {dimension_numbers = #tpu.dot_dimension_numbers<[1], [0], [0], [1], [0, 0, 1, 1], [], []>} : vector<8x8xf32>, vector<8x8xf32>, vector<8x8xf32> -> vector<8x8xf32>
    %936 = vector.extract_strided_slice %903 {offsets = [0, 0], sizes = [8, 32], strides = [1, 1]} : vector<32x32xf32> to vector<8x32xf32>
    %cst_399 = arith.constant dense<0.000000e+00> : vector<8x32xf32>
    %937 = tpu.matmul %935, %936, %cst_399 {dimension_numbers = #tpu.dot_dimension_numbers<[1], [0], [0], [1], [0, 0, 1, 1], [], []>} : vector<8x8xf32>, vector<8x32xf32>, vector<8x32xf32> -> vector<8x32xf32>
    %938 = arith.addf %912, %937 : vector<8x32xf32>
    %939 = vector.extract_strided_slice %909 {offsets = [0, 8], sizes = [8, 8], strides = [1, 1]} : vector<8x32xf32> to vector<8x8xf32>
    %940 = vector.extract_strided_slice %910 {offsets = [0, 8], sizes = [8, 8], strides = [1, 1]} : vector<8x32xf32> to vector<8x8xf32>
    %cst_400 = arith.constant dense<0.000000e+00> : vector<8x8xf32>
    %941 = tpu.matmul %939, %940, %cst_400 {dimension_numbers = #tpu.dot_dimension_numbers<[1], [1], [0], [0], [0, 0, 1, 0], [], []>} : vector<8x8xf32>, vector<8x8xf32>, vector<8x8xf32> -> vector<8x8xf32>
    %cst_401 = arith.constant -1.000000e+04 : f32
    %cst_402 = arith.constant 1.000000e+04 : f32
    %942 = vector.broadcast %cst_401 : f32 to vector<8x8xf32>
    %943 = arith.maximumf %942, %941 : vector<8x8xf32>
    %944 = vector.broadcast %cst_402 : f32 to vector<8x8xf32>
    %945 = arith.minimumf %944, %943 : vector<8x8xf32>
    %946 = arith.mulf %945, %2 : vector<8x8xf32>
    %cst_403 = arith.constant -1.000000e+04 : f32
    %cst_404 = arith.constant 1.000000e+04 : f32
    %947 = vector.broadcast %cst_403 : f32 to vector<8x8xf32>
    %948 = arith.maximumf %947, %946 : vector<8x8xf32>
    %949 = vector.broadcast %cst_404 : f32 to vector<8x8xf32>
    %950 = arith.minimumf %949, %948 : vector<8x8xf32>
    %cst_405 = arith.constant dense<0xFF800000> : vector<8xf32>
    %951 = vector.multi_reduction <maximumf>, %950, %cst_405 [1] : vector<8x8xf32> to vector<8xf32>
    %952 = vector.shape_cast %951 : vector<8xf32> to vector<8x1xf32>
    %953 = vector.broadcast %952 : vector<8x1xf32> to vector<8x8xf32>
    %954 = arith.subf %950, %953 : vector<8x8xf32>
    %955 = math.exp %954 : vector<8x8xf32>
    %cst_406 = arith.constant dense<0.000000e+00> : vector<8xf32>
    %956 = vector.multi_reduction <add>, %955, %cst_406 [1] : vector<8x8xf32> to vector<8xf32>
    %957 = vector.shape_cast %956 : vector<8xf32> to vector<8x1xf32>
    %958 = vector.broadcast %957 : vector<8x1xf32> to vector<8x8xf32>
    %959 = arith.divf %955, %958 : vector<8x8xf32>
    %960 = vector.extract_strided_slice %911 {offsets = [0, 8], sizes = [8, 8], strides = [1, 1]} : vector<8x32xf32> to vector<8x8xf32>
    %cst_407 = arith.constant dense<0.000000e+00> : vector<8x8xf32>
    %961 = tpu.matmul %959, %960, %cst_407 {dimension_numbers = #tpu.dot_dimension_numbers<[1], [0], [0], [1], [0, 0, 1, 1], [], []>} : vector<8x8xf32>, vector<8x8xf32>, vector<8x8xf32> -> vector<8x8xf32>
    %962 = vector.extract_strided_slice %903 {offsets = [8, 0], sizes = [8, 32], strides = [1, 1]} : vector<32x32xf32> to vector<8x32xf32>
    %cst_408 = arith.constant dense<0.000000e+00> : vector<8x32xf32>
    %963 = tpu.matmul %961, %962, %cst_408 {dimension_numbers = #tpu.dot_dimension_numbers<[1], [0], [0], [1], [0, 0, 1, 1], [], []>} : vector<8x8xf32>, vector<8x32xf32>, vector<8x32xf32> -> vector<8x32xf32>
    %964 = arith.addf %938, %963 : vector<8x32xf32>
    %965 = vector.extract_strided_slice %909 {offsets = [0, 16], sizes = [8, 8], strides = [1, 1]} : vector<8x32xf32> to vector<8x8xf32>
    %966 = vector.extract_strided_slice %910 {offsets = [0, 16], sizes = [8, 8], strides = [1, 1]} : vector<8x32xf32> to vector<8x8xf32>
    %cst_409 = arith.constant dense<0.000000e+00> : vector<8x8xf32>
    %967 = tpu.matmul %965, %966, %cst_409 {dimension_numbers = #tpu.dot_dimension_numbers<[1], [1], [0], [0], [0, 0, 1, 0], [], []>} : vector<8x8xf32>, vector<8x8xf32>, vector<8x8xf32> -> vector<8x8xf32>
    %cst_410 = arith.constant -1.000000e+04 : f32
    %cst_411 = arith.constant 1.000000e+04 : f32
    %968 = vector.broadcast %cst_410 : f32 to vector<8x8xf32>
    %969 = arith.maximumf %968, %967 : vector<8x8xf32>
    %970 = vector.broadcast %cst_411 : f32 to vector<8x8xf32>
    %971 = arith.minimumf %970, %969 : vector<8x8xf32>
    %972 = arith.mulf %971, %2 : vector<8x8xf32>
    %cst_412 = arith.constant -1.000000e+04 : f32
    %cst_413 = arith.constant 1.000000e+04 : f32
    %973 = vector.broadcast %cst_412 : f32 to vector<8x8xf32>
    %974 = arith.maximumf %973, %972 : vector<8x8xf32>
    %975 = vector.broadcast %cst_413 : f32 to vector<8x8xf32>
    %976 = arith.minimumf %975, %974 : vector<8x8xf32>
    %cst_414 = arith.constant dense<0xFF800000> : vector<8xf32>
    %977 = vector.multi_reduction <maximumf>, %976, %cst_414 [1] : vector<8x8xf32> to vector<8xf32>
    %978 = vector.shape_cast %977 : vector<8xf32> to vector<8x1xf32>
    %979 = vector.broadcast %978 : vector<8x1xf32> to vector<8x8xf32>
    %980 = arith.subf %976, %979 : vector<8x8xf32>
    %981 = math.exp %980 : vector<8x8xf32>
    %cst_415 = arith.constant dense<0.000000e+00> : vector<8xf32>
    %982 = vector.multi_reduction <add>, %981, %cst_415 [1] : vector<8x8xf32> to vector<8xf32>
    %983 = vector.shape_cast %982 : vector<8xf32> to vector<8x1xf32>
    %984 = vector.broadcast %983 : vector<8x1xf32> to vector<8x8xf32>
    %985 = arith.divf %981, %984 : vector<8x8xf32>
    %986 = vector.extract_strided_slice %911 {offsets = [0, 16], sizes = [8, 8], strides = [1, 1]} : vector<8x32xf32> to vector<8x8xf32>
    %cst_416 = arith.constant dense<0.000000e+00> : vector<8x8xf32>
    %987 = tpu.matmul %985, %986, %cst_416 {dimension_numbers = #tpu.dot_dimension_numbers<[1], [0], [0], [1], [0, 0, 1, 1], [], []>} : vector<8x8xf32>, vector<8x8xf32>, vector<8x8xf32> -> vector<8x8xf32>
    %988 = vector.extract_strided_slice %903 {offsets = [16, 0], sizes = [8, 32], strides = [1, 1]} : vector<32x32xf32> to vector<8x32xf32>
    %cst_417 = arith.constant dense<0.000000e+00> : vector<8x32xf32>
    %989 = tpu.matmul %987, %988, %cst_417 {dimension_numbers = #tpu.dot_dimension_numbers<[1], [0], [0], [1], [0, 0, 1, 1], [], []>} : vector<8x8xf32>, vector<8x32xf32>, vector<8x32xf32> -> vector<8x32xf32>
    %990 = arith.addf %964, %989 : vector<8x32xf32>
    %991 = vector.extract_strided_slice %909 {offsets = [0, 24], sizes = [8, 8], strides = [1, 1]} : vector<8x32xf32> to vector<8x8xf32>
    %992 = vector.extract_strided_slice %910 {offsets = [0, 24], sizes = [8, 8], strides = [1, 1]} : vector<8x32xf32> to vector<8x8xf32>
    %cst_418 = arith.constant dense<0.000000e+00> : vector<8x8xf32>
    %993 = tpu.matmul %991, %992, %cst_418 {dimension_numbers = #tpu.dot_dimension_numbers<[1], [1], [0], [0], [0, 0, 1, 0], [], []>} : vector<8x8xf32>, vector<8x8xf32>, vector<8x8xf32> -> vector<8x8xf32>
    %cst_419 = arith.constant -1.000000e+04 : f32
    %cst_420 = arith.constant 1.000000e+04 : f32
    %994 = vector.broadcast %cst_419 : f32 to vector<8x8xf32>
    %995 = arith.maximumf %994, %993 : vector<8x8xf32>
    %996 = vector.broadcast %cst_420 : f32 to vector<8x8xf32>
    %997 = arith.minimumf %996, %995 : vector<8x8xf32>
    %998 = arith.mulf %997, %2 : vector<8x8xf32>
    %cst_421 = arith.constant -1.000000e+04 : f32
    %cst_422 = arith.constant 1.000000e+04 : f32
    %999 = vector.broadcast %cst_421 : f32 to vector<8x8xf32>
    %1000 = arith.maximumf %999, %998 : vector<8x8xf32>
    %1001 = vector.broadcast %cst_422 : f32 to vector<8x8xf32>
    %1002 = arith.minimumf %1001, %1000 : vector<8x8xf32>
    %cst_423 = arith.constant dense<0xFF800000> : vector<8xf32>
    %1003 = vector.multi_reduction <maximumf>, %1002, %cst_423 [1] : vector<8x8xf32> to vector<8xf32>
    %1004 = vector.shape_cast %1003 : vector<8xf32> to vector<8x1xf32>
    %1005 = vector.broadcast %1004 : vector<8x1xf32> to vector<8x8xf32>
    %1006 = arith.subf %1002, %1005 : vector<8x8xf32>
    %1007 = math.exp %1006 : vector<8x8xf32>
    %cst_424 = arith.constant dense<0.000000e+00> : vector<8xf32>
    %1008 = vector.multi_reduction <add>, %1007, %cst_424 [1] : vector<8x8xf32> to vector<8xf32>
    %1009 = vector.shape_cast %1008 : vector<8xf32> to vector<8x1xf32>
    %1010 = vector.broadcast %1009 : vector<8x1xf32> to vector<8x8xf32>
    %1011 = arith.divf %1007, %1010 : vector<8x8xf32>
    %1012 = vector.extract_strided_slice %911 {offsets = [0, 24], sizes = [8, 8], strides = [1, 1]} : vector<8x32xf32> to vector<8x8xf32>
    %cst_425 = arith.constant dense<0.000000e+00> : vector<8x8xf32>
    %1013 = tpu.matmul %1011, %1012, %cst_425 {dimension_numbers = #tpu.dot_dimension_numbers<[1], [0], [0], [1], [0, 0, 1, 1], [], []>} : vector<8x8xf32>, vector<8x8xf32>, vector<8x8xf32> -> vector<8x8xf32>
    %1014 = vector.extract_strided_slice %903 {offsets = [24, 0], sizes = [8, 32], strides = [1, 1]} : vector<32x32xf32> to vector<8x32xf32>
    %cst_426 = arith.constant dense<0.000000e+00> : vector<8x32xf32>
    %1015 = tpu.matmul %1013, %1014, %cst_426 {dimension_numbers = #tpu.dot_dimension_numbers<[1], [0], [0], [1], [0, 0, 1, 1], [], []>} : vector<8x8xf32>, vector<8x32xf32>, vector<8x32xf32> -> vector<8x32xf32>
    %1016 = arith.addf %990, %1015 : vector<8x32xf32>
    %1017 = vector.extract_strided_slice %908 {offsets = [8, 0], sizes = [8, 32], strides = [1, 1]} : vector<16x32xf32> to vector<8x32xf32>
    %1018 = vector.extract_strided_slice %905 {offsets = [8, 0], sizes = [8, 32], strides = [1, 1]} : vector<16x32xf32> to vector<8x32xf32>
    %1019 = vector.extract_strided_slice %906 {offsets = [8, 0], sizes = [8, 32], strides = [1, 1]} : vector<16x32xf32> to vector<8x32xf32>
    %cst_427 = arith.constant 0.000000e+00 : f32
    %1020 = vector.broadcast %cst_427 : f32 to vector<8x32xf32>
    %1021 = vector.extract_strided_slice %1017 {offsets = [0, 0], sizes = [8, 8], strides = [1, 1]} : vector<8x32xf32> to vector<8x8xf32>
    %1022 = vector.extract_strided_slice %1018 {offsets = [0, 0], sizes = [8, 8], strides = [1, 1]} : vector<8x32xf32> to vector<8x8xf32>
    %cst_428 = arith.constant dense<0.000000e+00> : vector<8x8xf32>
    %1023 = tpu.matmul %1021, %1022, %cst_428 {dimension_numbers = #tpu.dot_dimension_numbers<[1], [1], [0], [0], [0, 0, 1, 0], [], []>} : vector<8x8xf32>, vector<8x8xf32>, vector<8x8xf32> -> vector<8x8xf32>
    %cst_429 = arith.constant -1.000000e+04 : f32
    %cst_430 = arith.constant 1.000000e+04 : f32
    %1024 = vector.broadcast %cst_429 : f32 to vector<8x8xf32>
    %1025 = arith.maximumf %1024, %1023 : vector<8x8xf32>
    %1026 = vector.broadcast %cst_430 : f32 to vector<8x8xf32>
    %1027 = arith.minimumf %1026, %1025 : vector<8x8xf32>
    %1028 = arith.mulf %1027, %2 : vector<8x8xf32>
    %cst_431 = arith.constant -1.000000e+04 : f32
    %cst_432 = arith.constant 1.000000e+04 : f32
    %1029 = vector.broadcast %cst_431 : f32 to vector<8x8xf32>
    %1030 = arith.maximumf %1029, %1028 : vector<8x8xf32>
    %1031 = vector.broadcast %cst_432 : f32 to vector<8x8xf32>
    %1032 = arith.minimumf %1031, %1030 : vector<8x8xf32>
    %cst_433 = arith.constant dense<0xFF800000> : vector<8xf32>
    %1033 = vector.multi_reduction <maximumf>, %1032, %cst_433 [1] : vector<8x8xf32> to vector<8xf32>
    %1034 = vector.shape_cast %1033 : vector<8xf32> to vector<8x1xf32>
    %1035 = vector.broadcast %1034 : vector<8x1xf32> to vector<8x8xf32>
    %1036 = arith.subf %1032, %1035 : vector<8x8xf32>
    %1037 = math.exp %1036 : vector<8x8xf32>
    %cst_434 = arith.constant dense<0.000000e+00> : vector<8xf32>
    %1038 = vector.multi_reduction <add>, %1037, %cst_434 [1] : vector<8x8xf32> to vector<8xf32>
    %1039 = vector.shape_cast %1038 : vector<8xf32> to vector<8x1xf32>
    %1040 = vector.broadcast %1039 : vector<8x1xf32> to vector<8x8xf32>
    %1041 = arith.divf %1037, %1040 : vector<8x8xf32>
    %1042 = vector.extract_strided_slice %1019 {offsets = [0, 0], sizes = [8, 8], strides = [1, 1]} : vector<8x32xf32> to vector<8x8xf32>
    %cst_435 = arith.constant dense<0.000000e+00> : vector<8x8xf32>
    %1043 = tpu.matmul %1041, %1042, %cst_435 {dimension_numbers = #tpu.dot_dimension_numbers<[1], [0], [0], [1], [0, 0, 1, 1], [], []>} : vector<8x8xf32>, vector<8x8xf32>, vector<8x8xf32> -> vector<8x8xf32>
    %1044 = vector.extract_strided_slice %903 {offsets = [0, 0], sizes = [8, 32], strides = [1, 1]} : vector<32x32xf32> to vector<8x32xf32>
    %cst_436 = arith.constant dense<0.000000e+00> : vector<8x32xf32>
    %1045 = tpu.matmul %1043, %1044, %cst_436 {dimension_numbers = #tpu.dot_dimension_numbers<[1], [0], [0], [1], [0, 0, 1, 1], [], []>} : vector<8x8xf32>, vector<8x32xf32>, vector<8x32xf32> -> vector<8x32xf32>
    %1046 = arith.addf %1020, %1045 : vector<8x32xf32>
    %1047 = vector.extract_strided_slice %1017 {offsets = [0, 8], sizes = [8, 8], strides = [1, 1]} : vector<8x32xf32> to vector<8x8xf32>
    %1048 = vector.extract_strided_slice %1018 {offsets = [0, 8], sizes = [8, 8], strides = [1, 1]} : vector<8x32xf32> to vector<8x8xf32>
    %cst_437 = arith.constant dense<0.000000e+00> : vector<8x8xf32>
    %1049 = tpu.matmul %1047, %1048, %cst_437 {dimension_numbers = #tpu.dot_dimension_numbers<[1], [1], [0], [0], [0, 0, 1, 0], [], []>} : vector<8x8xf32>, vector<8x8xf32>, vector<8x8xf32> -> vector<8x8xf32>
    %cst_438 = arith.constant -1.000000e+04 : f32
    %cst_439 = arith.constant 1.000000e+04 : f32
    %1050 = vector.broadcast %cst_438 : f32 to vector<8x8xf32>
    %1051 = arith.maximumf %1050, %1049 : vector<8x8xf32>
    %1052 = vector.broadcast %cst_439 : f32 to vector<8x8xf32>
    %1053 = arith.minimumf %1052, %1051 : vector<8x8xf32>
    %1054 = arith.mulf %1053, %2 : vector<8x8xf32>
    %cst_440 = arith.constant -1.000000e+04 : f32
    %cst_441 = arith.constant 1.000000e+04 : f32
    %1055 = vector.broadcast %cst_440 : f32 to vector<8x8xf32>
    %1056 = arith.maximumf %1055, %1054 : vector<8x8xf32>
    %1057 = vector.broadcast %cst_441 : f32 to vector<8x8xf32>
    %1058 = arith.minimumf %1057, %1056 : vector<8x8xf32>
    %cst_442 = arith.constant dense<0xFF800000> : vector<8xf32>
    %1059 = vector.multi_reduction <maximumf>, %1058, %cst_442 [1] : vector<8x8xf32> to vector<8xf32>
    %1060 = vector.shape_cast %1059 : vector<8xf32> to vector<8x1xf32>
    %1061 = vector.broadcast %1060 : vector<8x1xf32> to vector<8x8xf32>
    %1062 = arith.subf %1058, %1061 : vector<8x8xf32>
    %1063 = math.exp %1062 : vector<8x8xf32>
    %cst_443 = arith.constant dense<0.000000e+00> : vector<8xf32>
    %1064 = vector.multi_reduction <add>, %1063, %cst_443 [1] : vector<8x8xf32> to vector<8xf32>
    %1065 = vector.shape_cast %1064 : vector<8xf32> to vector<8x1xf32>
    %1066 = vector.broadcast %1065 : vector<8x1xf32> to vector<8x8xf32>
    %1067 = arith.divf %1063, %1066 : vector<8x8xf32>
    %1068 = vector.extract_strided_slice %1019 {offsets = [0, 8], sizes = [8, 8], strides = [1, 1]} : vector<8x32xf32> to vector<8x8xf32>
    %cst_444 = arith.constant dense<0.000000e+00> : vector<8x8xf32>
    %1069 = tpu.matmul %1067, %1068, %cst_444 {dimension_numbers = #tpu.dot_dimension_numbers<[1], [0], [0], [1], [0, 0, 1, 1], [], []>} : vector<8x8xf32>, vector<8x8xf32>, vector<8x8xf32> -> vector<8x8xf32>
    %1070 = vector.extract_strided_slice %903 {offsets = [8, 0], sizes = [8, 32], strides = [1, 1]} : vector<32x32xf32> to vector<8x32xf32>
    %cst_445 = arith.constant dense<0.000000e+00> : vector<8x32xf32>
    %1071 = tpu.matmul %1069, %1070, %cst_445 {dimension_numbers = #tpu.dot_dimension_numbers<[1], [0], [0], [1], [0, 0, 1, 1], [], []>} : vector<8x8xf32>, vector<8x32xf32>, vector<8x32xf32> -> vector<8x32xf32>
    %1072 = arith.addf %1046, %1071 : vector<8x32xf32>
    %1073 = vector.extract_strided_slice %1017 {offsets = [0, 16], sizes = [8, 8], strides = [1, 1]} : vector<8x32xf32> to vector<8x8xf32>
    %1074 = vector.extract_strided_slice %1018 {offsets = [0, 16], sizes = [8, 8], strides = [1, 1]} : vector<8x32xf32> to vector<8x8xf32>
    %cst_446 = arith.constant dense<0.000000e+00> : vector<8x8xf32>
    %1075 = tpu.matmul %1073, %1074, %cst_446 {dimension_numbers = #tpu.dot_dimension_numbers<[1], [1], [0], [0], [0, 0, 1, 0], [], []>} : vector<8x8xf32>, vector<8x8xf32>, vector<8x8xf32> -> vector<8x8xf32>
    %cst_447 = arith.constant -1.000000e+04 : f32
    %cst_448 = arith.constant 1.000000e+04 : f32
    %1076 = vector.broadcast %cst_447 : f32 to vector<8x8xf32>
    %1077 = arith.maximumf %1076, %1075 : vector<8x8xf32>
    %1078 = vector.broadcast %cst_448 : f32 to vector<8x8xf32>
    %1079 = arith.minimumf %1078, %1077 : vector<8x8xf32>
    %1080 = arith.mulf %1079, %2 : vector<8x8xf32>
    %cst_449 = arith.constant -1.000000e+04 : f32
    %cst_450 = arith.constant 1.000000e+04 : f32
    %1081 = vector.broadcast %cst_449 : f32 to vector<8x8xf32>
    %1082 = arith.maximumf %1081, %1080 : vector<8x8xf32>
    %1083 = vector.broadcast %cst_450 : f32 to vector<8x8xf32>
    %1084 = arith.minimumf %1083, %1082 : vector<8x8xf32>
    %cst_451 = arith.constant dense<0xFF800000> : vector<8xf32>
    %1085 = vector.multi_reduction <maximumf>, %1084, %cst_451 [1] : vector<8x8xf32> to vector<8xf32>
    %1086 = vector.shape_cast %1085 : vector<8xf32> to vector<8x1xf32>
    %1087 = vector.broadcast %1086 : vector<8x1xf32> to vector<8x8xf32>
    %1088 = arith.subf %1084, %1087 : vector<8x8xf32>
    %1089 = math.exp %1088 : vector<8x8xf32>
    %cst_452 = arith.constant dense<0.000000e+00> : vector<8xf32>
    %1090 = vector.multi_reduction <add>, %1089, %cst_452 [1] : vector<8x8xf32> to vector<8xf32>
    %1091 = vector.shape_cast %1090 : vector<8xf32> to vector<8x1xf32>
    %1092 = vector.broadcast %1091 : vector<8x1xf32> to vector<8x8xf32>
    %1093 = arith.divf %1089, %1092 : vector<8x8xf32>
    %1094 = vector.extract_strided_slice %1019 {offsets = [0, 16], sizes = [8, 8], strides = [1, 1]} : vector<8x32xf32> to vector<8x8xf32>
    %cst_453 = arith.constant dense<0.000000e+00> : vector<8x8xf32>
    %1095 = tpu.matmul %1093, %1094, %cst_453 {dimension_numbers = #tpu.dot_dimension_numbers<[1], [0], [0], [1], [0, 0, 1, 1], [], []>} : vector<8x8xf32>, vector<8x8xf32>, vector<8x8xf32> -> vector<8x8xf32>
    %1096 = vector.extract_strided_slice %903 {offsets = [16, 0], sizes = [8, 32], strides = [1, 1]} : vector<32x32xf32> to vector<8x32xf32>
    %cst_454 = arith.constant dense<0.000000e+00> : vector<8x32xf32>
    %1097 = tpu.matmul %1095, %1096, %cst_454 {dimension_numbers = #tpu.dot_dimension_numbers<[1], [0], [0], [1], [0, 0, 1, 1], [], []>} : vector<8x8xf32>, vector<8x32xf32>, vector<8x32xf32> -> vector<8x32xf32>
    %1098 = arith.addf %1072, %1097 : vector<8x32xf32>
    %1099 = vector.extract_strided_slice %1017 {offsets = [0, 24], sizes = [8, 8], strides = [1, 1]} : vector<8x32xf32> to vector<8x8xf32>
    %1100 = vector.extract_strided_slice %1018 {offsets = [0, 24], sizes = [8, 8], strides = [1, 1]} : vector<8x32xf32> to vector<8x8xf32>
    %cst_455 = arith.constant dense<0.000000e+00> : vector<8x8xf32>
    %1101 = tpu.matmul %1099, %1100, %cst_455 {dimension_numbers = #tpu.dot_dimension_numbers<[1], [1], [0], [0], [0, 0, 1, 0], [], []>} : vector<8x8xf32>, vector<8x8xf32>, vector<8x8xf32> -> vector<8x8xf32>
    %cst_456 = arith.constant -1.000000e+04 : f32
    %cst_457 = arith.constant 1.000000e+04 : f32
    %1102 = vector.broadcast %cst_456 : f32 to vector<8x8xf32>
    %1103 = arith.maximumf %1102, %1101 : vector<8x8xf32>
    %1104 = vector.broadcast %cst_457 : f32 to vector<8x8xf32>
    %1105 = arith.minimumf %1104, %1103 : vector<8x8xf32>
    %1106 = arith.mulf %1105, %2 : vector<8x8xf32>
    %cst_458 = arith.constant -1.000000e+04 : f32
    %cst_459 = arith.constant 1.000000e+04 : f32
    %1107 = vector.broadcast %cst_458 : f32 to vector<8x8xf32>
    %1108 = arith.maximumf %1107, %1106 : vector<8x8xf32>
    %1109 = vector.broadcast %cst_459 : f32 to vector<8x8xf32>
    %1110 = arith.minimumf %1109, %1108 : vector<8x8xf32>
    %cst_460 = arith.constant dense<0xFF800000> : vector<8xf32>
    %1111 = vector.multi_reduction <maximumf>, %1110, %cst_460 [1] : vector<8x8xf32> to vector<8xf32>
    %1112 = vector.shape_cast %1111 : vector<8xf32> to vector<8x1xf32>
    %1113 = vector.broadcast %1112 : vector<8x1xf32> to vector<8x8xf32>
    %1114 = arith.subf %1110, %1113 : vector<8x8xf32>
    %1115 = math.exp %1114 : vector<8x8xf32>
    %cst_461 = arith.constant dense<0.000000e+00> : vector<8xf32>
    %1116 = vector.multi_reduction <add>, %1115, %cst_461 [1] : vector<8x8xf32> to vector<8xf32>
    %1117 = vector.shape_cast %1116 : vector<8xf32> to vector<8x1xf32>
    %1118 = vector.broadcast %1117 : vector<8x1xf32> to vector<8x8xf32>
    %1119 = arith.divf %1115, %1118 : vector<8x8xf32>
    %1120 = vector.extract_strided_slice %1019 {offsets = [0, 24], sizes = [8, 8], strides = [1, 1]} : vector<8x32xf32> to vector<8x8xf32>
    %cst_462 = arith.constant dense<0.000000e+00> : vector<8x8xf32>
    %1121 = tpu.matmul %1119, %1120, %cst_462 {dimension_numbers = #tpu.dot_dimension_numbers<[1], [0], [0], [1], [0, 0, 1, 1], [], []>} : vector<8x8xf32>, vector<8x8xf32>, vector<8x8xf32> -> vector<8x8xf32>
    %1122 = vector.extract_strided_slice %903 {offsets = [24, 0], sizes = [8, 32], strides = [1, 1]} : vector<32x32xf32> to vector<8x32xf32>
    %cst_463 = arith.constant dense<0.000000e+00> : vector<8x32xf32>
    %1123 = tpu.matmul %1121, %1122, %cst_463 {dimension_numbers = #tpu.dot_dimension_numbers<[1], [0], [0], [1], [0, 0, 1, 1], [], []>} : vector<8x8xf32>, vector<8x32xf32>, vector<8x32xf32> -> vector<8x32xf32>
    %1124 = arith.addf %1098, %1123 : vector<8x32xf32>
    %1125 = tpu.concatenate %1016, %1124 in 0 : vector<8x32xf32>, vector<8x32xf32> -> vector<16x32xf32>
    %1126 = arith.addf %899, %1125 : vector<16x32xf32>
    %c0_464 = arith.constant 0 : index
    %c0_465 = arith.constant 0 : index
    %c0_466 = arith.constant 0 : index
    %1127 = vector.load %arg27[%c0_464, %c0_465, %c0_466] : memref<2x1x32xf32, #tpu.memory_space<vmem>>, vector<1x1x32xf32>
    %1128 = vector.shape_cast %1127 : vector<1x1x32xf32> to vector<1x32xf32>
    %c0_467 = arith.constant 0 : index
    %c0_468 = arith.constant 0 : index
    %c0_469 = arith.constant 0 : index
    %1129 = vector.load %arg28[%c0_467, %c0_468, %c0_469] : memref<2x1x32xf32, #tpu.memory_space<vmem>>, vector<1x1x32xf32>
    %1130 = vector.shape_cast %1129 : vector<1x1x32xf32> to vector<1x32xf32>
    %cst_470 = arith.constant dense<0.000000e+00> : vector<16xf32>
    %1131 = vector.multi_reduction <add>, %1126, %cst_470 [1] : vector<16x32xf32> to vector<16xf32>
    %1132 = vector.shape_cast %1131 : vector<16xf32> to vector<16x1xf32>
    %cst_471 = arith.constant 3.200000e+01 : f32
    %1133 = vector.broadcast %cst_471 : f32 to vector<16x1xf32>
    %1134 = arith.divf %1132, %1133 : vector<16x1xf32>
    %1135 = vector.broadcast %1134 : vector<16x1xf32> to vector<16x32xf32>
    %1136 = arith.subf %1126, %1135 : vector<16x32xf32>
    %1137 = arith.mulf %1136, %1136 : vector<16x32xf32>
    %cst_472 = arith.constant dense<0.000000e+00> : vector<16xf32>
    %1138 = vector.multi_reduction <add>, %1137, %cst_472 [1] : vector<16x32xf32> to vector<16xf32>
    %1139 = vector.shape_cast %1138 : vector<16xf32> to vector<16x1xf32>
    %cst_473 = arith.constant 3.200000e+01 : f32
    %1140 = vector.broadcast %cst_473 : f32 to vector<16x1xf32>
    %1141 = arith.divf %1139, %1140 : vector<16x1xf32>
    %1142 = vector.broadcast %1134 : vector<16x1xf32> to vector<16x32xf32>
    %1143 = arith.subf %1126, %1142 : vector<16x32xf32>
    %cst_474 = arith.constant 9.99999974E-6 : f32
    %1144 = vector.broadcast %cst_474 : f32 to vector<16x1xf32>
    %1145 = arith.addf %1141, %1144 : vector<16x1xf32>
    %1146 = math.rsqrt %1145 : vector<16x1xf32>
    %1147 = vector.broadcast %1146 : vector<16x1xf32> to vector<16x32xf32>
    %1148 = arith.mulf %1143, %1147 : vector<16x32xf32>
    %1149 = vector.broadcast %1128 : vector<1x32xf32> to vector<16x32xf32>
    %1150 = arith.mulf %1148, %1149 : vector<16x32xf32>
    %1151 = vector.broadcast %1130 : vector<1x32xf32> to vector<16x32xf32>
    %1152 = arith.addf %1150, %1151 : vector<16x32xf32>
    %c0_475 = arith.constant 0 : index
    %c0_476 = arith.constant 0 : index
    %c0_477 = arith.constant 0 : index
    %1153 = vector.load %arg29[%c0_475, %c0_476, %c0_477] : memref<2x32x128xf32, #tpu.memory_space<vmem>>, vector<1x32x128xf32>
    %1154 = vector.shape_cast %1153 : vector<1x32x128xf32> to vector<32x128xf32>
    %c0_478 = arith.constant 0 : index
    %c0_479 = arith.constant 0 : index
    %c0_480 = arith.constant 0 : index
    %1155 = vector.load %arg30[%c0_478, %c0_479, %c0_480] : memref<2x1x128xf32, #tpu.memory_space<vmem>>, vector<1x1x128xf32>
    %1156 = vector.shape_cast %1155 : vector<1x1x128xf32> to vector<1x128xf32>
    %c0_481 = arith.constant 0 : index
    %c0_482 = arith.constant 0 : index
    %c0_483 = arith.constant 0 : index
    %1157 = vector.load %arg31[%c0_481, %c0_482, %c0_483] : memref<2x128x32xf32, #tpu.memory_space<vmem>>, vector<1x128x32xf32>
    %1158 = vector.shape_cast %1157 : vector<1x128x32xf32> to vector<128x32xf32>
    %c0_484 = arith.constant 0 : index
    %c0_485 = arith.constant 0 : index
    %c0_486 = arith.constant 0 : index
    %1159 = vector.load %arg32[%c0_484, %c0_485, %c0_486] : memref<2x1x32xf32, #tpu.memory_space<vmem>>, vector<1x1x32xf32>
    %1160 = vector.shape_cast %1159 : vector<1x1x32xf32> to vector<1x32xf32>
    %cst_487 = arith.constant dense<0.000000e+00> : vector<16x128xf32>
    %1161 = tpu.matmul %1152, %1154, %cst_487 {dimension_numbers = #tpu.dot_dimension_numbers<[1], [0], [0], [1], [0, 0, 1, 1], [], []>} : vector<16x32xf32>, vector<32x128xf32>, vector<16x128xf32> -> vector<16x128xf32>
    %1162 = vector.broadcast %1156 : vector<1x128xf32> to vector<16x128xf32>
    %1163 = arith.addf %1161, %1162 : vector<16x128xf32>
    %cst_488 = arith.constant 0.000000e+00 : f32
    %1164 = vector.broadcast %cst_488 : f32 to vector<16x128xf32>
    %1165 = arith.maximumf %1163, %1164 : vector<16x128xf32>
    %cst_489 = arith.constant dense<0.000000e+00> : vector<16x32xf32>
    %1166 = tpu.matmul %1165, %1158, %cst_489 {dimension_numbers = #tpu.dot_dimension_numbers<[1], [0], [0], [1], [0, 0, 1, 1], [], []>} : vector<16x128xf32>, vector<128x32xf32>, vector<16x32xf32> -> vector<16x32xf32>
    %1167 = vector.broadcast %1160 : vector<1x32xf32> to vector<16x32xf32>
    %1168 = arith.addf %1166, %1167 : vector<16x32xf32>
    %cst_490 = arith.constant -5.000000e+00 : f32
    %cst_491 = arith.constant 5.000000e+00 : f32
    %1169 = vector.broadcast %cst_490 : f32 to vector<16x32xf32>
    %1170 = arith.maximumf %1169, %1168 : vector<16x32xf32>
    %1171 = vector.broadcast %cst_491 : f32 to vector<16x32xf32>
    %1172 = arith.minimumf %1171, %1170 : vector<16x32xf32>
    %1173 = arith.addf %1152, %1172 : vector<16x32xf32>
    %c0_492 = arith.constant 0 : index
    %c0_493 = arith.constant 0 : index
    %c0_494 = arith.constant 0 : index
    %1174 = vector.load %arg33[%c0_492, %c0_493, %c0_494] : memref<2x1x32xf32, #tpu.memory_space<vmem>>, vector<1x1x32xf32>
    %1175 = vector.shape_cast %1174 : vector<1x1x32xf32> to vector<1x32xf32>
    %c0_495 = arith.constant 0 : index
    %c0_496 = arith.constant 0 : index
    %c0_497 = arith.constant 0 : index
    %1176 = vector.load %arg34[%c0_495, %c0_496, %c0_497] : memref<2x1x32xf32, #tpu.memory_space<vmem>>, vector<1x1x32xf32>
    %1177 = vector.shape_cast %1176 : vector<1x1x32xf32> to vector<1x32xf32>
    %cst_498 = arith.constant dense<0.000000e+00> : vector<16xf32>
    %1178 = vector.multi_reduction <add>, %1173, %cst_498 [1] : vector<16x32xf32> to vector<16xf32>
    %1179 = vector.shape_cast %1178 : vector<16xf32> to vector<16x1xf32>
    %cst_499 = arith.constant 3.200000e+01 : f32
    %1180 = vector.broadcast %cst_499 : f32 to vector<16x1xf32>
    %1181 = arith.divf %1179, %1180 : vector<16x1xf32>
    %1182 = vector.broadcast %1181 : vector<16x1xf32> to vector<16x32xf32>
    %1183 = arith.subf %1173, %1182 : vector<16x32xf32>
    %1184 = arith.mulf %1183, %1183 : vector<16x32xf32>
    %cst_500 = arith.constant dense<0.000000e+00> : vector<16xf32>
    %1185 = vector.multi_reduction <add>, %1184, %cst_500 [1] : vector<16x32xf32> to vector<16xf32>
    %1186 = vector.shape_cast %1185 : vector<16xf32> to vector<16x1xf32>
    %cst_501 = arith.constant 3.200000e+01 : f32
    %1187 = vector.broadcast %cst_501 : f32 to vector<16x1xf32>
    %1188 = arith.divf %1186, %1187 : vector<16x1xf32>
    %1189 = vector.broadcast %1181 : vector<16x1xf32> to vector<16x32xf32>
    %1190 = arith.subf %1173, %1189 : vector<16x32xf32>
    %cst_502 = arith.constant 9.99999974E-6 : f32
    %1191 = vector.broadcast %cst_502 : f32 to vector<16x1xf32>
    %1192 = arith.addf %1188, %1191 : vector<16x1xf32>
    %1193 = math.rsqrt %1192 : vector<16x1xf32>
    %1194 = vector.broadcast %1193 : vector<16x1xf32> to vector<16x32xf32>
    %1195 = arith.mulf %1190, %1194 : vector<16x32xf32>
    %1196 = vector.broadcast %1175 : vector<1x32xf32> to vector<16x32xf32>
    %1197 = arith.mulf %1195, %1196 : vector<16x32xf32>
    %1198 = vector.broadcast %1177 : vector<1x32xf32> to vector<16x32xf32>
    %1199 = arith.addf %1197, %1198 : vector<16x32xf32>
    %c1_503 = arith.constant 1 : index
    %c0_504 = arith.constant 0 : index
    %c0_505 = arith.constant 0 : index
    %1200 = vector.load %arg17[%c1_503, %c0_504, %c0_505] : memref<2x32x96xf32, #tpu.memory_space<vmem>>, vector<1x32x96xf32>
    %1201 = vector.shape_cast %1200 : vector<1x32x96xf32> to vector<32x96xf32>
    %c1_506 = arith.constant 1 : index
    %c0_507 = arith.constant 0 : index
    %c0_508 = arith.constant 0 : index
    %1202 = vector.load %arg18[%c1_506, %c0_507, %c0_508] : memref<2x32x8xf32, #tpu.memory_space<vmem>>, vector<1x32x8xf32>
    %1203 = vector.shape_cast %1202 : vector<1x32x8xf32> to vector<32x8xf32>
    %c1_509 = arith.constant 1 : index
    %c0_510 = arith.constant 0 : index
    %c0_511 = arith.constant 0 : index
    %1204 = vector.load %arg19[%c1_509, %c0_510, %c0_511] : memref<2x8x64xf32, #tpu.memory_space<vmem>>, vector<1x8x64xf32>
    %1205 = vector.shape_cast %1204 : vector<1x8x64xf32> to vector<8x64xf32>
    %c1_512 = arith.constant 1 : index
    %c0_513 = arith.constant 0 : index
    %c0_514 = arith.constant 0 : index
    %1206 = vector.load %arg20[%c1_512, %c0_513, %c0_514] : memref<2x32x32xf32, #tpu.memory_space<vmem>>, vector<1x32x32xf32>
    %1207 = vector.shape_cast %1206 : vector<1x32x32xf32> to vector<32x32xf32>
    %cst_515 = arith.constant dense<0.000000e+00> : vector<16x96xf32>
    %1208 = tpu.matmul %1199, %1201, %cst_515 {dimension_numbers = #tpu.dot_dimension_numbers<[1], [0], [0], [1], [0, 0, 1, 1], [], []>} : vector<16x32xf32>, vector<32x96xf32>, vector<16x96xf32> -> vector<16x96xf32>
    %1209 = vector.extract_strided_slice %1208 {offsets = [0, 0], sizes = [16, 32], strides = [1, 1]} : vector<16x96xf32> to vector<16x32xf32>
    %1210 = vector.extract_strided_slice %1208 {offsets = [0, 32], sizes = [16, 32], strides = [1, 1]} : vector<16x96xf32> to vector<16x32xf32>
    %1211 = vector.extract_strided_slice %1208 {offsets = [0, 64], sizes = [16, 32], strides = [1, 1]} : vector<16x96xf32> to vector<16x32xf32>
    %1212 = arith.addf %1210, %1211 : vector<16x32xf32>
    %cst_516 = arith.constant dense<0.000000e+00> : vector<16x8xf32>
    %1213 = tpu.matmul %1212, %1203, %cst_516 {dimension_numbers = #tpu.dot_dimension_numbers<[1], [0], [0], [1], [0, 0, 1, 1], [], []>} : vector<16x32xf32>, vector<32x8xf32>, vector<16x8xf32> -> vector<16x8xf32>
    %cst_517 = arith.constant dense<0.000000e+00> : vector<16x64xf32>
    %1214 = tpu.matmul %1213, %1205, %cst_517 {dimension_numbers = #tpu.dot_dimension_numbers<[1], [0], [0], [1], [0, 0, 1, 1], [], []>} : vector<16x8xf32>, vector<8x64xf32>, vector<16x64xf32> -> vector<16x64xf32>
    %1215 = vector.extract_strided_slice %1214 {offsets = [0, 0], sizes = [16, 32], strides = [1, 1]} : vector<16x64xf32> to vector<16x32xf32>
    %1216 = vector.extract_strided_slice %1214 {offsets = [0, 32], sizes = [16, 32], strides = [1, 1]} : vector<16x64xf32> to vector<16x32xf32>
    %cst_518 = arith.constant 0.176776692 : f32
    %1217 = vector.broadcast %cst_518 : f32 to vector<16x32xf32>
    %1218 = arith.mulf %1209, %1217 : vector<16x32xf32>
    %1219 = vector.extract_strided_slice %1218 {offsets = [0, 0], sizes = [8, 32], strides = [1, 1]} : vector<16x32xf32> to vector<8x32xf32>
    %1220 = vector.extract_strided_slice %1215 {offsets = [0, 0], sizes = [8, 32], strides = [1, 1]} : vector<16x32xf32> to vector<8x32xf32>
    %1221 = vector.extract_strided_slice %1216 {offsets = [0, 0], sizes = [8, 32], strides = [1, 1]} : vector<16x32xf32> to vector<8x32xf32>
    %cst_519 = arith.constant 0.000000e+00 : f32
    %1222 = vector.broadcast %cst_519 : f32 to vector<8x32xf32>
    %1223 = vector.extract_strided_slice %1219 {offsets = [0, 0], sizes = [8, 8], strides = [1, 1]} : vector<8x32xf32> to vector<8x8xf32>
    %1224 = vector.extract_strided_slice %1220 {offsets = [0, 0], sizes = [8, 8], strides = [1, 1]} : vector<8x32xf32> to vector<8x8xf32>
    %cst_520 = arith.constant dense<0.000000e+00> : vector<8x8xf32>
    %1225 = tpu.matmul %1223, %1224, %cst_520 {dimension_numbers = #tpu.dot_dimension_numbers<[1], [1], [0], [0], [0, 0, 1, 0], [], []>} : vector<8x8xf32>, vector<8x8xf32>, vector<8x8xf32> -> vector<8x8xf32>
    %cst_521 = arith.constant -1.000000e+04 : f32
    %cst_522 = arith.constant 1.000000e+04 : f32
    %1226 = vector.broadcast %cst_521 : f32 to vector<8x8xf32>
    %1227 = arith.maximumf %1226, %1225 : vector<8x8xf32>
    %1228 = vector.broadcast %cst_522 : f32 to vector<8x8xf32>
    %1229 = arith.minimumf %1228, %1227 : vector<8x8xf32>
    %1230 = arith.mulf %1229, %1 : vector<8x8xf32>
    %cst_523 = arith.constant -1.000000e+04 : f32
    %cst_524 = arith.constant 1.000000e+04 : f32
    %1231 = vector.broadcast %cst_523 : f32 to vector<8x8xf32>
    %1232 = arith.maximumf %1231, %1230 : vector<8x8xf32>
    %1233 = vector.broadcast %cst_524 : f32 to vector<8x8xf32>
    %1234 = arith.minimumf %1233, %1232 : vector<8x8xf32>
    %cst_525 = arith.constant dense<0xFF800000> : vector<8xf32>
    %1235 = vector.multi_reduction <maximumf>, %1234, %cst_525 [1] : vector<8x8xf32> to vector<8xf32>
    %1236 = vector.shape_cast %1235 : vector<8xf32> to vector<8x1xf32>
    %1237 = vector.broadcast %1236 : vector<8x1xf32> to vector<8x8xf32>
    %1238 = arith.subf %1234, %1237 : vector<8x8xf32>
    %1239 = math.exp %1238 : vector<8x8xf32>
    %cst_526 = arith.constant dense<0.000000e+00> : vector<8xf32>
    %1240 = vector.multi_reduction <add>, %1239, %cst_526 [1] : vector<8x8xf32> to vector<8xf32>
    %1241 = vector.shape_cast %1240 : vector<8xf32> to vector<8x1xf32>
    %1242 = vector.broadcast %1241 : vector<8x1xf32> to vector<8x8xf32>
    %1243 = arith.divf %1239, %1242 : vector<8x8xf32>
    %1244 = vector.extract_strided_slice %1221 {offsets = [0, 0], sizes = [8, 8], strides = [1, 1]} : vector<8x32xf32> to vector<8x8xf32>
    %cst_527 = arith.constant dense<0.000000e+00> : vector<8x8xf32>
    %1245 = tpu.matmul %1243, %1244, %cst_527 {dimension_numbers = #tpu.dot_dimension_numbers<[1], [0], [0], [1], [0, 0, 1, 1], [], []>} : vector<8x8xf32>, vector<8x8xf32>, vector<8x8xf32> -> vector<8x8xf32>
    %1246 = vector.extract_strided_slice %1207 {offsets = [0, 0], sizes = [8, 32], strides = [1, 1]} : vector<32x32xf32> to vector<8x32xf32>
    %cst_528 = arith.constant dense<0.000000e+00> : vector<8x32xf32>
    %1247 = tpu.matmul %1245, %1246, %cst_528 {dimension_numbers = #tpu.dot_dimension_numbers<[1], [0], [0], [1], [0, 0, 1, 1], [], []>} : vector<8x8xf32>, vector<8x32xf32>, vector<8x32xf32> -> vector<8x32xf32>
    %1248 = arith.addf %1222, %1247 : vector<8x32xf32>
    %1249 = vector.extract_strided_slice %1219 {offsets = [0, 8], sizes = [8, 8], strides = [1, 1]} : vector<8x32xf32> to vector<8x8xf32>
    %1250 = vector.extract_strided_slice %1220 {offsets = [0, 8], sizes = [8, 8], strides = [1, 1]} : vector<8x32xf32> to vector<8x8xf32>
    %cst_529 = arith.constant dense<0.000000e+00> : vector<8x8xf32>
    %1251 = tpu.matmul %1249, %1250, %cst_529 {dimension_numbers = #tpu.dot_dimension_numbers<[1], [1], [0], [0], [0, 0, 1, 0], [], []>} : vector<8x8xf32>, vector<8x8xf32>, vector<8x8xf32> -> vector<8x8xf32>
    %cst_530 = arith.constant -1.000000e+04 : f32
    %cst_531 = arith.constant 1.000000e+04 : f32
    %1252 = vector.broadcast %cst_530 : f32 to vector<8x8xf32>
    %1253 = arith.maximumf %1252, %1251 : vector<8x8xf32>
    %1254 = vector.broadcast %cst_531 : f32 to vector<8x8xf32>
    %1255 = arith.minimumf %1254, %1253 : vector<8x8xf32>
    %1256 = arith.mulf %1255, %1 : vector<8x8xf32>
    %cst_532 = arith.constant -1.000000e+04 : f32
    %cst_533 = arith.constant 1.000000e+04 : f32
    %1257 = vector.broadcast %cst_532 : f32 to vector<8x8xf32>
    %1258 = arith.maximumf %1257, %1256 : vector<8x8xf32>
    %1259 = vector.broadcast %cst_533 : f32 to vector<8x8xf32>
    %1260 = arith.minimumf %1259, %1258 : vector<8x8xf32>
    %cst_534 = arith.constant dense<0xFF800000> : vector<8xf32>
    %1261 = vector.multi_reduction <maximumf>, %1260, %cst_534 [1] : vector<8x8xf32> to vector<8xf32>
    %1262 = vector.shape_cast %1261 : vector<8xf32> to vector<8x1xf32>
    %1263 = vector.broadcast %1262 : vector<8x1xf32> to vector<8x8xf32>
    %1264 = arith.subf %1260, %1263 : vector<8x8xf32>
    %1265 = math.exp %1264 : vector<8x8xf32>
    %cst_535 = arith.constant dense<0.000000e+00> : vector<8xf32>
    %1266 = vector.multi_reduction <add>, %1265, %cst_535 [1] : vector<8x8xf32> to vector<8xf32>
    %1267 = vector.shape_cast %1266 : vector<8xf32> to vector<8x1xf32>
    %1268 = vector.broadcast %1267 : vector<8x1xf32> to vector<8x8xf32>
    %1269 = arith.divf %1265, %1268 : vector<8x8xf32>
    %1270 = vector.extract_strided_slice %1221 {offsets = [0, 8], sizes = [8, 8], strides = [1, 1]} : vector<8x32xf32> to vector<8x8xf32>
    %cst_536 = arith.constant dense<0.000000e+00> : vector<8x8xf32>
    %1271 = tpu.matmul %1269, %1270, %cst_536 {dimension_numbers = #tpu.dot_dimension_numbers<[1], [0], [0], [1], [0, 0, 1, 1], [], []>} : vector<8x8xf32>, vector<8x8xf32>, vector<8x8xf32> -> vector<8x8xf32>
    %1272 = vector.extract_strided_slice %1207 {offsets = [8, 0], sizes = [8, 32], strides = [1, 1]} : vector<32x32xf32> to vector<8x32xf32>
    %cst_537 = arith.constant dense<0.000000e+00> : vector<8x32xf32>
    %1273 = tpu.matmul %1271, %1272, %cst_537 {dimension_numbers = #tpu.dot_dimension_numbers<[1], [0], [0], [1], [0, 0, 1, 1], [], []>} : vector<8x8xf32>, vector<8x32xf32>, vector<8x32xf32> -> vector<8x32xf32>
    %1274 = arith.addf %1248, %1273 : vector<8x32xf32>
    %1275 = vector.extract_strided_slice %1219 {offsets = [0, 16], sizes = [8, 8], strides = [1, 1]} : vector<8x32xf32> to vector<8x8xf32>
    %1276 = vector.extract_strided_slice %1220 {offsets = [0, 16], sizes = [8, 8], strides = [1, 1]} : vector<8x32xf32> to vector<8x8xf32>
    %cst_538 = arith.constant dense<0.000000e+00> : vector<8x8xf32>
    %1277 = tpu.matmul %1275, %1276, %cst_538 {dimension_numbers = #tpu.dot_dimension_numbers<[1], [1], [0], [0], [0, 0, 1, 0], [], []>} : vector<8x8xf32>, vector<8x8xf32>, vector<8x8xf32> -> vector<8x8xf32>
    %cst_539 = arith.constant -1.000000e+04 : f32
    %cst_540 = arith.constant 1.000000e+04 : f32
    %1278 = vector.broadcast %cst_539 : f32 to vector<8x8xf32>
    %1279 = arith.maximumf %1278, %1277 : vector<8x8xf32>
    %1280 = vector.broadcast %cst_540 : f32 to vector<8x8xf32>
    %1281 = arith.minimumf %1280, %1279 : vector<8x8xf32>
    %1282 = arith.mulf %1281, %1 : vector<8x8xf32>
    %cst_541 = arith.constant -1.000000e+04 : f32
    %cst_542 = arith.constant 1.000000e+04 : f32
    %1283 = vector.broadcast %cst_541 : f32 to vector<8x8xf32>
    %1284 = arith.maximumf %1283, %1282 : vector<8x8xf32>
    %1285 = vector.broadcast %cst_542 : f32 to vector<8x8xf32>
    %1286 = arith.minimumf %1285, %1284 : vector<8x8xf32>
    %cst_543 = arith.constant dense<0xFF800000> : vector<8xf32>
    %1287 = vector.multi_reduction <maximumf>, %1286, %cst_543 [1] : vector<8x8xf32> to vector<8xf32>
    %1288 = vector.shape_cast %1287 : vector<8xf32> to vector<8x1xf32>
    %1289 = vector.broadcast %1288 : vector<8x1xf32> to vector<8x8xf32>
    %1290 = arith.subf %1286, %1289 : vector<8x8xf32>
    %1291 = math.exp %1290 : vector<8x8xf32>
    %cst_544 = arith.constant dense<0.000000e+00> : vector<8xf32>
    %1292 = vector.multi_reduction <add>, %1291, %cst_544 [1] : vector<8x8xf32> to vector<8xf32>
    %1293 = vector.shape_cast %1292 : vector<8xf32> to vector<8x1xf32>
    %1294 = vector.broadcast %1293 : vector<8x1xf32> to vector<8x8xf32>
    %1295 = arith.divf %1291, %1294 : vector<8x8xf32>
    %1296 = vector.extract_strided_slice %1221 {offsets = [0, 16], sizes = [8, 8], strides = [1, 1]} : vector<8x32xf32> to vector<8x8xf32>
    %cst_545 = arith.constant dense<0.000000e+00> : vector<8x8xf32>
    %1297 = tpu.matmul %1295, %1296, %cst_545 {dimension_numbers = #tpu.dot_dimension_numbers<[1], [0], [0], [1], [0, 0, 1, 1], [], []>} : vector<8x8xf32>, vector<8x8xf32>, vector<8x8xf32> -> vector<8x8xf32>
    %1298 = vector.extract_strided_slice %1207 {offsets = [16, 0], sizes = [8, 32], strides = [1, 1]} : vector<32x32xf32> to vector<8x32xf32>
    %cst_546 = arith.constant dense<0.000000e+00> : vector<8x32xf32>
    %1299 = tpu.matmul %1297, %1298, %cst_546 {dimension_numbers = #tpu.dot_dimension_numbers<[1], [0], [0], [1], [0, 0, 1, 1], [], []>} : vector<8x8xf32>, vector<8x32xf32>, vector<8x32xf32> -> vector<8x32xf32>
    %1300 = arith.addf %1274, %1299 : vector<8x32xf32>
    %1301 = vector.extract_strided_slice %1219 {offsets = [0, 24], sizes = [8, 8], strides = [1, 1]} : vector<8x32xf32> to vector<8x8xf32>
    %1302 = vector.extract_strided_slice %1220 {offsets = [0, 24], sizes = [8, 8], strides = [1, 1]} : vector<8x32xf32> to vector<8x8xf32>
    %cst_547 = arith.constant dense<0.000000e+00> : vector<8x8xf32>
    %1303 = tpu.matmul %1301, %1302, %cst_547 {dimension_numbers = #tpu.dot_dimension_numbers<[1], [1], [0], [0], [0, 0, 1, 0], [], []>} : vector<8x8xf32>, vector<8x8xf32>, vector<8x8xf32> -> vector<8x8xf32>
    %cst_548 = arith.constant -1.000000e+04 : f32
    %cst_549 = arith.constant 1.000000e+04 : f32
    %1304 = vector.broadcast %cst_548 : f32 to vector<8x8xf32>
    %1305 = arith.maximumf %1304, %1303 : vector<8x8xf32>
    %1306 = vector.broadcast %cst_549 : f32 to vector<8x8xf32>
    %1307 = arith.minimumf %1306, %1305 : vector<8x8xf32>
    %1308 = arith.mulf %1307, %1 : vector<8x8xf32>
    %cst_550 = arith.constant -1.000000e+04 : f32
    %cst_551 = arith.constant 1.000000e+04 : f32
    %1309 = vector.broadcast %cst_550 : f32 to vector<8x8xf32>
    %1310 = arith.maximumf %1309, %1308 : vector<8x8xf32>
    %1311 = vector.broadcast %cst_551 : f32 to vector<8x8xf32>
    %1312 = arith.minimumf %1311, %1310 : vector<8x8xf32>
    %cst_552 = arith.constant dense<0xFF800000> : vector<8xf32>
    %1313 = vector.multi_reduction <maximumf>, %1312, %cst_552 [1] : vector<8x8xf32> to vector<8xf32>
    %1314 = vector.shape_cast %1313 : vector<8xf32> to vector<8x1xf32>
    %1315 = vector.broadcast %1314 : vector<8x1xf32> to vector<8x8xf32>
    %1316 = arith.subf %1312, %1315 : vector<8x8xf32>
    %1317 = math.exp %1316 : vector<8x8xf32>
    %cst_553 = arith.constant dense<0.000000e+00> : vector<8xf32>
    %1318 = vector.multi_reduction <add>, %1317, %cst_553 [1] : vector<8x8xf32> to vector<8xf32>
    %1319 = vector.shape_cast %1318 : vector<8xf32> to vector<8x1xf32>
    %1320 = vector.broadcast %1319 : vector<8x1xf32> to vector<8x8xf32>
    %1321 = arith.divf %1317, %1320 : vector<8x8xf32>
    %1322 = vector.extract_strided_slice %1221 {offsets = [0, 24], sizes = [8, 8], strides = [1, 1]} : vector<8x32xf32> to vector<8x8xf32>
    %cst_554 = arith.constant dense<0.000000e+00> : vector<8x8xf32>
    %1323 = tpu.matmul %1321, %1322, %cst_554 {dimension_numbers = #tpu.dot_dimension_numbers<[1], [0], [0], [1], [0, 0, 1, 1], [], []>} : vector<8x8xf32>, vector<8x8xf32>, vector<8x8xf32> -> vector<8x8xf32>
    %1324 = vector.extract_strided_slice %1207 {offsets = [24, 0], sizes = [8, 32], strides = [1, 1]} : vector<32x32xf32> to vector<8x32xf32>
    %cst_555 = arith.constant dense<0.000000e+00> : vector<8x32xf32>
    %1325 = tpu.matmul %1323, %1324, %cst_555 {dimension_numbers = #tpu.dot_dimension_numbers<[1], [0], [0], [1], [0, 0, 1, 1], [], []>} : vector<8x8xf32>, vector<8x32xf32>, vector<8x32xf32> -> vector<8x32xf32>
    %1326 = arith.addf %1300, %1325 : vector<8x32xf32>
    %1327 = vector.extract_strided_slice %1218 {offsets = [8, 0], sizes = [8, 32], strides = [1, 1]} : vector<16x32xf32> to vector<8x32xf32>
    %1328 = vector.extract_strided_slice %1215 {offsets = [8, 0], sizes = [8, 32], strides = [1, 1]} : vector<16x32xf32> to vector<8x32xf32>
    %1329 = vector.extract_strided_slice %1216 {offsets = [8, 0], sizes = [8, 32], strides = [1, 1]} : vector<16x32xf32> to vector<8x32xf32>
    %cst_556 = arith.constant 0.000000e+00 : f32
    %1330 = vector.broadcast %cst_556 : f32 to vector<8x32xf32>
    %1331 = vector.extract_strided_slice %1327 {offsets = [0, 0], sizes = [8, 8], strides = [1, 1]} : vector<8x32xf32> to vector<8x8xf32>
    %1332 = vector.extract_strided_slice %1328 {offsets = [0, 0], sizes = [8, 8], strides = [1, 1]} : vector<8x32xf32> to vector<8x8xf32>
    %cst_557 = arith.constant dense<0.000000e+00> : vector<8x8xf32>
    %1333 = tpu.matmul %1331, %1332, %cst_557 {dimension_numbers = #tpu.dot_dimension_numbers<[1], [1], [0], [0], [0, 0, 1, 0], [], []>} : vector<8x8xf32>, vector<8x8xf32>, vector<8x8xf32> -> vector<8x8xf32>
    %cst_558 = arith.constant -1.000000e+04 : f32
    %cst_559 = arith.constant 1.000000e+04 : f32
    %1334 = vector.broadcast %cst_558 : f32 to vector<8x8xf32>
    %1335 = arith.maximumf %1334, %1333 : vector<8x8xf32>
    %1336 = vector.broadcast %cst_559 : f32 to vector<8x8xf32>
    %1337 = arith.minimumf %1336, %1335 : vector<8x8xf32>
    %1338 = arith.mulf %1337, %1 : vector<8x8xf32>
    %cst_560 = arith.constant -1.000000e+04 : f32
    %cst_561 = arith.constant 1.000000e+04 : f32
    %1339 = vector.broadcast %cst_560 : f32 to vector<8x8xf32>
    %1340 = arith.maximumf %1339, %1338 : vector<8x8xf32>
    %1341 = vector.broadcast %cst_561 : f32 to vector<8x8xf32>
    %1342 = arith.minimumf %1341, %1340 : vector<8x8xf32>
    %cst_562 = arith.constant dense<0xFF800000> : vector<8xf32>
    %1343 = vector.multi_reduction <maximumf>, %1342, %cst_562 [1] : vector<8x8xf32> to vector<8xf32>
    %1344 = vector.shape_cast %1343 : vector<8xf32> to vector<8x1xf32>
    %1345 = vector.broadcast %1344 : vector<8x1xf32> to vector<8x8xf32>
    %1346 = arith.subf %1342, %1345 : vector<8x8xf32>
    %1347 = math.exp %1346 : vector<8x8xf32>
    %cst_563 = arith.constant dense<0.000000e+00> : vector<8xf32>
    %1348 = vector.multi_reduction <add>, %1347, %cst_563 [1] : vector<8x8xf32> to vector<8xf32>
    %1349 = vector.shape_cast %1348 : vector<8xf32> to vector<8x1xf32>
    %1350 = vector.broadcast %1349 : vector<8x1xf32> to vector<8x8xf32>
    %1351 = arith.divf %1347, %1350 : vector<8x8xf32>
    %1352 = vector.extract_strided_slice %1329 {offsets = [0, 0], sizes = [8, 8], strides = [1, 1]} : vector<8x32xf32> to vector<8x8xf32>
    %cst_564 = arith.constant dense<0.000000e+00> : vector<8x8xf32>
    %1353 = tpu.matmul %1351, %1352, %cst_564 {dimension_numbers = #tpu.dot_dimension_numbers<[1], [0], [0], [1], [0, 0, 1, 1], [], []>} : vector<8x8xf32>, vector<8x8xf32>, vector<8x8xf32> -> vector<8x8xf32>
    %1354 = vector.extract_strided_slice %1207 {offsets = [0, 0], sizes = [8, 32], strides = [1, 1]} : vector<32x32xf32> to vector<8x32xf32>
    %cst_565 = arith.constant dense<0.000000e+00> : vector<8x32xf32>
    %1355 = tpu.matmul %1353, %1354, %cst_565 {dimension_numbers = #tpu.dot_dimension_numbers<[1], [0], [0], [1], [0, 0, 1, 1], [], []>} : vector<8x8xf32>, vector<8x32xf32>, vector<8x32xf32> -> vector<8x32xf32>
    %1356 = arith.addf %1330, %1355 : vector<8x32xf32>
    %1357 = vector.extract_strided_slice %1327 {offsets = [0, 8], sizes = [8, 8], strides = [1, 1]} : vector<8x32xf32> to vector<8x8xf32>
    %1358 = vector.extract_strided_slice %1328 {offsets = [0, 8], sizes = [8, 8], strides = [1, 1]} : vector<8x32xf32> to vector<8x8xf32>
    %cst_566 = arith.constant dense<0.000000e+00> : vector<8x8xf32>
    %1359 = tpu.matmul %1357, %1358, %cst_566 {dimension_numbers = #tpu.dot_dimension_numbers<[1], [1], [0], [0], [0, 0, 1, 0], [], []>} : vector<8x8xf32>, vector<8x8xf32>, vector<8x8xf32> -> vector<8x8xf32>
    %cst_567 = arith.constant -1.000000e+04 : f32
    %cst_568 = arith.constant 1.000000e+04 : f32
    %1360 = vector.broadcast %cst_567 : f32 to vector<8x8xf32>
    %1361 = arith.maximumf %1360, %1359 : vector<8x8xf32>
    %1362 = vector.broadcast %cst_568 : f32 to vector<8x8xf32>
    %1363 = arith.minimumf %1362, %1361 : vector<8x8xf32>
    %1364 = arith.mulf %1363, %1 : vector<8x8xf32>
    %cst_569 = arith.constant -1.000000e+04 : f32
    %cst_570 = arith.constant 1.000000e+04 : f32
    %1365 = vector.broadcast %cst_569 : f32 to vector<8x8xf32>
    %1366 = arith.maximumf %1365, %1364 : vector<8x8xf32>
    %1367 = vector.broadcast %cst_570 : f32 to vector<8x8xf32>
    %1368 = arith.minimumf %1367, %1366 : vector<8x8xf32>
    %cst_571 = arith.constant dense<0xFF800000> : vector<8xf32>
    %1369 = vector.multi_reduction <maximumf>, %1368, %cst_571 [1] : vector<8x8xf32> to vector<8xf32>
    %1370 = vector.shape_cast %1369 : vector<8xf32> to vector<8x1xf32>
    %1371 = vector.broadcast %1370 : vector<8x1xf32> to vector<8x8xf32>
    %1372 = arith.subf %1368, %1371 : vector<8x8xf32>
    %1373 = math.exp %1372 : vector<8x8xf32>
    %cst_572 = arith.constant dense<0.000000e+00> : vector<8xf32>
    %1374 = vector.multi_reduction <add>, %1373, %cst_572 [1] : vector<8x8xf32> to vector<8xf32>
    %1375 = vector.shape_cast %1374 : vector<8xf32> to vector<8x1xf32>
    %1376 = vector.broadcast %1375 : vector<8x1xf32> to vector<8x8xf32>
    %1377 = arith.divf %1373, %1376 : vector<8x8xf32>
    %1378 = vector.extract_strided_slice %1329 {offsets = [0, 8], sizes = [8, 8], strides = [1, 1]} : vector<8x32xf32> to vector<8x8xf32>
    %cst_573 = arith.constant dense<0.000000e+00> : vector<8x8xf32>
    %1379 = tpu.matmul %1377, %1378, %cst_573 {dimension_numbers = #tpu.dot_dimension_numbers<[1], [0], [0], [1], [0, 0, 1, 1], [], []>} : vector<8x8xf32>, vector<8x8xf32>, vector<8x8xf32> -> vector<8x8xf32>
    %1380 = vector.extract_strided_slice %1207 {offsets = [8, 0], sizes = [8, 32], strides = [1, 1]} : vector<32x32xf32> to vector<8x32xf32>
    %cst_574 = arith.constant dense<0.000000e+00> : vector<8x32xf32>
    %1381 = tpu.matmul %1379, %1380, %cst_574 {dimension_numbers = #tpu.dot_dimension_numbers<[1], [0], [0], [1], [0, 0, 1, 1], [], []>} : vector<8x8xf32>, vector<8x32xf32>, vector<8x32xf32> -> vector<8x32xf32>
    %1382 = arith.addf %1356, %1381 : vector<8x32xf32>
    %1383 = vector.extract_strided_slice %1327 {offsets = [0, 16], sizes = [8, 8], strides = [1, 1]} : vector<8x32xf32> to vector<8x8xf32>
    %1384 = vector.extract_strided_slice %1328 {offsets = [0, 16], sizes = [8, 8], strides = [1, 1]} : vector<8x32xf32> to vector<8x8xf32>
    %cst_575 = arith.constant dense<0.000000e+00> : vector<8x8xf32>
    %1385 = tpu.matmul %1383, %1384, %cst_575 {dimension_numbers = #tpu.dot_dimension_numbers<[1], [1], [0], [0], [0, 0, 1, 0], [], []>} : vector<8x8xf32>, vector<8x8xf32>, vector<8x8xf32> -> vector<8x8xf32>
    %cst_576 = arith.constant -1.000000e+04 : f32
    %cst_577 = arith.constant 1.000000e+04 : f32
    %1386 = vector.broadcast %cst_576 : f32 to vector<8x8xf32>
    %1387 = arith.maximumf %1386, %1385 : vector<8x8xf32>
    %1388 = vector.broadcast %cst_577 : f32 to vector<8x8xf32>
    %1389 = arith.minimumf %1388, %1387 : vector<8x8xf32>
    %1390 = arith.mulf %1389, %1 : vector<8x8xf32>
    %cst_578 = arith.constant -1.000000e+04 : f32
    %cst_579 = arith.constant 1.000000e+04 : f32
    %1391 = vector.broadcast %cst_578 : f32 to vector<8x8xf32>
    %1392 = arith.maximumf %1391, %1390 : vector<8x8xf32>
    %1393 = vector.broadcast %cst_579 : f32 to vector<8x8xf32>
    %1394 = arith.minimumf %1393, %1392 : vector<8x8xf32>
    %cst_580 = arith.constant dense<0xFF800000> : vector<8xf32>
    %1395 = vector.multi_reduction <maximumf>, %1394, %cst_580 [1] : vector<8x8xf32> to vector<8xf32>
    %1396 = vector.shape_cast %1395 : vector<8xf32> to vector<8x1xf32>
    %1397 = vector.broadcast %1396 : vector<8x1xf32> to vector<8x8xf32>
    %1398 = arith.subf %1394, %1397 : vector<8x8xf32>
    %1399 = math.exp %1398 : vector<8x8xf32>
    %cst_581 = arith.constant dense<0.000000e+00> : vector<8xf32>
    %1400 = vector.multi_reduction <add>, %1399, %cst_581 [1] : vector<8x8xf32> to vector<8xf32>
    %1401 = vector.shape_cast %1400 : vector<8xf32> to vector<8x1xf32>
    %1402 = vector.broadcast %1401 : vector<8x1xf32> to vector<8x8xf32>
    %1403 = arith.divf %1399, %1402 : vector<8x8xf32>
    %1404 = vector.extract_strided_slice %1329 {offsets = [0, 16], sizes = [8, 8], strides = [1, 1]} : vector<8x32xf32> to vector<8x8xf32>
    %cst_582 = arith.constant dense<0.000000e+00> : vector<8x8xf32>
    %1405 = tpu.matmul %1403, %1404, %cst_582 {dimension_numbers = #tpu.dot_dimension_numbers<[1], [0], [0], [1], [0, 0, 1, 1], [], []>} : vector<8x8xf32>, vector<8x8xf32>, vector<8x8xf32> -> vector<8x8xf32>
    %1406 = vector.extract_strided_slice %1207 {offsets = [16, 0], sizes = [8, 32], strides = [1, 1]} : vector<32x32xf32> to vector<8x32xf32>
    %cst_583 = arith.constant dense<0.000000e+00> : vector<8x32xf32>
    %1407 = tpu.matmul %1405, %1406, %cst_583 {dimension_numbers = #tpu.dot_dimension_numbers<[1], [0], [0], [1], [0, 0, 1, 1], [], []>} : vector<8x8xf32>, vector<8x32xf32>, vector<8x32xf32> -> vector<8x32xf32>
    %1408 = arith.addf %1382, %1407 : vector<8x32xf32>
    %1409 = vector.extract_strided_slice %1327 {offsets = [0, 24], sizes = [8, 8], strides = [1, 1]} : vector<8x32xf32> to vector<8x8xf32>
    %1410 = vector.extract_strided_slice %1328 {offsets = [0, 24], sizes = [8, 8], strides = [1, 1]} : vector<8x32xf32> to vector<8x8xf32>
    %cst_584 = arith.constant dense<0.000000e+00> : vector<8x8xf32>
    %1411 = tpu.matmul %1409, %1410, %cst_584 {dimension_numbers = #tpu.dot_dimension_numbers<[1], [1], [0], [0], [0, 0, 1, 0], [], []>} : vector<8x8xf32>, vector<8x8xf32>, vector<8x8xf32> -> vector<8x8xf32>
    %cst_585 = arith.constant -1.000000e+04 : f32
    %cst_586 = arith.constant 1.000000e+04 : f32
    %1412 = vector.broadcast %cst_585 : f32 to vector<8x8xf32>
    %1413 = arith.maximumf %1412, %1411 : vector<8x8xf32>
    %1414 = vector.broadcast %cst_586 : f32 to vector<8x8xf32>
    %1415 = arith.minimumf %1414, %1413 : vector<8x8xf32>
    %1416 = arith.mulf %1415, %1 : vector<8x8xf32>
    %cst_587 = arith.constant -1.000000e+04 : f32
    %cst_588 = arith.constant 1.000000e+04 : f32
    %1417 = vector.broadcast %cst_587 : f32 to vector<8x8xf32>
    %1418 = arith.maximumf %1417, %1416 : vector<8x8xf32>
    %1419 = vector.broadcast %cst_588 : f32 to vector<8x8xf32>
    %1420 = arith.minimumf %1419, %1418 : vector<8x8xf32>
    %cst_589 = arith.constant dense<0xFF800000> : vector<8xf32>
    %1421 = vector.multi_reduction <maximumf>, %1420, %cst_589 [1] : vector<8x8xf32> to vector<8xf32>
    %1422 = vector.shape_cast %1421 : vector<8xf32> to vector<8x1xf32>
    %1423 = vector.broadcast %1422 : vector<8x1xf32> to vector<8x8xf32>
    %1424 = arith.subf %1420, %1423 : vector<8x8xf32>
    %1425 = math.exp %1424 : vector<8x8xf32>
    %cst_590 = arith.constant dense<0.000000e+00> : vector<8xf32>
    %1426 = vector.multi_reduction <add>, %1425, %cst_590 [1] : vector<8x8xf32> to vector<8xf32>
    %1427 = vector.shape_cast %1426 : vector<8xf32> to vector<8x1xf32>
    %1428 = vector.broadcast %1427 : vector<8x1xf32> to vector<8x8xf32>
    %1429 = arith.divf %1425, %1428 : vector<8x8xf32>
    %1430 = vector.extract_strided_slice %1329 {offsets = [0, 24], sizes = [8, 8], strides = [1, 1]} : vector<8x32xf32> to vector<8x8xf32>
    %cst_591 = arith.constant dense<0.000000e+00> : vector<8x8xf32>
    %1431 = tpu.matmul %1429, %1430, %cst_591 {dimension_numbers = #tpu.dot_dimension_numbers<[1], [0], [0], [1], [0, 0, 1, 1], [], []>} : vector<8x8xf32>, vector<8x8xf32>, vector<8x8xf32> -> vector<8x8xf32>
    %1432 = vector.extract_strided_slice %1207 {offsets = [24, 0], sizes = [8, 32], strides = [1, 1]} : vector<32x32xf32> to vector<8x32xf32>
    %cst_592 = arith.constant dense<0.000000e+00> : vector<8x32xf32>
    %1433 = tpu.matmul %1431, %1432, %cst_592 {dimension_numbers = #tpu.dot_dimension_numbers<[1], [0], [0], [1], [0, 0, 1, 1], [], []>} : vector<8x8xf32>, vector<8x32xf32>, vector<8x32xf32> -> vector<8x32xf32>
    %1434 = arith.addf %1408, %1433 : vector<8x32xf32>
    %1435 = tpu.concatenate %1326, %1434 in 0 : vector<8x32xf32>, vector<8x32xf32> -> vector<16x32xf32>
    %1436 = arith.addf %1199, %1435 : vector<16x32xf32>
    %c1_593 = arith.constant 1 : index
    %c0_594 = arith.constant 0 : index
    %c0_595 = arith.constant 0 : index
    %1437 = vector.load %arg21[%c1_593, %c0_594, %c0_595] : memref<2x1x32xf32, #tpu.memory_space<vmem>>, vector<1x1x32xf32>
    %1438 = vector.shape_cast %1437 : vector<1x1x32xf32> to vector<1x32xf32>
    %c1_596 = arith.constant 1 : index
    %c0_597 = arith.constant 0 : index
    %c0_598 = arith.constant 0 : index
    %1439 = vector.load %arg22[%c1_596, %c0_597, %c0_598] : memref<2x1x32xf32, #tpu.memory_space<vmem>>, vector<1x1x32xf32>
    %1440 = vector.shape_cast %1439 : vector<1x1x32xf32> to vector<1x32xf32>
    %cst_599 = arith.constant dense<0.000000e+00> : vector<16xf32>
    %1441 = vector.multi_reduction <add>, %1436, %cst_599 [1] : vector<16x32xf32> to vector<16xf32>
    %1442 = vector.shape_cast %1441 : vector<16xf32> to vector<16x1xf32>
    %cst_600 = arith.constant 3.200000e+01 : f32
    %1443 = vector.broadcast %cst_600 : f32 to vector<16x1xf32>
    %1444 = arith.divf %1442, %1443 : vector<16x1xf32>
    %1445 = vector.broadcast %1444 : vector<16x1xf32> to vector<16x32xf32>
    %1446 = arith.subf %1436, %1445 : vector<16x32xf32>
    %1447 = arith.mulf %1446, %1446 : vector<16x32xf32>
    %cst_601 = arith.constant dense<0.000000e+00> : vector<16xf32>
    %1448 = vector.multi_reduction <add>, %1447, %cst_601 [1] : vector<16x32xf32> to vector<16xf32>
    %1449 = vector.shape_cast %1448 : vector<16xf32> to vector<16x1xf32>
    %cst_602 = arith.constant 3.200000e+01 : f32
    %1450 = vector.broadcast %cst_602 : f32 to vector<16x1xf32>
    %1451 = arith.divf %1449, %1450 : vector<16x1xf32>
    %1452 = vector.broadcast %1444 : vector<16x1xf32> to vector<16x32xf32>
    %1453 = arith.subf %1436, %1452 : vector<16x32xf32>
    %cst_603 = arith.constant 9.99999974E-6 : f32
    %1454 = vector.broadcast %cst_603 : f32 to vector<16x1xf32>
    %1455 = arith.addf %1451, %1454 : vector<16x1xf32>
    %1456 = math.rsqrt %1455 : vector<16x1xf32>
    %1457 = vector.broadcast %1456 : vector<16x1xf32> to vector<16x32xf32>
    %1458 = arith.mulf %1453, %1457 : vector<16x32xf32>
    %1459 = vector.broadcast %1438 : vector<1x32xf32> to vector<16x32xf32>
    %1460 = arith.mulf %1458, %1459 : vector<16x32xf32>
    %1461 = vector.broadcast %1440 : vector<1x32xf32> to vector<16x32xf32>
    %1462 = arith.addf %1460, %1461 : vector<16x32xf32>
    %c1_604 = arith.constant 1 : index
    %c0_605 = arith.constant 0 : index
    %c0_606 = arith.constant 0 : index
    %1463 = vector.load %arg23[%c1_604, %c0_605, %c0_606] : memref<2x32x32xf32, #tpu.memory_space<vmem>>, vector<1x32x32xf32>
    %1464 = vector.shape_cast %1463 : vector<1x32x32xf32> to vector<32x32xf32>
    %c1_607 = arith.constant 1 : index
    %c0_608 = arith.constant 0 : index
    %c0_609 = arith.constant 0 : index
    %1465 = vector.load %arg26[%c1_607, %c0_608, %c0_609] : memref<2x32x32xf32, #tpu.memory_space<vmem>>, vector<1x32x32xf32>
    %1466 = vector.shape_cast %1465 : vector<1x32x32xf32> to vector<32x32xf32>
    %cst_610 = arith.constant dense<0.000000e+00> : vector<16x32xf32>
    %1467 = tpu.matmul %1462, %1464, %cst_610 {dimension_numbers = #tpu.dot_dimension_numbers<[1], [0], [0], [1], [0, 0, 1, 1], [], []>} : vector<16x32xf32>, vector<32x32xf32>, vector<16x32xf32> -> vector<16x32xf32>
    %1468 = vector.extract_strided_slice %635 {offsets = [0, 0], sizes = [16, 32], strides = [1, 1]} : vector<16x64xf32> to vector<16x32xf32>
    %1469 = vector.extract_strided_slice %635 {offsets = [0, 32], sizes = [16, 32], strides = [1, 1]} : vector<16x64xf32> to vector<16x32xf32>
    %cst_611 = arith.constant 0.176776692 : f32
    %1470 = vector.broadcast %cst_611 : f32 to vector<16x32xf32>
    %1471 = arith.mulf %1467, %1470 : vector<16x32xf32>
    %1472 = vector.extract_strided_slice %1471 {offsets = [0, 0], sizes = [8, 32], strides = [1, 1]} : vector<16x32xf32> to vector<8x32xf32>
    %1473 = vector.extract_strided_slice %1468 {offsets = [0, 0], sizes = [8, 32], strides = [1, 1]} : vector<16x32xf32> to vector<8x32xf32>
    %1474 = vector.extract_strided_slice %1469 {offsets = [0, 0], sizes = [8, 32], strides = [1, 1]} : vector<16x32xf32> to vector<8x32xf32>
    %cst_612 = arith.constant 0.000000e+00 : f32
    %1475 = vector.broadcast %cst_612 : f32 to vector<8x32xf32>
    %1476 = vector.extract_strided_slice %1472 {offsets = [0, 0], sizes = [8, 8], strides = [1, 1]} : vector<8x32xf32> to vector<8x8xf32>
    %1477 = vector.extract_strided_slice %1473 {offsets = [0, 0], sizes = [8, 8], strides = [1, 1]} : vector<8x32xf32> to vector<8x8xf32>
    %cst_613 = arith.constant dense<0.000000e+00> : vector<8x8xf32>
    %1478 = tpu.matmul %1476, %1477, %cst_613 {dimension_numbers = #tpu.dot_dimension_numbers<[1], [1], [0], [0], [0, 0, 1, 0], [], []>} : vector<8x8xf32>, vector<8x8xf32>, vector<8x8xf32> -> vector<8x8xf32>
    %cst_614 = arith.constant -1.000000e+04 : f32
    %cst_615 = arith.constant 1.000000e+04 : f32
    %1479 = vector.broadcast %cst_614 : f32 to vector<8x8xf32>
    %1480 = arith.maximumf %1479, %1478 : vector<8x8xf32>
    %1481 = vector.broadcast %cst_615 : f32 to vector<8x8xf32>
    %1482 = arith.minimumf %1481, %1480 : vector<8x8xf32>
    %1483 = arith.mulf %1482, %2 : vector<8x8xf32>
    %cst_616 = arith.constant -1.000000e+04 : f32
    %cst_617 = arith.constant 1.000000e+04 : f32
    %1484 = vector.broadcast %cst_616 : f32 to vector<8x8xf32>
    %1485 = arith.maximumf %1484, %1483 : vector<8x8xf32>
    %1486 = vector.broadcast %cst_617 : f32 to vector<8x8xf32>
    %1487 = arith.minimumf %1486, %1485 : vector<8x8xf32>
    %cst_618 = arith.constant dense<0xFF800000> : vector<8xf32>
    %1488 = vector.multi_reduction <maximumf>, %1487, %cst_618 [1] : vector<8x8xf32> to vector<8xf32>
    %1489 = vector.shape_cast %1488 : vector<8xf32> to vector<8x1xf32>
    %1490 = vector.broadcast %1489 : vector<8x1xf32> to vector<8x8xf32>
    %1491 = arith.subf %1487, %1490 : vector<8x8xf32>
    %1492 = math.exp %1491 : vector<8x8xf32>
    %cst_619 = arith.constant dense<0.000000e+00> : vector<8xf32>
    %1493 = vector.multi_reduction <add>, %1492, %cst_619 [1] : vector<8x8xf32> to vector<8xf32>
    %1494 = vector.shape_cast %1493 : vector<8xf32> to vector<8x1xf32>
    %1495 = vector.broadcast %1494 : vector<8x1xf32> to vector<8x8xf32>
    %1496 = arith.divf %1492, %1495 : vector<8x8xf32>
    %1497 = vector.extract_strided_slice %1474 {offsets = [0, 0], sizes = [8, 8], strides = [1, 1]} : vector<8x32xf32> to vector<8x8xf32>
    %cst_620 = arith.constant dense<0.000000e+00> : vector<8x8xf32>
    %1498 = tpu.matmul %1496, %1497, %cst_620 {dimension_numbers = #tpu.dot_dimension_numbers<[1], [0], [0], [1], [0, 0, 1, 1], [], []>} : vector<8x8xf32>, vector<8x8xf32>, vector<8x8xf32> -> vector<8x8xf32>
    %1499 = vector.extract_strided_slice %1466 {offsets = [0, 0], sizes = [8, 32], strides = [1, 1]} : vector<32x32xf32> to vector<8x32xf32>
    %cst_621 = arith.constant dense<0.000000e+00> : vector<8x32xf32>
    %1500 = tpu.matmul %1498, %1499, %cst_621 {dimension_numbers = #tpu.dot_dimension_numbers<[1], [0], [0], [1], [0, 0, 1, 1], [], []>} : vector<8x8xf32>, vector<8x32xf32>, vector<8x32xf32> -> vector<8x32xf32>
    %1501 = arith.addf %1475, %1500 : vector<8x32xf32>
    %1502 = vector.extract_strided_slice %1472 {offsets = [0, 8], sizes = [8, 8], strides = [1, 1]} : vector<8x32xf32> to vector<8x8xf32>
    %1503 = vector.extract_strided_slice %1473 {offsets = [0, 8], sizes = [8, 8], strides = [1, 1]} : vector<8x32xf32> to vector<8x8xf32>
    %cst_622 = arith.constant dense<0.000000e+00> : vector<8x8xf32>
    %1504 = tpu.matmul %1502, %1503, %cst_622 {dimension_numbers = #tpu.dot_dimension_numbers<[1], [1], [0], [0], [0, 0, 1, 0], [], []>} : vector<8x8xf32>, vector<8x8xf32>, vector<8x8xf32> -> vector<8x8xf32>
    %cst_623 = arith.constant -1.000000e+04 : f32
    %cst_624 = arith.constant 1.000000e+04 : f32
    %1505 = vector.broadcast %cst_623 : f32 to vector<8x8xf32>
    %1506 = arith.maximumf %1505, %1504 : vector<8x8xf32>
    %1507 = vector.broadcast %cst_624 : f32 to vector<8x8xf32>
    %1508 = arith.minimumf %1507, %1506 : vector<8x8xf32>
    %1509 = arith.mulf %1508, %2 : vector<8x8xf32>
    %cst_625 = arith.constant -1.000000e+04 : f32
    %cst_626 = arith.constant 1.000000e+04 : f32
    %1510 = vector.broadcast %cst_625 : f32 to vector<8x8xf32>
    %1511 = arith.maximumf %1510, %1509 : vector<8x8xf32>
    %1512 = vector.broadcast %cst_626 : f32 to vector<8x8xf32>
    %1513 = arith.minimumf %1512, %1511 : vector<8x8xf32>
    %cst_627 = arith.constant dense<0xFF800000> : vector<8xf32>
    %1514 = vector.multi_reduction <maximumf>, %1513, %cst_627 [1] : vector<8x8xf32> to vector<8xf32>
    %1515 = vector.shape_cast %1514 : vector<8xf32> to vector<8x1xf32>
    %1516 = vector.broadcast %1515 : vector<8x1xf32> to vector<8x8xf32>
    %1517 = arith.subf %1513, %1516 : vector<8x8xf32>
    %1518 = math.exp %1517 : vector<8x8xf32>
    %cst_628 = arith.constant dense<0.000000e+00> : vector<8xf32>
    %1519 = vector.multi_reduction <add>, %1518, %cst_628 [1] : vector<8x8xf32> to vector<8xf32>
    %1520 = vector.shape_cast %1519 : vector<8xf32> to vector<8x1xf32>
    %1521 = vector.broadcast %1520 : vector<8x1xf32> to vector<8x8xf32>
    %1522 = arith.divf %1518, %1521 : vector<8x8xf32>
    %1523 = vector.extract_strided_slice %1474 {offsets = [0, 8], sizes = [8, 8], strides = [1, 1]} : vector<8x32xf32> to vector<8x8xf32>
    %cst_629 = arith.constant dense<0.000000e+00> : vector<8x8xf32>
    %1524 = tpu.matmul %1522, %1523, %cst_629 {dimension_numbers = #tpu.dot_dimension_numbers<[1], [0], [0], [1], [0, 0, 1, 1], [], []>} : vector<8x8xf32>, vector<8x8xf32>, vector<8x8xf32> -> vector<8x8xf32>
    %1525 = vector.extract_strided_slice %1466 {offsets = [8, 0], sizes = [8, 32], strides = [1, 1]} : vector<32x32xf32> to vector<8x32xf32>
    %cst_630 = arith.constant dense<0.000000e+00> : vector<8x32xf32>
    %1526 = tpu.matmul %1524, %1525, %cst_630 {dimension_numbers = #tpu.dot_dimension_numbers<[1], [0], [0], [1], [0, 0, 1, 1], [], []>} : vector<8x8xf32>, vector<8x32xf32>, vector<8x32xf32> -> vector<8x32xf32>
    %1527 = arith.addf %1501, %1526 : vector<8x32xf32>
    %1528 = vector.extract_strided_slice %1472 {offsets = [0, 16], sizes = [8, 8], strides = [1, 1]} : vector<8x32xf32> to vector<8x8xf32>
    %1529 = vector.extract_strided_slice %1473 {offsets = [0, 16], sizes = [8, 8], strides = [1, 1]} : vector<8x32xf32> to vector<8x8xf32>
    %cst_631 = arith.constant dense<0.000000e+00> : vector<8x8xf32>
    %1530 = tpu.matmul %1528, %1529, %cst_631 {dimension_numbers = #tpu.dot_dimension_numbers<[1], [1], [0], [0], [0, 0, 1, 0], [], []>} : vector<8x8xf32>, vector<8x8xf32>, vector<8x8xf32> -> vector<8x8xf32>
    %cst_632 = arith.constant -1.000000e+04 : f32
    %cst_633 = arith.constant 1.000000e+04 : f32
    %1531 = vector.broadcast %cst_632 : f32 to vector<8x8xf32>
    %1532 = arith.maximumf %1531, %1530 : vector<8x8xf32>
    %1533 = vector.broadcast %cst_633 : f32 to vector<8x8xf32>
    %1534 = arith.minimumf %1533, %1532 : vector<8x8xf32>
    %1535 = arith.mulf %1534, %2 : vector<8x8xf32>
    %cst_634 = arith.constant -1.000000e+04 : f32
    %cst_635 = arith.constant 1.000000e+04 : f32
    %1536 = vector.broadcast %cst_634 : f32 to vector<8x8xf32>
    %1537 = arith.maximumf %1536, %1535 : vector<8x8xf32>
    %1538 = vector.broadcast %cst_635 : f32 to vector<8x8xf32>
    %1539 = arith.minimumf %1538, %1537 : vector<8x8xf32>
    %cst_636 = arith.constant dense<0xFF800000> : vector<8xf32>
    %1540 = vector.multi_reduction <maximumf>, %1539, %cst_636 [1] : vector<8x8xf32> to vector<8xf32>
    %1541 = vector.shape_cast %1540 : vector<8xf32> to vector<8x1xf32>
    %1542 = vector.broadcast %1541 : vector<8x1xf32> to vector<8x8xf32>
    %1543 = arith.subf %1539, %1542 : vector<8x8xf32>
    %1544 = math.exp %1543 : vector<8x8xf32>
    %cst_637 = arith.constant dense<0.000000e+00> : vector<8xf32>
    %1545 = vector.multi_reduction <add>, %1544, %cst_637 [1] : vector<8x8xf32> to vector<8xf32>
    %1546 = vector.shape_cast %1545 : vector<8xf32> to vector<8x1xf32>
    %1547 = vector.broadcast %1546 : vector<8x1xf32> to vector<8x8xf32>
    %1548 = arith.divf %1544, %1547 : vector<8x8xf32>
    %1549 = vector.extract_strided_slice %1474 {offsets = [0, 16], sizes = [8, 8], strides = [1, 1]} : vector<8x32xf32> to vector<8x8xf32>
    %cst_638 = arith.constant dense<0.000000e+00> : vector<8x8xf32>
    %1550 = tpu.matmul %1548, %1549, %cst_638 {dimension_numbers = #tpu.dot_dimension_numbers<[1], [0], [0], [1], [0, 0, 1, 1], [], []>} : vector<8x8xf32>, vector<8x8xf32>, vector<8x8xf32> -> vector<8x8xf32>
    %1551 = vector.extract_strided_slice %1466 {offsets = [16, 0], sizes = [8, 32], strides = [1, 1]} : vector<32x32xf32> to vector<8x32xf32>
    %cst_639 = arith.constant dense<0.000000e+00> : vector<8x32xf32>
    %1552 = tpu.matmul %1550, %1551, %cst_639 {dimension_numbers = #tpu.dot_dimension_numbers<[1], [0], [0], [1], [0, 0, 1, 1], [], []>} : vector<8x8xf32>, vector<8x32xf32>, vector<8x32xf32> -> vector<8x32xf32>
    %1553 = arith.addf %1527, %1552 : vector<8x32xf32>
    %1554 = vector.extract_strided_slice %1472 {offsets = [0, 24], sizes = [8, 8], strides = [1, 1]} : vector<8x32xf32> to vector<8x8xf32>
    %1555 = vector.extract_strided_slice %1473 {offsets = [0, 24], sizes = [8, 8], strides = [1, 1]} : vector<8x32xf32> to vector<8x8xf32>
    %cst_640 = arith.constant dense<0.000000e+00> : vector<8x8xf32>
    %1556 = tpu.matmul %1554, %1555, %cst_640 {dimension_numbers = #tpu.dot_dimension_numbers<[1], [1], [0], [0], [0, 0, 1, 0], [], []>} : vector<8x8xf32>, vector<8x8xf32>, vector<8x8xf32> -> vector<8x8xf32>
    %cst_641 = arith.constant -1.000000e+04 : f32
    %cst_642 = arith.constant 1.000000e+04 : f32
    %1557 = vector.broadcast %cst_641 : f32 to vector<8x8xf32>
    %1558 = arith.maximumf %1557, %1556 : vector<8x8xf32>
    %1559 = vector.broadcast %cst_642 : f32 to vector<8x8xf32>
    %1560 = arith.minimumf %1559, %1558 : vector<8x8xf32>
    %1561 = arith.mulf %1560, %2 : vector<8x8xf32>
    %cst_643 = arith.constant -1.000000e+04 : f32
    %cst_644 = arith.constant 1.000000e+04 : f32
    %1562 = vector.broadcast %cst_643 : f32 to vector<8x8xf32>
    %1563 = arith.maximumf %1562, %1561 : vector<8x8xf32>
    %1564 = vector.broadcast %cst_644 : f32 to vector<8x8xf32>
    %1565 = arith.minimumf %1564, %1563 : vector<8x8xf32>
    %cst_645 = arith.constant dense<0xFF800000> : vector<8xf32>
    %1566 = vector.multi_reduction <maximumf>, %1565, %cst_645 [1] : vector<8x8xf32> to vector<8xf32>
    %1567 = vector.shape_cast %1566 : vector<8xf32> to vector<8x1xf32>
    %1568 = vector.broadcast %1567 : vector<8x1xf32> to vector<8x8xf32>
    %1569 = arith.subf %1565, %1568 : vector<8x8xf32>
    %1570 = math.exp %1569 : vector<8x8xf32>
    %cst_646 = arith.constant dense<0.000000e+00> : vector<8xf32>
    %1571 = vector.multi_reduction <add>, %1570, %cst_646 [1] : vector<8x8xf32> to vector<8xf32>
    %1572 = vector.shape_cast %1571 : vector<8xf32> to vector<8x1xf32>
    %1573 = vector.broadcast %1572 : vector<8x1xf32> to vector<8x8xf32>
    %1574 = arith.divf %1570, %1573 : vector<8x8xf32>
    %1575 = vector.extract_strided_slice %1474 {offsets = [0, 24], sizes = [8, 8], strides = [1, 1]} : vector<8x32xf32> to vector<8x8xf32>
    %cst_647 = arith.constant dense<0.000000e+00> : vector<8x8xf32>
    %1576 = tpu.matmul %1574, %1575, %cst_647 {dimension_numbers = #tpu.dot_dimension_numbers<[1], [0], [0], [1], [0, 0, 1, 1], [], []>} : vector<8x8xf32>, vector<8x8xf32>, vector<8x8xf32> -> vector<8x8xf32>
    %1577 = vector.extract_strided_slice %1466 {offsets = [24, 0], sizes = [8, 32], strides = [1, 1]} : vector<32x32xf32> to vector<8x32xf32>
    %cst_648 = arith.constant dense<0.000000e+00> : vector<8x32xf32>
    %1578 = tpu.matmul %1576, %1577, %cst_648 {dimension_numbers = #tpu.dot_dimension_numbers<[1], [0], [0], [1], [0, 0, 1, 1], [], []>} : vector<8x8xf32>, vector<8x32xf32>, vector<8x32xf32> -> vector<8x32xf32>
    %1579 = arith.addf %1553, %1578 : vector<8x32xf32>
    %1580 = vector.extract_strided_slice %1471 {offsets = [8, 0], sizes = [8, 32], strides = [1, 1]} : vector<16x32xf32> to vector<8x32xf32>
    %1581 = vector.extract_strided_slice %1468 {offsets = [8, 0], sizes = [8, 32], strides = [1, 1]} : vector<16x32xf32> to vector<8x32xf32>
    %1582 = vector.extract_strided_slice %1469 {offsets = [8, 0], sizes = [8, 32], strides = [1, 1]} : vector<16x32xf32> to vector<8x32xf32>
    %cst_649 = arith.constant 0.000000e+00 : f32
    %1583 = vector.broadcast %cst_649 : f32 to vector<8x32xf32>
    %1584 = vector.extract_strided_slice %1580 {offsets = [0, 0], sizes = [8, 8], strides = [1, 1]} : vector<8x32xf32> to vector<8x8xf32>
    %1585 = vector.extract_strided_slice %1581 {offsets = [0, 0], sizes = [8, 8], strides = [1, 1]} : vector<8x32xf32> to vector<8x8xf32>
    %cst_650 = arith.constant dense<0.000000e+00> : vector<8x8xf32>
    %1586 = tpu.matmul %1584, %1585, %cst_650 {dimension_numbers = #tpu.dot_dimension_numbers<[1], [1], [0], [0], [0, 0, 1, 0], [], []>} : vector<8x8xf32>, vector<8x8xf32>, vector<8x8xf32> -> vector<8x8xf32>
    %cst_651 = arith.constant -1.000000e+04 : f32
    %cst_652 = arith.constant 1.000000e+04 : f32
    %1587 = vector.broadcast %cst_651 : f32 to vector<8x8xf32>
    %1588 = arith.maximumf %1587, %1586 : vector<8x8xf32>
    %1589 = vector.broadcast %cst_652 : f32 to vector<8x8xf32>
    %1590 = arith.minimumf %1589, %1588 : vector<8x8xf32>
    %1591 = arith.mulf %1590, %2 : vector<8x8xf32>
    %cst_653 = arith.constant -1.000000e+04 : f32
    %cst_654 = arith.constant 1.000000e+04 : f32
    %1592 = vector.broadcast %cst_653 : f32 to vector<8x8xf32>
    %1593 = arith.maximumf %1592, %1591 : vector<8x8xf32>
    %1594 = vector.broadcast %cst_654 : f32 to vector<8x8xf32>
    %1595 = arith.minimumf %1594, %1593 : vector<8x8xf32>
    %cst_655 = arith.constant dense<0xFF800000> : vector<8xf32>
    %1596 = vector.multi_reduction <maximumf>, %1595, %cst_655 [1] : vector<8x8xf32> to vector<8xf32>
    %1597 = vector.shape_cast %1596 : vector<8xf32> to vector<8x1xf32>
    %1598 = vector.broadcast %1597 : vector<8x1xf32> to vector<8x8xf32>
    %1599 = arith.subf %1595, %1598 : vector<8x8xf32>
    %1600 = math.exp %1599 : vector<8x8xf32>
    %cst_656 = arith.constant dense<0.000000e+00> : vector<8xf32>
    %1601 = vector.multi_reduction <add>, %1600, %cst_656 [1] : vector<8x8xf32> to vector<8xf32>
    %1602 = vector.shape_cast %1601 : vector<8xf32> to vector<8x1xf32>
    %1603 = vector.broadcast %1602 : vector<8x1xf32> to vector<8x8xf32>
    %1604 = arith.divf %1600, %1603 : vector<8x8xf32>
    %1605 = vector.extract_strided_slice %1582 {offsets = [0, 0], sizes = [8, 8], strides = [1, 1]} : vector<8x32xf32> to vector<8x8xf32>
    %cst_657 = arith.constant dense<0.000000e+00> : vector<8x8xf32>
    %1606 = tpu.matmul %1604, %1605, %cst_657 {dimension_numbers = #tpu.dot_dimension_numbers<[1], [0], [0], [1], [0, 0, 1, 1], [], []>} : vector<8x8xf32>, vector<8x8xf32>, vector<8x8xf32> -> vector<8x8xf32>
    %1607 = vector.extract_strided_slice %1466 {offsets = [0, 0], sizes = [8, 32], strides = [1, 1]} : vector<32x32xf32> to vector<8x32xf32>
    %cst_658 = arith.constant dense<0.000000e+00> : vector<8x32xf32>
    %1608 = tpu.matmul %1606, %1607, %cst_658 {dimension_numbers = #tpu.dot_dimension_numbers<[1], [0], [0], [1], [0, 0, 1, 1], [], []>} : vector<8x8xf32>, vector<8x32xf32>, vector<8x32xf32> -> vector<8x32xf32>
    %1609 = arith.addf %1583, %1608 : vector<8x32xf32>
    %1610 = vector.extract_strided_slice %1580 {offsets = [0, 8], sizes = [8, 8], strides = [1, 1]} : vector<8x32xf32> to vector<8x8xf32>
    %1611 = vector.extract_strided_slice %1581 {offsets = [0, 8], sizes = [8, 8], strides = [1, 1]} : vector<8x32xf32> to vector<8x8xf32>
    %cst_659 = arith.constant dense<0.000000e+00> : vector<8x8xf32>
    %1612 = tpu.matmul %1610, %1611, %cst_659 {dimension_numbers = #tpu.dot_dimension_numbers<[1], [1], [0], [0], [0, 0, 1, 0], [], []>} : vector<8x8xf32>, vector<8x8xf32>, vector<8x8xf32> -> vector<8x8xf32>
    %cst_660 = arith.constant -1.000000e+04 : f32
    %cst_661 = arith.constant 1.000000e+04 : f32
    %1613 = vector.broadcast %cst_660 : f32 to vector<8x8xf32>
    %1614 = arith.maximumf %1613, %1612 : vector<8x8xf32>
    %1615 = vector.broadcast %cst_661 : f32 to vector<8x8xf32>
    %1616 = arith.minimumf %1615, %1614 : vector<8x8xf32>
    %1617 = arith.mulf %1616, %2 : vector<8x8xf32>
    %cst_662 = arith.constant -1.000000e+04 : f32
    %cst_663 = arith.constant 1.000000e+04 : f32
    %1618 = vector.broadcast %cst_662 : f32 to vector<8x8xf32>
    %1619 = arith.maximumf %1618, %1617 : vector<8x8xf32>
    %1620 = vector.broadcast %cst_663 : f32 to vector<8x8xf32>
    %1621 = arith.minimumf %1620, %1619 : vector<8x8xf32>
    %cst_664 = arith.constant dense<0xFF800000> : vector<8xf32>
    %1622 = vector.multi_reduction <maximumf>, %1621, %cst_664 [1] : vector<8x8xf32> to vector<8xf32>
    %1623 = vector.shape_cast %1622 : vector<8xf32> to vector<8x1xf32>
    %1624 = vector.broadcast %1623 : vector<8x1xf32> to vector<8x8xf32>
    %1625 = arith.subf %1621, %1624 : vector<8x8xf32>
    %1626 = math.exp %1625 : vector<8x8xf32>
    %cst_665 = arith.constant dense<0.000000e+00> : vector<8xf32>
    %1627 = vector.multi_reduction <add>, %1626, %cst_665 [1] : vector<8x8xf32> to vector<8xf32>
    %1628 = vector.shape_cast %1627 : vector<8xf32> to vector<8x1xf32>
    %1629 = vector.broadcast %1628 : vector<8x1xf32> to vector<8x8xf32>
    %1630 = arith.divf %1626, %1629 : vector<8x8xf32>
    %1631 = vector.extract_strided_slice %1582 {offsets = [0, 8], sizes = [8, 8], strides = [1, 1]} : vector<8x32xf32> to vector<8x8xf32>
    %cst_666 = arith.constant dense<0.000000e+00> : vector<8x8xf32>
    %1632 = tpu.matmul %1630, %1631, %cst_666 {dimension_numbers = #tpu.dot_dimension_numbers<[1], [0], [0], [1], [0, 0, 1, 1], [], []>} : vector<8x8xf32>, vector<8x8xf32>, vector<8x8xf32> -> vector<8x8xf32>
    %1633 = vector.extract_strided_slice %1466 {offsets = [8, 0], sizes = [8, 32], strides = [1, 1]} : vector<32x32xf32> to vector<8x32xf32>
    %cst_667 = arith.constant dense<0.000000e+00> : vector<8x32xf32>
    %1634 = tpu.matmul %1632, %1633, %cst_667 {dimension_numbers = #tpu.dot_dimension_numbers<[1], [0], [0], [1], [0, 0, 1, 1], [], []>} : vector<8x8xf32>, vector<8x32xf32>, vector<8x32xf32> -> vector<8x32xf32>
    %1635 = arith.addf %1609, %1634 : vector<8x32xf32>
    %1636 = vector.extract_strided_slice %1580 {offsets = [0, 16], sizes = [8, 8], strides = [1, 1]} : vector<8x32xf32> to vector<8x8xf32>
    %1637 = vector.extract_strided_slice %1581 {offsets = [0, 16], sizes = [8, 8], strides = [1, 1]} : vector<8x32xf32> to vector<8x8xf32>
    %cst_668 = arith.constant dense<0.000000e+00> : vector<8x8xf32>
    %1638 = tpu.matmul %1636, %1637, %cst_668 {dimension_numbers = #tpu.dot_dimension_numbers<[1], [1], [0], [0], [0, 0, 1, 0], [], []>} : vector<8x8xf32>, vector<8x8xf32>, vector<8x8xf32> -> vector<8x8xf32>
    %cst_669 = arith.constant -1.000000e+04 : f32
    %cst_670 = arith.constant 1.000000e+04 : f32
    %1639 = vector.broadcast %cst_669 : f32 to vector<8x8xf32>
    %1640 = arith.maximumf %1639, %1638 : vector<8x8xf32>
    %1641 = vector.broadcast %cst_670 : f32 to vector<8x8xf32>
    %1642 = arith.minimumf %1641, %1640 : vector<8x8xf32>
    %1643 = arith.mulf %1642, %2 : vector<8x8xf32>
    %cst_671 = arith.constant -1.000000e+04 : f32
    %cst_672 = arith.constant 1.000000e+04 : f32
    %1644 = vector.broadcast %cst_671 : f32 to vector<8x8xf32>
    %1645 = arith.maximumf %1644, %1643 : vector<8x8xf32>
    %1646 = vector.broadcast %cst_672 : f32 to vector<8x8xf32>
    %1647 = arith.minimumf %1646, %1645 : vector<8x8xf32>
    %cst_673 = arith.constant dense<0xFF800000> : vector<8xf32>
    %1648 = vector.multi_reduction <maximumf>, %1647, %cst_673 [1] : vector<8x8xf32> to vector<8xf32>
    %1649 = vector.shape_cast %1648 : vector<8xf32> to vector<8x1xf32>
    %1650 = vector.broadcast %1649 : vector<8x1xf32> to vector<8x8xf32>
    %1651 = arith.subf %1647, %1650 : vector<8x8xf32>
    %1652 = math.exp %1651 : vector<8x8xf32>
    %cst_674 = arith.constant dense<0.000000e+00> : vector<8xf32>
    %1653 = vector.multi_reduction <add>, %1652, %cst_674 [1] : vector<8x8xf32> to vector<8xf32>
    %1654 = vector.shape_cast %1653 : vector<8xf32> to vector<8x1xf32>
    %1655 = vector.broadcast %1654 : vector<8x1xf32> to vector<8x8xf32>
    %1656 = arith.divf %1652, %1655 : vector<8x8xf32>
    %1657 = vector.extract_strided_slice %1582 {offsets = [0, 16], sizes = [8, 8], strides = [1, 1]} : vector<8x32xf32> to vector<8x8xf32>
    %cst_675 = arith.constant dense<0.000000e+00> : vector<8x8xf32>
    %1658 = tpu.matmul %1656, %1657, %cst_675 {dimension_numbers = #tpu.dot_dimension_numbers<[1], [0], [0], [1], [0, 0, 1, 1], [], []>} : vector<8x8xf32>, vector<8x8xf32>, vector<8x8xf32> -> vector<8x8xf32>
    %1659 = vector.extract_strided_slice %1466 {offsets = [16, 0], sizes = [8, 32], strides = [1, 1]} : vector<32x32xf32> to vector<8x32xf32>
    %cst_676 = arith.constant dense<0.000000e+00> : vector<8x32xf32>
    %1660 = tpu.matmul %1658, %1659, %cst_676 {dimension_numbers = #tpu.dot_dimension_numbers<[1], [0], [0], [1], [0, 0, 1, 1], [], []>} : vector<8x8xf32>, vector<8x32xf32>, vector<8x32xf32> -> vector<8x32xf32>
    %1661 = arith.addf %1635, %1660 : vector<8x32xf32>
    %1662 = vector.extract_strided_slice %1580 {offsets = [0, 24], sizes = [8, 8], strides = [1, 1]} : vector<8x32xf32> to vector<8x8xf32>
    %1663 = vector.extract_strided_slice %1581 {offsets = [0, 24], sizes = [8, 8], strides = [1, 1]} : vector<8x32xf32> to vector<8x8xf32>
    %cst_677 = arith.constant dense<0.000000e+00> : vector<8x8xf32>
    %1664 = tpu.matmul %1662, %1663, %cst_677 {dimension_numbers = #tpu.dot_dimension_numbers<[1], [1], [0], [0], [0, 0, 1, 0], [], []>} : vector<8x8xf32>, vector<8x8xf32>, vector<8x8xf32> -> vector<8x8xf32>
    %cst_678 = arith.constant -1.000000e+04 : f32
    %cst_679 = arith.constant 1.000000e+04 : f32
    %1665 = vector.broadcast %cst_678 : f32 to vector<8x8xf32>
    %1666 = arith.maximumf %1665, %1664 : vector<8x8xf32>
    %1667 = vector.broadcast %cst_679 : f32 to vector<8x8xf32>
    %1668 = arith.minimumf %1667, %1666 : vector<8x8xf32>
    %1669 = arith.mulf %1668, %2 : vector<8x8xf32>
    %cst_680 = arith.constant -1.000000e+04 : f32
    %cst_681 = arith.constant 1.000000e+04 : f32
    %1670 = vector.broadcast %cst_680 : f32 to vector<8x8xf32>
    %1671 = arith.maximumf %1670, %1669 : vector<8x8xf32>
    %1672 = vector.broadcast %cst_681 : f32 to vector<8x8xf32>
    %1673 = arith.minimumf %1672, %1671 : vector<8x8xf32>
    %cst_682 = arith.constant dense<0xFF800000> : vector<8xf32>
    %1674 = vector.multi_reduction <maximumf>, %1673, %cst_682 [1] : vector<8x8xf32> to vector<8xf32>
    %1675 = vector.shape_cast %1674 : vector<8xf32> to vector<8x1xf32>
    %1676 = vector.broadcast %1675 : vector<8x1xf32> to vector<8x8xf32>
    %1677 = arith.subf %1673, %1676 : vector<8x8xf32>
    %1678 = math.exp %1677 : vector<8x8xf32>
    %cst_683 = arith.constant dense<0.000000e+00> : vector<8xf32>
    %1679 = vector.multi_reduction <add>, %1678, %cst_683 [1] : vector<8x8xf32> to vector<8xf32>
    %1680 = vector.shape_cast %1679 : vector<8xf32> to vector<8x1xf32>
    %1681 = vector.broadcast %1680 : vector<8x1xf32> to vector<8x8xf32>
    %1682 = arith.divf %1678, %1681 : vector<8x8xf32>
    %1683 = vector.extract_strided_slice %1582 {offsets = [0, 24], sizes = [8, 8], strides = [1, 1]} : vector<8x32xf32> to vector<8x8xf32>
    %cst_684 = arith.constant dense<0.000000e+00> : vector<8x8xf32>
    %1684 = tpu.matmul %1682, %1683, %cst_684 {dimension_numbers = #tpu.dot_dimension_numbers<[1], [0], [0], [1], [0, 0, 1, 1], [], []>} : vector<8x8xf32>, vector<8x8xf32>, vector<8x8xf32> -> vector<8x8xf32>
    %1685 = vector.extract_strided_slice %1466 {offsets = [24, 0], sizes = [8, 32], strides = [1, 1]} : vector<32x32xf32> to vector<8x32xf32>
    %cst_685 = arith.constant dense<0.000000e+00> : vector<8x32xf32>
    %1686 = tpu.matmul %1684, %1685, %cst_685 {dimension_numbers = #tpu.dot_dimension_numbers<[1], [0], [0], [1], [0, 0, 1, 1], [], []>} : vector<8x8xf32>, vector<8x32xf32>, vector<8x32xf32> -> vector<8x32xf32>
    %1687 = arith.addf %1661, %1686 : vector<8x32xf32>
    %1688 = tpu.concatenate %1579, %1687 in 0 : vector<8x32xf32>, vector<8x32xf32> -> vector<16x32xf32>
    %1689 = arith.addf %1462, %1688 : vector<16x32xf32>
    %c1_686 = arith.constant 1 : index
    %c0_687 = arith.constant 0 : index
    %c0_688 = arith.constant 0 : index
    %1690 = vector.load %arg27[%c1_686, %c0_687, %c0_688] : memref<2x1x32xf32, #tpu.memory_space<vmem>>, vector<1x1x32xf32>
    %1691 = vector.shape_cast %1690 : vector<1x1x32xf32> to vector<1x32xf32>
    %c1_689 = arith.constant 1 : index
    %c0_690 = arith.constant 0 : index
    %c0_691 = arith.constant 0 : index
    %1692 = vector.load %arg28[%c1_689, %c0_690, %c0_691] : memref<2x1x32xf32, #tpu.memory_space<vmem>>, vector<1x1x32xf32>
    %1693 = vector.shape_cast %1692 : vector<1x1x32xf32> to vector<1x32xf32>
    %cst_692 = arith.constant dense<0.000000e+00> : vector<16xf32>
    %1694 = vector.multi_reduction <add>, %1689, %cst_692 [1] : vector<16x32xf32> to vector<16xf32>
    %1695 = vector.shape_cast %1694 : vector<16xf32> to vector<16x1xf32>
    %cst_693 = arith.constant 3.200000e+01 : f32
    %1696 = vector.broadcast %cst_693 : f32 to vector<16x1xf32>
    %1697 = arith.divf %1695, %1696 : vector<16x1xf32>
    %1698 = vector.broadcast %1697 : vector<16x1xf32> to vector<16x32xf32>
    %1699 = arith.subf %1689, %1698 : vector<16x32xf32>
    %1700 = arith.mulf %1699, %1699 : vector<16x32xf32>
    %cst_694 = arith.constant dense<0.000000e+00> : vector<16xf32>
    %1701 = vector.multi_reduction <add>, %1700, %cst_694 [1] : vector<16x32xf32> to vector<16xf32>
    %1702 = vector.shape_cast %1701 : vector<16xf32> to vector<16x1xf32>
    %cst_695 = arith.constant 3.200000e+01 : f32
    %1703 = vector.broadcast %cst_695 : f32 to vector<16x1xf32>
    %1704 = arith.divf %1702, %1703 : vector<16x1xf32>
    %1705 = vector.broadcast %1697 : vector<16x1xf32> to vector<16x32xf32>
    %1706 = arith.subf %1689, %1705 : vector<16x32xf32>
    %cst_696 = arith.constant 9.99999974E-6 : f32
    %1707 = vector.broadcast %cst_696 : f32 to vector<16x1xf32>
    %1708 = arith.addf %1704, %1707 : vector<16x1xf32>
    %1709 = math.rsqrt %1708 : vector<16x1xf32>
    %1710 = vector.broadcast %1709 : vector<16x1xf32> to vector<16x32xf32>
    %1711 = arith.mulf %1706, %1710 : vector<16x32xf32>
    %1712 = vector.broadcast %1691 : vector<1x32xf32> to vector<16x32xf32>
    %1713 = arith.mulf %1711, %1712 : vector<16x32xf32>
    %1714 = vector.broadcast %1693 : vector<1x32xf32> to vector<16x32xf32>
    %1715 = arith.addf %1713, %1714 : vector<16x32xf32>
    %c1_697 = arith.constant 1 : index
    %c0_698 = arith.constant 0 : index
    %c0_699 = arith.constant 0 : index
    %1716 = vector.load %arg29[%c1_697, %c0_698, %c0_699] : memref<2x32x128xf32, #tpu.memory_space<vmem>>, vector<1x32x128xf32>
    %1717 = vector.shape_cast %1716 : vector<1x32x128xf32> to vector<32x128xf32>
    %c1_700 = arith.constant 1 : index
    %c0_701 = arith.constant 0 : index
    %c0_702 = arith.constant 0 : index
    %1718 = vector.load %arg30[%c1_700, %c0_701, %c0_702] : memref<2x1x128xf32, #tpu.memory_space<vmem>>, vector<1x1x128xf32>
    %1719 = vector.shape_cast %1718 : vector<1x1x128xf32> to vector<1x128xf32>
    %c1_703 = arith.constant 1 : index
    %c0_704 = arith.constant 0 : index
    %c0_705 = arith.constant 0 : index
    %1720 = vector.load %arg31[%c1_703, %c0_704, %c0_705] : memref<2x128x32xf32, #tpu.memory_space<vmem>>, vector<1x128x32xf32>
    %1721 = vector.shape_cast %1720 : vector<1x128x32xf32> to vector<128x32xf32>
    %c1_706 = arith.constant 1 : index
    %c0_707 = arith.constant 0 : index
    %c0_708 = arith.constant 0 : index
    %1722 = vector.load %arg32[%c1_706, %c0_707, %c0_708] : memref<2x1x32xf32, #tpu.memory_space<vmem>>, vector<1x1x32xf32>
    %1723 = vector.shape_cast %1722 : vector<1x1x32xf32> to vector<1x32xf32>
    %cst_709 = arith.constant dense<0.000000e+00> : vector<16x128xf32>
    %1724 = tpu.matmul %1715, %1717, %cst_709 {dimension_numbers = #tpu.dot_dimension_numbers<[1], [0], [0], [1], [0, 0, 1, 1], [], []>} : vector<16x32xf32>, vector<32x128xf32>, vector<16x128xf32> -> vector<16x128xf32>
    %1725 = vector.broadcast %1719 : vector<1x128xf32> to vector<16x128xf32>
    %1726 = arith.addf %1724, %1725 : vector<16x128xf32>
    %cst_710 = arith.constant 0.000000e+00 : f32
    %1727 = vector.broadcast %cst_710 : f32 to vector<16x128xf32>
    %1728 = arith.maximumf %1726, %1727 : vector<16x128xf32>
    %cst_711 = arith.constant dense<0.000000e+00> : vector<16x32xf32>
    %1729 = tpu.matmul %1728, %1721, %cst_711 {dimension_numbers = #tpu.dot_dimension_numbers<[1], [0], [0], [1], [0, 0, 1, 1], [], []>} : vector<16x128xf32>, vector<128x32xf32>, vector<16x32xf32> -> vector<16x32xf32>
    %1730 = vector.broadcast %1723 : vector<1x32xf32> to vector<16x32xf32>
    %1731 = arith.addf %1729, %1730 : vector<16x32xf32>
    %cst_712 = arith.constant -5.000000e+00 : f32
    %cst_713 = arith.constant 5.000000e+00 : f32
    %1732 = vector.broadcast %cst_712 : f32 to vector<16x32xf32>
    %1733 = arith.maximumf %1732, %1731 : vector<16x32xf32>
    %1734 = vector.broadcast %cst_713 : f32 to vector<16x32xf32>
    %1735 = arith.minimumf %1734, %1733 : vector<16x32xf32>
    %1736 = arith.addf %1715, %1735 : vector<16x32xf32>
    %c1_714 = arith.constant 1 : index
    %c0_715 = arith.constant 0 : index
    %c0_716 = arith.constant 0 : index
    %1737 = vector.load %arg33[%c1_714, %c0_715, %c0_716] : memref<2x1x32xf32, #tpu.memory_space<vmem>>, vector<1x1x32xf32>
    %1738 = vector.shape_cast %1737 : vector<1x1x32xf32> to vector<1x32xf32>
    %c1_717 = arith.constant 1 : index
    %c0_718 = arith.constant 0 : index
    %c0_719 = arith.constant 0 : index
    %1739 = vector.load %arg34[%c1_717, %c0_718, %c0_719] : memref<2x1x32xf32, #tpu.memory_space<vmem>>, vector<1x1x32xf32>
    %1740 = vector.shape_cast %1739 : vector<1x1x32xf32> to vector<1x32xf32>
    %cst_720 = arith.constant dense<0.000000e+00> : vector<16xf32>
    %1741 = vector.multi_reduction <add>, %1736, %cst_720 [1] : vector<16x32xf32> to vector<16xf32>
    %1742 = vector.shape_cast %1741 : vector<16xf32> to vector<16x1xf32>
    %cst_721 = arith.constant 3.200000e+01 : f32
    %1743 = vector.broadcast %cst_721 : f32 to vector<16x1xf32>
    %1744 = arith.divf %1742, %1743 : vector<16x1xf32>
    %1745 = vector.broadcast %1744 : vector<16x1xf32> to vector<16x32xf32>
    %1746 = arith.subf %1736, %1745 : vector<16x32xf32>
    %1747 = arith.mulf %1746, %1746 : vector<16x32xf32>
    %cst_722 = arith.constant dense<0.000000e+00> : vector<16xf32>
    %1748 = vector.multi_reduction <add>, %1747, %cst_722 [1] : vector<16x32xf32> to vector<16xf32>
    %1749 = vector.shape_cast %1748 : vector<16xf32> to vector<16x1xf32>
    %cst_723 = arith.constant 3.200000e+01 : f32
    %1750 = vector.broadcast %cst_723 : f32 to vector<16x1xf32>
    %1751 = arith.divf %1749, %1750 : vector<16x1xf32>
    %1752 = vector.broadcast %1744 : vector<16x1xf32> to vector<16x32xf32>
    %1753 = arith.subf %1736, %1752 : vector<16x32xf32>
    %cst_724 = arith.constant 9.99999974E-6 : f32
    %1754 = vector.broadcast %cst_724 : f32 to vector<16x1xf32>
    %1755 = arith.addf %1751, %1754 : vector<16x1xf32>
    %1756 = math.rsqrt %1755 : vector<16x1xf32>
    %1757 = vector.broadcast %1756 : vector<16x1xf32> to vector<16x32xf32>
    %1758 = arith.mulf %1753, %1757 : vector<16x32xf32>
    %1759 = vector.broadcast %1738 : vector<1x32xf32> to vector<16x32xf32>
    %1760 = arith.mulf %1758, %1759 : vector<16x32xf32>
    %1761 = vector.broadcast %1740 : vector<1x32xf32> to vector<16x32xf32>
    %1762 = arith.addf %1760, %1761 : vector<16x32xf32>
    %c0_725 = arith.constant 0 : index
    %c0_726 = arith.constant 0 : index
    %1763 = vector.load %arg35[%c0_725, %c0_726] : memref<32x128xf32, #tpu.memory_space<vmem>>, vector<32x128xf32>
    %cst_727 = arith.constant dense<0.000000e+00> : vector<16x128xf32>
    %1764 = tpu.matmul %1762, %1763, %cst_727 {dimension_numbers = #tpu.dot_dimension_numbers<[1], [0], [0], [1], [0, 0, 1, 1], [], []>} : vector<16x32xf32>, vector<32x128xf32>, vector<16x128xf32> -> vector<16x128xf32>
    %c0_728 = arith.constant 0 : index
    %c0_729 = arith.constant 0 : index
    %1765 = vector.load %arg36[%c0_728, %c0_729] : memref<1x128xf32, #tpu.memory_space<vmem>>, vector<1x128xf32>
    %1766 = vector.broadcast %1765 : vector<1x128xf32> to vector<16x128xf32>
    %1767 = arith.addf %1764, %1766 : vector<16x128xf32>
    %c0_730 = arith.constant 0 : index
    %c0_731 = arith.constant 0 : index
    %1768 = vector.load %arg37[%c0_730, %c0_731] : memref<16x128xf32, #tpu.memory_space<vmem>>, vector<16x128xf32>
    tpu.vector_store %arg37[%c0_730, %c0_731], %1767 {strides = array<i32>} : memref<16x128xf32, #tpu.memory_space<vmem>>, vector<16x128xf32>,
    return
  }
}

</mosaic_0001>

<bundles_post_ra>
// kernel: transformer_forward.1
= control target key start
LH: loop header
LB: loop body
LE: loop exit
PB: predicated region body
PF: predicated region fallthrough
CT: control target
= control target key end

     0   :  { %s7702_s3 = smov 5   ;;  %vm172_vm0 = vcmask 261120   ;;  %s7703_s10 = smov 96   ;;  %vm245_vm1 = vcmask 64512   ;;  %s9240_s0 = inlined_call_operand.smem [shape: u32[38], index: -1, kind: input, shape index: {}] }
   0x1   :  { %s7755_s6 = sld [smem:[%s9240_s0 + %s7702_s3]]   ;;  %s7704_s11 = smov 6  }
   0x2   :  { %s7760_s9 = sld [smem:[%s9240_s0]]   ;;  %s7705_s15 = smov 112  }
   0x3   :  { %s7781_s14 = sld [smem:[%s9240_s0 + %s7704_s11]]   ;;  %s7706_s16 = smov 7  }
   0x4   :  { %s7799_s19 = sld [smem:[%s9240_s0 + %s7706_s16]]   ;;  %s7707_s20 = smov 120  }
   0x5   :  { %s7708_s21 = smov 2   ;;  %s7709_s25 = smov 80  }
   0x6   :  { %s7827_s24 = sld [smem:[%s9240_s0 + %s7708_s21]]   ;;  %s7710_s26 = smov 104  }
   0x7   :  { %v162_v0 = vld [vmem:[%s7755_s6 + $0x18] sm:$0xff]  ;;  %v161_v1 = vld [vmem:[%s7755_s6 + $0x10] sm:$0xff]  ;;  %v160_v2 = vld [vmem:[%s7755_s6 + $0x8] sm:$0xff]  ;;  %s7711_s27 = smov 8   ;;  %s7712_s1 = smov 88  }
   0x8   :  { %191 = vmatpush.msra.mxu2 %v162_v0  ;;  %v159_v3 = vld [vmem:[%s7755_s6] sm:$0xff]  ;;  %v158_v5 = vld [vmem:[%s7760_s9 + $0x8] sm:$0xff]  ;;  %s7846_s30 = sld [smem:[%s9240_s0 + %s7711_s27]]   ;;  %s9241_s2 = smov 72  }
   0x9   :  { %v7767_v4 = vld [vmem:[%s7760_s9] sm:$0xff]  ;;  %v166_v8 = vld [vmem:[%s7781_s14 + $0x18] sm:$0xff]  ;;  %v165_v9 = vld [vmem:[%s7781_s14 + $0x10] sm:$0xff]  ;;  %s7714_s3 = smov 9   ;;  %s7716_s8 = smov 10  }
   0xa   :  { %192 = vmatpush.msra.mxu2 %v161_v1  ;;  %234 = vmatpush.msra.mxu1 %v166_v8  ;;  %v164_v10 = vld [vmem:[%s7781_s14 + $0x8] sm:$0xff]  ;;  %v163_v11 = vld [vmem:[%s7781_s14] sm:$0xff]  ;;  %s7949_s7 = sld [smem:[%s9240_s0 + %s7714_s3]]   ;;  %s7717_s16 = smov 11  }
   0xb   :  { %v167_v19 = vld [vmem:[%s7799_s19] sm:$0xff]  ;;  %s7965_s13 = sld [smem:[%s9240_s0 + %s7716_s8]]   ;;  %s7718_s22 = smov 12  }
   0xc   :  { %193 = vmatpush.msra.mxu2 %v160_v2  ;;  %235 = vmatpush.msra.mxu1 %v165_v9  ;;  %v7830_v30 = vld [vmem:[%s7827_s24] sm:$0xff]  ;;  %s7978_s21 = sld [smem:[%s9240_s0 + %s7717_s16]]   ;;  %s7719_s29 = smov 13  }
   0xd   :  { %7389 = vmatpush.msra.mxu3 %v167_v19  ;;  %s7997_s28 = sld [smem:[%s9240_s0 + %s7718_s22]]   ;;  %s7720_s8 = smov 14  }
   0xe   :  { %194 = vmatpush.msra.mxu2 %v159_v3  ;;  %236 = vmatpush.msra.mxu1 %v164_v10  ;;  %v7853_v55 = vld [vmem:[%s7846_s30] sm:$0xff]  ;;  %s8012_s5 = sld [smem:[%s9240_s0 + %s7719_s29]]   ;;  %s7721_s17 = smov 15  }
   0xf   :  { %6954 = vmatmul.msk.f32.vlgmr.msra.gmra.mxu2 %vm172_vm0, %v7767_v4  ;;  %s8034_s16 = sld [smem:[%s9240_s0 + %s7720_s8]]   ;;  %s7722_s27 = smov 16  }
  0x10   :  { %237 = vmatpush.msra.mxu1 %v163_v11  ;;  %267 = vmatpush.msrb.mxu2 %v167_v19  ;;  %s8050_s23 = sld [smem:[%s9240_s0 + %s7721_s17]]   ;;  %s7726_s11 = smov 1  }
  0x11   :  { %s8060_s4 = sld [smem:[%s9240_s0 + %s7722_s27]]   ;;  %s7727_s18 = smov 18  }
  0x12   :  { %482 = vmatpush.msrb.mxu1 %v7853_v55  ;;  %s6917_s17 = sld [smem:[%s9240_s0 + %s7726_s11]]   ;;  %s7728_s29 = smov 19  }
  0x13   :  { %s8355_s27 = sld [smem:[%s9240_s0 + %s7727_s18]]   ;;  %s7736_s11 = smov 27  }
  0x14   :  { %s8691_s18 = sld [smem:[%s9240_s0 + %s7736_s11]]  }
  0x17   :  { %6955 = vmatmul.msk.f32.gmra.mxu2 %vm172_vm0, %v158_v5 }
  0x92   :  { %v196_v6 = vpop.f32.mrf.mxu2 }
  0x93   :  { %204 = vrot.lane.b32.xlu0 %v196_v6, %s7703_s10  ;;  %v7790_v16 = vmul.f32 0.17677669, %v196_v6 }
  0x9a   :  { %v7774_v7 = vpop.f32.mrf.mxu2 }
  0x9b   :  { %206 = vrot.lane.b32.xlu1 %v7774_v7, %s7703_s10 }
 0x105   :  { %v205_v12 = vpop.permute.xlu0 %204 }
 0x106   :  { %v210_v13 = vadd.f32 %v205_v12, %v196_v6  ;;  %v7871_v12 = vmul.f32 0.17677669, %v7774_v7 }
 0x108   :  { %214 = vrot.lane.b32.xlu0 %v210_v13, %s7703_s10 }
 0x10d   :  { %v207_v14 = vpop.permute.xlu1 %206 }
 0x10e   :  { %v211_v15 = vadd.f32 %v207_v14, %v7774_v7 }
 0x110   :  { %216 = vrot.lane.b32.xlu1 %v211_v15, %s7703_s10 }
 0x118   :  { %487 = vrot.lane.b32.xlu1 %v7790_v16, %s7705_s15 }
 0x17a   :  { %v215_v17 = vpop.permute.xlu0 %214 }
 0x17b   :  { %6956 = vmatmul.msk.f32.vlgmr.msra.gmra.mxu1 %vm172_vm0, %v215_v17 }
 0x182   :  { %v217_v18 = vpop.permute.xlu1 %216 }
 0x183   :  { %6957 = vmatmul.msk.f32.gmra.mxu1 %vm172_vm0, %v217_v18 }
 0x18a   :  { %v488_v25 = vpop.permute.xlu1 %487 }
 0x1f8   :  { %v239_v20 = vpop.f32.mrf.mxu1 }
 0x1f9   :  { %6958 = vmatmul.msk.f32.vlgmr.msrb.gmra.mxu2 %vm245_vm1, %v239_v20 }
 0x200   :  { %v242_v21 = vpop.f32.mrf.mxu1 }
 0x201   :  { %6959 = vmatmul.msk.f32.vlgmr.msra.gmra.mxu3 %vm245_vm1, %v242_v21 }
 0x27c   :  { %v7804_v22 = vpop.f32.mrf.mxu2 }
 0x27d   :  { %332 = vrot.lane.b32.xlu1 %v7804_v22, %s7703_s10  ;;  %489 = vrot.lane.b32.xlu0 %v7804_v22, %s7705_s15 }
 0x27e   :  { %360 = vrot.lane.b32.xlu2 %v7804_v22, %s7707_s20  ;;  %6960 = vmatpush.xpose.msk.msrb.mxu3 %vm245_vm1, %v7804_v22 }
 0x281   :  { %6961 = vmatmul.msk.f32.vlgmr.msrb.gmra.mxu3 %vm245_vm1, %v7790_v16 }
 0x284   :  { %v7822_v28 = vpop.f32.mrf.mxu3 }
 0x286   :  { %358 = vrot.lane.b32.xlu2 %v7790_v16, %s7707_s20 }
 0x2d8   :  { %v361_v23 = vpop.permute.xlu2 %360 }
 0x2d9   :  { %6965 = vmatpush.xpose.msk.msra.mxu2 %vm245_vm1, %v361_v23 }
 0x2e0   :  { %v359_v24 = vpop.permute.xlu2 %358 }
 0x2e1   :  { %6966 = vmatmul.msk.f32.vlgmr.msra.gmra.mxu2 %vm245_vm1, %v359_v24 }
 0x2ef   :  { %v333_v26 = vpop.permute.xlu1 %332  ;;  %v490_v27 = vpop.permute.xlu0 %489 }
 0x2f0   :  { %353 = vmatpush.msra.mxu3 %v333_v26  ;;  %6972 = vmatpush.xpose.msk.msrb.mxu2 %vm245_vm1, %v490_v27 }
 0x2f3   :  { %6973 = vmatmul.msk.f32.vlgmr.msrb.gmra.mxu2 %vm245_vm1, %v488_v25 }
 0x304   :  { %v300_v29 = vpop.f32.mrf.mxu3 }
 0x305   :  { %v6962_v31 = vclamps-f32 %v300_v29, 10000.0 }
 0x307   :  { %v305_v32 = vmul.f32 %v6962_v31, %v7830_v30 }
 0x309   :  { %v6963_v33 = vclamps-f32 %v305_v32, 10000.0 }
 0x30b   :  { %v308_v34 = vsel %vm245_vm1, %v6963_v33, -inf }
 0x30c   :  { %309 = vmax.xlane.f32.xlu2 %v308_v34 }
 0x364   :  { %v383_v35 = vpop.f32.mrf.mxu2 }
 0x365   :  { %v6967_v36 = vclamps-f32 %v383_v35, 10000.0 }
 0x367   :  { %v388_v37 = vmul.f32 %v6967_v36, %v7830_v30 }
 0x369   :  { %v6968_v38 = vclamps-f32 %v388_v37, 10000.0 }
 0x36b   :  { %v391_v39 = vsel %vm245_vm1, %v6968_v38, -inf }
 0x36c   :  { %392 = vmax.xlane.f32.xlu1 %v391_v39 }
 0x376   :  { %v512_v40 = vpop.f32.mrf.mxu2 }
 0x377   :  { %v6974_v41 = vclamps-f32 %v512_v40, 10000.0 }
 0x379   :  { %v517_v42 = vmul.f32 %v6974_v41, %v7830_v30 }
 0x37b   :  { %v6975_v43 = vclamps-f32 %v517_v42, 10000.0 }
 0x37d   :  { %v520_v44 = vsel %vm245_vm1, %v6975_v43, -inf }
 0x37e   :  { %521 = vmax.xlane.f32.xlu2 %v520_v44 }
 0x37f   :  { %v310_v45 = vpop.xlane.xlu2 %309 }
 0x380   :  { %v311_v46 = vsub.f32 %v6963_v33, %v310_v45 }
 0x382   :  { %v312_v47 = vmul.f32 1.442695, %v311_v46 }
 0x384   :  { %7464 = vpow2.f32 %v312_v47 }
 0x385   :  { %544 = vrot.lane.b32.xlu1 %v7804_v22, %s7709_s25 }
 0x38a   :  { %v7465_v48 = vpop.eup %7464 }
 0x38b   :  { %v314_v49 = vsel %vm245_vm1, %v7465_v48, 0.0 }
 0x38c   :  { %315 = vadd.xlane.f32.xlu0 %v314_v49  ;;  %v170_v49 = vld [vmem:[%s7846_s30 + $0x10] sm:$0xff] }
 0x3a0   :  { %596 = vrot.lane.b32.xlu0 %v7804_v22, %s7710_s26 }
 0x3df   :  { %v393_v50 = vpop.xlane.xlu1 %392 }
 0x3e0   :  { %v394_v51 = vsub.f32 %v6968_v38, %v393_v50 }
 0x3e2   :  { %v395_v52 = vmul.f32 1.442695, %v394_v51 }
 0x3e4   :  { %7466 = vpow2.f32 %v395_v52 }
 0x3ea   :  { %v7848_v53 = vpop.eup %7466 }
 0x3eb   :  { %v397_v54 = vsel %vm245_vm1, %v7848_v53, 0.0 }
 0x3ec   :  { %398 = vadd.xlane.f32.xlu2 %v397_v54 }
 0x3f1   :  { %v522_v56 = vpop.xlane.xlu2 %521 }
 0x3f2   :  { %v523_v57 = vsub.f32 %v6975_v43, %v522_v56  ;;  %v169_v43 = vld [vmem:[%s7846_s30 + $0x8] sm:$0xff] }
 0x3f3   :  { %459 = vmatpush.msra.mxu0 %v169_v43 }
 0x3f4   :  { %v524_v58 = vmul.f32 1.442695, %v523_v57 }
 0x3f5   :  { %588 = vmatpush.msrb.mxu0 %v170_v49 }
 0x3f6   :  { %7468 = vpow2.f32 %v524_v58 }
 0x3f7   :  { %v545_v17 = vpop.permute.xlu1 %544 }
 0x3fc   :  { %v7856_v59 = vpop.eup %7468 }
 0x3fd   :  { %v526_v60 = vsel %vm245_vm1, %v7856_v59, 0.0 }
 0x3fe   :  { %527 = vadd.xlane.f32.xlu0 %v526_v60 }
 0x3ff   :  { %v316_v61 = vpop.xlane.xlu0 %315 }
 0x400   :  { %7470 = vrcp.f32 %v316_v61  ;;  %v328_v1 = vand.u32 2147483648, %v316_v61  ;;  %v326_v3 = vand.u32 2147483647, %v316_v61  ;;  %vm322_vm3 = vweird.f32 %v316_v61 }
 0x402   :  { %v329_v6 = vor.u32 1.1754944e-38, %v328_v1  ;;  %vm327_vm5 = vcmp.eq.f32.partialorder %v326_v3, 8.507059e+37 }
 0x404   :  { %415 = vrot.lane.b32.xlu2 %v7804_v22, %s7712_s1 }
 0x406   :  { %v7471_v62 = vpop.eup %7470 }
 0x407   :  { %v318_v63 = vmul.f32 %v7471_v62, %v316_v61  ;;  %vm323_vm2 = vweird.f32 %v7471_v62 }
 0x408   :  { %vm324_vm4 = vmor %vm322_vm3, %vm323_vm2 }
 0x409   :  { %v319_v0 = vsub.f32 1.0, %v318_v63 }
 0x40b   :  { %v320_v2 = vmul.f32 %v7471_v62, %v319_v0 }
 0x40d   :  { %v321_v5 = vadd.f32 %v7471_v62, %v320_v2 }
 0x40f   :  { %v325_v8 = vsel %vm324_vm4, %v7471_v62, %v321_v5 }
 0x410   :  { %v330_v9 = vsel %vm327_vm5, %v329_v6, %v325_v8 }
 0x411   :  { %v331_v10 = vmul.f32 %v7465_v48, %v330_v9 }
 0x412   :  { %v597_v11 = vpop.permute.xlu0 %596  ;;  %594 = vrot.lane.b32.xlu0 %v7790_v16, %s7710_s26 }
 0x413   :  { %6964 = vmatmul.msk.f32.vlgmr.msra.gmra.mxu3 %vm245_vm1, %v331_v10  ;;  %6978 = vmatpush.xpose.msk.msra.mxu1 %vm245_vm1, %v597_v11 }
 0x41a   :  { %651 = vrot.lane.b32.xlu0 %v7804_v22, %s9241_s2 }
 0x422   :  { %784 = vrot.lane.b32.xlu0 %v7822_v28, %s7707_s20 }
 0x42a   :  { %782 = vrot.lane.b32.xlu0 %v7871_v12, %s7707_s20 }
 0x432   :  { %913 = vrot.lane.b32.xlu0 %v7822_v28, %s7705_s15 }
 0x43a   :  { %911 = vrot.lane.b32.xlu0 %v7871_v12, %s7705_s15 }
 0x442   :  { %756 = vrot.lane.b32.xlu0 %v7822_v28, %s7703_s10 }
 0x45f   :  { %v399_v13 = vpop.xlane.xlu2 %398 }
 0x460   :  { %7472 = vrcp.f32 %v399_v13  ;;  %v411_v18 = vand.u32 2147483648, %v399_v13  ;;  %v409_v20 = vand.u32 2147483647, %v399_v13  ;;  %vm405_vm7 = vweird.f32 %v399_v13 }
 0x462   :  { %v412_v22 = vor.u32 1.1754944e-38, %v411_v18  ;;  %vm410_vm9 = vcmp.eq.f32.partialorder %v409_v20, 8.507059e+37 }
 0x466   :  { %v7473_v14 = vpop.eup %7472 }
 0x467   :  { %v401_v15 = vmul.f32 %v7473_v14, %v399_v13  ;;  %v416_v16 = vpop.permute.xlu2 %415  ;;  %vm406_vm6 = vweird.f32 %v7473_v14 }
 0x468   :  { %436 = vmatpush.msrb.mxu3 %v416_v16  ;;  %vm407_vm8 = vmor %vm405_vm7, %vm406_vm6 }
 0x469   :  { %v402_v7 = vsub.f32 1.0, %v401_v15 }
 0x46a   :  { %565 = vmatpush.msra.mxu3 %v545_v17 }
 0x46b   :  { %v403_v19 = vmul.f32 %v7473_v14, %v402_v7 }
 0x46d   :  { %v404_v21 = vadd.f32 %v7473_v14, %v403_v19 }
 0x46f   :  { %v408_v23 = vsel %vm407_vm8, %v7473_v14, %v404_v21 }
 0x470   :  { %v413_v24 = vsel %vm410_vm9, %v412_v22, %v408_v23 }
 0x471   :  { %v528_v25 = vpop.xlane.xlu0 %527  ;;  %v414_v26 = vmul.f32 %v7848_v53, %v413_v24 }
 0x472   :  { %7474 = vrcp.f32 %v528_v25  ;;  %v540_v32 = vand.u32 2147483648, %v528_v25  ;;  %v538_v34 = vand.u32 2147483647, %v528_v25  ;;  %vm534_vm11 = vweird.f32 %v528_v25 }
 0x473   :  { %6969 = vmatmul.msk.f32.vlgmr.msrb.gmra.mxu3 %vm245_vm1, %v414_v26  ;;  %v7920_v26 = vld [vmem:[%s7846_s30 + $0x18] sm:$0xff] }
 0x474   :  { %v541_v36 = vor.u32 1.1754944e-38, %v540_v32  ;;  %vm539_vm13 = vcmp.eq.f32.partialorder %v538_v34, 8.507059e+37  ;;  %695 = vmatpush.msrb.mxu3 %v7920_v26 }
 0x478   :  { %v7475_v27 = vpop.eup %7474 }
 0x479   :  { %v530_v29 = vmul.f32 %v7475_v27, %v528_v25  ;;  %vm535_vm10 = vweird.f32 %v7475_v27 }
 0x47a   :  { %vm536_vm12 = vmor %vm534_vm11, %vm535_vm10 }
 0x47b   :  { %v531_v31 = vsub.f32 1.0, %v530_v29 }
 0x47d   :  { %v532_v33 = vmul.f32 %v7475_v27, %v531_v31 }
 0x47f   :  { %v533_v35 = vadd.f32 %v7475_v27, %v532_v33 }
 0x481   :  { %v537_v37 = vsel %vm536_vm12, %v7475_v27, %v533_v35 }
 0x482   :  { %v542_v38 = vsel %vm539_vm13, %v541_v36, %v537_v37 }
 0x483   :  { %v543_v39 = vmul.f32 %v7856_v59, %v542_v38 }
 0x484   :  { %v595_v40 = vpop.permute.xlu0 %594 }
 0x485   :  { %6976 = vmatmul.msk.f32.vlgmr.msra.gmra.mxu3 %vm245_vm1, %v543_v39 }
 0x48c   :  { %v652_v41 = vpop.permute.xlu0 %651 }
 0x48d   :  { %672 = vmatpush.msra.mxu2 %v652_v41 }
 0x494   :  { %v785_v42 = vpop.permute.xlu0 %784 }
 0x495   :  { %6989 = vmatpush.xpose.msk.msrb.mxu2 %vm245_vm1, %v785_v42 }
 0x496   :  { %v355_v44 = vpop.f32.mrf.mxu3 }
 0x497   :  { %6971 = vmatmul.msk.f32.vlgmr.msrb.gmra.mxu1 %vm245_vm1, %v355_v44 }
 0x49c   :  { %v7888_v45 = vpop.permute.xlu0 %782 }
 0x49f   :  { %6979 = vmatmul.msk.f32.vlgmr.msra.gmra.mxu1 %vm245_vm1, %v595_v40 }
 0x4a4   :  { %v914_v46 = vpop.permute.xlu0 %913 }
 0x4ac   :  { %v7891_v47 = vpop.permute.xlu0 %911 }
 0x4b4   :  { %v757_v48 = vpop.permute.xlu0 %756 }
 0x4b5   :  { %777 = vmatpush.msrb.mxu1 %v757_v48 }
 0x4b7   :  { %906 = vmatpush.msra.mxu1 %v7853_v55 }
 0x4f6   :  { %v438_v50 = vpop.f32.mrf.mxu3 }
 0x4f7   :  { %6970 = vmatmul.msk.f32.vlgmr.msra.gmra.mxu0 %vm245_vm1, %v438_v50 }
 0x4f8   :  { %6984 = vmatpush.xpose.msk.msra.mxu0 %vm245_vm1, %v7822_v28 }
 0x508   :  { %v567_v51 = vpop.f32.mrf.mxu3 }
 0x509   :  { %6977 = vmatmul.msk.f32.vlgmr.msrb.gmra.mxu0 %vm245_vm1, %v567_v51 }
 0x50a   :  { %883 = vmatpush.msrb.mxu0 %v169_v43 }
 0x511   :  { %6985 = vmatmul.msk.f32.vlgmr.msra.gmra.mxu0 %vm245_vm1, %v7871_v12 }
 0x512   :  { %1012 = vmatpush.msra.mxu0 %v170_v49 }
 0x514   :  { %v7901_v52 = vpop.f32.mrf.mxu1 }
 0x51c   :  { %v619_v53 = vpop.f32.mrf.mxu1 }
 0x51d   :  { %v6980_v54 = vclamps-f32 %v619_v53, 10000.0 }
 0x51f   :  { %v624_v55 = vmul.f32 %v6980_v54, %v7830_v30 }
 0x521   :  { %v6981_v56 = vclamps-f32 %v624_v55, 10000.0 }
 0x523   :  { %v627_v57 = vsel %vm245_vm1, %v6981_v56, -inf }
 0x524   :  { %628 = vmax.xlane.f32.xlu2 %v627_v57 }
 0x574   :  { %v7905_v58 = vpop.f32.mrf.mxu0 }
 0x575   :  { %v485_v53 = vadd.f32 %v7901_v52, %v7905_v58 }
 0x586   :  { %v7907_v59 = vpop.f32.mrf.mxu0 }
 0x587   :  { %v593_v54 = vadd.f32 %v7907_v59, %v485_v53 }
 0x58e   :  { %v724_v60 = vpop.f32.mrf.mxu0 }
 0x58f   :  { %v6986_v61 = vclamps-f32 %v724_v60, 10000.0 }
 0x591   :  { %v729_v62 = vmul.f32 %v6986_v61, %v7830_v30 }
 0x593   :  { %v6987_v63 = vclamps-f32 %v729_v62, 10000.0 }
 0x595   :  { %v732_v0 = vsel %vm245_vm1, %v6987_v63, -inf }
 0x596   :  { %733 = vmax.xlane.f32.xlu2 %v732_v0 }
 0x597   :  { %v629_v1 = vpop.xlane.xlu2 %628 }
 0x598   :  { %v630_v2 = vsub.f32 %v6981_v56, %v629_v1 }
 0x59a   :  { %v631_v3 = vmul.f32 1.442695, %v630_v2 }
 0x59c   :  { %7476 = vpow2.f32 %v631_v3 }
 0x5a2   :  { %v7477_v5 = vpop.eup %7476 }
 0x5a3   :  { %v633_v6 = vsel %vm245_vm1, %v7477_v5, 0.0 }
 0x5a4   :  { %634 = vadd.xlane.f32.xlu1 %v633_v6 }
 0x609   :  { %v734_v8 = vpop.xlane.xlu2 %733 }
 0x60a   :  { %v735_v9 = vsub.f32 %v6987_v63, %v734_v8  ;;  %v7715_v8 = vmov 32.0  }
 0x60c   :  { %v736_v10 = vmul.f32 1.442695, %v735_v9 }
 0x60e   :  { %7478 = vpow2.f32 %v736_v10 }
 0x614   :  { %v7479_v11 = vpop.eup %7478 }
 0x615   :  { %v738_v13 = vsel %vm245_vm1, %v7479_v11, 0.0 }
 0x616   :  { %739 = vadd.xlane.f32.xlu1 %v738_v13 }
 0x617   :  { %v635_v14 = vpop.xlane.xlu1 %634 }
 0x618   :  { %7480 = vrcp.f32 %v635_v14  ;;  %v647_v7 = vand.u32 2147483648, %v635_v14  ;;  %v645_v19 = vand.u32 2147483647, %v635_v14  ;;  %vm641_vm15 = vweird.f32 %v635_v14 }
 0x61a   :  { %v648_v21 = vor.u32 1.1754944e-38, %v647_v7  ;;  %vm646_vm3 = vcmp.eq.f32.partialorder %v645_v19, 8.507059e+37 }
 0x61e   :  { %v7481_v15 = vpop.eup %7480 }
 0x61f   :  { %v637_v16 = vmul.f32 %v7481_v15, %v635_v14  ;;  %vm642_vm14 = vweird.f32 %v7481_v15 }
 0x620   :  { %vm643_vm2 = vmor %vm641_vm15, %vm642_vm14 }
 0x621   :  { %v638_v17 = vsub.f32 1.0, %v637_v16 }
 0x623   :  { %v639_v18 = vmul.f32 %v7481_v15, %v638_v17 }
 0x625   :  { %v640_v20 = vadd.f32 %v7481_v15, %v639_v18 }
 0x627   :  { %v644_v22 = vsel %vm643_vm2, %v7481_v15, %v640_v20 }
 0x628   :  { %v649_v23 = vsel %vm646_vm3, %v648_v21, %v644_v22 }
 0x629   :  { %v650_v24 = vmul.f32 %v7477_v5, %v649_v23 }
 0x62b   :  { %6982 = vmatmul.msk.f32.vlgmr.msra.gmra.mxu2 %vm245_vm1, %v650_v24 }
 0x62c   :  { %6996 = vmatpush.xpose.msk.msra.mxu2 %vm245_vm1, %v914_v46 }
 0x633   :  { %6990 = vmatmul.msk.f32.vlgmr.msrb.gmra.mxu2 %vm245_vm1, %v7888_v45 }
 0x63b   :  { %6997 = vmatmul.msk.f32.vlgmr.msra.gmra.mxu2 %vm245_vm1, %v7891_v47 }
 0x689   :  { %v740_v25 = vpop.xlane.xlu1 %739 }
 0x68a   :  { %7482 = vrcp.f32 %v740_v25  ;;  %v752_v32 = vand.u32 2147483648, %v740_v25  ;;  %v750_v34 = vand.u32 2147483647, %v740_v25  ;;  %vm746_vm5 = vweird.f32 %v740_v25 }
 0x68c   :  { %v753_v36 = vor.u32 1.1754944e-38, %v752_v32  ;;  %vm751_vm7 = vcmp.eq.f32.partialorder %v750_v34, 8.507059e+37 }
 0x690   :  { %v7483_v27 = vpop.eup %7482 }
 0x691   :  { %v742_v29 = vmul.f32 %v7483_v27, %v740_v25  ;;  %vm747_vm4 = vweird.f32 %v7483_v27 }
 0x692   :  { %vm748_vm6 = vmor %vm746_vm5, %vm747_vm4 }
 0x693   :  { %v743_v31 = vsub.f32 1.0, %v742_v29 }
 0x695   :  { %v744_v33 = vmul.f32 %v7483_v27, %v743_v31 }
 0x697   :  { %v745_v35 = vadd.f32 %v7483_v27, %v744_v33 }
 0x699   :  { %v749_v37 = vsel %vm748_vm6, %v7483_v27, %v745_v35 }
 0x69a   :  { %v754_v38 = vsel %vm751_vm7, %v753_v36, %v749_v37 }
 0x69b   :  { %v755_v39 = vmul.f32 %v7479_v11, %v754_v38 }
 0x69d   :  { %6988 = vmatmul.msk.f32.vlgmr.msrb.gmra.mxu1 %vm245_vm1, %v755_v39 }
 0x6ae   :  { %v674_v40 = vpop.f32.mrf.mxu2 }
 0x6af   :  { %6983 = vmatmul.msk.f32.vlgmr.msrb.gmra.mxu3 %vm245_vm1, %v674_v40 }
 0x6b6   :  { %v807_v41 = vpop.f32.mrf.mxu2 }
 0x6b7   :  { %v6991_v42 = vclamps-f32 %v807_v41, 10000.0 }
 0x6b9   :  { %v812_v43 = vmul.f32 %v6991_v42, %v7830_v30 }
 0x6bb   :  { %v6992_v44 = vclamps-f32 %v812_v43, 10000.0 }
 0x6bd   :  { %v815_v45 = vsel %vm245_vm1, %v6992_v44, -inf }
 0x6be   :  { %v936_v46 = vpop.f32.mrf.mxu2  ;;  %816 = vmax.xlane.f32.xlu2 %v815_v45 }
 0x6bf   :  { %v6998_v47 = vclamps-f32 %v936_v46, 10000.0 }
 0x6c1   :  { %v941_v48 = vmul.f32 %v6998_v47, %v7830_v30 }
 0x6c3   :  { %v6999_v49 = vclamps-f32 %v941_v48, 10000.0 }
 0x6c5   :  { %v944_v50 = vsel %vm245_vm1, %v6999_v49, -inf }
 0x6c6   :  { %945 = vmax.xlane.f32.xlu1 %v944_v50 }
 0x6d6   :  { %968 = vrot.lane.b32.xlu2 %v7822_v28, %s7709_s25 }
 0x6df   :  { %839 = vrot.lane.b32.xlu1 %v7822_v28, %s7712_s1 }
 0x6e7   :  { %1020 = vrot.lane.b32.xlu1 %v7822_v28, %s7710_s26 }
 0x71a   :  { %v779_v51 = vpop.f32.mrf.mxu1 }
 0x71b   :  { %6995 = vmatmul.msk.f32.vlgmr.msra.gmra.mxu1 %vm245_vm1, %v779_v51 }
 0x731   :  { %v817_v55 = vpop.xlane.xlu2 %816 }
 0x732   :  { %v818_v56 = vsub.f32 %v6992_v44, %v817_v55  ;;  %v697_v57 = vpop.f32.mrf.mxu3 }
 0x733   :  { %v700_v60 = vadd.f32 %v697_v57, %v593_v54 }
 0x734   :  { %v819_v61 = vmul.f32 1.442695, %v818_v56 }
 0x735   :  { %v1125_v62 = vadd.f32 %v700_v60, %v7767_v4 }
 0x736   :  { %7484 = vpow2.f32 %v819_v61 }
 0x737   :  { %v1129_v63 = vsel %vm172_vm0, %v1125_v62, 0.0 }
 0x738   :  { %1130 = vadd.xlane.f32.xlu1 %v1129_v63  ;;  %v1193_v63 = vld [vmem:[%s7978_s21 + $0x18] sm:$0xff] }
 0x739   :  { %v946_v0 = vpop.xlane.xlu1 %945  ;;  %v969_v59 = vpop.permute.xlu2 %968 }
 0x73a   :  { %v947_v1 = vsub.f32 %v6999_v49, %v946_v0 }
 0x73c   :  { %v7485_v2 = vpop.eup %7484  ;;  %v948_v3 = vmul.f32 1.442695, %v947_v1 }
 0x73d   :  { %v821_v5 = vsel %vm245_vm1, %v7485_v2, 0.0 }
 0x73e   :  { %7486 = vpow2.f32 %v948_v3  ;;  %822 = vadd.xlane.f32.xlu0 %v821_v5  ;;  %v1190_v5 = vld [vmem:[%s7978_s21] sm:$0xff] }
 0x73f   :  { %7488 = vrcp.f32 %v7715_v8 }
 0x744   :  { %v7942_v52 = vpop.eup %7486 }
 0x745   :  { %v950_v58 = vsel %vm245_vm1, %v7942_v52, 0.0  ;;  %v7489_v9 = vpop.eup %7488 }
 0x746   :  { %951 = vadd.xlane.f32.xlu2 %v950_v58  ;;  %v1136_v10 = vmul.f32 32.0, %v7489_v9  ;;  %vm1140_vm8 = vweird.f32 %v7489_v9 }
 0x748   :  { %v1137_v11 = vsub.f32 1.0, %v1136_v10  ;;  %v1209_v10 = vld [vmem:[%s8012_s5 + $0x70] sm:$0xff] }
 0x74a   :  { %v1138_v13 = vmul.f32 %v7489_v9, %v1137_v11  ;;  %v1208_v11 = vld [vmem:[%s8012_s5 + $0x68] sm:$0xff] }
 0x74c   :  { %v1139_v14 = vadd.f32 %v7489_v9, %v1138_v13  ;;  %v1207_v13 = vld [vmem:[%s8012_s5 + $0x60] sm:$0xff] }
 0x74e   :  { %v7954_v15 = vsel %vm1140_vm8, %v7489_v9, %v1139_v14  ;;  %v1210_v9 = vld [vmem:[%s8012_s5 + $0x78] sm:$0xff] }
 0x74f   :  { %v1206_v14 = vld [vmem:[%s8012_s5 + $0x58] sm:$0xff] }
 0x751   :  { %v840_v4 = vpop.permute.xlu1 %839 }
 0x752   :  { %860 = vmatpush.msra.mxu3 %v840_v4 }
 0x754   :  { %989 = vmatpush.msrb.mxu3 %v969_v59 }
 0x759   :  { %v1021_v6 = vpop.permute.xlu1 %1020 }
 0x75a   :  { %7002 = vmatpush.xpose.msk.msrb.mxu1 %vm245_vm1, %v1021_v6  ;;  %v8002_v6 = vld [vmem:[%s7965_s13] ss:$0 sm:$0xff] }
 0x75e   :  { %1018 = vrot.lane.b32.xlu2 %v7871_v12, %s7710_s26  ;;  %1249 = vmatpush.msra.mxu1 %v1210_v9 }
 0x760   :  { %1250 = vmatpush.msra.mxu1 %v1209_v10 }
 0x762   :  { %1251 = vmatpush.msra.mxu1 %v1208_v11 }
 0x764   :  { %1252 = vmatpush.msra.mxu1 %v1207_v13 }
 0x766   :  { %1253 = vmatpush.msra.mxu1 %v1206_v14  ;;  %v7698_v14 = vld [vmem:[%s7760_s9 + $0x8] sm:$0xff]  ;;  %s7729_s9 = smov 3  }
 0x798   :  { %v7973_v51 = vpop.f32.mrf.mxu1 }
 0x7ab   :  { %v1131_v16 = vpop.xlane.xlu1 %1130 }
 0x7ac   :  { %v1142_v17 = vmul.f32 %v7954_v15, %v1131_v16  ;;  %v1205_v16 = vld [vmem:[%s8012_s5 + $0x50] sm:$0xff] }
 0x7ad   :  { %1254 = vmatpush.msra.mxu1 %v1205_v16 }
 0x7ae   :  { %v7957_v7 = vsub.f32 %v1125_v62, %v1142_v17  ;;  %v1204_v17 = vld [vmem:[%s8012_s5 + $0x48] sm:$0xff] }
 0x7af   :  { %1255 = vmatpush.msra.mxu1 %v1204_v17 }
 0x7b0   :  { %v1146_v18 = vmul.f32 %v7957_v7, %v7957_v7 }
 0x7b1   :  { %v823_v19 = vpop.xlane.xlu0 %822 }
 0x7b2   :  { %7490 = vrcp.f32 %v823_v19  ;;  %v1148_v12 = vsel %vm172_vm0, %v1146_v18, 0.0  ;;  %v835_v24 = vand.u32 2147483648, %v823_v19  ;;  %v833_v27 = vand.u32 2147483647, %v823_v19  ;;  %v1202_v18 = vld [vmem:[%s8012_s5 + $0x38] sm:$0xff] }
 0x7b3   :  { %1149 = vadd.xlane.f32.xlu0 %v1148_v12  ;;  %vm829_vm10 = vweird.f32 %v823_v19  ;;  %v1200_v12 = vld [vmem:[%s8012_s5 + $0x28] sm:$0xff] }
 0x7b4   :  { %v836_v32 = vor.u32 1.1754944e-38, %v835_v24  ;;  %vm834_vm12 = vcmp.eq.f32.partialorder %v833_v27, 8.507059e+37  ;;  %v1195_v24 = vld [vmem:[%s8012_s5] sm:$0xff] }
 0x7b8   :  { %v7491_v20 = vpop.eup %7490 }
 0x7b9   :  { %v825_v21 = vmul.f32 %v7491_v20, %v823_v19  ;;  %v952_v22 = vpop.xlane.xlu2 %951  ;;  %vm830_vm9 = vweird.f32 %v7491_v20  ;;  %v1201_v19 = vld [vmem:[%s8012_s5 + $0x30] sm:$0xff] }
 0x7ba   :  { %7492 = vrcp.f32 %v952_v22  ;;  %vm831_vm11 = vmor %vm829_vm10, %vm830_vm9  ;;  %v964_v39 = vand.u32 2147483648, %v952_v22  ;;  %v962_v41 = vand.u32 2147483647, %v952_v22  ;;  %vm958_vm14 = vweird.f32 %v952_v22 }
 0x7bb   :  { %v826_v23 = vsub.f32 1.0, %v825_v21  ;;  %v1198_v21 = vld [vmem:[%s8012_s5 + $0x18] sm:$0xff] }
 0x7bc   :  { %v965_v43 = vor.u32 1.1754944e-38, %v964_v39  ;;  %vm963_vm2 = vcmp.eq.f32.partialorder %v962_v41, 8.507059e+37 }
 0x7bd   :  { %v827_v25 = vmul.f32 %v7491_v20, %v826_v23  ;;  %v1196_v23 = vld [vmem:[%s8012_s5 + $0x8] sm:$0xff] }
 0x7bf   :  { %v828_v29 = vadd.f32 %v7491_v20, %v827_v25 }
 0x7c0   :  { %v7493_v31 = vpop.eup %7492 }
 0x7c1   :  { %v832_v33 = vsel %vm831_vm11, %v7491_v20, %v828_v29  ;;  %v954_v34 = vmul.f32 %v7493_v31, %v952_v22  ;;  %v1019_v35 = vpop.permute.xlu2 %1018  ;;  %vm959_vm13 = vweird.f32 %v7493_v31  ;;  %v1199_v20 = vld [vmem:[%s8012_s5 + $0x20] sm:$0xff]  ;;  %v1197_v22 = vld [vmem:[%s8012_s5 + $0x10] sm:$0xff] }
 0x7c2   :  { %7003 = vmatmul.msk.f32.vlgmr.msrb.gmra.mxu1 %vm245_vm1, %v1019_v35  ;;  %v837_v36 = vsel %vm834_vm12, %v836_v32, %v832_v33  ;;  %vm960_vm15 = vmor %vm958_vm14, %vm959_vm13  ;;  %v8037_v35 = vld [vmem:[%s7997_s28] ss:$0 sm:$0xff] }
 0x7c3   :  { %v955_v37 = vsub.f32 1.0, %v954_v34  ;;  %v838_v38 = vmul.f32 %v7485_v2, %v837_v36  ;;  %v1192_v2 = vld [vmem:[%s7978_s21 + $0x10] sm:$0xff] }
 0x7c5   :  { %v956_v40 = vmul.f32 %v7493_v31, %v955_v37  ;;  %6993 = vmatmul.msk.f32.vlgmr.msra.gmra.mxu3 %vm245_vm1, %v838_v38 }
 0x7c6   :  { %1119 = vmatpush.msra.mxu3 %v7920_v26 }
 0x7c7   :  { %v957_v42 = vadd.f32 %v7493_v31, %v956_v40 }
 0x7c9   :  { %v961_v44 = vsel %vm960_vm15, %v7493_v31, %v957_v42 }
 0x7ca   :  { %v966_v45 = vsel %vm963_vm2, %v965_v43, %v961_v44 }
 0x7cb   :  { %v967_v46 = vmul.f32 %v7942_v52, %v966_v45  ;;  %v7991_v52 = vld [vmem:[%s7949_s7] ss:$0 sm:$0xff] }
 0x7cd   :  { %7000 = vmatmul.msk.f32.vlgmr.msrb.gmra.mxu3 %vm245_vm1, %v967_v46 }
 0x826   :  { %v1150_v47 = vpop.xlane.xlu0 %1149 }
 0x827   :  { %v1154_v48 = vmul.f32 %v1150_v47, %v7954_v15 }
 0x829   :  { %v1156_v49 = vadd.f32 1e-05, %v1154_v48 }
 0x82b   :  { %7494 = vrsqrt.f32 %v1156_v49  ;;  %vm1164_vm4 = vweird.f32 %v1156_v49 }
 0x831   :  { %v7495_v50 = vpop.eup %7494 }
 0x832   :  { %v1159_v26 = vmul.f32 %v7495_v50, %v1156_v49  ;;  %vm1165_vm3 = vweird.f32 %v7495_v50 }
 0x833   :  { %vm1166_vm5 = vmor %vm1164_vm4, %vm1165_vm3 }
 0x834   :  { %v1160_v53 = vmul.f32 %v7495_v50, %v1159_v26 }
 0x836   :  { %v1161_v55 = vmul.f32 0.5, %v1160_v53 }
 0x838   :  { %v1162_v60 = vsub.f32 1.5, %v1161_v55 }
 0x83a   :  { %v1163_v0 = vmul.f32 %v7495_v50, %v1162_v60 }
 0x83c   :  { %v1167_v3 = vsel %vm1166_vm5, %v7495_v50, %v1163_v0 }
 0x83d   :  { %v1178_v58 = vmul.f32 %v1167_v3, %v7957_v7  ;;  %v1203_v7 = vld [vmem:[%s8012_s5 + $0x40] sm:$0xff]  ;;  %v7013_v3 = vld [vmem:[%s7755_s6 + $0x28] sm:$0xff] }
 0x83e   :  { %1256 = vmatpush.msra.mxu1 %v1203_v7 }
 0x83f   :  { %v1043_v54 = vpop.f32.mrf.mxu1  ;;  %v1183_v59 = vmul.f32 %v7991_v52, %v1178_v58 }
 0x840   :  { %v7004_v56 = vclamps-f32 %v1043_v54, 10000.0  ;;  %1257 = vmatpush.msra.mxu1 %v1202_v18 }
 0x841   :  { %v8005_v8 = vadd.f32 %v8002_v6, %v1183_v59 }
 0x842   :  { %v7981_v57 = vmul.f32 %v7004_v56, %v7830_v30  ;;  %v1191_v30 = vld [vmem:[%s7978_s21 + $0x8] sm:$0xff]  ;;  %1258 = vmatpush.msra.mxu1 %v1201_v19 }
 0x844   :  { %v7005_v61 = vclamps-f32 %v7981_v57, 10000.0  ;;  %1259 = vmatpush.msra.mxu1 %v1200_v12 }
 0x846   :  { %v1051_v62 = vsel %vm245_vm1, %v7005_v61, -inf  ;;  %1260 = vmatpush.msra.mxu1 %v1199_v20 }
 0x847   :  { %1052 = vmax.xlane.f32.xlu2 %v1051_v62 }
 0x848   :  { %v862_v1 = vpop.f32.mrf.mxu3  ;;  %1261 = vmatpush.msra.mxu1 %v1198_v21 }
 0x849   :  { %6994 = vmatmul.msk.f32.vlgmr.msrb.gmra.mxu0 %vm245_vm1, %v862_v1 }
 0x84a   :  { %1233 = vmatpush.msrb.mxu0 %v1193_v63  ;;  %1262 = vmatpush.msra.mxu1 %v1197_v22 }
 0x84c   :  { %1234 = vmatpush.msrb.mxu0 %v1192_v2  ;;  %1263 = vmatpush.msra.mxu1 %v1196_v23  ;;  %v7015_v2 = vld [vmem:[%s7755_s6 + $0x38] sm:$0xff]  ;;  %v8074_v23 = vld [vmem:[%s8060_s4] ss:$0 sm:$0xff] }
 0x84e   :  { %1235 = vmatpush.msrb.mxu0 %v1191_v30  ;;  %1264 = vmatpush.msra.mxu1 %v1195_v24  ;;  %v7014_v30 = vld [vmem:[%s7755_s6 + $0x30] sm:$0xff] }
 0x850   :  { %v991_v4 = vpop.f32.mrf.mxu3  ;;  %1236 = vmatpush.msrb.mxu0 %v1190_v5  ;;  %v7012_v5 = vld [vmem:[%s7755_s6 + $0x20] sm:$0xff]  ;;  %s7723_s6 = smov 24  }
 0x851   :  { %7001 = vmatmul.msk.f32.vlgmr.msra.gmra.mxu0 %vm245_vm1, %v991_v4 }
 0x859   :  { %7008 = vmatmul.msk.f32.vlgmr.msrb.gmra.mxu0 %vm172_vm0, %v8005_v8 }
 0x8ba   :  { %v1053_v25 = vpop.xlane.xlu2 %1052 }
 0x8bb   :  { %v1054_v27 = vsub.f32 %v7005_v61, %v1053_v25 }
 0x8bd   :  { %v1055_v29 = vmul.f32 1.442695, %v1054_v27 }
 0x8bf   :  { %7496 = vpow2.f32 %v1055_v29 }
 0x8c5   :  { %v7497_v31 = vpop.eup %7496 }
 0x8c6   :  { %v885_v32 = vpop.f32.mrf.mxu0  ;;  %v1057_v33 = vsel %vm245_vm1, %v7497_v31, 0.0 }
 0x8c7   :  { %1058 = vadd.xlane.f32.xlu0 %v1057_v33 }
 0x8ce   :  { %v1014_v34 = vpop.f32.mrf.mxu0 }
 0x8d6   :  { %v1238_v36 = vpop.f32.mrf.mxu0 }
 0x8d7   :  { %v1239_v37 = vadd.f32 %v8037_v35, %v1238_v36  ;;  %v7019_v36 = vld [vmem:[%s7781_s14 + $0x38] sm:$0xff] }
 0x8d8   :  { %1412 = vmatpush.msrb.mxu3 %v7019_v36 }
 0x8d9   :  { %v1244_v38 = vmax.f32 %v1239_v37, 0.0  ;;  %v7018_v37 = vld [vmem:[%s7781_s14 + $0x30] sm:$0xff] }
 0x8da   :  { %1413 = vmatpush.msrb.mxu3 %v7018_v37 }
 0x8db   :  { %1265 = vmatmul.f32.vlgmr.msra.gmra.mxu1 %v1244_v38  ;;  %1075 = vrot.lane.b32.xlu0 %v7822_v28, %s9241_s2  ;;  %v8044_v28 = vld [vmem:[%s8034_s16] ss:$0 sm:$0xff] }
 0x93a   :  { %v1059_v39 = vpop.xlane.xlu0 %1058 }
 0x93b   :  { %7498 = vrcp.f32 %v1059_v39  ;;  %v1071_v43 = vand.u32 2147483648, %v1059_v39  ;;  %v1069_v45 = vand.u32 2147483647, %v1059_v39  ;;  %vm1065_vm7 = vweird.f32 %v1059_v39 }
 0x93d   :  { %v1072_v47 = vor.u32 1.1754944e-38, %v1071_v43  ;;  %vm1070_vm9 = vcmp.eq.f32.partialorder %v1069_v45, 8.507059e+37  ;;  %v7016_v43 = vld [vmem:[%s7781_s14 + $0x20] sm:$0xff] }
 0x941   :  { %v7499_v40 = vpop.eup %7498 }
 0x942   :  { %v1061_v41 = vmul.f32 %v7499_v40, %v1059_v39  ;;  %vm1066_vm6 = vweird.f32 %v7499_v40  ;;  %v7017_v39 = vld [vmem:[%s7781_s14 + $0x28] sm:$0xff]  ;;  %s7738_s14 = smov 31  }
 0x943   :  { %vm1067_vm8 = vmor %vm1065_vm7, %vm1066_vm6  ;;  %1414 = vmatpush.msrb.mxu3 %v7017_v39 }
 0x944   :  { %v1062_v42 = vsub.f32 1.0, %v1061_v41 }
 0x945   :  { %1415 = vmatpush.msrb.mxu3 %v7016_v43 }
 0x946   :  { %v1063_v44 = vmul.f32 %v7499_v40, %v1062_v42 }
 0x948   :  { %v1064_v46 = vadd.f32 %v7499_v40, %v1063_v44 }
 0x94a   :  { %v1068_v48 = vsel %vm1067_vm8, %v7499_v40, %v1064_v46 }
 0x94b   :  { %v1073_v49 = vsel %vm1070_vm9, %v1072_v47, %v1068_v48 }
 0x94c   :  { %v1074_v50 = vmul.f32 %v7497_v31, %v1073_v49 }
 0x94d   :  { %v1076_v26 = vpop.permute.xlu0 %1075 }
 0x94e   :  { %1096 = vmatpush.msrb.mxu2 %v1076_v26 }
 0x94f   :  { %7006 = vmatmul.msk.f32.vlgmr.msrb.gmra.mxu2 %vm245_vm1, %v1074_v50 }
 0x950   :  { %1369 = vmatpush.msra.mxu2 %v7015_v2 }
 0x952   :  { %1370 = vmatpush.msra.mxu2 %v7014_v30 }
 0x954   :  { %1371 = vmatpush.msra.mxu2 %v7013_v3 }
 0x956   :  { %1372 = vmatpush.msra.mxu2 %v7012_v5 }
 0x958   :  { %v1266_v53 = vpop.f32.mrf.mxu1 }
 0x959   :  { %v1267_v54 = vadd.f32 %v8044_v28, %v1266_v53 }
 0x95b   :  { %v7010_v55 = vclamps-f32 %v1267_v54, 5.0 }
 0x95d   :  { %v1276_v56 = vadd.f32 %v7010_v55, %v8005_v8  ;;  %v909_v8 = vadd.f32 %v7973_v51, %v885_v32  ;;  %v8071_v51 = vld [vmem:[%s8050_s23] ss:$0 sm:$0xff] }
 0x95f   :  { %v1280_v57 = vsel %vm172_vm0, %v1276_v56, 0.0  ;;  %v1017_v9 = vadd.f32 %v1014_v34, %v909_v8 }
 0x960   :  { %1281 = vadd.xlane.f32.xlu0 %v1280_v57 }
 0x9d2   :  { %v1098_v60 = vpop.f32.mrf.mxu2 }
 0x9d3   :  { %7007 = vmatmul.msk.f32.vlgmr.msra.gmra.mxu3 %vm245_vm1, %v1098_v60  ;;  %v1282_v61 = vpop.xlane.xlu0 %1281 }
 0x9d4   :  { %v1286_v62 = vmul.f32 %v1282_v61, %v7954_v15 }
 0x9d6   :  { %v1288_v63 = vsub.f32 %v1276_v56, %v1286_v62  ;;  %v7020_v62 = vld [vmem:[%s7799_s19 + $0x8] sm:$0xff]  ;;  %s6940_s19 = sld [smem:[%s9240_s0 + %s7723_s6]]  }
 0x9d7   :  { %1444 = vmatpush.msra.mxu0 %v7020_v62  ;;  %s8367_s6 = sld [smem:[%s9240_s0 + %s7728_s29]]  }
 0x9d8   :  { %v1290_v0 = vmul.f32 %v1288_v63, %v1288_v63 }
 0x9da   :  { %v1292_v1 = vsel %vm172_vm0, %v1290_v0, 0.0 }
 0x9db   :  { %1293 = vadd.xlane.f32.xlu1 %v1292_v1 }
 0xa4e   :  { %v1294_v58 = vpop.xlane.xlu1 %1293 }
 0xa4f   :  { %v1298_v4 = vmul.f32 %v1294_v58, %v7954_v15 }
 0xa51   :  { %v1300_v59 = vadd.f32 1e-05, %v1298_v4 }
 0xa53   :  { %7500 = vrsqrt.f32 %v1300_v59  ;;  %vm1308_vm11 = vweird.f32 %v1300_v59 }
 0xa56   :  { %v1121_v10 = vpop.f32.mrf.mxu3 }
 0xa57   :  { %v1124_v11 = vadd.f32 %v1121_v10, %v1017_v9 }
 0xa59   :  { %v7501_v13 = vpop.eup %7500  ;;  %v1126_v16 = vadd.f32 %v7698_v14, %v1124_v11 }
 0xa5a   :  { %v1303_v17 = vmul.f32 %v7501_v13, %v1300_v59  ;;  %vm1309_vm10 = vweird.f32 %v7501_v13 }
 0xa5b   :  { %v1132_v7 = vsel %vm172_vm0, %v1126_v16, 0.0  ;;  %vm1310_vm12 = vmor %vm1308_vm11, %vm1309_vm10 }
 0xa5c   :  { %v1304_v18 = vmul.f32 %v7501_v13, %v1303_v17  ;;  %1133 = vadd.xlane.f32.xlu2 %v1132_v7 }
 0xa5e   :  { %v1305_v19 = vmul.f32 0.5, %v1304_v18 }
 0xa60   :  { %v1306_v12 = vsub.f32 1.5, %v1305_v19 }
 0xa62   :  { %v1307_v20 = vmul.f32 %v7501_v13, %v1306_v12 }
 0xa64   :  { %v1311_v21 = vsel %vm1310_vm12, %v7501_v13, %v1307_v20 }
 0xa65   :  { %v1322_v22 = vmul.f32 %v1311_v21, %v1288_v63 }
 0xa67   :  { %v1327_v24 = vmul.f32 %v8071_v51, %v1322_v22 }
 0xa69   :  { %v8078_v25 = vadd.f32 %v8074_v23, %v1327_v24 }
 0xa6b   :  { %7025 = vmatmul.msk.f32.vlgmr.msra.gmra.mxu2 %vm172_vm0, %v8078_v25 }
 0xacf   :  { %v1134_v27 = vpop.xlane.xlu2 %1133 }
 0xad0   :  { %v1143_v29 = vmul.f32 %v7954_v15, %v1134_v27 }
 0xad2   :  { %v1145_v31 = vsub.f32 %v1126_v16, %v1143_v29 }
 0xad4   :  { %v1147_v32 = vmul.f32 %v1145_v31, %v1145_v31 }
 0xad6   :  { %v1151_v33 = vsel %vm172_vm0, %v1147_v32, 0.0 }
 0xad7   :  { %1152 = vadd.xlane.f32.xlu1 %v1151_v33 }
 0xaee   :  { %v1374_v34 = vpop.f32.mrf.mxu2 }
 0xaef   :  { %1382 = vrot.lane.b32.xlu2 %v1374_v34, %s7703_s10  ;;  %v8108_v4 = vmul.f32 0.17677669, %v1374_v34 }
 0xb49   :  { %v1383_v38 = vpop.permute.xlu2 %1382 }
 0xb4a   :  { %v1388_v40 = vadd.f32 %v1383_v38, %v1374_v34  ;;  %v1153_v41 = vpop.xlane.xlu1 %1152 }
 0xb4b   :  { %v1155_v42 = vmul.f32 %v1153_v41, %v7954_v15 }
 0xb4c   :  { %1392 = vrot.lane.b32.xlu1 %v1388_v40, %s7703_s10 }
 0xb4d   :  { %v1157_v44 = vadd.f32 1e-05, %v1155_v42 }
 0xb4f   :  { %7502 = vrsqrt.f32 %v1157_v44  ;;  %vm1174_vm14 = vweird.f32 %v1157_v44 }
 0xb55   :  { %v7503_v45 = vpop.eup %7502 }
 0xb56   :  { %v1169_v46 = vmul.f32 %v7503_v45, %v1157_v44  ;;  %vm1175_vm13 = vweird.f32 %v7503_v45 }
 0xb57   :  { %vm1176_vm15 = vmor %vm1174_vm14, %vm1175_vm13 }
 0xb58   :  { %v1170_v47 = vmul.f32 %v7503_v45, %v1169_v46 }
 0xb5a   :  { %v1171_v48 = vmul.f32 0.5, %v1170_v47 }
 0xb5c   :  { %v1172_v49 = vsub.f32 1.5, %v1171_v48 }
 0xb5e   :  { %v1173_v50 = vmul.f32 %v7503_v45, %v1172_v49 }
 0xb60   :  { %v1177_v26 = vsel %vm1176_vm15, %v7503_v45, %v1173_v50 }
 0xb61   :  { %v1179_v53 = vmul.f32 %v1177_v26, %v1145_v31 }
 0xb63   :  { %v1184_v54 = vmul.f32 %v7991_v52, %v1179_v53  ;;  %v8154_v53 = vld [vmem:[%s7846_s30 + $0x28] sm:$0xff] }
 0xb64   :  { %1636 = vmatpush.msrb.mxu0 %v8154_v53 }
 0xb65   :  { %v1189_v55 = vadd.f32 %v8002_v6, %v1184_v54 }
 0xb67   :  { %7009 = vmatmul.msk.f32.gmra.mxu0 %vm172_vm0, %v1189_v55 }
 0xbbe   :  { %v1393_v56 = vpop.permute.xlu1 %1392 }
 0xbbf   :  { %7027 = vmatmul.msk.f32.vlgmr.msrb.gmra.mxu3 %vm172_vm0, %v1393_v56 }
 0xbe4   :  { %v1241_v57 = vpop.f32.mrf.mxu0 }
 0xbe5   :  { %v1242_v60 = vadd.f32 %v8037_v35, %v1241_v57  ;;  %v8158_v57 = vld [vmem:[%s7846_s30 + $0x20] sm:$0xff] }
 0xbe7   :  { %v1245_v61 = vmax.f32 %v1242_v60, 0.0 }
 0xbe9   :  { %1268 = vmatmul.f32.gmra.mxu1 %v1245_v61 }
 0xc42   :  { %v1417_v63 = vpop.f32.mrf.mxu3 }
 0xc43   :  { %7029 = vmatmul.msk.f32.vlgmr.msra.gmra.mxu0 %vm245_vm1, %v1417_v63 }
 0xc66   :  { %v1269_v0 = vpop.f32.mrf.mxu1 }
 0xc67   :  { %v1270_v52 = vadd.f32 %v8044_v28, %v1269_v0 }
 0xc69   :  { %v7011_v1 = vclamps-f32 %v1270_v52, 5.0 }
 0xc6b   :  { %v1277_v6 = vadd.f32 %v7011_v1, %v1189_v55 }
 0xc6d   :  { %v1283_v2 = vsel %vm172_vm0, %v1277_v6, 0.0 }
 0xc6e   :  { %1284 = vadd.xlane.f32.xlu2 %v1283_v2 }
 0xcc0   :  { %v8100_v30 = vpop.f32.mrf.mxu0 }
 0xcc1   :  { %1537 = vrot.lane.b32.xlu1 %v8100_v30, %s7707_s20  ;;  %7031 = vmatpush.xpose.msk.msrb.mxu2 %vm245_vm1, %v8100_v30 }
 0xce1   :  { %v1285_v35 = vpop.xlane.xlu2 %1284 }
 0xce2   :  { %v1287_v3 = vmul.f32 %v1285_v35, %v7954_v15 }
 0xce4   :  { %v1289_v5 = vsub.f32 %v1277_v6, %v1287_v3 }
 0xce6   :  { %v1291_v58 = vmul.f32 %v1289_v5, %v1289_v5 }
 0xce8   :  { %v1295_v28 = vsel %vm172_vm0, %v1291_v58, 0.0 }
 0xce9   :  { %1296 = vadd.xlane.f32.xlu0 %v1295_v28 }
 0xcfd   :  { %1535 = vrot.lane.b32.xlu0 %v8108_v4, %s7707_s20 }
 0xd33   :  { %v1538_v59 = vpop.permute.xlu1 %1537 }
 0xd34   :  { %7036 = vmatpush.xpose.msk.msra.mxu2 %vm245_vm1, %v1538_v59 }
 0xd5c   :  { %v1297_v8 = vpop.xlane.xlu0 %1296 }
 0xd5d   :  { %v1299_v9 = vmul.f32 %v1297_v8, %v7954_v15 }
 0xd5f   :  { %v1301_v10 = vadd.f32 1e-05, %v1299_v9 }
 0xd61   :  { %7504 = vrsqrt.f32 %v1301_v10  ;;  %vm1318_vm3 = vweird.f32 %v1301_v10 }
 0xd67   :  { %v7505_v11 = vpop.eup %7504 }
 0xd68   :  { %v1313_v13 = vmul.f32 %v7505_v11, %v1301_v10  ;;  %vm1319_vm2 = vweird.f32 %v7505_v11 }
 0xd69   :  { %vm1320_vm4 = vmor %vm1318_vm3, %vm1319_vm2 }
 0xd6a   :  { %v1314_v14 = vmul.f32 %v7505_v11, %v1313_v13 }
 0xd6c   :  { %v1315_v16 = vmul.f32 0.5, %v1314_v14 }
 0xd6e   :  { %v1316_v17 = vsub.f32 1.5, %v1315_v16 }
 0xd6f   :  { %v1536_v21 = vpop.permute.xlu0 %1535 }
 0xd70   :  { %v1317_v7 = vmul.f32 %v7505_v11, %v1316_v17 }
 0xd72   :  { %v1321_v18 = vsel %vm1320_vm4, %v7505_v11, %v1317_v7 }
 0xd73   :  { %v1323_v19 = vmul.f32 %v1321_v18, %v1289_v5 }
 0xd75   :  { %v1328_v12 = vmul.f32 %v8071_v51, %v1323_v19  ;;  %v8128_v51 = vld [vmem:[%s7827_s24] sm:$0xff]  ;;  %s7724_s24 = smov 25  }
 0xd77   :  { %v8116_v20 = vadd.f32 %v8074_v23, %v1328_v12  ;;  %v7023_v12 = vld [vmem:[%s7846_s30 + $0x30] sm:$0xff] }
 0xd78   :  { %1765 = vmatpush.msrb.mxu1 %v7023_v12 }
 0xd79   :  { %7026 = vmatmul.msk.f32.gmra.mxu2 %vm172_vm0, %v8116_v20 }
 0xd81   :  { %7032 = vmatmul.msk.f32.vlgmr.msrb.gmra.mxu2 %vm245_vm1, %v8108_v4 }
 0xd82   :  { %1659 = vmatpush.msrb.mxu2 %v8158_v57 }
 0xd89   :  { %7037 = vmatmul.msk.f32.vlgmr.msra.gmra.mxu2 %vm245_vm1, %v1536_v21 }
 0xdfc   :  { %v8123_v22 = vpop.f32.mrf.mxu2 }
 0xdfd   :  { %1384 = vrot.lane.b32.xlu2 %v8123_v22, %s7703_s10 }
 0xe04   :  { %v1477_v24 = vpop.f32.mrf.mxu2 }
 0xe05   :  { %v7033_v27 = vclamps-f32 %v1477_v24, 10000.0 }
 0xe07   :  { %v1482_v23 = vmul.f32 %v8128_v51, %v7033_v27 }
 0xe09   :  { %v7034_v29 = vclamps-f32 %v1482_v23, 10000.0 }
 0xe0b   :  { %v1485_v31 = vsel %vm245_vm1, %v7034_v29, -inf }
 0xe0c   :  { %v1560_v32 = vpop.f32.mrf.mxu2  ;;  %1486 = vmax.xlane.f32.xlu1 %v1485_v31 }
 0xe0d   :  { %v7038_v33 = vclamps-f32 %v1560_v32, 10000.0 }
 0xe0f   :  { %v1565_v34 = vmul.f32 %v8128_v51, %v7038_v33 }
 0xe11   :  { %v7039_v36 = vclamps-f32 %v1565_v34, 10000.0 }
 0xe13   :  { %v1568_v37 = vsel %vm245_vm1, %v7039_v36, -inf }
 0xe14   :  { %1569 = vmax.xlane.f32.xlu0 %v1568_v37 }
 0xe28   :  { %1592 = vrot.lane.b32.xlu0 %v8100_v30, %s7712_s1 }
 0xe57   :  { %v1385_v38 = vpop.permute.xlu2 %1384 }
 0xe58   :  { %v1389_v39 = vadd.f32 %v1385_v38, %v8123_v22 }
 0xe5a   :  { %1394 = vrot.lane.b32.xlu2 %v1389_v39, %s7703_s10 }
 0xe62   :  { %1666 = vrot.lane.b32.xlu2 %v8100_v30, %s7705_s15 }
 0xe6a   :  { %1664 = vrot.lane.b32.xlu2 %v8108_v4, %s7705_s15 }
 0xe7f   :  { %v1487_v40 = vpop.xlane.xlu1 %1486 }
 0xe80   :  { %v1488_v41 = vsub.f32 %v7034_v29, %v1487_v40 }
 0xe82   :  { %v1489_v42 = vmul.f32 1.442695, %v1488_v41  ;;  %v1453_v41 = vmul.f32 0.17677669, %v8123_v22 }
 0xe84   :  { %7506 = vpow2.f32 %v1489_v42 }
 0xe87   :  { %v1570_v43 = vpop.xlane.xlu0 %1569 }
 0xe88   :  { %v1571_v44 = vsub.f32 %v7039_v36, %v1570_v43 }
 0xe8a   :  { %v7507_v45 = vpop.eup %7506  ;;  %v1572_v46 = vmul.f32 1.442695, %v1571_v44 }
 0xe8b   :  { %v1491_v47 = vsel %vm245_vm1, %v7507_v45, 0.0 }
 0xe8c   :  { %7508 = vpow2.f32 %v1572_v46  ;;  %1492 = vadd.xlane.f32.xlu1 %v1491_v47 }
 0xe92   :  { %v7509_v48 = vpop.eup %7508 }
 0xe93   :  { %v1574_v49 = vsel %vm245_vm1, %v7509_v48, 0.0 }
 0xe94   :  { %1575 = vadd.xlane.f32.xlu1 %v1574_v49 }
 0xe9a   :  { %v1593_v9 = vpop.permute.xlu0 %1592 }
 0xead   :  { %1509 = vrot.lane.b32.xlu1 %v8100_v30, %s7703_s10 }
 0xeb4   :  { %v1395_v50 = vpop.permute.xlu2 %1394 }
 0xeb5   :  { %7028 = vmatmul.msk.f32.gmra.mxu3 %vm172_vm0, %v1395_v50  ;;  %1721 = vrot.lane.b32.xlu1 %v8100_v30, %s7709_s25 }
 0xebc   :  { %v1667_v11 = vpop.permute.xlu2 %1666 }
 0xebd   :  { %1773 = vrot.lane.b32.xlu1 %v8100_v30, %s7710_s26 }
 0xec4   :  { %v1665_v18 = vpop.permute.xlu2 %1664 }
 0xec5   :  { %1771 = vrot.lane.b32.xlu1 %v8108_v4, %s7710_s26 }
 0xeff   :  { %v1493_v26 = vpop.xlane.xlu1 %1492 }
 0xf00   :  { %7510 = vrcp.f32 %v1493_v26  ;;  %v1505_v1 = vand.u32 2147483648, %v1493_v26  ;;  %vm1499_vm6 = vweird.f32 %v1493_v26  ;;  %v1503_v6 = vand.u32 2147483647, %v1493_v26 }
 0xf02   :  { %v1506_v3 = vor.u32 1.1754944e-38, %v1505_v1  ;;  %vm1504_vm8 = vcmp.eq.f32.partialorder %v1503_v6, 8.507059e+37 }
 0xf06   :  { %v7511_v54 = vpop.eup %7510 }
 0xf07   :  { %v1576_v55 = vpop.xlane.xlu1 %1575  ;;  %v1495_v56 = vmul.f32 %v7511_v54, %v1493_v26  ;;  %vm1500_vm5 = vweird.f32 %v7511_v54 }
 0xf08   :  { %7512 = vrcp.f32 %v1576_v55  ;;  %vm1501_vm7 = vmor %vm1499_vm6, %vm1500_vm5  ;;  %v1588_v28 = vand.u32 2147483648, %v1576_v55  ;;  %vm1582_vm10 = vweird.f32 %v1576_v55  ;;  %v1586_v4 = vand.u32 2147483647, %v1576_v55 }
 0xf09   :  { %v1496_v60 = vsub.f32 1.0, %v1495_v56 }
 0xf0a   :  { %v1589_v13 = vor.u32 1.1754944e-38, %v1588_v28  ;;  %vm1587_vm12 = vcmp.eq.f32.partialorder %v1586_v4, 8.507059e+37 }
 0xf0b   :  { %v1497_v62 = vmul.f32 %v7511_v54, %v1496_v60 }
 0xf0d   :  { %v1498_v0 = vadd.f32 %v7511_v54, %v1497_v62 }
 0xf0e   :  { %v7513_v61 = vpop.eup %7512 }
 0xf0f   :  { %v1578_v63 = vmul.f32 %v7513_v61, %v1576_v55  ;;  %v1502_v2 = vsel %vm1501_vm7, %v7511_v54, %v1498_v0  ;;  %vm1583_vm9 = vweird.f32 %v7513_v61 }
 0xf10   :  { %v1507_v5 = vsel %vm1504_vm8, %v1506_v3, %v1502_v2  ;;  %vm1584_vm11 = vmor %vm1582_vm10, %vm1583_vm9 }
 0xf11   :  { %v1579_v52 = vsub.f32 1.0, %v1578_v63  ;;  %v1508_v8 = vmul.f32 %v7507_v45, %v1507_v5 }
 0xf13   :  { %v1580_v35 = vmul.f32 %v7513_v61, %v1579_v52 }
 0xf15   :  { %v1581_v58 = vadd.f32 %v7513_v61, %v1580_v35 }
 0xf17   :  { %v1585_v10 = vsel %vm1584_vm11, %v7513_v61, %v1581_v58 }
 0xf18   :  { %v1590_v14 = vsel %vm1587_vm12, %v1589_v13, %v1585_v10 }
 0xf19   :  { %v1591_v17 = vmul.f32 %v7509_v48, %v1590_v14 }
 0xf1f   :  { %v1510_v59 = vpop.permute.xlu1 %1509 }
 0xf20   :  { %1530 = vmatpush.msra.mxu3 %v1510_v59 }
 0xf21   :  { %7035 = vmatmul.msk.f32.vlgmr.msra.gmra.mxu3 %vm245_vm1, %v1508_v8 }
 0xf22   :  { %1613 = vmatpush.msrb.mxu3 %v1593_v9 }
 0xf24   :  { %7043 = vmatpush.xpose.msk.msra.mxu3 %vm245_vm1, %v1667_v11 }
 0xf27   :  { %v1722_v16 = vpop.permute.xlu1 %1721 }
 0xf28   :  { %1742 = vmatpush.msra.mxu0 %v1722_v16 }
 0xf29   :  { %7040 = vmatmul.msk.f32.vlgmr.msrb.gmra.mxu3 %vm245_vm1, %v1591_v17 }
 0xf2f   :  { %v1774_v7 = vpop.permute.xlu1 %1773 }
 0xf30   :  { %7049 = vmatpush.xpose.msk.msra.mxu2 %vm245_vm1, %v1774_v7 }
 0xf31   :  { %7044 = vmatmul.msk.f32.vlgmr.msra.gmra.mxu3 %vm245_vm1, %v1665_v18 }
 0xf37   :  { %v1772_v24 = vpop.permute.xlu1 %1771 }
 0xf38   :  { %v1420_v19 = vpop.f32.mrf.mxu3 }
 0xf39   :  { %7030 = vmatmul.msk.f32.gmra.mxu0 %vm245_vm1, %v1420_v19 }
 0xfa4   :  { %v1532_v21 = vpop.f32.mrf.mxu3 }
 0xfa5   :  { %7042 = vmatmul.msk.f32.vlgmr.msrb.gmra.mxu2 %vm245_vm1, %v1532_v21 }
 0xfac   :  { %v1615_v27 = vpop.f32.mrf.mxu3 }
 0xfad   :  { %7041 = vmatmul.msk.f32.vlgmr.msrb.gmra.mxu0 %vm245_vm1, %v1615_v27  ;;  %7050 = vmatmul.msk.f32.vlgmr.msra.gmra.mxu2 %vm245_vm1, %v1772_v24 }
 0xfb4   :  { %v1689_v23 = vpop.f32.mrf.mxu3 }
 0xfb5   :  { %v7045_v29 = vclamps-f32 %v1689_v23, 10000.0 }
 0xfb6   :  { %v8171_v31 = vpop.f32.mrf.mxu0 }
 0xfb7   :  { %7055 = vmatpush.xpose.msk.msra.mxu1 %vm245_vm1, %v8171_v31  ;;  %v1694_v32 = vmul.f32 %v8128_v51, %v7045_v29 }
 0xfb9   :  { %v7046_v33 = vclamps-f32 %v1694_v32, 10000.0 }
 0xfbb   :  { %v1697_v34 = vsel %vm245_vm1, %v7046_v33, -inf }
 0xfbc   :  { %1698 = vmax.xlane.f32.xlu2 %v1697_v34 }
0x102a   :  { %v8188_v56 = vpop.f32.mrf.mxu0 }
0x102f   :  { %v1699_v36 = vpop.xlane.xlu2 %1698 }
0x1030   :  { %v1700_v37 = vsub.f32 %v7046_v33, %v1699_v36 }
0x1032   :  { %v1701_v38 = vmul.f32 1.442695, %v1700_v37 }
0x1034   :  { %7514 = vpow2.f32 %v1701_v38 }
0x103a   :  { %v7515_v39 = vpop.eup %7514 }
0x103b   :  { %v1703_v40 = vsel %vm245_vm1, %v7515_v39, 0.0 }
0x103c   :  { %1704 = vadd.xlane.f32.xlu0 %v1703_v40 }
0x1050   :  { %1933 = vrot.lane.b32.xlu0 %v8171_v31, %s7703_s10 }
0x1058   :  { %1961 = vrot.lane.b32.xlu0 %v8171_v31, %s7707_s20 }
0x1060   :  { %1959 = vrot.lane.b32.xlu0 %v1453_v41, %s7707_s20 }
0x1068   :  { %2195 = vrot.lane.b32.xlu0 %v1453_v41, %s7710_s26 }
0x1070   :  { %2088 = vrot.lane.b32.xlu0 %v1453_v41, %s7705_s15 }
0x10af   :  { %v1705_v42 = vpop.xlane.xlu0 %1704 }
0x10b0   :  { %7516 = vrcp.f32 %v1705_v42  ;;  %v1717_v46 = vand.u32 2147483648, %v1705_v42  ;;  %v1715_v48 = vand.u32 2147483647, %v1705_v42  ;;  %vm1711_vm14 = vweird.f32 %v1705_v42 }
0x10b2   :  { %v1718_v50 = vor.u32 1.1754944e-38, %v1717_v46  ;;  %vm1716_vm2 = vcmp.eq.f32.partialorder %v1715_v48, 8.507059e+37 }
0x10b6   :  { %v7517_v43 = vpop.eup %7516 }
0x10b7   :  { %v1707_v44 = vmul.f32 %v7517_v43, %v1705_v42  ;;  %vm1712_vm13 = vweird.f32 %v7517_v43 }
0x10b8   :  { %vm1713_vm15 = vmor %vm1711_vm14, %vm1712_vm13 }
0x10b9   :  { %v1708_v45 = vsub.f32 1.0, %v1707_v44 }
0x10bb   :  { %v1709_v47 = vmul.f32 %v7517_v43, %v1708_v45 }
0x10bd   :  { %v1710_v49 = vadd.f32 %v7517_v43, %v1709_v47 }
0x10bf   :  { %v1714_v22 = vsel %vm1713_vm15, %v7517_v43, %v1710_v49 }
0x10c0   :  { %v1719_v26 = vsel %vm1716_vm2, %v1718_v50, %v1714_v22 }
0x10c1   :  { %v1720_v54 = vmul.f32 %v7515_v39, %v1719_v26  ;;  %v8219_v26 = vld [vmem:[%s7846_s30 + $0x38] sm:$0xff]  ;;  %s7730_s30 = smov 20  }
0x10c2   :  { %v1934_v55 = vpop.permute.xlu0 %1933  ;;  %1872 = vmatpush.msrb.mxu0 %v8219_v26 }
0x10c3   :  { %7047 = vmatmul.msk.f32.vlgmr.msra.gmra.mxu0 %vm245_vm1, %v1720_v54  ;;  %1954 = vmatpush.msrb.mxu2 %v1934_v55 }
0x10c5   :  { %2083 = vmatpush.msra.mxu2 %v8158_v57  ;;  %v8199_v57 = vpop.f32.mrf.mxu2 }
0x10ca   :  { %v1962_v34 = vpop.permute.xlu0 %1961 }
0x10cd   :  { %v1796_v35 = vpop.f32.mrf.mxu2 }
0x10ce   :  { %v7051_v3 = vclamps-f32 %v1796_v35, 10000.0 }
0x10d0   :  { %v1801_v28 = vmul.f32 %v8128_v51, %v7051_v3 }
0x10d2   :  { %v7052_v4 = vclamps-f32 %v1801_v28, 10000.0  ;;  %v1960_v43 = vpop.permute.xlu0 %1959 }
0x10d4   :  { %v1804_v59 = vsel %vm245_vm1, %v7052_v4, -inf }
0x10da   :  { %v2196_v50 = vpop.permute.xlu0 %2195 }
0x10e2   :  { %v2089_v22 = vpop.permute.xlu0 %2088 }
0x1140   :  { %v1744_v60 = vpop.f32.mrf.mxu0 }
0x1141   :  { %7048 = vmatmul.msk.f32.vlgmr.msrb.gmra.mxu1 %vm245_vm1, %v1744_v60 }
0x1142   :  { %2060 = vmatpush.msrb.mxu1 %v8154_v53 }
0x1149   :  { %7056 = vmatmul.msk.f32.vlgmr.msra.gmra.mxu1 %vm245_vm1, %v1453_v41 }
0x114a   :  { %2189 = vmatpush.msra.mxu1 %v7023_v12 }
0x11be   :  { %v8193_v61 = vpop.f32.mrf.mxu1 }
0x11c6   :  { %v1901_v62 = vpop.f32.mrf.mxu1 }
0x11c7   :  { %v7057_v63 = vclamps-f32 %v1901_v62, 10000.0 }
0x11c9   :  { %v1906_v0 = vmul.f32 %v8128_v51, %v7057_v63 }
0x11cb   :  { %v7058_v52 = vclamps-f32 %v1906_v0, 10000.0 }
0x11cd   :  { %v1909_v1 = vsel %vm245_vm1, %v7058_v52, -inf }
0x11ce   :  { %1910 = vmax.xlane.f32.xlu1 %v1909_v1 }
0x11e7   :  { %2197 = vrot.lane.b32.xlu1 %v8171_v31, %s7710_s26 }
0x1241   :  { %v1911_v6 = vpop.xlane.xlu1 %1910 }
0x1242   :  { %v1912_v53 = vsub.f32 %v7058_v52, %v1911_v6 }
0x1244   :  { %v1913_v2 = vmul.f32 1.442695, %v1912_v53 }
0x1246   :  { %7518 = vpow2.f32 %v1913_v2 }
0x124c   :  { %v7519_v5 = vpop.eup %7518 }
0x124d   :  { %v1915_v58 = vsel %vm245_vm1, %v7519_v5, 0.0 }
0x124e   :  { %1916 = vadd.xlane.f32.xlu2 %v1915_v58 }
0x1256   :  { %1805 = vmax.xlane.f32.xlu2 %v1804_v59 }
0x1259   :  { %v2198_v29 = vpop.permute.xlu1 %2197 }
0x12c1   :  { %v1917_v8 = vpop.xlane.xlu2 %1916 }
0x12c2   :  { %7520 = vrcp.f32 %v1917_v8  ;;  %v1929_v16 = vand.u32 2147483648, %v1917_v8  ;;  %v1927_v18 = vand.u32 2147483647, %v1917_v8  ;;  %vm1923_vm4 = vweird.f32 %v1917_v8 }
0x12c4   :  { %v1930_v12 = vor.u32 1.1754944e-38, %v1929_v16  ;;  %vm1928_vm6 = vcmp.eq.f32.partialorder %v1927_v18, 8.507059e+37 }
0x12c8   :  { %v7521_v9 = vpop.eup %7520 }
0x12c9   :  { %v1919_v10 = vmul.f32 %v7521_v9, %v1917_v8  ;;  %v1806_v11 = vpop.xlane.xlu2 %1805  ;;  %vm1924_vm3 = vweird.f32 %v7521_v9 }
0x12ca   :  { %v1807_v13 = vsub.f32 %v7052_v4, %v1806_v11  ;;  %vm1925_vm5 = vmor %vm1923_vm4, %vm1924_vm3 }
0x12cb   :  { %v1920_v14 = vsub.f32 1.0, %v1919_v10 }
0x12cc   :  { %v1808_v17 = vmul.f32 1.442695, %v1807_v13 }
0x12cd   :  { %v1921_v7 = vmul.f32 %v7521_v9, %v1920_v14 }
0x12ce   :  { %7522 = vpow2.f32 %v1808_v17 }
0x12cf   :  { %v1922_v19 = vadd.f32 %v7521_v9, %v1921_v7 }
0x12d1   :  { %v1926_v21 = vsel %vm1925_vm5, %v7521_v9, %v1922_v19 }
0x12d2   :  { %v1931_v24 = vsel %vm1928_vm6, %v1930_v12, %v1926_v21 }
0x12d3   :  { %v1932_v27 = vmul.f32 %v7519_v5, %v1931_v24  ;;  %v1662_v24 = vadd.f32 %v8199_v57, %v8188_v56 }
0x12d4   :  { %v7523_v23 = vpop.eup %7522 }
0x12d5   :  { %7059 = vmatmul.msk.f32.vlgmr.msrb.gmra.mxu2 %vm245_vm1, %v1932_v27  ;;  %v1810_v32 = vsel %vm245_vm1, %v7523_v23, 0.0 }
0x12d6   :  { %7073 = vmatpush.xpose.msk.msrb.mxu2 %vm245_vm1, %v2198_v29  ;;  %1811 = vadd.xlane.f32.xlu2 %v1810_v32 }
0x12ee   :  { %1828 = vrot.lane.b32.xlu2 %v8100_v30, %s9241_s2 }
0x12f6   :  { %2090 = vrot.lane.b32.xlu2 %v8171_v31, %s7705_s15 }
0x1349   :  { %v1812_v33 = vpop.xlane.xlu2 %1811 }
0x134a   :  { %7524 = vrcp.f32 %v1812_v33  ;;  %v1824_v40 = vand.u32 2147483648, %v1812_v33  ;;  %v1822_v42 = vand.u32 2147483647, %v1812_v33  ;;  %vm1818_vm8 = vweird.f32 %v1812_v33 }
0x134c   :  { %v1825_v30 = vor.u32 1.1754944e-38, %v1824_v40  ;;  %vm1823_vm10 = vcmp.eq.f32.partialorder %v1822_v42, 8.507059e+37 }
0x1350   :  { %v7525_v36 = vpop.eup %7524 }
0x1351   :  { %v1814_v37 = vmul.f32 %v7525_v36, %v1812_v33  ;;  %v1829_v38 = vpop.permute.xlu2 %1828  ;;  %vm1819_vm7 = vweird.f32 %v7525_v36 }
0x1352   :  { %1849 = vmatpush.msrb.mxu3 %v1829_v38  ;;  %vm1820_vm9 = vmor %vm1818_vm8, %vm1819_vm7 }
0x1353   :  { %v1815_v39 = vsub.f32 1.0, %v1814_v37 }
0x1354   :  { %7060 = vmatpush.xpose.msk.msra.mxu3 %vm245_vm1, %v1962_v34 }
0x1355   :  { %v1816_v41 = vmul.f32 %v7525_v36, %v1815_v39 }
0x1357   :  { %v1817_v44 = vadd.f32 %v7525_v36, %v1816_v41 }
0x1358   :  { %v1956_v45 = vpop.f32.mrf.mxu2 }
0x1359   :  { %v1821_v46 = vsel %vm1820_vm9, %v7525_v36, %v1817_v44  ;;  %7066 = vmatmul.msk.f32.vlgmr.msra.gmra.mxu2 %vm245_vm1, %v1956_v45  ;;  %v2091_v49 = vpop.permute.xlu2 %2090 }
0x135a   :  { %v1826_v47 = vsel %vm1823_vm10, %v1825_v30, %v1821_v46 }
0x135b   :  { %v1827_v48 = vmul.f32 %v7523_v23, %v1826_v47  ;;  %v1770_v23 = vadd.f32 %v8193_v61, %v1662_v24 }
0x135d   :  { %7053 = vmatmul.msk.f32.vlgmr.msrb.gmra.mxu3 %vm245_vm1, %v1827_v48 }
0x135e   :  { %7067 = vmatpush.xpose.msk.msrb.mxu3 %vm245_vm1, %v2091_v49 }
0x1361   :  { %7074 = vmatmul.msk.f32.vlgmr.msrb.gmra.mxu2 %vm245_vm1, %v2196_v50 }
0x1365   :  { %7061 = vmatmul.msk.f32.vlgmr.msra.gmra.mxu3 %vm245_vm1, %v1960_v43 }
0x136d   :  { %7068 = vmatmul.msk.f32.vlgmr.msrb.gmra.mxu3 %vm245_vm1, %v2089_v22 }
0x13dc   :  { %v8222_v54 = vpop.f32.mrf.mxu2 }
0x13e0   :  { %v1851_v55 = vpop.f32.mrf.mxu3 }
0x13e1   :  { %7054 = vmatmul.msk.f32.vlgmr.msrb.gmra.mxu0 %vm245_vm1, %v1851_v55 }
0x13e4   :  { %v2220_v60 = vpop.f32.mrf.mxu2 }
0x13e5   :  { %v7075_v62 = vclamps-f32 %v2220_v60, 10000.0 }
0x13e7   :  { %v2225_v63 = vmul.f32 %v8128_v51, %v7075_v62 }
0x13e8   :  { %v1984_v0 = vpop.f32.mrf.mxu3 }
0x13e9   :  { %v7062_v52 = vclamps-f32 %v1984_v0, 10000.0  ;;  %v7076_v1 = vclamps-f32 %v2225_v63, 10000.0 }
0x13eb   :  { %v2228_v6 = vsel %vm245_vm1, %v7076_v1, -inf  ;;  %v1989_v53 = vmul.f32 %v8128_v51, %v7062_v52 }
0x13ec   :  { %2229 = vmax.xlane.f32.xlu0 %v2228_v6 }
0x13ed   :  { %v7063_v2 = vclamps-f32 %v1989_v53, 10000.0 }
0x13ef   :  { %v1992_v35 = vsel %vm245_vm1, %v7063_v2, -inf }
0x13f0   :  { %1993 = vmax.xlane.f32.xlu2 %v1992_v35  ;;  %v2113_v3 = vpop.f32.mrf.mxu3 }
0x13f1   :  { %v7069_v5 = vclamps-f32 %v2113_v3, 10000.0 }
0x13f3   :  { %v2118_v58 = vmul.f32 %v8128_v51, %v7069_v5 }
0x13f5   :  { %v7070_v28 = vclamps-f32 %v2118_v58, 10000.0 }
0x13f7   :  { %v2121_v4 = vsel %vm245_vm1, %v7070_v28, -inf }
0x13f8   :  { %2122 = vmax.xlane.f32.xlu1 %v2121_v4 }
0x145e   :  { %v1874_v27 = vpop.f32.mrf.mxu0 }
0x145f   :  { %v2230_v59 = vpop.xlane.xlu0 %2229  ;;  %v1877_v29 = vadd.f32 %v1874_v27, %v1770_v23 }
0x1460   :  { %v2231_v8 = vsub.f32 %v7076_v1, %v2230_v59 }
0x1461   :  { %v8247_v32 = vadd.f32 %v1877_v29, %v8078_v25 }
0x1462   :  { %v2232_v9 = vmul.f32 1.442695, %v2231_v8 }
0x1463   :  { %v1994_v10 = vpop.xlane.xlu2 %1993  ;;  %v2308_v33 = vsel %vm172_vm0, %v8247_v32, 0.0 }
0x1464   :  { %7526 = vpow2.f32 %v2232_v9  ;;  %v1995_v11 = vsub.f32 %v7063_v2, %v1994_v10 }
0x1466   :  { %v1996_v13 = vmul.f32 1.442695, %v1995_v11 }
0x1468   :  { %7528 = vpow2.f32 %v1996_v13 }
0x146a   :  { %v7527_v14 = vpop.eup %7526 }
0x146b   :  { %v2123_v16 = vpop.xlane.xlu1 %2122  ;;  %v2234_v17 = vsel %vm245_vm1, %v7527_v14, 0.0 }
0x146c   :  { %v2124_v7 = vsub.f32 %v7070_v28, %v2123_v16  ;;  %2235 = vadd.xlane.f32.xlu0 %v2234_v17  ;;  %v7083_v17 = vld [vmem:[%s7978_s21 + $0x30] sm:$0xff] }
0x146e   :  { %v7529_v18 = vpop.eup %7528  ;;  %v2125_v51 = vmul.f32 1.442695, %v2124_v7  ;;  %v7082_v7 = vld [vmem:[%s7978_s21 + $0x28] sm:$0xff] }
0x146f   :  { %v1998_v19 = vsel %vm245_vm1, %v7529_v18, 0.0 }
0x1470   :  { %7530 = vpow2.f32 %v2125_v51  ;;  %1999 = vadd.xlane.f32.xlu2 %v1998_v19 }
0x1476   :  { %v8233_v12 = vpop.eup %7530 }
0x1477   :  { %v2127_v21 = vsel %vm245_vm1, %v8233_v12, 0.0 }
0x1478   :  { %2128 = vadd.xlane.f32.xlu1 %v2127_v21 }
0x1480   :  { %2252 = vrot.lane.b32.xlu0 %v8171_v31, %s9241_s2 }
0x1488   :  { %2016 = vrot.lane.b32.xlu2 %v8171_v31, %s7712_s1 }
0x1491   :  { %2145 = vrot.lane.b32.xlu1 %v8171_v31, %s7709_s25 }
0x14aa   :  { %2309 = vadd.xlane.f32.xlu0 %v2308_v33  ;;  %v8268_v33 = vld [vmem:[%s7949_s7 + $0x1] ss:$0 sm:$0xff]  ;;  %s7735_s7 = smov 26  }
0x14df   :  { %v2236_v34 = vpop.xlane.xlu0 %2235 }
0x14e0   :  { %7532 = vrcp.f32 %v2236_v34  ;;  %v2246_v56 = vand.u32 2147483647, %v2236_v34  ;;  %v2248_v57 = vand.u32 2147483648, %v2236_v34  ;;  %vm2242_vm12 = vweird.f32 %v2236_v34 }
0x14e2   :  { %vm2247_vm14 = vcmp.eq.f32.partialorder %v2246_v56, 8.507059e+37  ;;  %v2249_v44 = vor.u32 1.1754944e-38, %v2248_v57  ;;  %v7100_v56 = vld [vmem:[%s8012_s5 + $0xf0] sm:$0xff]  ;;  %v7099_v57 = vld [vmem:[%s8012_s5 + $0xe8] sm:$0xff] }
0x14e3   :  { %v2000_v36 = vpop.xlane.xlu2 %1999 }
0x14e4   :  { %7534 = vrcp.f32 %v2000_v36  ;;  %v2012_v30 = vand.u32 2147483648, %v2000_v36  ;;  %v2010_v47 = vand.u32 2147483647, %v2000_v36  ;;  %vm2006_vm2 = vweird.f32 %v2000_v36 }
0x14e6   :  { %v7533_v37 = vpop.eup %7532  ;;  %v2013_v55 = vor.u32 1.1754944e-38, %v2012_v30  ;;  %vm2011_vm4 = vcmp.eq.f32.partialorder %v2010_v47, 8.507059e+37  ;;  %v7092_v30 = vld [vmem:[%s8012_s5 + $0xb0] sm:$0xff]  ;;  %v7089_v47 = vld [vmem:[%s8012_s5 + $0x98] sm:$0xff] }
0x14e7   :  { %v2238_v31 = vmul.f32 %v7533_v37, %v2236_v34  ;;  %vm2243_vm11 = vweird.f32 %v7533_v37 }
0x14e8   :  { %vm2244_vm13 = vmor %vm2242_vm12, %vm2243_vm11 }
0x14e9   :  { %v2239_v38 = vsub.f32 1.0, %v2238_v31 }
0x14ea   :  { %v7535_v39 = vpop.eup %7534 }
0x14eb   :  { %v2240_v40 = vmul.f32 %v7533_v37, %v2239_v38  ;;  %v2002_v61 = vmul.f32 %v7535_v39, %v2000_v36  ;;  %v2017_v41 = vpop.permute.xlu2 %2016  ;;  %v2129_v25 = vpop.xlane.xlu1 %2128  ;;  %vm2007_vm15 = vweird.f32 %v7535_v39 }
0x14ec   :  { %7536 = vrcp.f32 %v2129_v25  ;;  %2037 = vmatpush.msra.mxu0 %v2017_v41  ;;  %vm2008_vm3 = vmor %vm2006_vm2, %vm2007_vm15  ;;  %v2141_v2 = vand.u32 2147483648, %v2129_v25  ;;  %vm2135_vm6 = vweird.f32 %v2129_v25  ;;  %v2139_v35 = vand.u32 2147483647, %v2129_v25  ;;  %v7096_v41 = vld [vmem:[%s8012_s5 + $0xd0] sm:$0xff] }
0x14ed   :  { %v2241_v42 = vadd.f32 %v7533_v37, %v2240_v40  ;;  %v2003_v43 = vsub.f32 1.0, %v2002_v61  ;;  %v7098_v40 = vld [vmem:[%s8012_s5 + $0xe0] sm:$0xff]  ;;  %v7097_v61 = vld [vmem:[%s8012_s5 + $0xd8] sm:$0xff] }
0x14ee   :  { %v2142_v5 = vor.u32 1.1754944e-38, %v2141_v2  ;;  %vm2140_vm8 = vcmp.eq.f32.partialorder %v2139_v35, 8.507059e+37 }
0x14ef   :  { %v2245_v45 = vsel %vm2244_vm13, %v7533_v37, %v2241_v42  ;;  %v2004_v46 = vmul.f32 %v7535_v39, %v2003_v43  ;;  %v8271_v37 = vld [vmem:[%s7965_s13 + $0x1] ss:$0 sm:$0xff]  ;;  %v7093_v43 = vld [vmem:[%s8012_s5 + $0xb8] sm:$0xff]  ;;  %s6941_s13 = sld [smem:[%s9240_s0 + %s7724_s24]]  }
0x14f0   :  { %v2250_v48 = vsel %vm2247_vm14, %v2249_v44, %v2245_v45  ;;  %v7094_v42 = vld [vmem:[%s8012_s5 + $0xc0] sm:$0xff]  ;;  %v7091_v45 = vld [vmem:[%s8012_s5 + $0xa8] sm:$0xff]  ;;  %s8402_s24 = sld [smem:[%s9240_s0 + %s7729_s9]]   ;;  %s7734_s9 = smov 4  }
0x14f1   :  { %v2005_v49 = vadd.f32 %v7535_v39, %v2004_v46  ;;  %v2251_v50 = vmul.f32 %v7527_v14, %v2250_v48  ;;  %v7090_v46 = vld [vmem:[%s8012_s5 + $0xa0] sm:$0xff] }
0x14f2   :  { %v7537_v22 = vpop.eup %7536  ;;  %v2253_v60 = vpop.permute.xlu0 %2252 }
0x14f3   :  { %v2009_v62 = vsel %vm2008_vm3, %v7535_v39, %v2005_v49  ;;  %v2131_v63 = vmul.f32 %v7537_v22, %v2129_v25  ;;  %2273 = vmatpush.msra.mxu3 %v2253_v60  ;;  %vm2136_vm5 = vweird.f32 %v7537_v22  ;;  %v7101_v39 = vld [vmem:[%s8012_s5 + $0xf8] sm:$0xff]  ;;  %v7095_v25 = vld [vmem:[%s8012_s5 + $0xc8] sm:$0xff] }
0x14f4   :  { %7077 = vmatmul.msk.f32.vlgmr.msra.gmra.mxu3 %vm245_vm1, %v2251_v50  ;;  %v2014_v0 = vsel %vm2011_vm4, %v2013_v55, %v2009_v62  ;;  %vm2137_vm7 = vmor %vm2135_vm6, %vm2136_vm5  ;;  %2425 = vmatpush.msra.mxu2 %v7101_v39  ;;  %v7115_v39 = vld [vmem:[%s6940_s19 + $0x30] sm:$0xff] }
0x14f5   :  { %v2132_v52 = vsub.f32 1.0, %v2131_v63  ;;  %v2015_v1 = vmul.f32 %v7529_v18, %v2014_v0  ;;  %v7081_v18 = vld [vmem:[%s7978_s21 + $0x20] sm:$0xff]  ;;  %v7088_v63 = vld [vmem:[%s8012_s5 + $0x90] sm:$0xff]  ;;  %v7087_v0 = vld [vmem:[%s8012_s5 + $0x88] sm:$0xff] }
0x14f6   :  { %2426 = vmatpush.msra.mxu2 %v7100_v56  ;;  %v2513_v56 = vld [vmem:[%s6940_s19 + $0x8] sm:$0xff] }
0x14f7   :  { %v2133_v6 = vmul.f32 %v7537_v22, %v2132_v52  ;;  %7064 = vmatmul.msk.f32.vlgmr.msra.gmra.mxu0 %vm245_vm1, %v2015_v1  ;;  %v7086_v52 = vld [vmem:[%s8012_s5 + $0x80] sm:$0xff]  ;;  %s8617_s5 = sld [smem:[%s9240_s0 + %s7735_s7]]  }
0x14f8   :  { %2427 = vmatpush.msra.mxu2 %v7099_v57  ;;  %v7114_v57 = vld [vmem:[%s6940_s19 + $0x28] sm:$0xff] }
0x14f9   :  { %v2134_v53 = vadd.f32 %v7537_v22, %v2133_v6 }
0x14fa   :  { %2428 = vmatpush.msra.mxu2 %v7098_v40  ;;  %v2512_v40 = vld [vmem:[%s6940_s19] sm:$0xff] }
0x14fb   :  { %v2138_v3 = vsel %vm2137_vm7, %v7537_v22, %v2134_v53 }
0x14fc   :  { %v2143_v58 = vsel %vm2140_vm8, %v2142_v5, %v2138_v3  ;;  %2429 = vmatpush.msra.mxu2 %v7097_v61  ;;  %v7113_v61 = vld [vmem:[%s6940_s19 + $0x20] sm:$0xff] }
0x14fd   :  { %v2144_v4 = vmul.f32 %v8233_v12, %v2143_v58  ;;  %v8299_v58 = vld [vmem:[%s8034_s16 + $0x1] ss:$0 sm:$0xff]  ;;  %s7732_s16 = smov 22  }
0x14fe   :  { %2430 = vmatpush.msra.mxu2 %v7096_v41  ;;  %s8537_s22 = sld [smem:[%s9240_s0 + %s7732_s16]]   ;;  %s7742_s16 = smov 33  }
0x14ff   :  { %s8791_s3 = sld [smem:[%s9240_s0 + %s7742_s16]]  }
0x1500   :  { %2431 = vmatpush.msra.mxu2 %v7095_v25 }
0x1502   :  { %2432 = vmatpush.msra.mxu2 %v7094_v42 }
0x1503   :  { %v2146_v28 = vpop.permute.xlu1 %2145 }
0x1504   :  { %2166 = vmatpush.msrb.mxu0 %v2146_v28  ;;  %2433 = vmatpush.msra.mxu2 %v7093_v43 }
0x1505   :  { %7071 = vmatmul.msk.f32.vlgmr.msrb.gmra.mxu0 %vm245_vm1, %v2144_v4 }
0x1506   :  { %2296 = vmatpush.msra.mxu0 %v8219_v26  ;;  %v7084_v26 = vld [vmem:[%s7978_s21 + $0x38] sm:$0xff]  ;;  %2434 = vmatpush.msra.mxu2 %v7092_v30  ;;  %s7725_s21 = smov 17  }
0x1507   :  { %s8332_s8 = sld [smem:[%s9240_s0 + %s7725_s21]]  }
0x1508   :  { %2435 = vmatpush.msra.mxu2 %v7091_v45  ;;  %s8436_s21 = sld [smem:[%s9240_s0 + %s7730_s30]]  }
0x1509   :  { %s8585_s30 = sld [smem:[%s9240_s0 + %s7734_s9]]  }
0x150a   :  { %2436 = vmatpush.msra.mxu2 %v7090_v46 }
0x150c   :  { %2437 = vmatpush.msra.mxu2 %v7089_v47 }
0x150e   :  { %2438 = vmatpush.msra.mxu2 %v7088_v63 }
0x1510   :  { %2439 = vmatpush.msra.mxu2 %v7087_v0 }
0x1512   :  { %2440 = vmatpush.msra.mxu2 %v7086_v52 }
0x151d   :  { %v2310_v59 = vpop.xlane.xlu0 %2309 }
0x151e   :  { %v2314_v8 = vmul.f32 %v2310_v59, %v7954_v15 }
0x1520   :  { %v2316_v9 = vsub.f32 %v8247_v32, %v2314_v8 }
0x1522   :  { %v2318_v10 = vmul.f32 %v2316_v9, %v2316_v9 }
0x1524   :  { %v2320_v11 = vsel %vm172_vm0, %v2318_v10, 0.0 }
0x1525   :  { %2321 = vadd.xlane.f32.xlu1 %v2320_v11 }
0x1574   :  { %v2039_v13 = vpop.f32.mrf.mxu0 }
0x1575   :  { %7065 = vmatmul.msk.f32.vlgmr.msrb.gmra.mxu1 %vm245_vm1, %v2039_v13 }
0x1576   :  { %2409 = vmatpush.msrb.mxu1 %v7084_v26 }
0x1577   :  { %v2275_v14 = vpop.f32.mrf.mxu3 }
0x1578   :  { %7078 = vmatmul.msk.f32.vlgmr.msra.gmra.mxu0 %vm245_vm1, %v2275_v14  ;;  %2410 = vmatpush.msrb.mxu1 %v7083_v17 }
0x157a   :  { %2411 = vmatpush.msrb.mxu1 %v7082_v7 }
0x157c   :  { %2412 = vmatpush.msrb.mxu1 %v7081_v18 }
0x1582   :  { %v2168_v16 = vpop.f32.mrf.mxu0 }
0x1583   :  { %7072 = vmatmul.msk.f32.vlgmr.msra.gmra.mxu1 %vm245_vm1, %v2168_v16 }
0x1598   :  { %v2322_v51 = vpop.xlane.xlu1 %2321 }
0x1599   :  { %v2326_v19 = vmul.f32 %v2322_v51, %v7954_v15 }
0x159b   :  { %v2328_v12 = vadd.f32 1e-05, %v2326_v19 }
0x159d   :  { %7538 = vrsqrt.f32 %v2328_v12  ;;  %vm2336_vm10 = vweird.f32 %v2328_v12 }
0x15a3   :  { %v7539_v21 = vpop.eup %7538 }
0x15a4   :  { %v2331_v24 = vmul.f32 %v7539_v21, %v2328_v12  ;;  %vm2337_vm9 = vweird.f32 %v7539_v21 }
0x15a5   :  { %vm2338_vm11 = vmor %vm2336_vm10, %vm2337_vm9 }
0x15a6   :  { %v2332_v27 = vmul.f32 %v7539_v21, %v2331_v24 }
0x15a8   :  { %v2333_v23 = vmul.f32 0.5, %v2332_v27 }
0x15aa   :  { %v2334_v29 = vsub.f32 1.5, %v2333_v23 }
0x15ac   :  { %v2335_v32 = vmul.f32 %v7539_v21, %v2334_v29 }
0x15ae   :  { %v2339_v34 = vsel %vm2338_vm11, %v7539_v21, %v2335_v32 }
0x15af   :  { %v2350_v36 = vmul.f32 %v2339_v34, %v2316_v9 }
0x15b1   :  { %v2355_v31 = vmul.f32 %v8268_v33, %v2350_v36 }
0x15b3   :  { %v2360_v38 = vadd.f32 %v8271_v37, %v2355_v31 }
0x15b5   :  { %7103 = vmatmul.msk.f32.vlgmr.msrb.gmra.mxu1 %vm172_vm0, %v2360_v38 }
0x15f2   :  { %v2062_v44 = vpop.f32.mrf.mxu1 }
0x15f3   :  { %v2086_v48 = vadd.f32 %v8222_v54, %v2062_v44  ;;  %v7443_v54 = vld [vmem:[%s7997_s28 + $0x1] ss:$0 sm:$0xff]  ;;  %s7731_s28 = smov 21  }
0x15f4   :  { %s8531_s12 = sld [smem:[%s9240_s0 + %s7731_s28]]   ;;  %s7739_s28 = smov 29  }
0x15f5   :  { %v2298_v22 = vpop.f32.mrf.mxu0 }
0x1600   :  { %v2191_v49 = vpop.f32.mrf.mxu1 }
0x1601   :  { %v2194_v50 = vadd.f32 %v2191_v49, %v2086_v48  ;;  %v7445_v48 = vld [vmem:[%s8050_s23 + $0x1] ss:$0 sm:$0xff]  ;;  %s7733_s23 = smov 23  }
0x1603   :  { %v2301_v55 = vadd.f32 %v2298_v22, %v2194_v50  ;;  %v7446_v22 = vld [vmem:[%s8060_s4 + $0x1] ss:$0 sm:$0xff]  ;;  %s8549_s4 = sld [smem:[%s9240_s0 + %s7733_s23]]   ;;  %s7737_s23 = smov 28  }
0x1604   :  { %s8696_s9 = sld [smem:[%s9240_s0 + %s7737_s23]]   ;;  %s7740_s23 = smov 30  }
0x1605   :  { %v2303_v60 = vadd.f32 %v2301_v55, %v8116_v20 }
0x1607   :  { %v2311_v62 = vsel %vm172_vm0, %v2303_v60, 0.0 }
0x1608   :  { %2312 = vadd.xlane.f32.xlu2 %v2311_v62 }
0x1632   :  { %v2414_v1 = vpop.f32.mrf.mxu1 }
0x1633   :  { %v2415_v6 = vadd.f32 %v7443_v54, %v2414_v1  ;;  %v2545_v1 = vld [vmem:[%s6941_s13] sm:$0xff] }
0x1634   :  { %2567 = vmatpush.msrb.mxu0 %v2545_v1 }
0x1635   :  { %v2420_v53 = vmax.f32 %v2415_v6, 0.0 }
0x1637   :  { %2441 = vmatmul.f32.vlgmr.msra.gmra.mxu2 %v2420_v53 }
0x167b   :  { %v2313_v2 = vpop.xlane.xlu2 %2312 }
0x167c   :  { %v2315_v35 = vmul.f32 %v2313_v2, %v7954_v15 }
0x167e   :  { %v2317_v3 = vsub.f32 %v2303_v60, %v2315_v35 }
0x1680   :  { %v2319_v20 = vmul.f32 %v2317_v3, %v2317_v3 }
0x1682   :  { %v2323_v5 = vsel %vm172_vm0, %v2319_v20, 0.0 }
0x1683   :  { %2324 = vadd.xlane.f32.xlu0 %v2323_v5  ;;  %v7119_v5 = vld [vmem:[%s6941_s13 + $0x8] sm:$0xff]  ;;  %s8717_s13 = sld [smem:[%s9240_s0 + %s7738_s14]]  }
0x1684   :  { %s8744_s14 = sld [smem:[%s9240_s0 + %s7740_s23]]  }
0x16ba   :  { %v2442_v28 = vpop.f32.mrf.mxu2 }
0x16bb   :  { %v2443_v4 = vadd.f32 %v8299_v58, %v2442_v28 }
0x16bd   :  { %v7105_v59 = vclamps-f32 %v2443_v4, 5.0 }
0x16bf   :  { %v2452_v8 = vadd.f32 %v7105_v59, %v2360_v38  ;;  %v2514_v38 = vld [vmem:[%s6940_s19 + $0x10] sm:$0xff] }
0x16c1   :  { %v2458_v9 = vsel %vm172_vm0, %v2452_v8, 0.0 }
0x16c2   :  { %2459 = vadd.xlane.f32.xlu2 %v2458_v9 }
0x16f6   :  { %v2325_v10 = vpop.xlane.xlu0 %2324 }
0x16f7   :  { %v2327_v11 = vmul.f32 %v2325_v10, %v7954_v15 }
0x16f9   :  { %v2329_v13 = vadd.f32 1e-05, %v2327_v11 }
0x16fb   :  { %7540 = vrsqrt.f32 %v2329_v13  ;;  %vm2346_vm13 = vweird.f32 %v2329_v13 }
0x1701   :  { %v7541_v14 = vpop.eup %7540 }
0x1702   :  { %v2341_v16 = vmul.f32 %v7541_v14, %v2329_v13  ;;  %vm2347_vm12 = vweird.f32 %v7541_v14 }
0x1703   :  { %vm2348_vm14 = vmor %vm2346_vm13, %vm2347_vm12 }
0x1704   :  { %v2342_v26 = vmul.f32 %v7541_v14, %v2341_v16 }
0x1706   :  { %v2343_v17 = vmul.f32 0.5, %v2342_v26 }
0x1708   :  { %v2344_v7 = vsub.f32 1.5, %v2343_v17 }
0x170a   :  { %v2345_v18 = vmul.f32 %v7541_v14, %v2344_v7 }
0x170c   :  { %v2349_v51 = vsel %vm2348_vm14, %v7541_v14, %v2345_v18  ;;  %v2639_v18 = vld [vmem:[%s8332_s8 + $0x18] sm:$0xff] }
0x170d   :  { %v2351_v19 = vmul.f32 %v2349_v51, %v2317_v3  ;;  %v2638_v51 = vld [vmem:[%s8332_s8 + $0x10] sm:$0xff]  ;;  %2667 = vmatpush.msra.mxu0 %v2639_v18 }
0x170f   :  { %v2356_v12 = vmul.f32 %v8268_v33, %v2351_v19  ;;  %v2515_v33 = vld [vmem:[%s6940_s19 + $0x18] sm:$0xff]  ;;  %v2637_v19 = vld [vmem:[%s8332_s8 + $0x8] sm:$0xff]  ;;  %2668 = vmatpush.msra.mxu0 %v2638_v51 }
0x1710   :  { %2534 = vmatpush.msrb.mxu3 %v2515_v33  ;;  %v2640_v33 = vld [vmem:[%s8355_s27] sm:$0xff] }
0x1711   :  { %v2361_v21 = vadd.f32 %v8271_v37, %v2356_v12  ;;  %v7116_v37 = vld [vmem:[%s6940_s19 + $0x38] sm:$0xff]  ;;  %2669 = vmatpush.msra.mxu0 %v2637_v19  ;;  %v2636_v12 = vld [vmem:[%s8332_s8] sm:$0xff]  ;;  %s7741_s19 = smov 32  }
0x1712   :  { %2592 = vmatpush.msra.mxu1 %v7116_v37  ;;  %2535 = vmatpush.msrb.mxu3 %v2514_v38  ;;  %s8775_s11 = sld [smem:[%s9240_s0 + %s7741_s19]]   ;;  %s7743_s19 = smov 34  }
0x1713   :  { %7104 = vmatmul.msk.f32.gmra.mxu1 %vm172_vm0, %v2361_v21  ;;  %2670 = vmatpush.msra.mxu0 %v2636_v12 }
0x1714   :  { %2593 = vmatpush.msra.mxu1 %v7115_v39  ;;  %2536 = vmatpush.msrb.mxu3 %v2513_v56 }
0x1716   :  { %2594 = vmatpush.msra.mxu1 %v7114_v57  ;;  %2537 = vmatpush.msrb.mxu3 %v2512_v40  ;;  %v2644_v57 = vld [vmem:[%s8367_s6] sm:$0xff]  ;;  %v8370_v40 = vld [vmem:[%s6917_s17 + $0x8] sm:$0xff] }
0x1718   :  { %2595 = vmatpush.msra.mxu1 %v7113_v61  ;;  %2626 = vmatpush.msra.mxu3 %v7119_v5 }
0x1735   :  { %v2460_v24 = vpop.xlane.xlu2 %2459 }
0x1736   :  { %v2464_v27 = vmul.f32 %v2460_v24, %v7954_v15 }
0x1738   :  { %v2466_v23 = vsub.f32 %v2452_v8, %v2464_v27  ;;  %v8343_v27 = vld [vmem:[%s6917_s17] sm:$0xff]  ;;  %s8728_s17 = sld [smem:[%s9240_s0 + %s7739_s28]]  }
0x173a   :  { %v2468_v29 = vmul.f32 %v2466_v23, %v2466_v23 }
0x173c   :  { %v2470_v32 = vsel %vm172_vm0, %v2468_v29, 0.0 }
0x173d   :  { %2471 = vadd.xlane.f32.xlu0 %v2470_v32 }
0x1790   :  { %v2417_v34 = vpop.f32.mrf.mxu1 }
0x1791   :  { %v2418_v36 = vadd.f32 %v7443_v54, %v2417_v34  ;;  %v2643_v34 = vld [vmem:[%s8355_s27 + $0x18] sm:$0xff] }
0x1792   :  { %2710 = vmatpush.msrb.mxu1 %v2643_v34 }
0x1793   :  { %v2421_v31 = vmax.f32 %v2418_v36, 0.0  ;;  %v2642_v36 = vld [vmem:[%s8355_s27 + $0x10] sm:$0xff] }
0x1794   :  { %2711 = vmatpush.msrb.mxu1 %v2642_v36 }
0x1795   :  { %2444 = vmatmul.f32.gmra.mxu2 %v2421_v31  ;;  %v2641_v31 = vld [vmem:[%s8355_s27 + $0x8] sm:$0xff] }
0x1796   :  { %2712 = vmatpush.msrb.mxu1 %v2641_v31 }
0x1798   :  { %2713 = vmatpush.msrb.mxu1 %v2640_v33 }
0x17b0   :  { %v2472_v41 = vpop.xlane.xlu0 %2471 }
0x17b1   :  { %v2476_v25 = vmul.f32 %v2472_v41, %v7954_v15 }
0x17b3   :  { %v2478_v42 = vadd.f32 1e-05, %v2476_v25 }
0x17b5   :  { %7542 = vrsqrt.f32 %v2478_v42  ;;  %vm2486_vm2 = vweird.f32 %v2478_v42 }
0x17bb   :  { %v7543_v43 = vpop.eup %7542 }
0x17bc   :  { %v2481_v44 = vmul.f32 %v7543_v43, %v2478_v42  ;;  %vm2487_vm15 = vweird.f32 %v7543_v43 }
0x17bd   :  { %vm2488_vm3 = vmor %vm2486_vm2, %vm2487_vm15 }
0x17be   :  { %v2482_v30 = vmul.f32 %v7543_v43, %v2481_v44 }
0x17c0   :  { %v2483_v45 = vmul.f32 0.5, %v2482_v30 }
0x17c2   :  { %v2484_v46 = vsub.f32 1.5, %v2483_v45 }
0x17c4   :  { %v2485_v47 = vmul.f32 %v7543_v43, %v2484_v46 }
0x17c6   :  { %v2489_v49 = vsel %vm2488_vm3, %v7543_v43, %v2485_v47 }
0x17c7   :  { %v2500_v50 = vmul.f32 %v2489_v49, %v2466_v23 }
0x17c9   :  { %v2505_v55 = vmul.f32 %v7445_v48, %v2500_v50 }
0x17cb   :  { %v2510_v60 = vadd.f32 %v7446_v22, %v2505_v55  ;;  %v8405_v55 = vld [vmem:[%s8402_s24] sm:$0xff] }
0x17cd   :  { %7109 = vmatmul.msk.f32.vlgmr.msrb.gmra.mxu3 %vm172_vm0, %v2510_v60  ;;  %7117 = vmatmul.msk.f32.vlgmr.msra.gmra.mxu1 %vm172_vm0, %v2510_v60 }
0x17ce   :  { %2742 = vmatpush.msrb.mxu3 %v2644_v57 }
0x1818   :  { %v2445_v62 = vpop.f32.mrf.mxu2 }
0x1819   :  { %v2446_v63 = vadd.f32 %v8299_v58, %v2445_v62 }
0x181b   :  { %v7106_v0 = vclamps-f32 %v2446_v63, 5.0 }
0x181d   :  { %v2453_v52 = vadd.f32 %v7106_v0, %v2361_v21 }
0x181f   :  { %v2461_v54 = vsel %vm172_vm0, %v2453_v52, 0.0 }
0x1820   :  { %2462 = vadd.xlane.f32.xlu1 %v2461_v54 }
0x184a   :  { %v2597_v7 = vpop.f32.mrf.mxu1 }
0x1850   :  { %v2539_v6 = vpop.f32.mrf.mxu3 }
0x1851   :  { %7111 = vmatmul.msk.f32.vlgmr.msrb.gmra.mxu0 %vm245_vm1, %v2539_v6 }
0x1893   :  { %v2463_v53 = vpop.xlane.xlu1 %2462 }
0x1894   :  { %v2465_v2 = vmul.f32 %v2463_v53, %v7954_v15 }
0x1896   :  { %v2467_v35 = vsub.f32 %v2453_v52, %v2465_v2 }
0x1898   :  { %v2469_v3 = vmul.f32 %v2467_v35, %v2467_v35 }
0x189a   :  { %v2473_v20 = vsel %vm172_vm0, %v2469_v3, 0.0 }
0x189b   :  { %2474 = vadd.xlane.f32.xlu2 %v2473_v20 }
0x18ce   :  { %v8347_v23 = vpop.f32.mrf.mxu0 }
0x190e   :  { %v2475_v58 = vpop.xlane.xlu2 %2474 }
0x190f   :  { %v2477_v28 = vmul.f32 %v2475_v58, %v7954_v15 }
0x1911   :  { %v2479_v4 = vadd.f32 1e-05, %v2477_v28 }
0x1913   :  { %7544 = vrsqrt.f32 %v2479_v4  ;;  %vm2496_vm5 = vweird.f32 %v2479_v4 }
0x1919   :  { %v7545_v59 = vpop.eup %7544 }
0x191a   :  { %v2491_v8 = vmul.f32 %v7545_v59, %v2479_v4  ;;  %vm2497_vm4 = vweird.f32 %v7545_v59 }
0x191b   :  { %vm2498_vm6 = vmor %vm2496_vm5, %vm2497_vm4 }
0x191c   :  { %v2492_v9 = vmul.f32 %v7545_v59, %v2491_v8 }
0x191e   :  { %v2493_v10 = vmul.f32 0.5, %v2492_v9 }
0x1920   :  { %v2494_v11 = vsub.f32 1.5, %v2493_v10 }
0x1922   :  { %v2495_v13 = vmul.f32 %v7545_v59, %v2494_v11 }
0x1924   :  { %v2499_v14 = vsel %vm2498_vm6, %v7545_v59, %v2495_v13 }
0x1925   :  { %v2501_v16 = vmul.f32 %v2499_v14, %v2467_v35 }
0x1927   :  { %v2506_v26 = vmul.f32 %v7445_v48, %v2501_v16 }
0x1929   :  { %v2511_v17 = vadd.f32 %v7446_v22, %v2506_v26 }
0x192b   :  { %7110 = vmatmul.msk.f32.gmra.mxu3 %vm172_vm0, %v2511_v17  ;;  %7118 = vmatmul.msk.f32.gmra.mxu1 %vm172_vm0, %v2511_v17 }
0x1933   :  { %7120 = vmatmul.msk.f32.vlgmr.msra.gmra.mxu3 %vm245_vm1, %v2597_v7 }
0x19a8   :  { %v2600_v21 = vpop.f32.mrf.mxu1 }
0x19a9   :  { %7121 = vmatmul.msk.f32.gmra.mxu3 %vm245_vm1, %v2600_v21 }
0x19ae   :  { %v2542_v24 = vpop.f32.mrf.mxu3 }
0x19af   :  { %7112 = vmatmul.msk.f32.gmra.mxu0 %vm245_vm1, %v2542_v24 }
0x19b6   :  { %v8379_v25 = vpop.f32.mrf.mxu3 }
0x19b7   :  { %7122 = vmatmul.msk.f32.vlgmr.msra.gmra.mxu0 %vm172_vm0, %v8343_v27 }
0x19bf   :  { %7123 = vmatmul.msk.f32.gmra.mxu0 %vm172_vm0, %v8370_v40 }
0x1a2c   :  { %v8349_v29 = vpop.f32.mrf.mxu0  ;;  %v8381_v42 = vpop.f32.mrf.mxu3 }
0x1a34   :  { %v2672_v32 = vpop.f32.mrf.mxu0 }
0x1a35   :  { %2680 = vrot.lane.b32.xlu1 %v2672_v32, %s7703_s10  ;;  %v2750_v39 = vmul.f32 0.17677669, %v2672_v32 }
0x1a3c   :  { %v8375_v41 = vpop.f32.mrf.mxu0 }
0x1aa7   :  { %v2681_v37 = vpop.permute.xlu1 %2680 }
0x1aa8   :  { %v2686_v38 = vadd.f32 %v2681_v37, %v2672_v32 }
0x1aaa   :  { %2690 = vrot.lane.b32.xlu0 %v2686_v38, %s7703_s10 }
0x1ab2   :  { %2833 = vrot.lane.b32.xlu0 %v2750_v39, %s7707_s20 }
0x1aba   :  { %2682 = vrot.lane.b32.xlu0 %v8375_v41, %s7703_s10 }
0x1b1c   :  { %v2691_v56 = vpop.permute.xlu0 %2690 }
0x1b1d   :  { %7124 = vmatmul.msk.f32.vlgmr.msrb.gmra.mxu1 %vm172_vm0, %v2691_v56 }
0x1b24   :  { %v2834_v44 = vpop.permute.xlu0 %2833 }
0x1b2c   :  { %v2683_v45 = vpop.permute.xlu0 %2682 }
0x1b2d   :  { %v2687_v46 = vadd.f32 %v2683_v45, %v8375_v41 }
0x1b9a   :  { %v2715_v61 = vpop.f32.mrf.mxu1 }
0x1b9b   :  { %7126 = vmatmul.msk.f32.vlgmr.msrb.gmra.mxu3 %vm245_vm1, %v2715_v61 }
0x1c1e   :  { %v8383_v43 = vpop.f32.mrf.mxu3 }
0x1c1f   :  { %2964 = vrot.lane.b32.xlu1 %v8383_v43, %s7705_s15  ;;  %2835 = vrot.lane.b32.xlu2 %v8383_v43, %s7707_s20 }
0x1c20   :  { %7128 = vmatpush.xpose.msk.msrb.mxu0 %vm245_vm1, %v8383_v43 }
0x1c23   :  { %7129 = vmatmul.msk.f32.vlgmr.msrb.gmra.mxu0 %vm245_vm1, %v2750_v39 }
0x1c27   :  { %2962 = vrot.lane.b32.xlu2 %v2750_v39, %s7705_s15  ;;  %2692 = vrot.lane.b32.xlu1 %v2687_v46, %s7703_s10 }
0x1c79   :  { %v2836_v30 = vpop.permute.xlu2 %2835 }
0x1c7a   :  { %7133 = vmatpush.xpose.msk.msra.mxu0 %vm245_vm1, %v2836_v30 }
0x1c7d   :  { %7134 = vmatmul.msk.f32.vlgmr.msra.gmra.mxu0 %vm245_vm1, %v2834_v44 }
0x1c81   :  { %v2963_v48 = vpop.permute.xlu2 %2962 }
0x1c91   :  { %v2965_v47 = vpop.permute.xlu1 %2964 }
0x1c92   :  { %7140 = vmatpush.xpose.msk.msrb.mxu0 %vm245_vm1, %v2965_v47 }
0x1c95   :  { %7141 = vmatmul.msk.f32.vlgmr.msrb.gmra.mxu0 %vm245_vm1, %v2963_v48 }
0x1c99   :  { %v2693_v53 = vpop.permute.xlu1 %2692 }
0x1c9a   :  { %7125 = vmatmul.msk.f32.gmra.mxu1 %vm172_vm0, %v2693_v53 }
0x1ca0   :  { %v2775_v49 = vpop.f32.mrf.mxu0 }
0x1ca1   :  { %v7130_v59 = vclamps-f32 %v2775_v49, 10000.0 }
0x1ca3   :  { %v2780_v10 = vmul.f32 %v7130_v59, %v8405_v55 }
0x1ca5   :  { %v7131_v13 = vclamps-f32 %v2780_v10, 10000.0 }
0x1ca7   :  { %v2783_v16 = vsel %vm245_vm1, %v7131_v13, -inf }
0x1cfa   :  { %v2858_v50 = vpop.f32.mrf.mxu0 }
0x1cfb   :  { %v7135_v22 = vclamps-f32 %v2858_v50, 10000.0 }
0x1cfd   :  { %v2863_v60 = vmul.f32 %v7135_v22, %v8405_v55 }
0x1cff   :  { %v7136_v62 = vclamps-f32 %v2863_v60, 10000.0 }
0x1d01   :  { %v2866_v63 = vsel %vm245_vm1, %v7136_v62, -inf }
0x1d02   :  { %2867 = vmax.xlane.f32.xlu2 %v2866_v63 }
0x1d12   :  { %v2987_v0 = vpop.f32.mrf.mxu0 }
0x1d13   :  { %v7142_v52 = vclamps-f32 %v2987_v0, 10000.0  ;;  %v2645_v0 = vld [vmem:[%s8436_s21] sm:$0xff] }
0x1d14   :  { %2957 = vmatpush.msra.mxu3 %v2645_v0 }
0x1d15   :  { %v2992_v54 = vmul.f32 %v7142_v52, %v8405_v55  ;;  %v2646_v52 = vld [vmem:[%s8436_s21 + $0x8] sm:$0xff] }
0x1d17   :  { %v7143_v1 = vclamps-f32 %v2992_v54, 10000.0  ;;  %v2718_v11 = vpop.f32.mrf.mxu1 }
0x1d18   :  { %7127 = vmatmul.msk.f32.gmra.mxu3 %vm245_vm1, %v2718_v11  ;;  %v8448_v11 = vmul.f32 0.17677669, %v8375_v41 }
0x1d19   :  { %v2995_v6 = vsel %vm245_vm1, %v7143_v1, -inf }
0x1d1a   :  { %2996 = vmax.xlane.f32.xlu0 %v2995_v6 }
0x1d2e   :  { %2890 = vrot.lane.b32.xlu0 %v8383_v43, %s7712_s1 }
0x1d36   :  { %2807 = vrot.lane.b32.xlu0 %v8383_v43, %s7703_s10 }
0x1d3e   :  { %3069 = vrot.lane.b32.xlu0 %v2750_v39, %s7710_s26 }
0x1d75   :  { %v2868_v2 = vpop.xlane.xlu2 %2867 }
0x1d76   :  { %v2869_v35 = vsub.f32 %v7136_v62, %v2868_v2 }
0x1d78   :  { %v2870_v3 = vmul.f32 1.442695, %v2869_v35 }
0x1d7a   :  { %7546 = vpow2.f32 %v2870_v3 }
0x1d80   :  { %v7547_v20 = vpop.eup %7546 }
0x1d81   :  { %v2872_v5 = vsel %vm245_vm1, %v7547_v20, 0.0 }
0x1d82   :  { %2873 = vadd.xlane.f32.xlu1 %v2872_v5 }
0x1d8d   :  { %v2997_v58 = vpop.xlane.xlu0 %2996 }
0x1d8e   :  { %v2998_v28 = vsub.f32 %v7143_v1, %v2997_v58 }
0x1d90   :  { %v2999_v4 = vmul.f32 1.442695, %v2998_v28 }
0x1d92   :  { %7548 = vpow2.f32 %v2999_v4 }
0x1d98   :  { %v7549_v8 = vpop.eup %7548 }
0x1d99   :  { %v3001_v9 = vsel %vm245_vm1, %v7549_v8, 0.0 }
0x1d9a   :  { %3002 = vadd.xlane.f32.xlu2 %v3001_v9 }
0x1d9b   :  { %3019 = vrot.lane.b32.xlu1 %v8383_v43, %s7709_s25  ;;  %v8429_v63 = vpop.f32.mrf.mxu3 }
0x1da0   :  { %v2891_v14 = vpop.permute.xlu0 %2890 }
0x1da1   :  { %2911 = vmatpush.msra.mxu1 %v2891_v14 }
0x1da2   :  { %2784 = vmax.xlane.f32.xlu2 %v2783_v16 }
0x1da8   :  { %v2808_v26 = vpop.permute.xlu0 %2807 }
0x1da9   :  { %2828 = vmatpush.msrb.mxu2 %v2808_v26 }
0x1dab   :  { %2934 = vmatpush.msra.mxu2 %v2646_v52 }
0x1db0   :  { %v3070_v16 = vpop.permute.xlu0 %3069 }
0x1df5   :  { %v2874_v17 = vpop.xlane.xlu1 %2873 }
0x1df6   :  { %7550 = vrcp.f32 %v2874_v17  ;;  %v2886_v19 = vand.u32 2147483648, %v2874_v17  ;;  %v2884_v21 = vand.u32 2147483647, %v2874_v17  ;;  %vm2880_vm8 = vweird.f32 %v2874_v17 }
0x1df8   :  { %v2887_v32 = vor.u32 1.1754944e-38, %v2886_v19  ;;  %vm2885_vm10 = vcmp.eq.f32.partialorder %v2884_v21, 8.507059e+37 }
0x1dfc   :  { %v7551_v7 = vpop.eup %7550 }
0x1dfd   :  { %v2876_v18 = vmul.f32 %v7551_v7, %v2874_v17  ;;  %vm2881_vm7 = vweird.f32 %v7551_v7 }
0x1dfe   :  { %vm2882_vm9 = vmor %vm2880_vm8, %vm2881_vm7 }
0x1dff   :  { %v2877_v51 = vsub.f32 1.0, %v2876_v18 }
0x1e01   :  { %v2878_v12 = vmul.f32 %v7551_v7, %v2877_v51 }
0x1e03   :  { %v2879_v24 = vadd.f32 %v7551_v7, %v2878_v12 }
0x1e05   :  { %v2883_v34 = vsel %vm2882_vm9, %v7551_v7, %v2879_v24 }
0x1e06   :  { %v2888_v36 = vsel %vm2885_vm10, %v2887_v32, %v2883_v34 }
0x1e07   :  { %v2889_v31 = vmul.f32 %v7547_v20, %v2888_v36 }
0x1e09   :  { %7137 = vmatmul.msk.f32.vlgmr.msra.gmra.mxu1 %vm245_vm1, %v2889_v31 }
0x1e0d   :  { %v3020_v33 = vpop.permute.xlu1 %3019  ;;  %v3003_v37 = vpop.xlane.xlu2 %3002 }
0x1e0e   :  { %7552 = vrcp.f32 %v3003_v37  ;;  %3040 = vmatpush.msrb.mxu1 %v3020_v33  ;;  %v3015_v44 = vand.u32 2147483648, %v3003_v37  ;;  %v3013_v46 = vand.u32 2147483647, %v3003_v37  ;;  %vm3009_vm12 = vweird.f32 %v3003_v37 }
0x1e10   :  { %v3016_v48 = vor.u32 1.1754944e-38, %v3015_v44  ;;  %vm3014_vm14 = vcmp.eq.f32.partialorder %v3013_v46, 8.507059e+37 }
0x1e14   :  { %v7553_v38 = vpop.eup %7552 }
0x1e15   :  { %v3005_v39 = vmul.f32 %v7553_v38, %v3003_v37  ;;  %v2785_v56 = vpop.xlane.xlu2 %2784  ;;  %vm3010_vm11 = vweird.f32 %v7553_v38 }
0x1e16   :  { %v2786_v57 = vsub.f32 %v7131_v13, %v2785_v56  ;;  %vm3011_vm13 = vmor %vm3009_vm12, %vm3010_vm11 }
0x1e17   :  { %v3006_v61 = vsub.f32 1.0, %v3005_v39 }
0x1e18   :  { %v2787_v30 = vmul.f32 1.442695, %v2786_v57 }
0x1e19   :  { %v3007_v45 = vmul.f32 %v7553_v38, %v3006_v61 }
0x1e1a   :  { %7554 = vpow2.f32 %v2787_v30 }
0x1e1b   :  { %v3008_v47 = vadd.f32 %v7553_v38, %v3007_v45 }
0x1e1d   :  { %v3012_v49 = vsel %vm3011_vm13, %v7553_v38, %v3008_v47 }
0x1e1e   :  { %v3017_v50 = vsel %vm3014_vm14, %v3016_v48, %v3012_v49 }
0x1e1f   :  { %v3018_v22 = vmul.f32 %v7549_v8, %v3017_v50  ;;  %v2647_v8 = vld [vmem:[%s8436_s21 + $0x10] sm:$0xff] }
0x1e20   :  { %v7555_v60 = vpop.eup %7554 }
0x1e21   :  { %7144 = vmatmul.msk.f32.vlgmr.msrb.gmra.mxu1 %vm245_vm1, %v3018_v22  ;;  %v2789_v62 = vsel %vm245_vm1, %v7555_v60, 0.0 }
0x1e22   :  { %2790 = vadd.xlane.f32.xlu2 %v2789_v62 }
0x1e3a   :  { %3071 = vrot.lane.b32.xlu2 %v8383_v43, %s7710_s26 }
0x1e42   :  { %3231 = vrot.lane.b32.xlu2 %v8429_v63, %s7703_s10 }
0x1e86   :  { %v2913_v9 = vpop.f32.mrf.mxu1 }
0x1e95   :  { %v2791_v54 = vpop.xlane.xlu2 %2790 }
0x1e96   :  { %7556 = vrcp.f32 %v2791_v54  ;;  %v2803_v35 = vand.u32 2147483648, %v2791_v54  ;;  %v2801_v20 = vand.u32 2147483647, %v2791_v54  ;;  %vm2797_vm2 = vweird.f32 %v2791_v54 }
0x1e98   :  { %v2804_v58 = vor.u32 1.1754944e-38, %v2803_v35  ;;  %vm2802_vm4 = vcmp.eq.f32.partialorder %v2801_v20, 8.507059e+37 }
0x1e9c   :  { %v7557_v1 = vpop.eup %7556 }
0x1e9d   :  { %v2793_v6 = vmul.f32 %v7557_v1, %v2791_v54  ;;  %v3072_v53 = vpop.permute.xlu2 %3071  ;;  %vm2798_vm15 = vweird.f32 %v7557_v1 }
0x1e9e   :  { %7146 = vmatpush.xpose.msk.msrb.mxu3 %vm245_vm1, %v3072_v53  ;;  %vm2799_vm3 = vmor %vm2797_vm2, %vm2798_vm15  ;;  %v3042_v10 = vpop.f32.mrf.mxu1 }
0x1e9f   :  { %v2794_v2 = vsub.f32 1.0, %v2793_v6 }
0x1ea1   :  { %v2795_v3 = vmul.f32 %v7557_v1, %v2794_v2 }
0x1ea3   :  { %v2796_v5 = vadd.f32 %v7557_v1, %v2795_v3 }
0x1ea5   :  { %v2800_v28 = vsel %vm2799_vm3, %v7557_v1, %v2796_v5  ;;  %v3232_v14 = vpop.permute.xlu2 %3231 }
0x1ea6   :  { %v2805_v4 = vsel %vm2802_vm4, %v2804_v58, %v2800_v28 }
0x1ea7   :  { %v2806_v59 = vmul.f32 %v7555_v60, %v2805_v4 }
0x1ea9   :  { %7132 = vmatmul.msk.f32.vlgmr.msrb.gmra.mxu2 %vm245_vm1, %v2806_v59 }
0x1eaa   :  { %3063 = vmatpush.msrb.mxu2 %v2647_v8 }
0x1eb1   :  { %7138 = vmatmul.msk.f32.vlgmr.msra.gmra.mxu2 %vm245_vm1, %v2913_v9 }
0x1eb2   :  { %7152 = vmatpush.xpose.msk.msra.mxu2 %vm245_vm1, %v8429_v63 }
0x1eb9   :  { %7145 = vmatmul.msk.f32.vlgmr.msrb.gmra.mxu2 %vm245_vm1, %v3042_v10 }
0x1eba   :  { %3358 = vmatpush.msrb.mxu2 %v2646_v52 }
0x1ec1   :  { %7153 = vmatmul.msk.f32.vlgmr.msra.gmra.mxu2 %vm245_vm1, %v8448_v11 }
0x1ec2   :  { %3487 = vmatpush.msra.mxu2 %v2647_v8 }
0x1f2c   :  { %v2830_v13 = vpop.f32.mrf.mxu2 }
0x1f2d   :  { %7139 = vmatmul.msk.f32.vlgmr.msra.gmra.mxu3 %vm245_vm1, %v2830_v13 }
0x1f2e   :  { %3252 = vmatpush.msra.mxu3 %v3232_v14 }
0x1f34   :  { %v8453_v26 = vpop.f32.mrf.mxu2 }
0x1f35   :  { %7147 = vmatmul.msk.f32.vlgmr.msrb.gmra.mxu3 %vm245_vm1, %v3070_v16 }
0x1f36   :  { %3381 = vmatpush.msrb.mxu3 %v2645_v0 }
0x1f3c   :  { %v8456_v17 = vpop.f32.mrf.mxu2 }
0x1f44   :  { %v3199_v7 = vpop.f32.mrf.mxu2 }
0x1f45   :  { %v7154_v41 = vclamps-f32 %v3199_v7, 10000.0  ;;  %v8492_v7 = vld [vmem:[%s8436_s21 + $0x18] sm:$0xff] }
0x1f46   :  { %3170 = vmatpush.msra.mxu1 %v8492_v7 }
0x1f47   :  { %v3204_v18 = vmul.f32 %v7154_v41, %v8405_v55 }
0x1f49   :  { %v7155_v51 = vclamps-f32 %v3204_v18, 10000.0 }
0x1f4b   :  { %v3207_v19 = vsel %vm245_vm1, %v7155_v51, -inf }
0x1f4c   :  { %3208 = vmax.xlane.f32.xlu1 %v3207_v19 }
0x1fb0   :  { %v8460_v12 = vpop.f32.mrf.mxu3 }
0x1fb8   :  { %v3094_v21 = vpop.f32.mrf.mxu3 }
0x1fb9   :  { %v7148_v24 = vclamps-f32 %v3094_v21, 10000.0 }
0x1fbb   :  { %v3099_v32 = vmul.f32 %v7148_v24, %v8405_v55 }
0x1fbd   :  { %v7149_v34 = vclamps-f32 %v3099_v32, 10000.0 }
0x1fbf   :  { %v3209_v36 = vpop.xlane.xlu1 %3208  ;;  %v3102_v31 = vsel %vm245_vm1, %v7149_v34, -inf }
0x1fc0   :  { %v3210_v33 = vsub.f32 %v7155_v51, %v3209_v36  ;;  %3103 = vmax.xlane.f32.xlu2 %v3102_v31 }
0x1fc2   :  { %v3211_v37 = vmul.f32 1.442695, %v3210_v33 }
0x1fc4   :  { %7558 = vpow2.f32 %v3211_v37 }
0x1fca   :  { %v7559_v38 = vpop.eup %7558 }
0x1fcb   :  { %v3213_v39 = vsel %vm245_vm1, %v7559_v38, 0.0 }
0x1fcc   :  { %3214 = vadd.xlane.f32.xlu0 %v3213_v39 }
0x1fd8   :  { %3257 = vrot.lane.b32.xlu2 %v8448_v11, %s7707_s20 }
0x1fe0   :  { %3126 = vrot.lane.b32.xlu0 %v8383_v43, %s9241_s2 }
0x1fe8   :  { %3388 = vrot.lane.b32.xlu0 %v8429_v63, %s7705_s15 }
0x1ff0   :  { %3495 = vrot.lane.b32.xlu0 %v8429_v63, %s7710_s26 }
0x2033   :  { %v3104_v56 = vpop.xlane.xlu2 %3103 }
0x2034   :  { %v3105_v57 = vsub.f32 %v7149_v34, %v3104_v56 }
0x2036   :  { %v3106_v61 = vmul.f32 1.442695, %v3105_v57 }
0x2038   :  { %7560 = vpow2.f32 %v3106_v61 }
0x203e   :  { %v7561_v44 = vpop.eup %7560 }
0x203f   :  { %v3215_v30 = vpop.xlane.xlu0 %3214  ;;  %v3108_v45 = vsel %vm245_vm1, %v7561_v44, 0.0 }
0x2040   :  { %7562 = vrcp.f32 %v3215_v30  ;;  %3109 = vadd.xlane.f32.xlu1 %v3108_v45  ;;  %v3227_v43 = vand.u32 2147483648, %v3215_v30  ;;  %v3225_v50 = vand.u32 2147483647, %v3215_v30  ;;  %vm3221_vm6 = vweird.f32 %v3215_v30 }
0x2042   :  { %v3228_v60 = vor.u32 1.1754944e-38, %v3227_v43  ;;  %vm3226_vm8 = vcmp.eq.f32.partialorder %v3225_v50, 8.507059e+37 }
0x2046   :  { %v7563_v46 = vpop.eup %7562 }
0x2047   :  { %v3217_v47 = vmul.f32 %v7563_v46, %v3215_v30  ;;  %vm3222_vm5 = vweird.f32 %v7563_v46 }
0x2048   :  { %vm3223_vm7 = vmor %vm3221_vm6, %vm3222_vm5 }
0x2049   :  { %v3218_v48 = vsub.f32 1.0, %v3217_v47 }
0x204b   :  { %v3219_v49 = vmul.f32 %v7563_v46, %v3218_v48 }
0x204d   :  { %v3220_v22 = vadd.f32 %v7563_v46, %v3219_v49 }
0x204f   :  { %v3224_v62 = vsel %vm3223_vm7, %v7563_v46, %v3220_v22 }
0x2050   :  { %v3229_v0 = vsel %vm3226_vm8, %v3228_v60, %v3224_v62 }
0x2051   :  { %v3230_v52 = vmul.f32 %v7559_v38, %v3229_v0 }
0x2052   :  { %v3127_v54 = vpop.permute.xlu0 %3126 }
0x2053   :  { %3147 = vmatpush.msra.mxu0 %v3127_v54  ;;  %7156 = vmatmul.msk.f32.vlgmr.msra.gmra.mxu3 %vm245_vm1, %v3230_v52 }
0x2059   :  { %3259 = vrot.lane.b32.xlu1 %v8429_v63, %s7707_s20 }
0x205a   :  { %v3389_v1 = vpop.permute.xlu0 %3388 }
0x2061   :  { %3386 = vrot.lane.b32.xlu1 %v8448_v11, %s7705_s15 }
0x2062   :  { %v3496_v6 = vpop.permute.xlu0 %3495 }
0x2063   :  { %7170 = vmatpush.xpose.msk.msra.mxu3 %vm245_vm1, %v3496_v6 }
0x2069   :  { %3493 = vrot.lane.b32.xlu1 %v8448_v11, %s7710_s26  ;;  %v3258_v11 = vpop.permute.xlu2 %3257 }
0x20b3   :  { %v3110_v53 = vpop.xlane.xlu1 %3109 }
0x20b4   :  { %7564 = vrcp.f32 %v3110_v53  ;;  %v3122_v20 = vand.u32 2147483648, %v3110_v53  ;;  %v3120_v58 = vand.u32 2147483647, %v3110_v53  ;;  %vm3116_vm10 = vweird.f32 %v3110_v53 }
0x20b6   :  { %v3123_v4 = vor.u32 1.1754944e-38, %v3122_v20  ;;  %vm3121_vm12 = vcmp.eq.f32.partialorder %v3120_v58, 8.507059e+37 }
0x20ba   :  { %v7565_v2 = vpop.eup %7564 }
0x20bb   :  { %v3112_v35 = vmul.f32 %v7565_v2, %v3110_v53  ;;  %vm3117_vm9 = vweird.f32 %v7565_v2 }
0x20bc   :  { %vm3118_vm11 = vmor %vm3116_vm10, %vm3117_vm9 }
0x20bd   :  { %v3113_v3 = vsub.f32 1.0, %v3112_v35 }
0x20bf   :  { %v3114_v5 = vmul.f32 %v7565_v2, %v3113_v3 }
0x20c1   :  { %v3115_v28 = vadd.f32 %v7565_v2, %v3114_v5 }
0x20c3   :  { %v3119_v59 = vsel %vm3118_vm11, %v7565_v2, %v3115_v28 }
0x20c4   :  { %v3124_v8 = vsel %vm3121_vm12, %v3123_v4, %v3119_v59 }
0x20c5   :  { %v3125_v9 = vmul.f32 %v7561_v44, %v3124_v8 }
0x20c7   :  { %7150 = vmatmul.msk.f32.vlgmr.msra.gmra.mxu0 %vm245_vm1, %v3125_v9 }
0x20cb   :  { %v3260_v10 = vpop.permute.xlu1 %3259 }
0x20cc   :  { %7157 = vmatpush.xpose.msk.msrb.mxu0 %vm245_vm1, %v3260_v10 }
0x20cf   :  { %7158 = vmatmul.msk.f32.vlgmr.msrb.gmra.mxu0 %vm245_vm1, %v3258_v11 }
0x20d0   :  { %7164 = vmatpush.xpose.msk.msra.mxu0 %vm245_vm1, %v3389_v1  ;;  %v2960_v1 = vadd.f32 %v8460_v12, %v8453_v26 }
0x20d2   :  { %v3068_v53 = vadd.f32 %v8456_v17, %v2960_v1 }
0x20d3   :  { %v3387_v13 = vpop.permute.xlu1 %3386 }
0x20d6   :  { %v3254_v14 = vpop.f32.mrf.mxu3 }
0x20d7   :  { %7163 = vmatmul.msk.f32.vlgmr.msrb.gmra.mxu3 %vm245_vm1, %v3254_v14  ;;  %7165 = vmatmul.msk.f32.vlgmr.msra.gmra.mxu0 %vm245_vm1, %v3387_v13 }
0x20d8   :  { %7178 = vmatpush.xpose.msk.msrb.mxu3 %vm245_vm1, %v8347_v23 }
0x20db   :  { %v3494_v16 = vpop.permute.xlu1 %3493 }
0x20df   :  { %7171 = vmatmul.msk.f32.vlgmr.msra.gmra.mxu3 %vm245_vm1, %v3494_v16 }
0x2144   :  { %v3149_v41 = vpop.f32.mrf.mxu0 }
0x2145   :  { %7151 = vmatmul.msk.f32.vlgmr.msra.gmra.mxu1 %vm245_vm1, %v3149_v41 }
0x214c   :  { %v3282_v18 = vpop.f32.mrf.mxu0 }
0x214d   :  { %v7159_v51 = vclamps-f32 %v3282_v18, 10000.0 }
0x214f   :  { %v3287_v19 = vmul.f32 %v7159_v51, %v8405_v55 }
0x2151   :  { %v7160_v21 = vclamps-f32 %v3287_v19, 10000.0 }
0x2153   :  { %v3290_v24 = vsel %vm245_vm1, %v7160_v21, -inf }
0x2154   :  { %3291 = vmax.xlane.f32.xlu0 %v3290_v24  ;;  %v3411_v32 = vpop.f32.mrf.mxu0 }
0x2155   :  { %v7166_v34 = vclamps-f32 %v3411_v32, 10000.0 }
0x2157   :  { %v3416_v36 = vmul.f32 %v7166_v34, %v8405_v55 }
0x2159   :  { %v7167_v31 = vclamps-f32 %v3416_v36, 10000.0 }
0x215a   :  { %v8499_v33 = vpop.f32.mrf.mxu3 }
0x215b   :  { %v3419_v37 = vsel %vm245_vm1, %v7167_v31, -inf }
0x215c   :  { %3420 = vmax.xlane.f32.xlu2 %v3419_v37 }
0x2162   :  { %v3518_v38 = vpop.f32.mrf.mxu3 }
0x2163   :  { %v7172_v39 = vclamps-f32 %v3518_v38, 10000.0 }
0x2165   :  { %v3523_v56 = vmul.f32 %v7172_v39, %v8405_v55 }
0x2167   :  { %v7173_v57 = vclamps-f32 %v3523_v56, 10000.0 }
0x2169   :  { %v3526_v61 = vsel %vm245_vm1, %v7173_v57, -inf }
0x216a   :  { %3527 = vmax.xlane.f32.xlu1 %v3526_v61 }
0x2183   :  { %3314 = vrot.lane.b32.xlu1 %v8429_v63, %s7712_s1 }
0x21c2   :  { %v3172_v6 = vpop.f32.mrf.mxu1 }
0x21c3   :  { %v3175_v2 = vadd.f32 %v3172_v6, %v3068_v53 }
0x21c5   :  { %v8520_v35 = vadd.f32 %v3175_v2, %v8343_v27 }
0x21c7   :  { %v3292_v44 = vpop.xlane.xlu0 %3291  ;;  %v3604_v3 = vsel %vm172_vm0, %v8520_v35, 0.0 }
0x21c8   :  { %v3293_v30 = vsub.f32 %v7160_v21, %v3292_v44 }
0x21ca   :  { %v3294_v45 = vmul.f32 1.442695, %v3293_v30 }
0x21cc   :  { %7566 = vpow2.f32 %v3294_v45 }
0x21cf   :  { %v3421_v46 = vpop.xlane.xlu2 %3420 }
0x21d0   :  { %v3422_v47 = vsub.f32 %v7167_v31, %v3421_v46 }
0x21d2   :  { %v7567_v48 = vpop.eup %7566  ;;  %v3423_v43 = vmul.f32 1.442695, %v3422_v47 }
0x21d3   :  { %v3296_v49 = vsel %vm245_vm1, %v7567_v48, 0.0 }
0x21d4   :  { %7568 = vpow2.f32 %v3423_v43  ;;  %3297 = vadd.xlane.f32.xlu0 %v3296_v49 }
0x21da   :  { %v7569_v55 = vpop.eup %7568 }
0x21db   :  { %v3425_v50 = vsel %vm245_vm1, %v7569_v55, 0.0 }
0x21dc   :  { %3426 = vadd.xlane.f32.xlu2 %v3425_v50 }
0x21dd   :  { %v3528_v22 = vpop.xlane.xlu1 %3527 }
0x21de   :  { %v3529_v60 = vsub.f32 %v7173_v57, %v3528_v22 }
0x21e0   :  { %v3530_v62 = vmul.f32 1.442695, %v3529_v60  ;;  %v3661_v60 = vld [vmem:[%s8549_s4 + $0x18] sm:$0xff] }
0x21e2   :  { %7570 = vpow2.f32 %v3530_v62  ;;  %v3660_v62 = vld [vmem:[%s8549_s4 + $0x10] sm:$0xff] }
0x21e8   :  { %v8508_v0 = vpop.eup %7570  ;;  %3443 = vrot.lane.b32.xlu0 %v8429_v63, %s7709_s25 }
0x21e9   :  { %v3532_v52 = vsel %vm245_vm1, %v8508_v0, 0.0 }
0x21ea   :  { %3533 = vadd.xlane.f32.xlu2 %v3532_v52  ;;  %v3658_v52 = vld [vmem:[%s8549_s4] sm:$0xff] }
0x21f5   :  { %v3315_v54 = vpop.permute.xlu1 %3314 }
0x21f6   :  { %3335 = vmatpush.msrb.mxu1 %v3315_v54 }
0x2202   :  { %3550 = vrot.lane.b32.xlu2 %v8429_v63, %s9241_s2 }
0x2212   :  { %3605 = vadd.xlane.f32.xlu0 %v3604_v3 }
0x2247   :  { %v3298_v20 = vpop.xlane.xlu0 %3297 }
0x2248   :  { %7572 = vrcp.f32 %v3298_v20  ;;  %v3310_v4 = vand.u32 2147483648, %v3298_v20  ;;  %v3308_v12 = vand.u32 2147483647, %v3298_v20  ;;  %vm3304_vm14 = vweird.f32 %v3298_v20 }
0x224a   :  { %v3311_v27 = vor.u32 1.1754944e-38, %v3310_v4  ;;  %vm3309_vm2 = vcmp.eq.f32.partialorder %v3308_v12, 8.507059e+37 }
0x224e   :  { %v7573_v5 = vpop.eup %7572 }
0x224f   :  { %v3300_v58 = vmul.f32 %v7573_v5, %v3298_v20  ;;  %v3427_v28 = vpop.xlane.xlu2 %3426  ;;  %vm3305_vm13 = vweird.f32 %v7573_v5 }
0x2250   :  { %7574 = vrcp.f32 %v3427_v28  ;;  %vm3306_vm15 = vmor %vm3304_vm14, %vm3305_vm13  ;;  %v3439_v14 = vand.u32 2147483648, %v3427_v28  ;;  %v3437_v18 = vand.u32 2147483647, %v3427_v28  ;;  %vm3433_vm4 = vweird.f32 %v3427_v28 }
0x2251   :  { %v3301_v63 = vsub.f32 1.0, %v3300_v58  ;;  %v7447_v58 = vld [vmem:[%s8531_s12] ss:$0 sm:$0xff] }
0x2252   :  { %v3440_v21 = vor.u32 1.1754944e-38, %v3439_v14  ;;  %vm3438_vm6 = vcmp.eq.f32.partialorder %v3437_v18, 8.507059e+37 }
0x2253   :  { %v3302_v26 = vmul.f32 %v7573_v5, %v3301_v63  ;;  %v7448_v63 = vld [vmem:[%s8537_s22] ss:$0 sm:$0xff] }
0x2255   :  { %v3303_v17 = vadd.f32 %v7573_v5, %v3302_v26 }
0x2256   :  { %v7575_v59 = vpop.eup %7574 }
0x2257   :  { %v3307_v8 = vsel %vm3306_vm15, %v7573_v5, %v3303_v17  ;;  %v3429_v9 = vmul.f32 %v7575_v59, %v3427_v28  ;;  %vm3434_vm3 = vweird.f32 %v7575_v59 }
0x2258   :  { %v3312_v10 = vsel %vm3309_vm2, %v3311_v27, %v3307_v8  ;;  %vm3435_vm5 = vmor %vm3433_vm4, %vm3434_vm3 }
0x2259   :  { %v3430_v11 = vsub.f32 1.0, %v3429_v9  ;;  %v3313_v13 = vmul.f32 %v7567_v48, %v3312_v10 }
0x225a   :  { %v3444_v16 = vpop.permute.xlu0 %3443 }
0x225b   :  { %v3431_v41 = vmul.f32 %v7575_v59, %v3430_v11  ;;  %7161 = vmatmul.msk.f32.vlgmr.msrb.gmra.mxu1 %vm245_vm1, %v3313_v13 }
0x225c   :  { %3464 = vmatpush.msra.mxu1 %v3444_v16 }
0x225d   :  { %v3432_v51 = vadd.f32 %v7575_v59, %v3431_v41  ;;  %v3534_v19 = vpop.xlane.xlu2 %3533 }
0x225e   :  { %3594 = vmatpush.msrb.mxu1 %v8492_v7  ;;  %7576 = vrcp.f32 %v3534_v19  ;;  %v3546_v39 = vand.u32 2147483648, %v3534_v19  ;;  %v3544_v57 = vand.u32 2147483647, %v3534_v19  ;;  %vm3540_vm8 = vweird.f32 %v3534_v19 }
0x225f   :  { %v3436_v24 = vsel %vm3435_vm5, %v7575_v59, %v3432_v51 }
0x2260   :  { %v3441_v32 = vsel %vm3438_vm6, %v3440_v21, %v3436_v24  ;;  %v3547_v7 = vor.u32 1.1754944e-38, %v3546_v39  ;;  %vm3545_vm10 = vcmp.eq.f32.partialorder %v3544_v57, 8.507059e+37 }
0x2261   :  { %v3442_v34 = vmul.f32 %v7569_v55, %v3441_v32  ;;  %v8588_v32 = vld [vmem:[%s8585_s30] sm:$0xff] }
0x2263   :  { %7168 = vmatmul.msk.f32.vlgmr.msra.gmra.mxu1 %vm245_vm1, %v3442_v34 }
0x2264   :  { %v7577_v36 = vpop.eup %7576 }
0x2265   :  { %v3536_v31 = vmul.f32 %v7577_v36, %v3534_v19  ;;  %v3551_v37 = vpop.permute.xlu2 %3550  ;;  %vm3541_vm7 = vweird.f32 %v7577_v36 }
0x2266   :  { %3571 = vmatpush.msrb.mxu0 %v3551_v37  ;;  %vm3542_vm9 = vmor %vm3540_vm8, %vm3541_vm7 }
0x2267   :  { %v3537_v38 = vsub.f32 1.0, %v3536_v31 }
0x2269   :  { %v3538_v56 = vmul.f32 %v7577_v36, %v3537_v38 }
0x226b   :  { %v3539_v61 = vadd.f32 %v7577_v36, %v3538_v56 }
0x226d   :  { %v3543_v44 = vsel %vm3542_vm9, %v7577_v36, %v3539_v61 }
0x226e   :  { %v3548_v30 = vsel %vm3545_vm10, %v3547_v7, %v3543_v44 }
0x226f   :  { %v3549_v45 = vmul.f32 %v8508_v0, %v3548_v30  ;;  %v3659_v0 = vld [vmem:[%s8549_s4 + $0x8] sm:$0xff] }
0x2271   :  { %7174 = vmatmul.msk.f32.vlgmr.msrb.gmra.mxu0 %vm245_vm1, %v3549_v45 }
0x2285   :  { %v3606_v46 = vpop.xlane.xlu0 %3605 }
0x2286   :  { %v3610_v47 = vmul.f32 %v3606_v46, %v7954_v15 }
0x2288   :  { %v3612_v48 = vsub.f32 %v8520_v35, %v3610_v47 }
0x228a   :  { %v3614_v43 = vmul.f32 %v3612_v48, %v3612_v48 }
0x228c   :  { %v3616_v49 = vsel %vm172_vm0, %v3614_v43, 0.0 }
0x228d   :  { %3617 = vadd.xlane.f32.xlu1 %v3616_v49 }
0x22a6   :  { %3780 = vrot.lane.b32.xlu1 %v8347_v23, %s7707_s20 }
0x22d8   :  { %v3337_v55 = vpop.f32.mrf.mxu1 }
0x22d9   :  { %7162 = vmatmul.msk.f32.vlgmr.msrb.gmra.mxu2 %vm245_vm1, %v3337_v55 }
0x22da   :  { %3684 = vmatpush.msrb.mxu2 %v3661_v60 }
0x22dc   :  { %3685 = vmatpush.msrb.mxu2 %v3660_v62 }
0x22de   :  { %3686 = vmatpush.msrb.mxu2 %v3659_v0 }
0x22e0   :  { %v3466_v50 = vpop.f32.mrf.mxu1  ;;  %3687 = vmatpush.msrb.mxu2 %v3658_v52 }
0x22e1   :  { %7169 = vmatmul.msk.f32.vlgmr.msra.gmra.mxu2 %vm245_vm1, %v3466_v50 }
0x22ee   :  { %v3573_v22 = vpop.f32.mrf.mxu0 }
0x22ef   :  { %7175 = vmatmul.msk.f32.vlgmr.msrb.gmra.mxu1 %vm245_vm1, %v3573_v22 }
0x2300   :  { %v3618_v54 = vpop.xlane.xlu1 %3617 }
0x2301   :  { %v3622_v1 = vmul.f32 %v3618_v54, %v7954_v15 }
0x2303   :  { %v3624_v6 = vadd.f32 1e-05, %v3622_v1 }
0x2305   :  { %7578 = vrsqrt.f32 %v3624_v6  ;;  %vm3632_vm12 = vweird.f32 %v3624_v6 }
0x230b   :  { %v7579_v53 = vpop.eup %7578 }
0x230c   :  { %v3627_v2 = vmul.f32 %v7579_v53, %v3624_v6  ;;  %vm3633_vm11 = vweird.f32 %v7579_v53 }
0x230d   :  { %vm3634_vm13 = vmor %vm3632_vm12, %vm3633_vm11 }
0x230e   :  { %v3628_v35 = vmul.f32 %v7579_v53, %v3627_v2 }
0x2310   :  { %v3629_v3 = vmul.f32 0.5, %v3628_v35 }
0x2312   :  { %v3630_v20 = vsub.f32 1.5, %v3629_v3 }
0x2314   :  { %v3631_v5 = vmul.f32 %v7579_v53, %v3630_v20 }
0x2316   :  { %v3635_v28 = vsel %vm3634_vm13, %v7579_v53, %v3631_v5 }
0x2317   :  { %v3646_v4 = vmul.f32 %v3635_v28, %v3612_v48 }
0x2318   :  { %v3781_v26 = vpop.permute.xlu1 %3780 }
0x2319   :  { %v3651_v12 = vmul.f32 %v7447_v58, %v3646_v4  ;;  %7183 = vmatpush.xpose.msk.msra.mxu1 %vm245_vm1, %v3781_v26 }
0x231b   :  { %v8560_v17 = vadd.f32 %v7448_v63, %v3651_v12 }
0x231d   :  { %7176 = vmatmul.msk.f32.vlgmr.msrb.gmra.mxu2 %vm172_vm0, %v8560_v17 }
0x235c   :  { %v3360_v59 = vpop.f32.mrf.mxu2 }
0x235d   :  { %v3384_v8 = vadd.f32 %v8499_v33, %v3360_v59 }
0x2364   :  { %v3489_v27 = vpop.f32.mrf.mxu2 }
0x2365   :  { %v3492_v9 = vadd.f32 %v3489_v27, %v3384_v8 }
0x236c   :  { %v3596_v10 = vpop.f32.mrf.mxu1 }
0x236d   :  { %v3599_v11 = vadd.f32 %v3596_v10, %v3492_v9 }
0x236f   :  { %v3601_v13 = vadd.f32 %v3599_v11, %v8370_v40 }
0x2371   :  { %v3607_v14 = vsel %vm172_vm0, %v3601_v13, 0.0 }
0x2372   :  { %3608 = vadd.xlane.f32.xlu2 %v3607_v14 }
0x23a0   :  { %v3689_v16 = vpop.f32.mrf.mxu2 }
0x23a1   :  { %v8567_v41 = vmul.f32 0.17677669, %v3689_v16 }
0x23a3   :  { %3907 = vrot.lane.b32.xlu1 %v8567_v41, %s7705_s15  ;;  %3778 = vrot.lane.b32.xlu2 %v8567_v41, %s7707_s20 }
0x23a4   :  { %7179 = vmatmul.msk.f32.vlgmr.msrb.gmra.mxu3 %vm245_vm1, %v8567_v41 }
0x23ab   :  { %3752 = vrot.lane.b32.xlu2 %v8347_v23, %s7703_s10 }
0x23e5   :  { %v3609_v33 = vpop.xlane.xlu2 %3608 }
0x23e6   :  { %v3611_v40 = vmul.f32 %v3609_v33, %v7954_v15 }
0x23e8   :  { %v3613_v18 = vsub.f32 %v3601_v13, %v3611_v40 }
0x23ea   :  { %v3615_v51 = vmul.f32 %v3613_v18, %v3613_v18 }
0x23ec   :  { %v3619_v19 = vsel %vm172_vm0, %v3615_v51, 0.0 }
0x23ed   :  { %3620 = vadd.xlane.f32.xlu0 %v3619_v19  ;;  %v8620_v19 = vld [vmem:[%s8617_s5] sm:$0xff] }
0x23ee   :  { %3902 = vmatpush.msrb.mxu1 %v8620_v19 }
0x23fd   :  { %v3779_v21 = vpop.permute.xlu2 %3778 }
0x23fe   :  { %7184 = vmatmul.msk.f32.vlgmr.msra.gmra.mxu1 %vm245_vm1, %v3779_v21 }
0x2401   :  { %3909 = vrot.lane.b32.xlu0 %v8347_v23, %s7705_s15 }
0x2405   :  { %v3753_v24 = vpop.permute.xlu2 %3752 }
0x2406   :  { %3773 = vmatpush.msra.mxu0 %v3753_v24 }
0x2415   :  { %v3908_v52 = vpop.permute.xlu1 %3907 }
0x2427   :  { %v3720_v34 = vpop.f32.mrf.mxu3 }
0x2428   :  { %v7180_v36 = vclamps-f32 %v3720_v34, 10000.0 }
0x242a   :  { %v3725_v31 = vmul.f32 %v7180_v36, %v8588_v32 }
0x242c   :  { %v7181_v37 = vclamps-f32 %v3725_v31, 10000.0 }
0x242e   :  { %v3728_v38 = vsel %vm245_vm1, %v7181_v37, -inf }
0x242f   :  { %3729 = vmax.xlane.f32.xlu0 %v3728_v38 }
0x2460   :  { %v3621_v39 = vpop.xlane.xlu0 %3620 }
0x2461   :  { %v3623_v56 = vmul.f32 %v3621_v39, %v7954_v15 }
0x2463   :  { %v3625_v57 = vadd.f32 1e-05, %v3623_v56 }
0x2465   :  { %7580 = vrsqrt.f32 %v3625_v57  ;;  %vm3642_vm15 = vweird.f32 %v3625_v57 }
0x246b   :  { %v7581_v61 = vpop.eup %7580 }
0x246c   :  { %v3637_v7 = vmul.f32 %v7581_v61, %v3625_v57  ;;  %vm3643_vm14 = vweird.f32 %v7581_v61 }
0x246d   :  { %vm3644_vm2 = vmor %vm3642_vm15, %vm3643_vm14 }
0x246e   :  { %v3638_v44 = vmul.f32 %v7581_v61, %v3637_v7 }
0x2470   :  { %v3639_v30 = vmul.f32 0.5, %v3638_v44 }
0x2472   :  { %v3640_v45 = vsub.f32 1.5, %v3639_v30 }
0x2473   :  { %v3910_v46 = vpop.permute.xlu0 %3909 }
0x2474   :  { %v3641_v47 = vmul.f32 %v7581_v61, %v3640_v45  ;;  %7190 = vmatpush.xpose.msk.msra.mxu2 %vm245_vm1, %v3910_v46 }
0x2476   :  { %v3645_v48 = vsel %vm3644_vm2, %v7581_v61, %v3641_v47 }
0x2477   :  { %v3647_v43 = vmul.f32 %v3645_v48, %v3613_v18 }
0x2479   :  { %v3652_v49 = vmul.f32 %v7447_v58, %v3647_v43 }
0x247b   :  { %v3803_v55 = vpop.f32.mrf.mxu1  ;;  %v8594_v50 = vadd.f32 %v7448_v63, %v3652_v49 }
0x247c   :  { %v7185_v22 = vclamps-f32 %v3803_v55, 10000.0 }
0x247d   :  { %7177 = vmatmul.msk.f32.gmra.mxu2 %vm172_vm0, %v8594_v50 }
0x247e   :  { %v3808_v60 = vmul.f32 %v7185_v22, %v8588_v32 }
0x2480   :  { %v7186_v62 = vclamps-f32 %v3808_v60, 10000.0 }
0x2482   :  { %v3811_v0 = vsel %vm245_vm1, %v7186_v62, -inf }
0x2483   :  { %3812 = vmax.xlane.f32.xlu2 %v3811_v0 }
0x2485   :  { %7191 = vmatmul.msk.f32.vlgmr.msra.gmra.mxu2 %vm245_vm1, %v3908_v52 }
0x249b   :  { %3964 = vrot.lane.b32.xlu2 %v8347_v23, %s7709_s25 }
0x24a2   :  { %v3730_v54 = vpop.xlane.xlu0 %3729 }
0x24a3   :  { %v3731_v1 = vsub.f32 %v7181_v37, %v3730_v54 }
0x24a5   :  { %v3732_v6 = vmul.f32 1.442695, %v3731_v1 }
0x24a7   :  { %7582 = vpow2.f32 %v3732_v6 }
0x24ad   :  { %v7583_v53 = vpop.eup %7582 }
0x24ae   :  { %v3734_v2 = vsel %vm245_vm1, %v7583_v53, 0.0 }
0x24af   :  { %3735 = vadd.xlane.f32.xlu1 %v3734_v2 }
0x24f6   :  { %v3813_v35 = vpop.xlane.xlu2 %3812 }
0x24f7   :  { %v3814_v3 = vsub.f32 %v7186_v62, %v3813_v35 }
0x24f9   :  { %v3815_v20 = vmul.f32 1.442695, %v3814_v3 }
0x24fb   :  { %7584 = vpow2.f32 %v3815_v20 }
0x24fe   :  { %v3965_v43 = vpop.permute.xlu2 %3964 }
0x2500   :  { %v8604_v5 = vpop.f32.mrf.mxu2 }
0x2501   :  { %v7585_v58 = vpop.eup %7584  ;;  %v8634_v22 = vmul.f32 0.17677669, %v8604_v5 }
0x2502   :  { %v3817_v28 = vsel %vm245_vm1, %v7585_v58, 0.0 }
0x2503   :  { %3818 = vadd.xlane.f32.xlu1 %v3817_v28 }
0x2508   :  { %v3932_v63 = vpop.f32.mrf.mxu2 }
0x2509   :  { %v7192_v4 = vclamps-f32 %v3932_v63, 10000.0 }
0x250b   :  { %v3937_v26 = vmul.f32 %v7192_v4, %v8588_v32 }
0x250d   :  { %v7193_v12 = vclamps-f32 %v3937_v26, 10000.0 }
0x250f   :  { %v3940_v59 = vsel %vm245_vm1, %v7193_v12, -inf }
0x2510   :  { %3941 = vmax.xlane.f32.xlu0 %v3940_v59 }
0x251c   :  { %3835 = vrot.lane.b32.xlu1 %v8347_v23, %s7712_s1 }
0x2522   :  { %v3736_v27 = vpop.xlane.xlu1 %3735 }
0x2523   :  { %7586 = vrcp.f32 %v3736_v27  ;;  %v3748_v11 = vand.u32 2147483648, %v3736_v27  ;;  %v3746_v14 = vand.u32 2147483647, %v3736_v27  ;;  %vm3742_vm4 = vweird.f32 %v3736_v27 }
0x2524   :  { %4016 = vrot.lane.b32.xlu0 %v8347_v23, %s7710_s26 }
0x2525   :  { %v3749_v33 = vor.u32 1.1754944e-38, %v3748_v11  ;;  %vm3747_vm6 = vcmp.eq.f32.partialorder %v3746_v14, 8.507059e+37 }
0x2529   :  { %v7587_v8 = vpop.eup %7586 }
0x252a   :  { %v3738_v9 = vmul.f32 %v7587_v8, %v3736_v27  ;;  %vm3743_vm3 = vweird.f32 %v7587_v8 }
0x252b   :  { %vm3744_vm5 = vmor %vm3742_vm4, %vm3743_vm3 }
0x252c   :  { %v3739_v10 = vsub.f32 1.0, %v3738_v9 }
0x252e   :  { %v3740_v13 = vmul.f32 %v7587_v8, %v3739_v10 }
0x2530   :  { %v3741_v16 = vadd.f32 %v7587_v8, %v3740_v13 }
0x2532   :  { %v3745_v40 = vsel %vm3744_vm5, %v7587_v8, %v3741_v16 }
0x2533   :  { %v3750_v18 = vsel %vm3747_vm6, %v3749_v33, %v3745_v40 }
0x2534   :  { %v3751_v51 = vmul.f32 %v7583_v53, %v3750_v18 }
0x2536   :  { %7182 = vmatmul.msk.f32.vlgmr.msra.gmra.mxu0 %vm245_vm1, %v3751_v51 }
0x2576   :  { %v3819_v21 = vpop.xlane.xlu1 %3818 }
0x2577   :  { %7588 = vrcp.f32 %v3819_v21  ;;  %v3831_v56 = vand.u32 2147483648, %v3819_v21  ;;  %vm3825_vm8 = vweird.f32 %v3819_v21  ;;  %v3829_v57 = vand.u32 2147483647, %v3819_v21 }
0x2579   :  { %v3832_v44 = vor.u32 1.1754944e-38, %v3831_v56  ;;  %vm3830_vm10 = vcmp.eq.f32.partialorder %v3829_v57, 8.507059e+37 }
0x257d   :  { %v7589_v24 = vpop.eup %7588 }
0x257e   :  { %v3821_v34 = vmul.f32 %v7589_v24, %v3819_v21  ;;  %vm3826_vm7 = vweird.f32 %v7589_v24 }
0x257f   :  { %vm3827_vm9 = vmor %vm3825_vm8, %vm3826_vm7 }
0x2580   :  { %v3822_v36 = vsub.f32 1.0, %v3821_v34 }
0x2582   :  { %v3823_v31 = vmul.f32 %v7589_v24, %v3822_v36 }
0x2583   :  { %v3942_v37 = vpop.xlane.xlu0 %3941 }
0x2584   :  { %v3824_v38 = vadd.f32 %v7589_v24, %v3823_v31  ;;  %v3943_v39 = vsub.f32 %v7193_v12, %v3942_v37 }
0x2586   :  { %v3944_v61 = vmul.f32 1.442695, %v3943_v39  ;;  %v3828_v7 = vsel %vm3827_vm9, %v7589_v24, %v3824_v38 }
0x2587   :  { %v3833_v30 = vsel %vm3830_vm10, %v3832_v44, %v3828_v7 }
0x2588   :  { %7590 = vpow2.f32 %v3944_v61  ;;  %v3834_v46 = vmul.f32 %v7585_v58, %v3833_v30 }
0x258e   :  { %v7591_v45 = vpop.eup %7590  ;;  %v3836_v47 = vpop.permute.xlu1 %3835 }
0x258f   :  { %3856 = vmatpush.msra.mxu3 %v3836_v47  ;;  %v3946_v48 = vsel %vm245_vm1, %v7591_v45, 0.0 }
0x2590   :  { %3947 = vadd.xlane.f32.xlu0 %v3946_v48  ;;  %7187 = vmatmul.msk.f32.vlgmr.msra.gmra.mxu3 %vm245_vm1, %v3834_v46 }
0x2591   :  { %3985 = vmatpush.msrb.mxu3 %v3965_v43 }
0x2596   :  { %v4017_v49 = vpop.permute.xlu0 %4016 }
0x2597   :  { %7196 = vmatpush.xpose.msk.msra.mxu1 %vm245_vm1, %v4017_v49 }
0x25a4   :  { %4014 = vrot.lane.b32.xlu0 %v8567_v41, %s7710_s26  ;;  %v3664_v41 = vld [vmem:[%s8617_s5 + $0x10] sm:$0xff] }
0x25ac   :  { %4071 = vrot.lane.b32.xlu0 %v8347_v23, %s9241_s2  ;;  %v3663_v23 = vld [vmem:[%s8617_s5 + $0x8] sm:$0xff] }
0x25ad   :  { %3879 = vmatpush.msrb.mxu0 %v3663_v23 }
0x25af   :  { %4008 = vmatpush.msra.mxu0 %v3664_v41 }
0x25b3   :  { %v3775_v55 = vpop.f32.mrf.mxu0 }
0x25b4   :  { %7189 = vmatmul.msk.f32.vlgmr.msrb.gmra.mxu1 %vm245_vm1, %v3775_v55  ;;  %4204 = vrot.lane.b32.xlu0 %v8349_v29, %s7707_s20 }
0x25bc   :  { %4202 = vrot.lane.b32.xlu0 %v8634_v22, %s7707_s20 }
0x25c4   :  { %4333 = vrot.lane.b32.xlu0 %v8349_v29, %s7705_s15 }
0x25cc   :  { %4331 = vrot.lane.b32.xlu0 %v8634_v22, %s7705_s15 }
0x25d4   :  { %4176 = vrot.lane.b32.xlu0 %v8349_v29, %s7703_s10 }
0x2603   :  { %v3948_v60 = vpop.xlane.xlu0 %3947 }
0x2604   :  { %7592 = vrcp.f32 %v3948_v60  ;;  %v3960_v54 = vand.u32 2147483648, %v3948_v60  ;;  %v3958_v6 = vand.u32 2147483647, %v3948_v60  ;;  %vm3954_vm12 = vweird.f32 %v3948_v60 }
0x2606   :  { %v3961_v2 = vor.u32 1.1754944e-38, %v3960_v54  ;;  %vm3959_vm14 = vcmp.eq.f32.partialorder %v3958_v6, 8.507059e+37 }
0x260a   :  { %v7593_v62 = vpop.eup %7592 }
0x260b   :  { %v3950_v0 = vmul.f32 %v7593_v62, %v3948_v60  ;;  %vm3955_vm11 = vweird.f32 %v7593_v62 }
0x260c   :  { %vm3956_vm13 = vmor %vm3954_vm12, %vm3955_vm11 }
0x260d   :  { %v3951_v52 = vsub.f32 1.0, %v3950_v0  ;;  %v8669_v0 = vld [vmem:[%s8617_s5 + $0x18] sm:$0xff] }
0x260e   :  { %4115 = vmatpush.msra.mxu3 %v8669_v0 }
0x260f   :  { %v3952_v1 = vmul.f32 %v7593_v62, %v3951_v52 }
0x2611   :  { %v3953_v53 = vadd.f32 %v7593_v62, %v3952_v1 }
0x2613   :  { %v3957_v35 = vsel %vm3956_vm13, %v7593_v62, %v3953_v53  ;;  %v3858_v3 = vpop.f32.mrf.mxu3 }
0x2614   :  { %v3962_v20 = vsel %vm3959_vm14, %v3961_v2, %v3957_v35  ;;  %7188 = vmatmul.msk.f32.vlgmr.msrb.gmra.mxu0 %vm245_vm1, %v3858_v3 }
0x2615   :  { %v3963_v5 = vmul.f32 %v7591_v45, %v3962_v20  ;;  %7202 = vmatpush.xpose.msk.msrb.mxu0 %vm245_vm1, %v8349_v29 }
0x2616   :  { %v4015_v58 = vpop.permute.xlu0 %4014 }
0x2617   :  { %7194 = vmatmul.msk.f32.vlgmr.msrb.gmra.mxu3 %vm245_vm1, %v3963_v5  ;;  %7197 = vmatmul.msk.f32.vlgmr.msra.gmra.mxu1 %vm245_vm1, %v4015_v58 }
0x261e   :  { %v4072_v28 = vpop.permute.xlu0 %4071 }
0x261f   :  { %4092 = vmatpush.msrb.mxu2 %v4072_v28 }
0x2626   :  { %v4205_v63 = vpop.permute.xlu0 %4204 }
0x2627   :  { %7207 = vmatpush.xpose.msk.msra.mxu2 %vm245_vm1, %v4205_v63 }
0x262e   :  { %v4203_v4 = vpop.permute.xlu0 %4202 }
0x2631   :  { %v3904_v27 = vpop.f32.mrf.mxu1 }
0x2636   :  { %v4334_v26 = vpop.permute.xlu0 %4333 }
0x263e   :  { %v4332_v12 = vpop.permute.xlu0 %4331 }
0x2646   :  { %v4177_v59 = vpop.permute.xlu0 %4176 }
0x2647   :  { %4197 = vmatpush.msrb.mxu1 %v4177_v59 }
0x2649   :  { %4326 = vmatpush.msra.mxu1 %v8620_v19 }
0x2691   :  { %v3881_v33 = vpop.f32.mrf.mxu0 }
0x2692   :  { %v3905_v51 = vadd.f32 %v3904_v27, %v3881_v33 }
0x2694   :  { %v4039_v8 = vpop.f32.mrf.mxu1 }
0x2695   :  { %v7198_v9 = vclamps-f32 %v4039_v8, 10000.0 }
0x2697   :  { %v4044_v10 = vmul.f32 %v7198_v9, %v8588_v32 }
0x2699   :  { %v7199_v11 = vclamps-f32 %v4044_v10, 10000.0 }
0x269a   :  { %v3987_v13 = vpop.f32.mrf.mxu3 }
0x269b   :  { %7195 = vmatmul.msk.f32.vlgmr.msra.gmra.mxu0 %vm245_vm1, %v3987_v13  ;;  %v4047_v14 = vsel %vm245_vm1, %v7199_v11, -inf }
0x269c   :  { %4048 = vmax.xlane.f32.xlu1 %v4047_v14  ;;  %4303 = vmatpush.msra.mxu0 %v3663_v23 }
0x26a3   :  { %7203 = vmatmul.msk.f32.vlgmr.msrb.gmra.mxu0 %vm245_vm1, %v8634_v22 }
0x26a4   :  { %4432 = vmatpush.msrb.mxu0 %v3664_v41 }
0x270f   :  { %v4049_v16 = vpop.xlane.xlu1 %4048 }
0x2710   :  { %v4050_v40 = vsub.f32 %v7199_v11, %v4049_v16 }
0x2712   :  { %v4051_v18 = vmul.f32 1.442695, %v4050_v40 }
0x2714   :  { %7594 = vpow2.f32 %v4051_v18 }
0x2718   :  { %v4010_v19 = vpop.f32.mrf.mxu0 }
0x2719   :  { %v8658_v21 = vadd.f32 %v4010_v19, %v3905_v51 }
0x271a   :  { %v7595_v24 = vpop.eup %7594 }
0x271b   :  { %v4053_v34 = vsel %vm245_vm1, %v7595_v24, 0.0 }
0x271c   :  { %4054 = vadd.xlane.f32.xlu2 %v4053_v34 }
0x2720   :  { %v4144_v36 = vpop.f32.mrf.mxu0 }
0x2721   :  { %v7204_v31 = vclamps-f32 %v4144_v36, 10000.0 }
0x2723   :  { %v4149_v37 = vmul.f32 %v7204_v31, %v8588_v32 }
0x2725   :  { %v7205_v38 = vclamps-f32 %v4149_v37, 10000.0 }
0x2727   :  { %v4152_v39 = vsel %vm245_vm1, %v7205_v38, -inf }
0x2728   :  { %4153 = vmax.xlane.f32.xlu2 %v4152_v39 }
0x278f   :  { %v4055_v56 = vpop.xlane.xlu2 %4054 }
0x2790   :  { %7596 = vrcp.f32 %v4055_v56  ;;  %v4067_v44 = vand.u32 2147483648, %v4055_v56  ;;  %v4065_v45 = vand.u32 2147483647, %v4055_v56  ;;  %vm4061_vm2 = vweird.f32 %v4055_v56 }
0x2792   :  { %v4068_v43 = vor.u32 1.1754944e-38, %v4067_v44  ;;  %vm4066_vm4 = vcmp.eq.f32.partialorder %v4065_v45, 8.507059e+37 }
0x2796   :  { %v7597_v57 = vpop.eup %7596 }
0x2797   :  { %v4057_v61 = vmul.f32 %v7597_v57, %v4055_v56  ;;  %vm4062_vm15 = vweird.f32 %v7597_v57 }
0x2798   :  { %vm4063_vm3 = vmor %vm4061_vm2, %vm4062_vm15 }
0x2799   :  { %v4058_v7 = vsub.f32 1.0, %v4057_v61 }
0x279b   :  { %v4059_v30 = vmul.f32 %v7597_v57, %v4058_v7  ;;  %v4154_v46 = vpop.xlane.xlu2 %4153 }
0x279c   :  { %v4155_v47 = vsub.f32 %v7205_v38, %v4154_v46 }
0x279d   :  { %v4060_v48 = vadd.f32 %v7597_v57, %v4059_v30 }
0x279e   :  { %v4156_v49 = vmul.f32 1.442695, %v4155_v47 }
0x279f   :  { %v4064_v55 = vsel %vm4063_vm3, %v7597_v57, %v4060_v48 }
0x27a0   :  { %v4069_v23 = vsel %vm4066_vm4, %v4068_v43, %v4064_v55  ;;  %7598 = vpow2.f32 %v4156_v49 }
0x27a1   :  { %v4070_v41 = vmul.f32 %v7595_v24, %v4069_v23 }
0x27a3   :  { %7200 = vmatmul.msk.f32.vlgmr.msrb.gmra.mxu2 %vm245_vm1, %v4070_v41 }
0x27a4   :  { %7214 = vmatpush.xpose.msk.msrb.mxu2 %vm245_vm1, %v4334_v26 }
0x27a6   :  { %v7599_v60 = vpop.eup %7598 }
0x27a7   :  { %v4158_v62 = vsel %vm245_vm1, %v7599_v60, 0.0 }
0x27a8   :  { %4159 = vadd.xlane.f32.xlu1 %v4158_v62 }
0x27ab   :  { %7208 = vmatmul.msk.f32.vlgmr.msra.gmra.mxu2 %vm245_vm1, %v4203_v4 }
0x27b3   :  { %7215 = vmatmul.msk.f32.vlgmr.msrb.gmra.mxu2 %vm245_vm1, %v4332_v12 }
0x281b   :  { %v4160_v52 = vpop.xlane.xlu1 %4159 }
0x281c   :  { %7600 = vrcp.f32 %v4160_v52  ;;  %v4172_v53 = vand.u32 2147483648, %v4160_v52  ;;  %v4170_v3 = vand.u32 2147483647, %v4160_v52  ;;  %vm4166_vm6 = vweird.f32 %v4160_v52 }
0x281e   :  { %v4173_v5 = vor.u32 1.1754944e-38, %v4172_v53  ;;  %vm4171_vm8 = vcmp.eq.f32.partialorder %v4170_v3, 8.507059e+37 }
0x2822   :  { %v7601_v54 = vpop.eup %7600 }
0x2823   :  { %v4162_v1 = vmul.f32 %v7601_v54, %v4160_v52  ;;  %vm4167_vm5 = vweird.f32 %v7601_v54 }
0x2824   :  { %vm4168_vm7 = vmor %vm4166_vm6, %vm4167_vm5 }
0x2825   :  { %v4163_v6 = vsub.f32 1.0, %v4162_v1 }
0x2826   :  { %v4094_v2 = vpop.f32.mrf.mxu2 }
0x2827   :  { %v4164_v35 = vmul.f32 %v7601_v54, %v4163_v6  ;;  %7201 = vmatmul.msk.f32.vlgmr.msra.gmra.mxu3 %vm245_vm1, %v4094_v2 }
0x2829   :  { %v4165_v20 = vadd.f32 %v7601_v54, %v4164_v35 }
0x282b   :  { %v4169_v58 = vsel %vm4168_vm7, %v7601_v54, %v4165_v20 }
0x282c   :  { %v4174_v28 = vsel %vm4171_vm8, %v4173_v5, %v4169_v58 }
0x282d   :  { %v4175_v63 = vmul.f32 %v7599_v60, %v4174_v28 }
0x282e   :  { %v4227_v4 = vpop.f32.mrf.mxu2 }
0x282f   :  { %v7209_v26 = vclamps-f32 %v4227_v4, 10000.0  ;;  %7206 = vmatmul.msk.f32.vlgmr.msrb.gmra.mxu1 %vm245_vm1, %v4175_v63 }
0x2831   :  { %v4232_v12 = vmul.f32 %v7209_v26, %v8588_v32 }
0x2833   :  { %v7210_v59 = vclamps-f32 %v4232_v12, 10000.0 }
0x2835   :  { %v4235_v27 = vsel %vm245_vm1, %v7210_v59, -inf }
0x2836   :  { %v4356_v8 = vpop.f32.mrf.mxu2  ;;  %4236 = vmax.xlane.f32.xlu2 %v4235_v27 }
0x2837   :  { %v7216_v9 = vclamps-f32 %v4356_v8, 10000.0  ;;  %v4623_v8 = vld [vmem:[%s8717_s13 + $0x78] sm:$0xff] }
0x2839   :  { %v4361_v10 = vmul.f32 %v7216_v9, %v8588_v32  ;;  %v4622_v9 = vld [vmem:[%s8717_s13 + $0x70] sm:$0xff] }
0x283b   :  { %v7217_v11 = vclamps-f32 %v4361_v10, 10000.0  ;;  %v4621_v10 = vld [vmem:[%s8717_s13 + $0x68] sm:$0xff] }
0x283d   :  { %v4364_v13 = vsel %vm245_vm1, %v7217_v11, -inf }
0x283e   :  { %4365 = vmax.xlane.f32.xlu1 %v4364_v13  ;;  %v4620_v13 = vld [vmem:[%s8717_s13 + $0x60] sm:$0xff] }
0x2857   :  { %4259 = vrot.lane.b32.xlu1 %v8349_v29, %s7712_s1 }
0x285f   :  { %4440 = vrot.lane.b32.xlu1 %v8349_v29, %s7710_s26 }
0x28a9   :  { %v4237_v14 = vpop.xlane.xlu2 %4236 }
0x28aa   :  { %v4238_v16 = vsub.f32 %v7210_v59, %v4237_v14  ;;  %v4117_v33 = vpop.f32.mrf.mxu3 }
0x28ab   :  { %v4120_v40 = vadd.f32 %v4117_v33, %v8658_v21 }
0x28ac   :  { %v4239_v18 = vmul.f32 1.442695, %v4238_v16  ;;  %v4199_v51 = vpop.f32.mrf.mxu1 }
0x28ad   :  { %v4545_v19 = vadd.f32 %v4120_v40, %v8560_v17  ;;  %7213 = vmatmul.msk.f32.vlgmr.msra.gmra.mxu1 %vm245_vm1, %v4199_v51 }
0x28ae   :  { %7602 = vpow2.f32 %v4239_v18  ;;  %v4606_v18 = vld [vmem:[%s8728_s17 + $0x18] sm:$0xff] }
0x28af   :  { %v4549_v24 = vsel %vm172_vm0, %v4545_v19, 0.0 }
0x28b0   :  { %4550 = vadd.xlane.f32.xlu1 %v4549_v24 }
0x28b1   :  { %v4366_v34 = vpop.xlane.xlu1 %4365 }
0x28b2   :  { %v4367_v36 = vsub.f32 %v7217_v11, %v4366_v34  ;;  %v4605_v34 = vld [vmem:[%s8728_s17 + $0x10] sm:$0xff] }
0x28b4   :  { %v7603_v31 = vpop.eup %7602  ;;  %v4368_v37 = vmul.f32 1.442695, %v4367_v36 }
0x28b5   :  { %v4241_v38 = vsel %vm245_vm1, %v7603_v31, 0.0 }
0x28b6   :  { %7604 = vpow2.f32 %v4368_v37  ;;  %4242 = vadd.xlane.f32.xlu0 %v4241_v38 }
0x28bc   :  { %v7605_v39 = vpop.eup %7604 }
0x28bd   :  { %v4370_v21 = vsel %vm245_vm1, %v7605_v39, 0.0 }
0x28be   :  { %4371 = vadd.xlane.f32.xlu2 %v4370_v21 }
0x28c9   :  { %v4260_v17 = vpop.permute.xlu1 %4259 }
0x28ca   :  { %4280 = vmatpush.msrb.mxu3 %v4260_v17  ;;  %v8738_v17 = vld [vmem:[%s8691_s18] ss:$0 sm:$0xff] }
0x28d1   :  { %v4441_v56 = vpop.permute.xlu1 %4440 }
0x28d2   :  { %7220 = vmatpush.xpose.msk.msrb.mxu1 %vm245_vm1, %v4441_v56 }
0x28d6   :  { %4388 = vrot.lane.b32.xlu2 %v8349_v29, %s7709_s25  ;;  %4662 = vmatpush.msra.mxu1 %v4623_v8 }
0x28d8   :  { %4663 = vmatpush.msra.mxu1 %v4622_v9 }
0x28da   :  { %4664 = vmatpush.msra.mxu1 %v4621_v10 }
0x28dc   :  { %4665 = vmatpush.msra.mxu1 %v4620_v13 }
0x28de   :  { %4438 = vrot.lane.b32.xlu2 %v8634_v22, %s7710_s26 }
0x2923   :  { %v4551_v57 = vpop.xlane.xlu1 %4550 }
0x2924   :  { %v4555_v61 = vmul.f32 %v4551_v57, %v7954_v15  ;;  %v8748_v57 = vld [vmem:[%s8696_s9] ss:$0 sm:$0xff] }
0x2926   :  { %v8704_v7 = vsub.f32 %v4545_v19, %v4555_v61 }
0x2928   :  { %v4559_v44 = vmul.f32 %v8704_v7, %v8704_v7 }
0x2929   :  { %v4243_v30 = vpop.xlane.xlu0 %4242 }
0x292a   :  { %7606 = vrcp.f32 %v4243_v30  ;;  %v4561_v45 = vsel %vm172_vm0, %v4559_v44, 0.0  ;;  %v4255_v49 = vand.u32 2147483648, %v4243_v30  ;;  %v4253_v55 = vand.u32 2147483647, %v4243_v30  ;;  %v8723_v14 = vpop.f32.mrf.mxu1  ;;  %v4619_v44 = vld [vmem:[%s8717_s13 + $0x58] sm:$0xff] }
0x292b   :  { %4562 = vadd.xlane.f32.xlu0 %v4561_v45  ;;  %vm4249_vm10 = vweird.f32 %v4243_v30  ;;  %4666 = vmatpush.msra.mxu1 %v4619_v44  ;;  %v4617_v45 = vld [vmem:[%s8717_s13 + $0x48] sm:$0xff] }
0x292c   :  { %v4256_v60 = vor.u32 1.1754944e-38, %v4255_v49  ;;  %vm4254_vm12 = vcmp.eq.f32.partialorder %v4253_v55, 8.507059e+37  ;;  %v4612_v49 = vld [vmem:[%s8717_s13 + $0x20] sm:$0xff]  ;;  %v4610_v55 = vld [vmem:[%s8717_s13 + $0x10] sm:$0xff] }
0x2930   :  { %v7607_v46 = vpop.eup %7606 }
0x2931   :  { %v4245_v47 = vmul.f32 %v7607_v46, %v4243_v30  ;;  %v4372_v48 = vpop.xlane.xlu2 %4371  ;;  %vm4250_vm9 = vweird.f32 %v7607_v46  ;;  %v4618_v30 = vld [vmem:[%s8717_s13 + $0x50] sm:$0xff] }
0x2932   :  { %7608 = vrcp.f32 %v4372_v48  ;;  %vm4251_vm11 = vmor %vm4249_vm10, %vm4250_vm9  ;;  %v4384_v2 = vand.u32 2147483648, %v4372_v48  ;;  %v4382_v3 = vand.u32 2147483647, %v4372_v48  ;;  %vm4378_vm14 = vweird.f32 %v4372_v48  ;;  %4667 = vmatpush.msra.mxu1 %v4618_v30 }
0x2933   :  { %v4246_v43 = vsub.f32 1.0, %v4245_v47  ;;  %v4615_v47 = vld [vmem:[%s8717_s13 + $0x38] sm:$0xff] }
0x2934   :  { %v4385_v5 = vor.u32 1.1754944e-38, %v4384_v2  ;;  %vm4383_vm2 = vcmp.eq.f32.partialorder %v4382_v3, 8.507059e+37  ;;  %4668 = vmatpush.msra.mxu1 %v4617_v45  ;;  %v8778_v3 = vld [vmem:[%s8744_s14] ss:$0 sm:$0xff] }
0x2935   :  { %v4247_v22 = vmul.f32 %v7607_v46, %v4246_v43  ;;  %v4613_v43 = vld [vmem:[%s8717_s13 + $0x28] sm:$0xff] }
0x2937   :  { %v4248_v23 = vadd.f32 %v7607_v46, %v4247_v22  ;;  %v4611_v22 = vld [vmem:[%s8717_s13 + $0x18] sm:$0xff] }
0x2938   :  { %v7609_v41 = vpop.eup %7608 }
0x2939   :  { %v4252_v62 = vsel %vm4251_vm11, %v7607_v46, %v4248_v23  ;;  %v4374_v52 = vmul.f32 %v7609_v41, %v4372_v48  ;;  %v4389_v54 = vpop.permute.xlu2 %4388  ;;  %vm4379_vm13 = vweird.f32 %v7609_v41  ;;  %v4616_v46 = vld [vmem:[%s8717_s13 + $0x40] sm:$0xff]  ;;  %v4614_v48 = vld [vmem:[%s8717_s13 + $0x30] sm:$0xff]  ;;  %v4609_v23 = vld [vmem:[%s8717_s13 + $0x8] sm:$0xff] }
0x293a   :  { %v4257_v1 = vsel %vm4254_vm12, %v4256_v60, %v4252_v62  ;;  %4409 = vmatpush.msra.mxu3 %v4389_v54  ;;  %vm4380_vm15 = vmor %vm4378_vm14, %vm4379_vm13  ;;  %4669 = vmatpush.msra.mxu1 %v4616_v46 }
0x293b   :  { %v4258_v6 = vmul.f32 %v7603_v31, %v4257_v1  ;;  %v4375_v53 = vsub.f32 1.0, %v4374_v52  ;;  %v4604_v31 = vld [vmem:[%s8728_s17 + $0x8] sm:$0xff] }
0x293c   :  { %4670 = vmatpush.msra.mxu1 %v4615_v47 }
0x293d   :  { %v4376_v35 = vmul.f32 %v7609_v41, %v4375_v53  ;;  %7211 = vmatmul.msk.f32.vlgmr.msrb.gmra.mxu3 %vm245_vm1, %v4258_v6 }
0x293e   :  { %4539 = vmatpush.msrb.mxu3 %v8669_v0  ;;  %4671 = vmatpush.msra.mxu1 %v4614_v48 }
0x293f   :  { %v4377_v20 = vadd.f32 %v7609_v41, %v4376_v35 }
0x2940   :  { %4672 = vmatpush.msra.mxu1 %v4613_v43 }
0x2941   :  { %v4381_v58 = vsel %vm4380_vm15, %v7609_v41, %v4377_v20  ;;  %v4439_v28 = vpop.permute.xlu2 %4438  ;;  %v4608_v41 = vld [vmem:[%s8717_s13] sm:$0xff] }
0x2942   :  { %v4386_v63 = vsel %vm4383_vm2, %v4385_v5, %v4381_v58  ;;  %7221 = vmatmul.msk.f32.vlgmr.msrb.gmra.mxu1 %vm245_vm1, %v4439_v28 }
0x2943   :  { %v4387_v4 = vmul.f32 %v7605_v39, %v4386_v63  ;;  %v4603_v39 = vld [vmem:[%s8728_s17] sm:$0xff]  ;;  %4673 = vmatpush.msra.mxu1 %v4612_v49 }
0x2945   :  { %7218 = vmatmul.msk.f32.vlgmr.msra.gmra.mxu3 %vm245_vm1, %v4387_v4  ;;  %4674 = vmatpush.msra.mxu1 %v4611_v22  ;;  %v8811_v22 = vld [vmem:[%s8791_s3] ss:$0 sm:$0xff] }
0x2947   :  { %4675 = vmatpush.msra.mxu1 %v4610_v55 }
0x2949   :  { %4676 = vmatpush.msra.mxu1 %v4609_v23 }
0x294b   :  { %4677 = vmatpush.msra.mxu1 %v4608_v41 }
0x299e   :  { %v4563_v26 = vpop.xlane.xlu0 %4562 }
0x299f   :  { %v4567_v12 = vmul.f32 %v4563_v26, %v7954_v15 }
0x29a1   :  { %v4569_v59 = vadd.f32 1e-05, %v4567_v12 }
0x29a3   :  { %7610 = vrsqrt.f32 %v4569_v59  ;;  %vm4577_vm4 = vweird.f32 %v4569_v59 }
0x29a9   :  { %v7611_v0 = vpop.eup %7610 }
0x29aa   :  { %v4572_v27 = vmul.f32 %v7611_v0, %v4569_v59  ;;  %vm4578_vm3 = vweird.f32 %v7611_v0 }
0x29ab   :  { %vm4579_vm5 = vmor %vm4577_vm4, %vm4578_vm3 }
0x29ac   :  { %v4573_v11 = vmul.f32 %v7611_v0, %v4572_v27 }
0x29ae   :  { %v4574_v16 = vmul.f32 0.5, %v4573_v11 }
0x29b0   :  { %v4575_v33 = vsub.f32 1.5, %v4574_v16 }
0x29b2   :  { %v4576_v51 = vmul.f32 %v7611_v0, %v4575_v33 }
0x29b4   :  { %v4580_v37 = vsel %vm4579_vm5, %v7611_v0, %v4576_v51 }
0x29b5   :  { %v4591_v56 = vmul.f32 %v4580_v37, %v8704_v7  ;;  %v7233_v37 = vld [vmem:[%s8332_s8 + $0x38] sm:$0xff] }
0x29b7   :  { %v4596_v61 = vmul.f32 %v8738_v17, %v4591_v56 }
0x29b9   :  { %v8752_v7 = vadd.f32 %v8748_v57, %v4596_v61 }
0x29bf   :  { %v4463_v40 = vpop.f32.mrf.mxu1 }
0x29c0   :  { %v7222_v19 = vclamps-f32 %v4463_v40, 10000.0  ;;  %v4282_v24 = vpop.f32.mrf.mxu3 }
0x29c1   :  { %7212 = vmatmul.msk.f32.vlgmr.msra.gmra.mxu0 %vm245_vm1, %v4282_v24 }
0x29c2   :  { %v4468_v36 = vmul.f32 %v7222_v19, %v8588_v32  ;;  %4646 = vmatpush.msra.mxu0 %v4606_v18 }
0x29c4   :  { %v7223_v38 = vclamps-f32 %v4468_v36, 10000.0  ;;  %4647 = vmatpush.msra.mxu0 %v4605_v34 }
0x29c6   :  { %v4471_v21 = vsel %vm245_vm1, %v7223_v38, -inf  ;;  %4648 = vmatpush.msra.mxu0 %v4604_v31 }
0x29c7   :  { %4472 = vmax.xlane.f32.xlu2 %v4471_v21  ;;  %v7230_v21 = vld [vmem:[%s8332_s8 + $0x20] sm:$0xff] }
0x29c8   :  { %v4411_v32 = vpop.f32.mrf.mxu3  ;;  %4649 = vmatpush.msra.mxu0 %v4603_v39  ;;  %v7231_v39 = vld [vmem:[%s8332_s8 + $0x28] sm:$0xff] }
0x29c9   :  { %7219 = vmatmul.msk.f32.vlgmr.msrb.gmra.mxu0 %vm245_vm1, %v4411_v32 }
0x29d1   :  { %7226 = vmatmul.msk.f32.vlgmr.msra.gmra.mxu0 %vm172_vm0, %v8752_v7 }
0x2a3a   :  { %v4473_v60 = vpop.xlane.xlu2 %4472 }
0x2a3b   :  { %v4474_v62 = vsub.f32 %v7223_v38, %v4473_v60  ;;  %v7232_v38 = vld [vmem:[%s8332_s8 + $0x30] sm:$0xff]  ;;  %s9243_s8 = smov 72  }
0x2a3d   :  { %v4475_v52 = vmul.f32 1.442695, %v4474_v62 }
0x2a3e   :  { %v4305_v54 = vpop.f32.mrf.mxu0 }
0x2a3f   :  { %7612 = vpow2.f32 %v4475_v52  ;;  %v4329_v6 = vadd.f32 %v8723_v14, %v4305_v54 }
0x2a45   :  { %v7613_v1 = vpop.eup %7612 }
0x2a46   :  { %v4434_v53 = vpop.f32.mrf.mxu0  ;;  %v4477_v2 = vsel %vm245_vm1, %v7613_v1, 0.0 }
0x2a47   :  { %v8770_v35 = vadd.f32 %v4434_v53, %v4329_v6  ;;  %4478 = vadd.xlane.f32.xlu0 %v4477_v2 }
0x2a4e   :  { %v4651_v20 = vpop.f32.mrf.mxu0 }
0x2a4f   :  { %v4652_v5 = vadd.f32 %v8778_v3, %v4651_v20 }
0x2a51   :  { %v4657_v58 = vmax.f32 %v4652_v5, 0.0  ;;  %v7237_v5 = vld [vmem:[%s8355_s27 + $0x38] sm:$0xff] }
0x2a52   :  { %4825 = vmatpush.msra.mxu3 %v7237_v5 }
0x2a53   :  { %4678 = vmatmul.f32.vlgmr.msra.gmra.mxu1 %v4657_v58  ;;  %v7236_v58 = vld [vmem:[%s8355_s27 + $0x30] sm:$0xff] }
0x2a54   :  { %4826 = vmatpush.msra.mxu3 %v7236_v58 }
0x2a5b   :  { %4495 = vrot.lane.b32.xlu0 %v8349_v29, %s9241_s2  ;;  %v8784_v29 = vld [vmem:[%s8775_s11] ss:$0 sm:$0xff]  ;;  %s8797_s2 = sld [smem:[%s9240_s0 + %s7743_s19]]  }
0x2a61   :  { %v8815_v41 = vld [vmem:[%s8797_s2] ss:$0 sm:$0xff] }
0x2aba   :  { %v4479_v28 = vpop.xlane.xlu0 %4478 }
0x2abb   :  { %7614 = vrcp.f32 %v4479_v28  ;;  %v4491_v12 = vand.u32 2147483648, %v4479_v28  ;;  %v4489_v0 = vand.u32 2147483647, %v4479_v28  ;;  %vm4485_vm7 = vweird.f32 %v4479_v28 }
0x2abd   :  { %v4492_v8 = vor.u32 1.1754944e-38, %v4491_v12  ;;  %vm4490_vm9 = vcmp.eq.f32.partialorder %v4489_v0, 8.507059e+37 }
0x2ac1   :  { %v7615_v63 = vpop.eup %7614 }
0x2ac2   :  { %v4481_v4 = vmul.f32 %v7615_v63, %v4479_v28  ;;  %vm4486_vm6 = vweird.f32 %v7615_v63  ;;  %v7235_v28 = vld [vmem:[%s8355_s27 + $0x28] sm:$0xff] }
0x2ac3   :  { %vm4487_vm8 = vmor %vm4485_vm7, %vm4486_vm6  ;;  %4827 = vmatpush.msra.mxu3 %v7235_v28 }
0x2ac4   :  { %v4482_v26 = vsub.f32 1.0, %v4481_v4 }
0x2ac6   :  { %v4483_v59 = vmul.f32 %v7615_v63, %v4482_v26  ;;  %v7234_v26 = vld [vmem:[%s8355_s27 + $0x20] sm:$0xff] }
0x2ac7   :  { %4828 = vmatpush.msra.mxu3 %v7234_v26 }
0x2ac8   :  { %v4484_v27 = vadd.f32 %v7615_v63, %v4483_v59 }
0x2aca   :  { %v4488_v9 = vsel %vm4487_vm8, %v7615_v63, %v4484_v27 }
0x2acb   :  { %v4493_v10 = vsel %vm4490_vm9, %v4492_v8, %v4488_v9 }
0x2acc   :  { %v4494_v11 = vmul.f32 %v7613_v1, %v4493_v10 }
0x2acd   :  { %v4496_v13 = vpop.permute.xlu0 %4495 }
0x2ace   :  { %4516 = vmatpush.msra.mxu2 %v4496_v13 }
0x2acf   :  { %7224 = vmatmul.msk.f32.vlgmr.msra.gmra.mxu2 %vm245_vm1, %v4494_v11 }
0x2ad0   :  { %v4679_v14 = vpop.f32.mrf.mxu1  ;;  %4782 = vmatpush.msrb.mxu2 %v7233_v37 }
0x2ad1   :  { %v4680_v16 = vadd.f32 %v8784_v29, %v4679_v14 }
0x2ad2   :  { %4783 = vmatpush.msrb.mxu2 %v7232_v38 }
0x2ad3   :  { %v7228_v33 = vclamps-f32 %v4680_v16, 5.0 }
0x2ad4   :  { %4784 = vmatpush.msrb.mxu2 %v7231_v39 }
0x2ad5   :  { %v4689_v40 = vadd.f32 %v7228_v33, %v8752_v7 }
0x2ad6   :  { %4785 = vmatpush.msrb.mxu2 %v7230_v21 }
0x2ad7   :  { %v4693_v18 = vsel %vm172_vm0, %v4689_v40, 0.0 }
0x2ad8   :  { %4694 = vadd.xlane.f32.xlu0 %v4693_v18 }
0x2b4b   :  { %v4695_v51 = vpop.xlane.xlu0 %4694 }
0x2b4c   :  { %v4699_v19 = vmul.f32 %v4695_v51, %v7954_v15 }
0x2b4e   :  { %v4701_v24 = vsub.f32 %v4689_v40, %v4699_v19  ;;  %v7238_v19 = vld [vmem:[%s8367_s6 + $0x8] sm:$0xff] }
0x2b4f   :  { %4857 = vmatpush.msrb.mxu0 %v7238_v19 }
0x2b50   :  { %v4703_v34 = vmul.f32 %v4701_v24, %v4701_v24 }
0x2b52   :  { %v4518_v36 = vpop.f32.mrf.mxu2  ;;  %v4705_v31 = vsel %vm172_vm0, %v4703_v34, 0.0 }
0x2b53   :  { %7225 = vmatmul.msk.f32.vlgmr.msrb.gmra.mxu3 %vm245_vm1, %v4518_v36  ;;  %4706 = vadd.xlane.f32.xlu1 %v4705_v31 }
0x2bc6   :  { %v4707_v56 = vpop.xlane.xlu1 %4706 }
0x2bc7   :  { %v4711_v32 = vmul.f32 %v4707_v56, %v7954_v15 }
0x2bc9   :  { %v4713_v61 = vadd.f32 1e-05, %v4711_v32 }
0x2bcb   :  { %7616 = vrsqrt.f32 %v4713_v61  ;;  %vm4721_vm11 = vweird.f32 %v4713_v61 }
0x2bd1   :  { %v7617_v7 = vpop.eup %7616 }
0x2bd2   :  { %v4716_v44 = vmul.f32 %v7617_v7, %v4713_v61  ;;  %vm4722_vm10 = vweird.f32 %v7617_v7 }
0x2bd3   :  { %vm4723_vm12 = vmor %vm4721_vm11, %vm4722_vm10 }
0x2bd4   :  { %v4717_v30 = vmul.f32 %v7617_v7, %v4716_v44 }
0x2bd6   :  { %v4718_v45 = vmul.f32 0.5, %v4717_v30  ;;  %v4541_v46 = vpop.f32.mrf.mxu3 }
0x2bd7   :  { %v4544_v47 = vadd.f32 %v4541_v46, %v8770_v35 }
0x2bd8   :  { %v4719_v48 = vsub.f32 1.5, %v4718_v45 }
0x2bd9   :  { %v4546_v43 = vadd.f32 %v4544_v47, %v8594_v50 }
0x2bda   :  { %v4720_v49 = vmul.f32 %v7617_v7, %v4719_v48 }
0x2bdb   :  { %v4552_v55 = vsel %vm172_vm0, %v4546_v43, 0.0 }
0x2bdc   :  { %v4724_v23 = vsel %vm4723_vm12, %v7617_v7, %v4720_v49  ;;  %4553 = vadd.xlane.f32.xlu2 %v4552_v55 }
0x2bdd   :  { %v4735_v60 = vmul.f32 %v4724_v23, %v4701_v24 }
0x2bdf   :  { %v4740_v62 = vmul.f32 %v8811_v22, %v4735_v60 }
0x2be1   :  { %v8819_v52 = vadd.f32 %v8815_v41, %v4740_v62 }
0x2be3   :  { %7243 = vmatmul.msk.f32.vlgmr.msrb.gmra.mxu2 %vm172_vm0, %v8819_v52 }
0x2c4f   :  { %v4554_v50 = vpop.xlane.xlu2 %4553 }
0x2c50   :  { %v4556_v54 = vmul.f32 %v4554_v50, %v7954_v15 }
0x2c52   :  { %v4558_v1 = vsub.f32 %v4546_v43, %v4556_v54 }
0x2c54   :  { %v4560_v6 = vmul.f32 %v4558_v1, %v4558_v1 }
0x2c56   :  { %v4564_v53 = vsel %vm172_vm0, %v4560_v6, 0.0 }
0x2c57   :  { %4565 = vadd.xlane.f32.xlu1 %v4564_v53 }
0x2c66   :  { %v4787_v2 = vpop.f32.mrf.mxu2 }
0x2c67   :  { %4795 = vrot.lane.b32.xlu2 %v4787_v2, %s7703_s10  ;;  %v8849_v56 = vmul.f32 0.17677669, %v4787_v2 }
0x2cc1   :  { %v4796_v35 = vpop.permute.xlu2 %4795 }
0x2cc2   :  { %v4801_v20 = vadd.f32 %v4796_v35, %v4787_v2 }
0x2cc4   :  { %4805 = vrot.lane.b32.xlu1 %v4801_v20, %s7703_s10 }
0x2cca   :  { %v4566_v63 = vpop.xlane.xlu1 %4565 }
0x2ccb   :  { %v4568_v4 = vmul.f32 %v4566_v63, %v7954_v15 }
0x2ccd   :  { %v4570_v12 = vadd.f32 1e-05, %v4568_v4 }
0x2ccf   :  { %7618 = vrsqrt.f32 %v4570_v12  ;;  %vm4587_vm14 = vweird.f32 %v4570_v12 }
0x2cd5   :  { %v7619_v59 = vpop.eup %7618 }
0x2cd6   :  { %v4582_v0 = vmul.f32 %v7619_v59, %v4570_v12  ;;  %vm4588_vm13 = vweird.f32 %v7619_v59 }
0x2cd7   :  { %vm4589_vm15 = vmor %vm4587_vm14, %vm4588_vm13 }
0x2cd8   :  { %v4583_v27 = vmul.f32 %v7619_v59, %v4582_v0 }
0x2cda   :  { %v4584_v8 = vmul.f32 0.5, %v4583_v27 }
0x2cdc   :  { %v4585_v9 = vsub.f32 1.5, %v4584_v8 }
0x2cde   :  { %v4586_v10 = vmul.f32 %v7619_v59, %v4585_v9 }
0x2ce0   :  { %v4590_v11 = vsel %vm4589_vm15, %v7619_v59, %v4586_v10 }
0x2ce1   :  { %v4592_v13 = vmul.f32 %v4590_v11, %v4558_v1 }
0x2ce3   :  { %v4597_v14 = vmul.f32 %v8738_v17, %v4592_v13 }
0x2ce5   :  { %v4602_v16 = vadd.f32 %v8748_v57, %v4597_v14 }
0x2ce7   :  { %7227 = vmatmul.msk.f32.gmra.mxu0 %vm172_vm0, %v4602_v16 }
0x2d36   :  { %v4806_v33 = vpop.permute.xlu1 %4805 }
0x2d37   :  { %7245 = vmatmul.msk.f32.vlgmr.msra.gmra.mxu3 %vm172_vm0, %v4806_v33 }
0x2d64   :  { %v4654_v40 = vpop.f32.mrf.mxu0 }
0x2d65   :  { %v4655_v18 = vadd.f32 %v8778_v3, %v4654_v40 }
0x2d67   :  { %v4658_v51 = vmax.f32 %v4655_v18, 0.0 }
0x2d69   :  { %4681 = vmatmul.f32.gmra.mxu1 %v4658_v51  ;;  %v8899_v51 = vld [vmem:[%s8436_s21 + $0x20] sm:$0xff] }
0x2dba   :  { %v4830_v24 = vpop.f32.mrf.mxu3 }
0x2dbb   :  { %7247 = vmatmul.msk.f32.vlgmr.msrb.gmra.mxu0 %vm245_vm1, %v4830_v24 }
0x2de6   :  { %v4682_v34 = vpop.f32.mrf.mxu1 }
0x2de7   :  { %v4683_v17 = vadd.f32 %v8784_v29, %v4682_v34 }
0x2de9   :  { %v7229_v36 = vclamps-f32 %v4683_v17, 5.0 }
0x2deb   :  { %v4690_v57 = vadd.f32 %v7229_v36, %v4602_v16  ;;  %v8895_v16 = vld [vmem:[%s8436_s21 + $0x28] sm:$0xff] }
0x2dec   :  { %5049 = vmatpush.msra.mxu0 %v8895_v16 }
0x2ded   :  { %v4696_v31 = vsel %vm172_vm0, %v4690_v57, 0.0 }
0x2dee   :  { %4697 = vadd.xlane.f32.xlu2 %v4696_v31 }
0x2e38   :  { %v8841_v37 = vpop.f32.mrf.mxu0 }
0x2e39   :  { %4950 = vrot.lane.b32.xlu1 %v8841_v37, %s7707_s20  ;;  %7249 = vmatpush.xpose.msk.msra.mxu2 %vm245_vm1, %v8841_v37 }
0x2e61   :  { %v4698_v3 = vpop.xlane.xlu2 %4697 }
0x2e62   :  { %v4700_v38 = vmul.f32 %v4698_v3, %v7954_v15 }
0x2e64   :  { %v4702_v39 = vsub.f32 %v4690_v57, %v4700_v38 }
0x2e66   :  { %v4704_v21 = vmul.f32 %v4702_v39, %v4702_v39 }
0x2e68   :  { %v4708_v29 = vsel %vm172_vm0, %v4704_v21, 0.0 }
0x2e69   :  { %4709 = vadd.xlane.f32.xlu0 %v4708_v29 }
0x2e7d   :  { %4948 = vrot.lane.b32.xlu0 %v8849_v56, %s7707_s20 }
0x2eab   :  { %v4951_v32 = vpop.permute.xlu1 %4950 }
0x2eac   :  { %7254 = vmatpush.xpose.msk.msrb.mxu2 %vm245_vm1, %v4951_v32 }
0x2edc   :  { %v4710_v61 = vpop.xlane.xlu0 %4709 }
0x2edd   :  { %v4712_v7 = vmul.f32 %v4710_v61, %v7954_v15 }
0x2edf   :  { %v4714_v44 = vadd.f32 1e-05, %v4712_v7 }
0x2ee1   :  { %7620 = vrsqrt.f32 %v4714_v44  ;;  %vm4731_vm3 = vweird.f32 %v4714_v44 }
0x2ee7   :  { %v7621_v30 = vpop.eup %7620 }
0x2ee8   :  { %v4726_v45 = vmul.f32 %v7621_v30, %v4714_v44  ;;  %vm4732_vm2 = vweird.f32 %v7621_v30 }
0x2ee9   :  { %vm4733_vm4 = vmor %vm4731_vm3, %vm4732_vm2 }
0x2eea   :  { %v4727_v46 = vmul.f32 %v7621_v30, %v4726_v45 }
0x2eec   :  { %v4728_v47 = vmul.f32 0.5, %v4727_v46 }
0x2eee   :  { %v4729_v48 = vsub.f32 1.5, %v4728_v47 }
0x2eef   :  { %v4949_v62 = vpop.permute.xlu0 %4948 }
0x2ef0   :  { %v4730_v43 = vmul.f32 %v7621_v30, %v4729_v48 }
0x2ef2   :  { %v4734_v49 = vsel %vm4733_vm4, %v7621_v30, %v4730_v43 }
0x2ef3   :  { %v4736_v55 = vmul.f32 %v4734_v49, %v4702_v39 }
0x2ef5   :  { %v4741_v23 = vmul.f32 %v8811_v22, %v4736_v55  ;;  %v8869_v22 = vld [vmem:[%s8402_s24] sm:$0xff]  ;;  %s7746_s24 = smov 37  }
0x2ef7   :  { %v8857_v60 = vadd.f32 %v8815_v41, %v4741_v23 }
0x2ef9   :  { %7244 = vmatmul.msk.f32.gmra.mxu2 %vm172_vm0, %v8857_v60 }
0x2f01   :  { %7250 = vmatmul.msk.f32.vlgmr.msra.gmra.mxu2 %vm245_vm1, %v8849_v56 }
0x2f02   :  { %5072 = vmatpush.msra.mxu2 %v8899_v51 }
0x2f09   :  { %7255 = vmatmul.msk.f32.vlgmr.msrb.gmra.mxu2 %vm245_vm1, %v4949_v62 }
0x2f7c   :  { %v8864_v50 = vpop.f32.mrf.mxu2 }
0x2f7d   :  { %4797 = vrot.lane.b32.xlu2 %v8864_v50, %s7703_s10 }
0x2f84   :  { %v4890_v54 = vpop.f32.mrf.mxu2 }
0x2f85   :  { %v7251_v1 = vclamps-f32 %v4890_v54, 10000.0  ;;  %v7241_v54 = vld [vmem:[%s8436_s21 + $0x30] sm:$0xff] }
0x2f86   :  { %5178 = vmatpush.msrb.mxu1 %v7241_v54 }
0x2f87   :  { %v4895_v41 = vmul.f32 %v8869_v22, %v7251_v1 }
0x2f89   :  { %v7252_v6 = vclamps-f32 %v4895_v41, 10000.0 }
0x2f8b   :  { %v4898_v53 = vsel %vm245_vm1, %v7252_v6, -inf }
0x2f8c   :  { %v4973_v2 = vpop.f32.mrf.mxu2  ;;  %4899 = vmax.xlane.f32.xlu1 %v4898_v53 }
0x2f8d   :  { %v7256_v35 = vclamps-f32 %v4973_v2, 10000.0 }
0x2f8f   :  { %v4978_v20 = vmul.f32 %v8869_v22, %v7256_v35 }
0x2f91   :  { %v7257_v5 = vclamps-f32 %v4978_v20, 10000.0 }
0x2f93   :  { %v4981_v58 = vsel %vm245_vm1, %v7257_v5, -inf }
0x2f94   :  { %4982 = vmax.xlane.f32.xlu0 %v4981_v58 }
0x2fa8   :  { %5005 = vrot.lane.b32.xlu0 %v8841_v37, %s7712_s1 }
0x2fd7   :  { %v4798_v28 = vpop.permute.xlu2 %4797 }
0x2fd8   :  { %v4802_v63 = vadd.f32 %v4798_v28, %v8864_v50 }
0x2fda   :  { %4807 = vrot.lane.b32.xlu2 %v4802_v63, %s7703_s10 }
0x2fe2   :  { %5079 = vrot.lane.b32.xlu2 %v8841_v37, %s7705_s15 }
0x2fea   :  { %5077 = vrot.lane.b32.xlu2 %v8849_v56, %s7705_s15 }
0x2fff   :  { %v4900_v4 = vpop.xlane.xlu1 %4899 }
0x3000   :  { %v4901_v26 = vsub.f32 %v7252_v6, %v4900_v4 }
0x3002   :  { %v4902_v12 = vmul.f32 1.442695, %v4901_v26 }
0x3004   :  { %7622 = vpow2.f32 %v4902_v12 }
0x3007   :  { %v4983_v59 = vpop.xlane.xlu0 %4982 }
0x3008   :  { %v4984_v0 = vsub.f32 %v7257_v5, %v4983_v59  ;;  %v8926_v59 = vmul.f32 0.17677669, %v8864_v50 }
0x300a   :  { %v7623_v27 = vpop.eup %7622  ;;  %v4985_v8 = vmul.f32 1.442695, %v4984_v0 }
0x300b   :  { %v4904_v9 = vsel %vm245_vm1, %v7623_v27, 0.0 }
0x300c   :  { %7624 = vpow2.f32 %v4985_v8  ;;  %4905 = vadd.xlane.f32.xlu1 %v4904_v9 }
0x3012   :  { %v7625_v10 = vpop.eup %7624 }
0x3013   :  { %v4987_v11 = vsel %vm245_vm1, %v7625_v10, 0.0 }
0x3014   :  { %4988 = vadd.xlane.f32.xlu1 %v4987_v11 }
0x301a   :  { %v5006_v30 = vpop.permute.xlu0 %5005 }
0x302d   :  { %4922 = vrot.lane.b32.xlu1 %v8841_v37, %s7703_s10 }
0x3034   :  { %v4808_v13 = vpop.permute.xlu2 %4807 }
0x3035   :  { %7246 = vmatmul.msk.f32.gmra.mxu3 %vm172_vm0, %v4808_v13  ;;  %5134 = vrot.lane.b32.xlu1 %v8841_v37, %s7709_s25 }
0x303c   :  { %v5080_v46 = vpop.permute.xlu2 %5079 }
0x303d   :  { %5186 = vrot.lane.b32.xlu1 %v8841_v37, %s7710_s26 }
0x3044   :  { %v5078_v23 = vpop.permute.xlu2 %5077 }
0x3045   :  { %5184 = vrot.lane.b32.xlu1 %v8849_v56, %s7710_s26 }
0x307f   :  { %v4906_v14 = vpop.xlane.xlu1 %4905 }
0x3080   :  { %7626 = vrcp.f32 %v4906_v14  ;;  %v4918_v31 = vand.u32 2147483648, %v4906_v14  ;;  %vm4912_vm6 = vweird.f32 %v4906_v14  ;;  %v4916_v3 = vand.u32 2147483647, %v4906_v14 }
0x3082   :  { %v4919_v21 = vor.u32 1.1754944e-38, %v4918_v31  ;;  %vm4917_vm8 = vcmp.eq.f32.partialorder %v4916_v3, 8.507059e+37 }
0x3086   :  { %v7627_v33 = vpop.eup %7626 }
0x3087   :  { %v4989_v40 = vpop.xlane.xlu1 %4988  ;;  %v4908_v18 = vmul.f32 %v7627_v33, %v4906_v14  ;;  %vm4913_vm5 = vweird.f32 %v7627_v33 }
0x3088   :  { %7628 = vrcp.f32 %v4989_v40  ;;  %vm4914_vm7 = vmor %vm4912_vm6, %vm4913_vm5  ;;  %v5001_v32 = vand.u32 2147483648, %v4989_v40  ;;  %vm4995_vm10 = vweird.f32 %v4989_v40  ;;  %v4999_v7 = vand.u32 2147483647, %v4989_v40 }
0x3089   :  { %v4909_v19 = vsub.f32 1.0, %v4908_v18 }
0x308a   :  { %v5002_v47 = vor.u32 1.1754944e-38, %v5001_v32  ;;  %vm5000_vm12 = vcmp.eq.f32.partialorder %v4999_v7, 8.507059e+37 }
0x308b   :  { %v4910_v34 = vmul.f32 %v7627_v33, %v4909_v19 }
0x308d   :  { %v4911_v36 = vadd.f32 %v7627_v33, %v4910_v34 }
0x308e   :  { %v7629_v24 = vpop.eup %7628 }
0x308f   :  { %v4991_v17 = vmul.f32 %v7629_v24, %v4989_v40  ;;  %v4915_v38 = vsel %vm4914_vm7, %v7627_v33, %v4911_v36  ;;  %vm4996_vm9 = vweird.f32 %v7629_v24 }
0x3090   :  { %v4920_v29 = vsel %vm4917_vm8, %v4919_v21, %v4915_v38  ;;  %vm4997_vm11 = vmor %vm4995_vm10, %vm4996_vm9 }
0x3091   :  { %v4992_v57 = vsub.f32 1.0, %v4991_v17  ;;  %v4921_v61 = vmul.f32 %v7623_v27, %v4920_v29 }
0x3093   :  { %v4993_v39 = vmul.f32 %v7629_v24, %v4992_v57 }
0x3095   :  { %v4994_v56 = vadd.f32 %v7629_v24, %v4993_v39 }
0x3097   :  { %v4998_v45 = vsel %vm4997_vm11, %v7629_v24, %v4994_v56 }
0x3098   :  { %v5003_v48 = vsel %vm5000_vm12, %v5002_v47, %v4998_v45 }
0x3099   :  { %v5004_v43 = vmul.f32 %v7625_v10, %v5003_v48 }
0x309f   :  { %v4923_v44 = vpop.permute.xlu1 %4922 }
0x30a0   :  { %4943 = vmatpush.msrb.mxu3 %v4923_v44 }
0x30a1   :  { %7253 = vmatmul.msk.f32.vlgmr.msrb.gmra.mxu3 %vm245_vm1, %v4921_v61 }
0x30a2   :  { %5026 = vmatpush.msra.mxu3 %v5006_v30 }
0x30a4   :  { %7261 = vmatpush.xpose.msk.msrb.mxu3 %vm245_vm1, %v5080_v46 }
0x30a7   :  { %v5135_v49 = vpop.permute.xlu1 %5134 }
0x30a8   :  { %5155 = vmatpush.msrb.mxu0 %v5135_v49 }
0x30a9   :  { %7258 = vmatmul.msk.f32.vlgmr.msra.gmra.mxu3 %vm245_vm1, %v5004_v43 }
0x30af   :  { %v5187_v55 = vpop.permute.xlu1 %5186 }
0x30b0   :  { %7267 = vmatpush.xpose.msk.msrb.mxu2 %vm245_vm1, %v5187_v55 }
0x30b1   :  { %7262 = vmatmul.msk.f32.vlgmr.msrb.gmra.mxu3 %vm245_vm1, %v5078_v23 }
0x30b7   :  { %v5185_v41 = vpop.permute.xlu1 %5184 }
0x30b8   :  { %v4833_v62 = vpop.f32.mrf.mxu3 }
0x30b9   :  { %7248 = vmatmul.msk.f32.gmra.mxu0 %vm245_vm1, %v4833_v62 }
0x3124   :  { %v4945_v1 = vpop.f32.mrf.mxu3 }
0x3125   :  { %7260 = vmatmul.msk.f32.vlgmr.msra.gmra.mxu2 %vm245_vm1, %v4945_v1 }
0x312c   :  { %v5028_v6 = vpop.f32.mrf.mxu3 }
0x312d   :  { %7259 = vmatmul.msk.f32.vlgmr.msra.gmra.mxu0 %vm245_vm1, %v5028_v6  ;;  %7268 = vmatmul.msk.f32.vlgmr.msrb.gmra.mxu2 %vm245_vm1, %v5185_v41 }
0x3134   :  { %v5102_v53 = vpop.f32.mrf.mxu3 }
0x3135   :  { %v7263_v2 = vclamps-f32 %v5102_v53, 10000.0 }
0x3136   :  { %v8912_v35 = vpop.f32.mrf.mxu0 }
0x3137   :  { %v5107_v20 = vmul.f32 %v8869_v22, %v7263_v2  ;;  %7273 = vmatpush.xpose.msk.msra.mxu1 %vm245_vm1, %v8912_v35 }
0x3139   :  { %v7264_v5 = vclamps-f32 %v5107_v20, 10000.0 }
0x313b   :  { %v5110_v58 = vsel %vm245_vm1, %v7264_v5, -inf }
0x313c   :  { %5111 = vmax.xlane.f32.xlu2 %v5110_v58 }
0x31a8   :  { %v5074_v17 = vpop.f32.mrf.mxu2 }
0x31aa   :  { %v5051_v24 = vpop.f32.mrf.mxu0 }
0x31ab   :  { %v5075_v36 = vadd.f32 %v5074_v17, %v5051_v24  ;;  %v8964_v24 = vld [vmem:[%s8436_s21 + $0x38] sm:$0xff] }
0x31ac   :  { %5285 = vmatpush.msra.mxu0 %v8964_v24 }
0x31af   :  { %v5112_v28 = vpop.xlane.xlu2 %5111 }
0x31b0   :  { %v5113_v63 = vsub.f32 %v7264_v5, %v5112_v28  ;;  %v5209_v32 = vpop.f32.mrf.mxu2 }
0x31b1   :  { %v7269_v61 = vclamps-f32 %v5209_v32, 10000.0 }
0x31b2   :  { %v5114_v4 = vmul.f32 1.442695, %v5113_v63 }
0x31b3   :  { %v5214_v44 = vmul.f32 %v8869_v22, %v7269_v61 }
0x31b4   :  { %7630 = vpow2.f32 %v5114_v4 }
0x31b5   :  { %v7270_v45 = vclamps-f32 %v5214_v44, 10000.0 }
0x31b7   :  { %v5217_v46 = vsel %vm245_vm1, %v7270_v45, -inf }
0x31ba   :  { %v7631_v26 = vpop.eup %7630 }
0x31bb   :  { %v5116_v12 = vsel %vm245_vm1, %v7631_v26, 0.0 }
0x31bc   :  { %5117 = vadd.xlane.f32.xlu0 %v5116_v12 }
0x31d0   :  { %5346 = vrot.lane.b32.xlu0 %v8912_v35, %s7703_s10 }
0x31d8   :  { %5241 = vrot.lane.b32.xlu0 %v8841_v37, %s9243_s8 }
0x31e0   :  { %5610 = vrot.lane.b32.xlu0 %v8912_v35, %s7710_s26 }
0x31e8   :  { %5608 = vrot.lane.b32.xlu0 %v8926_v59, %s7710_s26 }
0x31f0   :  { %5503 = vrot.lane.b32.xlu0 %v8912_v35, %s7705_s15 }
0x322f   :  { %v5118_v0 = vpop.xlane.xlu0 %5117 }
0x3230   :  { %7632 = vrcp.f32 %v5118_v0  ;;  %v5130_v10 = vand.u32 2147483648, %v5118_v0  ;;  %v5128_v37 = vand.u32 2147483647, %v5118_v0  ;;  %vm5124_vm14 = vweird.f32 %v5118_v0 }
0x3232   :  { %v5131_v50 = vor.u32 1.1754944e-38, %v5130_v10  ;;  %vm5129_vm2 = vcmp.eq.f32.partialorder %v5128_v37, 8.507059e+37 }
0x3236   :  { %v7633_v27 = vpop.eup %7632 }
0x3237   :  { %v5120_v8 = vmul.f32 %v7633_v27, %v5118_v0  ;;  %vm5125_vm13 = vweird.f32 %v7633_v27 }
0x3238   :  { %vm5126_vm15 = vmor %vm5124_vm14, %vm5125_vm13 }
0x3239   :  { %v5121_v9 = vsub.f32 1.0, %v5120_v8 }
0x323b   :  { %v5122_v11 = vmul.f32 %v7633_v27, %v5121_v9 }
0x323d   :  { %v5123_v13 = vadd.f32 %v7633_v27, %v5122_v11 }
0x323f   :  { %v5127_v14 = vsel %vm5126_vm15, %v7633_v27, %v5123_v13 }
0x3240   :  { %v5132_v33 = vsel %vm5129_vm2, %v5131_v50, %v5127_v14 }
0x3241   :  { %v5133_v40 = vmul.f32 %v7631_v26, %v5132_v33 }
0x3242   :  { %v5347_v18 = vpop.permute.xlu0 %5346 }
0x3243   :  { %7265 = vmatmul.msk.f32.vlgmr.msrb.gmra.mxu0 %vm245_vm1, %v5133_v40  ;;  %5367 = vmatpush.msra.mxu2 %v5347_v18 }
0x3245   :  { %5496 = vmatpush.msrb.mxu2 %v8899_v51 }
0x324a   :  { %v5242_v19 = vpop.permute.xlu0 %5241 }
0x324b   :  { %5262 = vmatpush.msra.mxu3 %v5242_v19 }
0x3252   :  { %v5611_v28 = vpop.permute.xlu0 %5610 }
0x325a   :  { %v5609_v27 = vpop.permute.xlu0 %5608 }
0x3262   :  { %v5504_v40 = vpop.permute.xlu0 %5503 }
0x32c0   :  { %v5157_v34 = vpop.f32.mrf.mxu0 }
0x32c1   :  { %7266 = vmatmul.msk.f32.vlgmr.msrb.gmra.mxu1 %vm245_vm1, %v5157_v34 }
0x32c2   :  { %5473 = vmatpush.msrb.mxu1 %v8895_v16 }
0x32c9   :  { %7274 = vmatmul.msk.f32.vlgmr.msra.gmra.mxu1 %vm245_vm1, %v8926_v59 }
0x32ca   :  { %5602 = vmatpush.msra.mxu1 %v7241_v54 }
0x333e   :  { %v5180_v57 = vpop.f32.mrf.mxu1 }
0x333f   :  { %v8938_v31 = vadd.f32 %v5180_v57, %v5075_v36 }
0x3346   :  { %v5314_v3 = vpop.f32.mrf.mxu1 }
0x3347   :  { %v7275_v38 = vclamps-f32 %v5314_v3, 10000.0 }
0x3349   :  { %v5319_v51 = vmul.f32 %v8869_v22, %v7275_v38 }
0x334b   :  { %v7276_v39 = vclamps-f32 %v5319_v51, 10000.0 }
0x334d   :  { %v5322_v21 = vsel %vm245_vm1, %v7276_v39, -inf }
0x334e   :  { %5323 = vmax.xlane.f32.xlu1 %v5322_v21 }
0x3367   :  { %5372 = vrot.lane.b32.xlu1 %v8926_v59, %s7707_s20 }
0x33c1   :  { %v5324_v16 = vpop.xlane.xlu1 %5323 }
0x33c2   :  { %v5325_v29 = vsub.f32 %v7276_v39, %v5324_v16 }
0x33c4   :  { %v5326_v56 = vmul.f32 1.442695, %v5325_v29 }
0x33c6   :  { %7634 = vpow2.f32 %v5326_v56 }
0x33cc   :  { %v7635_v7 = vpop.eup %7634 }
0x33cd   :  { %v5328_v30 = vsel %vm245_vm1, %v7635_v7, 0.0 }
0x33ce   :  { %5329 = vadd.xlane.f32.xlu2 %v5328_v30 }
0x33d6   :  { %5218 = vmax.xlane.f32.xlu2 %v5217_v46 }
0x33d9   :  { %v5373_v18 = vpop.permute.xlu1 %5372 }
0x3441   :  { %v5330_v47 = vpop.xlane.xlu2 %5329 }
0x3442   :  { %7636 = vrcp.f32 %v5330_v47  ;;  %v5342_v62 = vand.u32 2147483648, %v5330_v47  ;;  %v5340_v41 = vand.u32 2147483647, %v5330_v47  ;;  %vm5336_vm4 = vweird.f32 %v5330_v47 }
0x3444   :  { %v5343_v53 = vor.u32 1.1754944e-38, %v5342_v62  ;;  %vm5341_vm6 = vcmp.eq.f32.partialorder %v5340_v41, 8.507059e+37 }
0x3448   :  { %v7637_v48 = vpop.eup %7636 }
0x3449   :  { %v5332_v43 = vmul.f32 %v7637_v48, %v5330_v47  ;;  %v5219_v49 = vpop.xlane.xlu2 %5218  ;;  %vm5337_vm3 = vweird.f32 %v7637_v48 }
0x344a   :  { %v5220_v55 = vsub.f32 %v7270_v45, %v5219_v49  ;;  %vm5338_vm5 = vmor %vm5336_vm4, %vm5337_vm3 }
0x344b   :  { %v5333_v23 = vsub.f32 1.0, %v5332_v43 }
0x344c   :  { %v5221_v54 = vmul.f32 1.442695, %v5220_v55 }
0x344d   :  { %v5334_v1 = vmul.f32 %v7637_v48, %v5333_v23 }
0x344e   :  { %7638 = vpow2.f32 %v5221_v54 }
0x344f   :  { %v5335_v6 = vadd.f32 %v7637_v48, %v5334_v1 }
0x3451   :  { %v5339_v2 = vsel %vm5338_vm5, %v7637_v48, %v5335_v6 }
0x3452   :  { %v5344_v20 = vsel %vm5341_vm6, %v5343_v53, %v5339_v2 }
0x3453   :  { %v5345_v5 = vmul.f32 %v7635_v7, %v5344_v20 }
0x3454   :  { %v7639_v58 = vpop.eup %7638 }
0x3455   :  { %7277 = vmatmul.msk.f32.vlgmr.msra.gmra.mxu2 %vm245_vm1, %v5345_v5  ;;  %v5223_v63 = vsel %vm245_vm1, %v7639_v58, 0.0 }
0x3456   :  { %7291 = vmatpush.xpose.msk.msra.mxu2 %vm245_vm1, %v5611_v28  ;;  %5224 = vadd.xlane.f32.xlu2 %v5223_v63 }
0x346e   :  { %5374 = vrot.lane.b32.xlu2 %v8912_v35, %s7707_s20 }
0x3476   :  { %5501 = vrot.lane.b32.xlu2 %v8926_v59, %s7705_s15 }
0x34c9   :  { %v5225_v4 = vpop.xlane.xlu2 %5224 }
0x34ca   :  { %7640 = vrcp.f32 %v5225_v4  ;;  %v5237_v9 = vand.u32 2147483648, %v5225_v4  ;;  %v5235_v11 = vand.u32 2147483647, %v5225_v4  ;;  %vm5231_vm8 = vweird.f32 %v5225_v4 }
0x34cc   :  { %v5238_v13 = vor.u32 1.1754944e-38, %v5237_v9  ;;  %vm5236_vm10 = vcmp.eq.f32.partialorder %v5235_v11, 8.507059e+37 }
0x34d0   :  { %v7641_v26 = vpop.eup %7640 }
0x34d1   :  { %v5227_v12 = vmul.f32 %v7641_v26, %v5225_v4  ;;  %v5375_v0 = vpop.permute.xlu2 %5374  ;;  %vm5232_vm7 = vweird.f32 %v7641_v26 }
0x34d2   :  { %7278 = vmatpush.xpose.msk.msrb.mxu3 %vm245_vm1, %v5375_v0  ;;  %vm5233_vm9 = vmor %vm5231_vm8, %vm5232_vm7 }
0x34d3   :  { %v5228_v8 = vsub.f32 1.0, %v5227_v12 }
0x34d5   :  { %v5229_v10 = vmul.f32 %v7641_v26, %v5228_v8 }
0x34d7   :  { %v5230_v37 = vadd.f32 %v7641_v26, %v5229_v10 }
0x34d8   :  { %v5369_v50 = vpop.f32.mrf.mxu2 }
0x34d9   :  { %v5234_v59 = vsel %vm5233_vm9, %v7641_v26, %v5230_v37  ;;  %7284 = vmatmul.msk.f32.vlgmr.msrb.gmra.mxu2 %vm245_vm1, %v5369_v50  ;;  %v5502_v19 = vpop.permute.xlu2 %5501 }
0x34da   :  { %v5239_v14 = vsel %vm5236_vm10, %v5238_v13, %v5234_v59  ;;  %7309 = vmatpush.xpose.msk.msrb.mxu2 %vm245_vm1, %v8379_v25 }
0x34db   :  { %v5240_v33 = vmul.f32 %v7639_v58, %v5239_v14 }
0x34dd   :  { %7271 = vmatmul.msk.f32.vlgmr.msra.gmra.mxu3 %vm245_vm1, %v5240_v33 }
0x34de   :  { %7285 = vmatpush.xpose.msk.msra.mxu3 %vm245_vm1, %v5504_v40 }
0x34e1   :  { %7292 = vmatmul.msk.f32.vlgmr.msra.gmra.mxu2 %vm245_vm1, %v5609_v27 }
0x34e5   :  { %7279 = vmatmul.msk.f32.vlgmr.msrb.gmra.mxu3 %vm245_vm1, %v5373_v18 }
0x34ed   :  { %7286 = vmatmul.msk.f32.vlgmr.msra.gmra.mxu3 %vm245_vm1, %v5502_v19 }
0x355c   :  { %v8967_v34 = vpop.f32.mrf.mxu2 }
0x3560   :  { %v5264_v17 = vpop.f32.mrf.mxu3 }
0x3561   :  { %7272 = vmatmul.msk.f32.vlgmr.msra.gmra.mxu0 %vm245_vm1, %v5264_v17 }
0x3564   :  { %v5633_v36 = vpop.f32.mrf.mxu2 }
0x3565   :  { %v7293_v57 = vclamps-f32 %v5633_v36, 10000.0 }
0x3567   :  { %v5638_v3 = vmul.f32 %v8869_v22, %v7293_v57 }
0x3568   :  { %v5397_v38 = vpop.f32.mrf.mxu3 }
0x3569   :  { %v7294_v51 = vclamps-f32 %v5638_v3, 10000.0  ;;  %v7280_v39 = vclamps-f32 %v5397_v38, 10000.0 }
0x356b   :  { %v5402_v21 = vmul.f32 %v8869_v22, %v7280_v39  ;;  %v5641_v16 = vsel %vm245_vm1, %v7294_v51, -inf }
0x356c   :  { %5642 = vmax.xlane.f32.xlu1 %v5641_v16 }
0x356d   :  { %v7281_v29 = vclamps-f32 %v5402_v21, 10000.0 }
0x356f   :  { %v5405_v56 = vsel %vm245_vm1, %v7281_v29, -inf }
0x3570   :  { %v5526_v32 = vpop.f32.mrf.mxu3  ;;  %5406 = vmax.xlane.f32.xlu0 %v5405_v56 }
0x3571   :  { %v7287_v61 = vclamps-f32 %v5526_v32, 10000.0 }
0x3573   :  { %v5531_v7 = vmul.f32 %v8869_v22, %v7287_v61 }
0x3575   :  { %v7288_v44 = vclamps-f32 %v5531_v7, 10000.0 }
0x3577   :  { %v5534_v30 = vsel %vm245_vm1, %v7288_v44, -inf }
0x3578   :  { %5535 = vmax.xlane.f32.xlu2 %v5534_v30 }
0x35de   :  { %v5287_v2 = vpop.f32.mrf.mxu0 }
0x35df   :  { %v5643_v45 = vpop.xlane.xlu1 %5642  ;;  %v5290_v20 = vadd.f32 %v5287_v2, %v8938_v31 }
0x35e0   :  { %v5644_v46 = vsub.f32 %v7294_v51, %v5643_v45 }
0x35e1   :  { %v8990_v5 = vadd.f32 %v5290_v20, %v8819_v52 }
0x35e2   :  { %v5645_v47 = vmul.f32 1.442695, %v5644_v46 }
0x35e3   :  { %v5407_v48 = vpop.xlane.xlu0 %5406  ;;  %v5721_v58 = vsel %vm172_vm0, %v8990_v5, 0.0 }
0x35e4   :  { %7642 = vpow2.f32 %v5645_v47  ;;  %v5408_v43 = vsub.f32 %v7281_v29, %v5407_v48 }
0x35e6   :  { %v5409_v49 = vmul.f32 1.442695, %v5408_v43 }
0x35e8   :  { %7644 = vpow2.f32 %v5409_v49 }
0x35ea   :  { %v7643_v55 = vpop.eup %7642 }
0x35eb   :  { %v5536_v23 = vpop.xlane.xlu2 %5535  ;;  %v5647_v62 = vsel %vm245_vm1, %v7643_v55, 0.0 }
0x35ec   :  { %v5537_v54 = vsub.f32 %v7288_v44, %v5536_v23  ;;  %5648 = vadd.xlane.f32.xlu0 %v5647_v62  ;;  %v7302_v23 = vld [vmem:[%s8549_s4 + $0x38] sm:$0xff]  ;;  %v7301_v62 = vld [vmem:[%s8549_s4 + $0x30] sm:$0xff] }
0x35ee   :  { %v7645_v1 = vpop.eup %7644  ;;  %v5538_v22 = vmul.f32 1.442695, %v5537_v54  ;;  %v7300_v54 = vld [vmem:[%s8549_s4 + $0x28] sm:$0xff] }
0x35ef   :  { %v5411_v41 = vsel %vm245_vm1, %v7645_v1, 0.0 }
0x35f0   :  { %7646 = vpow2.f32 %v5538_v22  ;;  %5412 = vadd.xlane.f32.xlu2 %v5411_v41 }
0x35f6   :  { %v8978_v6 = vpop.eup %7646 }
0x35f7   :  { %v5540_v53 = vsel %vm245_vm1, %v8978_v6, 0.0 }
0x35f8   :  { %5541 = vadd.xlane.f32.xlu1 %v5540_v53 }
0x3600   :  { %5665 = vrot.lane.b32.xlu0 %v8912_v35, %s9243_s8 }
0x3608   :  { %5429 = vrot.lane.b32.xlu2 %v8912_v35, %s7712_s1 }
0x3611   :  { %5558 = vrot.lane.b32.xlu1 %v8912_v35, %s7709_s25 }
0x362a   :  { %5722 = vadd.xlane.f32.xlu0 %v5721_v58 }
0x365f   :  { %v5649_v28 = vpop.xlane.xlu0 %5648 }
0x3660   :  { %7648 = vrcp.f32 %v5649_v28  ;;  %v5659_v27 = vand.u32 2147483647, %v5649_v28  ;;  %v5661_v35 = vand.u32 2147483648, %v5649_v28  ;;  %vm5655_vm12 = vweird.f32 %v5649_v28 }
0x3662   :  { %vm5660_vm14 = vcmp.eq.f32.partialorder %v5659_v27, 8.507059e+37  ;;  %v5662_v37 = vor.u32 1.1754944e-38, %v5661_v35 }
0x3663   :  { %v5413_v63 = vpop.xlane.xlu2 %5412 }
0x3664   :  { %7650 = vrcp.f32 %v5413_v63  ;;  %v5425_v13 = vand.u32 2147483648, %v5413_v63  ;;  %v5423_v14 = vand.u32 2147483647, %v5413_v63  ;;  %vm5419_vm2 = vweird.f32 %v5413_v63 }
0x3666   :  { %v7649_v4 = vpop.eup %7648  ;;  %v5426_v17 = vor.u32 1.1754944e-38, %v5425_v13  ;;  %vm5424_vm4 = vcmp.eq.f32.partialorder %v5423_v14, 8.507059e+37 }
0x3667   :  { %v5651_v26 = vmul.f32 %v7649_v4, %v5649_v28  ;;  %vm5656_vm11 = vweird.f32 %v7649_v4 }
0x3668   :  { %vm5657_vm13 = vmor %vm5655_vm12, %vm5656_vm11 }
0x3669   :  { %v5652_v12 = vsub.f32 1.0, %v5651_v26 }
0x366a   :  { %v7651_v0 = vpop.eup %7650 }
0x366b   :  { %v5653_v8 = vmul.f32 %v7649_v4, %v5652_v12  ;;  %v5415_v31 = vmul.f32 %v7651_v0, %v5413_v63  ;;  %v5430_v9 = vpop.permute.xlu2 %5429  ;;  %v5542_v52 = vpop.xlane.xlu1 %5541  ;;  %vm5420_vm15 = vweird.f32 %v7651_v0  ;;  %v7456_v12 = vld [vmem:[%s8537_s22 + $0x1] ss:$0 sm:$0xff]  ;;  %s9231_s22 = sld [smem:[%s9240_s0 + %s7746_s24]]  }
0x366c   :  { %7652 = vrcp.f32 %v5542_v52  ;;  %5450 = vmatpush.msrb.mxu0 %v5430_v9  ;;  %vm5421_vm3 = vmor %vm5419_vm2, %vm5420_vm15  ;;  %v5554_v29 = vand.u32 2147483648, %v5542_v52  ;;  %vm5548_vm6 = vweird.f32 %v5542_v52  ;;  %v5552_v56 = vand.u32 2147483647, %v5542_v52 }
0x366d   :  { %v5654_v10 = vadd.f32 %v7649_v4, %v5653_v8  ;;  %v5416_v11 = vsub.f32 1.0, %v5415_v31 }
0x366e   :  { %v5555_v61 = vor.u32 1.1754944e-38, %v5554_v29  ;;  %vm5553_vm8 = vcmp.eq.f32.partialorder %v5552_v56, 8.507059e+37 }
0x366f   :  { %v5658_v50 = vsel %vm5657_vm13, %v7649_v4, %v5654_v10  ;;  %v5417_v59 = vmul.f32 %v7651_v0, %v5416_v11  ;;  %v7455_v4 = vld [vmem:[%s8531_s12 + $0x1] ss:$0 sm:$0xff] }
0x3670   :  { %v5663_v33 = vsel %vm5660_vm14, %v5662_v37, %v5658_v50 }
0x3671   :  { %v5664_v40 = vmul.f32 %v7643_v55, %v5663_v33  ;;  %v5418_v18 = vadd.f32 %v7651_v0, %v5417_v59 }
0x3672   :  { %v7653_v19 = vpop.eup %7652  ;;  %v5666_v36 = vpop.permute.xlu0 %5665 }
0x3673   :  { %v5422_v57 = vsel %vm5421_vm3, %v7651_v0, %v5418_v18  ;;  %v5544_v3 = vmul.f32 %v7653_v19, %v5542_v52  ;;  %5686 = vmatpush.msrb.mxu3 %v5666_v36  ;;  %vm5549_vm5 = vweird.f32 %v7653_v19 }
0x3674   :  { %v5427_v38 = vsel %vm5424_vm4, %v5426_v17, %v5422_v57  ;;  %7295 = vmatmul.msk.f32.vlgmr.msrb.gmra.mxu3 %vm245_vm1, %v5664_v40  ;;  %vm5550_vm7 = vmor %vm5548_vm6, %vm5549_vm5 }
0x3675   :  { %v5428_v51 = vmul.f32 %v7645_v1, %v5427_v38  ;;  %v5545_v39 = vsub.f32 1.0, %v5544_v3  ;;  %v7299_v1 = vld [vmem:[%s8549_s4 + $0x20] sm:$0xff] }
0x3677   :  { %v5546_v21 = vmul.f32 %v7653_v19, %v5545_v39  ;;  %7282 = vmatmul.msk.f32.vlgmr.msrb.gmra.mxu0 %vm245_vm1, %v5428_v51 }
0x3679   :  { %v5547_v16 = vadd.f32 %v7653_v19, %v5546_v21 }
0x367b   :  { %v5551_v32 = vsel %vm5550_vm7, %v7653_v19, %v5547_v16 }
0x367c   :  { %v5556_v7 = vsel %vm5553_vm8, %v5555_v61, %v5551_v32 }
0x367d   :  { %v5557_v44 = vmul.f32 %v8978_v6, %v5556_v7 }
0x3683   :  { %v5559_v30 = vpop.permute.xlu1 %5558 }
0x3684   :  { %5579 = vmatpush.msra.mxu0 %v5559_v30 }
0x3685   :  { %7289 = vmatmul.msk.f32.vlgmr.msra.gmra.mxu0 %vm245_vm1, %v5557_v44 }
0x3686   :  { %5709 = vmatpush.msrb.mxu0 %v8964_v24 }
0x369d   :  { %v5723_v45 = vpop.xlane.xlu0 %5722 }
0x369e   :  { %v5727_v46 = vmul.f32 %v5723_v45, %v7954_v15  ;;  %v9038_v45 = vld [vmem:[%s8585_s30] sm:$0xff] }
0x36a0   :  { %v5729_v47 = vsub.f32 %v8990_v5, %v5727_v46 }
0x36a2   :  { %v5731_v48 = vmul.f32 %v5729_v47, %v5729_v47 }
0x36a4   :  { %v5733_v43 = vsel %vm172_vm0, %v5731_v48, 0.0 }
0x36a5   :  { %5734 = vadd.xlane.f32.xlu2 %v5733_v43 }
0x36bd   :  { %5899 = vrot.lane.b32.xlu2 %v8379_v25, %s7707_s20 }
0x36f4   :  { %v5452_v49 = vpop.f32.mrf.mxu0 }
0x36f5   :  { %7283 = vmatmul.msk.f32.vlgmr.msrb.gmra.mxu1 %vm245_vm1, %v5452_v49 }
0x36f6   :  { %5803 = vmatpush.msrb.mxu1 %v7302_v23 }
0x36f7   :  { %v5688_v55 = vpop.f32.mrf.mxu3 }
0x36f8   :  { %7296 = vmatmul.msk.f32.vlgmr.msrb.gmra.mxu0 %vm245_vm1, %v5688_v55  ;;  %5804 = vmatpush.msrb.mxu1 %v7301_v62 }
0x36fa   :  { %5805 = vmatpush.msrb.mxu1 %v7300_v54 }
0x36fc   :  { %5806 = vmatpush.msrb.mxu1 %v7299_v1 }
0x3702   :  { %v5581_v24 = vpop.f32.mrf.mxu0 }
0x3703   :  { %7290 = vmatmul.msk.f32.vlgmr.msra.gmra.mxu1 %vm245_vm1, %v5581_v24 }
0x3718   :  { %v5735_v22 = vpop.xlane.xlu2 %5734 }
0x3719   :  { %v5739_v41 = vmul.f32 %v5735_v22, %v7954_v15 }
0x371b   :  { %v5741_v6 = vadd.f32 1e-05, %v5739_v41 }
0x371d   :  { %7654 = vrsqrt.f32 %v5741_v6  ;;  %vm5749_vm10 = vweird.f32 %v5741_v6 }
0x3720   :  { %v5900_v53 = vpop.permute.xlu2 %5899 }
0x3721   :  { %7314 = vmatpush.xpose.msk.msra.mxu0 %vm245_vm1, %v5900_v53  ;;  %v9055_v53 = vld [vmem:[%s8617_s5 + $0x20] sm:$0xff] }
0x3723   :  { %v7655_v2 = vpop.eup %7654 }
0x3724   :  { %v5744_v20 = vmul.f32 %v7655_v2, %v5741_v6  ;;  %vm5750_vm9 = vweird.f32 %v7655_v2 }
0x3725   :  { %vm5751_vm11 = vmor %vm5749_vm10, %vm5750_vm9  ;;  %6021 = vmatpush.msrb.mxu0 %v9055_v53 }
0x3726   :  { %v5745_v5 = vmul.f32 %v7655_v2, %v5744_v20 }
0x3728   :  { %v5746_v58 = vmul.f32 0.5, %v5745_v5 }
0x372a   :  { %v5747_v28 = vsub.f32 1.5, %v5746_v58 }
0x372c   :  { %v5748_v63 = vmul.f32 %v7655_v2, %v5747_v28 }
0x372e   :  { %v5752_v26 = vsel %vm5751_vm11, %v7655_v2, %v5748_v63 }
0x372f   :  { %v5763_v0 = vmul.f32 %v5752_v26, %v5729_v47 }
0x3731   :  { %v5768_v27 = vmul.f32 %v7455_v4, %v5763_v0 }
0x3733   :  { %v9015_v35 = vadd.f32 %v7456_v12, %v5768_v27 }
0x3735   :  { %7307 = vmatmul.msk.f32.vlgmr.msrb.gmra.mxu1 %vm172_vm0, %v9015_v35 }
0x3772   :  { %v5475_v8 = vpop.f32.mrf.mxu1 }
0x3773   :  { %v5499_v31 = vadd.f32 %v8967_v34, %v5475_v8 }
0x3775   :  { %v5711_v10 = vpop.f32.mrf.mxu0 }
0x3780   :  { %v5604_v9 = vpop.f32.mrf.mxu1 }
0x3781   :  { %v5607_v52 = vadd.f32 %v5604_v9, %v5499_v31 }
0x3783   :  { %v5714_v11 = vadd.f32 %v5711_v10, %v5607_v52 }
0x3785   :  { %v5716_v37 = vadd.f32 %v5714_v11, %v8857_v60 }
0x3787   :  { %v5724_v13 = vsel %vm172_vm0, %v5716_v37, 0.0 }
0x3788   :  { %5725 = vadd.xlane.f32.xlu1 %v5724_v13 }
0x37b2   :  { %v5808_v50 = vpop.f32.mrf.mxu1 }
0x37b3   :  { %v5814_v59 = vmul.f32 0.17677669, %v5808_v50 }
0x37b5   :  { %6026 = vrot.lane.b32.xlu2 %v5814_v59, %s7705_s15  ;;  %5897 = vrot.lane.b32.xlu1 %v5814_v59, %s7707_s20 }
0x37b6   :  { %7310 = vmatmul.msk.f32.vlgmr.msrb.gmra.mxu2 %vm245_vm1, %v5814_v59 }
0x37fb   :  { %v5726_v14 = vpop.xlane.xlu1 %5725 }
0x37fc   :  { %v5728_v34 = vmul.f32 %v5726_v14, %v7954_v15 }
0x37fe   :  { %v5730_v33 = vsub.f32 %v5716_v37, %v5728_v34 }
0x3800   :  { %v5732_v40 = vmul.f32 %v5730_v33, %v5730_v33 }
0x3802   :  { %v5736_v18 = vsel %vm172_vm0, %v5732_v40, 0.0 }
0x3803   :  { %5737 = vadd.xlane.f32.xlu0 %v5736_v18 }
0x380f   :  { %v6027_v7 = vpop.permute.xlu2 %6026 }
0x3817   :  { %6028 = vrot.lane.b32.xlu0 %v8379_v25, %s7705_s15 }
0x3827   :  { %v5898_v60 = vpop.permute.xlu1 %5897 }
0x3828   :  { %7315 = vmatmul.msk.f32.vlgmr.msra.gmra.mxu0 %vm245_vm1, %v5898_v60 }
0x3839   :  { %v5839_v58 = vpop.f32.mrf.mxu2 }
0x383a   :  { %v7311_v28 = vclamps-f32 %v5839_v58, 10000.0 }
0x3876   :  { %v5738_v19 = vpop.xlane.xlu0 %5737 }
0x3877   :  { %v5740_v17 = vmul.f32 %v5738_v19, %v7954_v15 }
0x3879   :  { %v5742_v36 = vadd.f32 1e-05, %v5740_v17 }
0x387b   :  { %7656 = vrsqrt.f32 %v5742_v36  ;;  %vm5759_vm13 = vweird.f32 %v5742_v36 }
0x3881   :  { %v7657_v57 = vpop.eup %7656 }
0x3882   :  { %v5754_v3 = vmul.f32 %v7657_v57, %v5742_v36  ;;  %vm5760_vm12 = vweird.f32 %v7657_v57 }
0x3883   :  { %vm5761_vm14 = vmor %vm5759_vm13, %vm5760_vm12 }
0x3884   :  { %v5755_v38 = vmul.f32 %v7657_v57, %v5754_v3 }
0x3886   :  { %v5756_v51 = vmul.f32 0.5, %v5755_v38 }
0x3888   :  { %v5757_v39 = vsub.f32 1.5, %v5756_v51 }
0x3889   :  { %v6029_v21 = vpop.permute.xlu0 %6028 }
0x388a   :  { %v5758_v16 = vmul.f32 %v7657_v57, %v5757_v39  ;;  %7321 = vmatpush.xpose.msk.msra.mxu1 %vm245_vm1, %v6029_v21 }
0x388c   :  { %v5762_v29 = vsel %vm5761_vm14, %v7657_v57, %v5758_v16 }
0x388d   :  { %v5764_v56 = vmul.f32 %v5762_v29, %v5730_v33 }
0x388f   :  { %v5769_v32 = vmul.f32 %v7455_v4, %v5764_v56  ;;  %v5844_v4 = vmul.f32 %v9038_v45, %v7311_v28 }
0x3891   :  { %v9032_v61 = vadd.f32 %v7456_v12, %v5769_v32  ;;  %v7312_v0 = vclamps-f32 %v5844_v4, 10000.0 }
0x3893   :  { %7308 = vmatmul.msk.f32.gmra.mxu1 %vm172_vm0, %v9032_v61  ;;  %v5847_v8 = vsel %vm245_vm1, %v7312_v0, -inf }
0x389b   :  { %7322 = vmatmul.msk.f32.vlgmr.msra.gmra.mxu1 %vm245_vm1, %v6027_v7 }
0x38a5   :  { %v5922_v44 = vpop.f32.mrf.mxu0 }
0x38a6   :  { %v7316_v30 = vclamps-f32 %v5922_v44, 10000.0 }
0x38a8   :  { %v5927_v46 = vmul.f32 %v9038_v45, %v7316_v30 }
0x38aa   :  { %v7317_v47 = vclamps-f32 %v5927_v46, 10000.0 }
0x38ac   :  { %v5930_v48 = vsel %vm245_vm1, %v7317_v47, -inf }
0x38ad   :  { %5931 = vmax.xlane.f32.xlu0 %v5930_v48 }
0x3910   :  { %v9042_v43 = vpop.f32.mrf.mxu1 }
0x3911   :  { %v9077_v58 = vmul.f32 0.17677669, %v9042_v43 }
0x3918   :  { %v6051_v49 = vpop.f32.mrf.mxu1 }
0x3919   :  { %v7323_v55 = vclamps-f32 %v6051_v49, 10000.0 }
0x391b   :  { %v6056_v24 = vmul.f32 %v9038_v45, %v7323_v55 }
0x391d   :  { %v7324_v23 = vclamps-f32 %v6056_v24, 10000.0 }
0x391f   :  { %v6059_v62 = vsel %vm245_vm1, %v7324_v23, -inf }
0x3920   :  { %6060 = vmax.xlane.f32.xlu1 %v6059_v62  ;;  %v5932_v54 = vpop.xlane.xlu0 %5931 }
0x3921   :  { %v5933_v1 = vsub.f32 %v7317_v47, %v5932_v54 }
0x3923   :  { %v5934_v22 = vmul.f32 1.442695, %v5933_v1 }
0x3925   :  { %7658 = vpow2.f32 %v5934_v22 }
0x392b   :  { %v7659_v41 = vpop.eup %7658 }
0x392c   :  { %v5936_v6 = vsel %vm245_vm1, %v7659_v41, 0.0 }
0x392d   :  { %5937 = vadd.xlane.f32.xlu2 %v5936_v6  ;;  %v7304_v6 = vld [vmem:[%s8617_s5 + $0x28] sm:$0xff] }
0x3939   :  { %5954 = vrot.lane.b32.xlu1 %v8379_v25, %s7712_s1 }
0x3941   :  { %6135 = vrot.lane.b32.xlu1 %v8379_v25, %s7710_s26 }
0x3945   :  { %6083 = vrot.lane.b32.xlu2 %v8379_v25, %s7709_s25 }
0x394d   :  { %6133 = vrot.lane.b32.xlu2 %v5814_v59, %s7710_s26 }
0x3993   :  { %v6061_v2 = vpop.xlane.xlu1 %6060 }
0x3994   :  { %v6062_v20 = vsub.f32 %v7324_v23, %v6061_v2  ;;  %v7305_v2 = vld [vmem:[%s8617_s5 + $0x30] sm:$0xff] }
0x3996   :  { %v6063_v5 = vmul.f32 1.442695, %v6062_v20 }
0x3998   :  { %7660 = vpow2.f32 %v6063_v5 }
0x399e   :  { %v7661_v63 = vpop.eup %7660 }
0x399f   :  { %v6065_v26 = vsel %vm245_vm1, %v7661_v63, 0.0 }
0x39a0   :  { %6066 = vadd.xlane.f32.xlu0 %v6065_v26  ;;  %v5938_v12 = vpop.xlane.xlu2 %5937 }
0x39a1   :  { %7662 = vrcp.f32 %v5938_v12  ;;  %v5950_v52 = vand.u32 2147483648, %v5938_v12  ;;  %v5948_v37 = vand.u32 2147483647, %v5938_v12  ;;  %vm5944_vm2 = vweird.f32 %v5938_v12 }
0x39a3   :  { %v5951_v59 = vor.u32 1.1754944e-38, %v5950_v52  ;;  %vm5949_vm4 = vcmp.eq.f32.partialorder %v5948_v37, 8.507059e+37 }
0x39a7   :  { %v7663_v27 = vpop.eup %7662 }
0x39a8   :  { %v5940_v31 = vmul.f32 %v7663_v27, %v5938_v12  ;;  %5848 = vmax.xlane.f32.xlu0 %v5847_v8  ;;  %vm5945_vm15 = vweird.f32 %v7663_v27  ;;  %v6084_v13 = vpop.permute.xlu2 %6083 }
0x39a9   :  { %vm5946_vm3 = vmor %vm5944_vm2, %vm5945_vm15 }
0x39aa   :  { %v5941_v9 = vsub.f32 1.0, %v5940_v31 }
0x39ab   :  { %v5955_v10 = vpop.permute.xlu1 %5954 }
0x39ac   :  { %v5942_v11 = vmul.f32 %v7663_v27, %v5941_v9  ;;  %5975 = vmatpush.msra.mxu2 %v5955_v10 }
0x39ae   :  { %6104 = vmatpush.msrb.mxu2 %v6084_v13  ;;  %v5943_v50 = vadd.f32 %v7663_v27, %v5942_v11 }
0x39b0   :  { %v5947_v14 = vsel %vm5946_vm3, %v7663_v27, %v5943_v50  ;;  %v6134_v4 = vpop.permute.xlu2 %6133 }
0x39b1   :  { %v5952_v34 = vsel %vm5949_vm4, %v5951_v59, %v5947_v14 }
0x39b2   :  { %v5953_v33 = vmul.f32 %v7659_v41, %v5952_v34 }
0x39b3   :  { %v6136_v40 = vpop.permute.xlu1 %6135 }
0x39b4   :  { %7318 = vmatmul.msk.f32.vlgmr.msra.gmra.mxu2 %vm245_vm1, %v5953_v33  ;;  %7327 = vmatpush.xpose.msk.msra.mxu0 %vm245_vm1, %v6136_v40 }
0x3a13   :  { %v6067_v18 = vpop.xlane.xlu0 %6066 }
0x3a14   :  { %7664 = vrcp.f32 %v6067_v18  ;;  %v6079_v3 = vand.u32 2147483648, %v6067_v18  ;;  %v6077_v39 = vand.u32 2147483647, %v6067_v18  ;;  %vm6073_vm6 = vweird.f32 %v6067_v18 }
0x3a16   :  { %v6080_v16 = vor.u32 1.1754944e-38, %v6079_v3  ;;  %vm6078_vm8 = vcmp.eq.f32.partialorder %v6077_v39, 8.507059e+37 }
0x3a1a   :  { %v7665_v60 = vpop.eup %7664 }
0x3a1b   :  { %v6069_v19 = vmul.f32 %v7665_v60, %v6067_v18  ;;  %v5849_v17 = vpop.xlane.xlu0 %5848  ;;  %vm6074_vm5 = vweird.f32 %v7665_v60 }
0x3a1c   :  { %v5850_v36 = vsub.f32 %v7312_v0, %v5849_v17  ;;  %vm6075_vm7 = vmor %vm6073_vm6, %vm6074_vm5 }
0x3a1d   :  { %v6070_v57 = vsub.f32 1.0, %v6069_v19 }
0x3a1e   :  { %v5851_v38 = vmul.f32 1.442695, %v5850_v36 }
0x3a1f   :  { %v6071_v51 = vmul.f32 %v7665_v60, %v6070_v57 }
0x3a20   :  { %7666 = vpow2.f32 %v5851_v38 }
0x3a21   :  { %v6072_v21 = vadd.f32 %v7665_v60, %v6071_v51 }
0x3a23   :  { %v6076_v29 = vsel %vm6075_vm7, %v7665_v60, %v6072_v21 }
0x3a24   :  { %v6081_v56 = vsel %vm6078_vm8, %v6080_v16, %v6076_v29 }
0x3a25   :  { %v6082_v32 = vmul.f32 %v7661_v63, %v6081_v56 }
0x3a26   :  { %v7667_v7 = vpop.eup %7666 }
0x3a27   :  { %7325 = vmatmul.msk.f32.vlgmr.msrb.gmra.mxu2 %vm245_vm1, %v6082_v32  ;;  %v5853_v44 = vsel %vm245_vm1, %v7667_v7, 0.0 }
0x3a28   :  { %5854 = vadd.xlane.f32.xlu0 %v5853_v44 }
0x3a37   :  { %v5977_v20 = vpop.f32.mrf.mxu2 }
0x3a3c   :  { %5871 = vrot.lane.b32.xlu0 %v8379_v25, %s7703_s10 }
0x3a44   :  { %6295 = vrot.lane.b32.xlu0 %v8381_v42, %s7703_s10  ;;  %s7744_s10 = smov 35  }
0x3a9b   :  { %v5855_v30 = vpop.xlane.xlu0 %5854 }
0x3a9c   :  { %7668 = vrcp.f32 %v5855_v30  ;;  %v5867_v49 = vand.u32 2147483648, %v5855_v30  ;;  %v5865_v24 = vand.u32 2147483647, %v5855_v30  ;;  %vm5861_vm10 = vweird.f32 %v5855_v30 }
0x3a9e   :  { %v5868_v62 = vor.u32 1.1754944e-38, %v5867_v49  ;;  %vm5866_vm12 = vcmp.eq.f32.partialorder %v5865_v24, 8.507059e+37 }
0x3aa2   :  { %v7669_v46 = vpop.eup %7668 }
0x3aa3   :  { %v5857_v47 = vmul.f32 %v7669_v46, %v5855_v30  ;;  %vm5862_vm9 = vweird.f32 %v7669_v46 }
0x3aa4   :  { %vm5863_vm11 = vmor %vm5861_vm10, %vm5862_vm9 }
0x3aa5   :  { %v5858_v48 = vsub.f32 1.0, %v5857_v47 }
0x3aa7   :  { %v5859_v55 = vmul.f32 %v7669_v46, %v5858_v48 }
0x3aa9   :  { %v5860_v23 = vadd.f32 %v7669_v46, %v5859_v55 }
0x3aaa   :  { %v6106_v5 = vpop.f32.mrf.mxu2 }
0x3aab   :  { %v5864_v54 = vsel %vm5863_vm11, %v7669_v46, %v5860_v23 }
0x3aac   :  { %v5869_v1 = vsel %vm5866_vm12, %v5868_v62, %v5864_v54 }
0x3aad   :  { %v5870_v22 = vmul.f32 %v7667_v7, %v5869_v1 }
0x3aae   :  { %v5872_v41 = vpop.permute.xlu0 %5871 }
0x3aaf   :  { %5892 = vmatpush.msra.mxu3 %v5872_v41 }
0x3ab0   :  { %7313 = vmatmul.msk.f32.vlgmr.msra.gmra.mxu3 %vm245_vm1, %v5870_v22 }
0x3ab1   :  { %5998 = vmatpush.msrb.mxu3 %v7304_v6 }
0x3ab3   :  { %6127 = vmatpush.msra.mxu3 %v7305_v2 }
0x3ab6   :  { %v6296_v63 = vpop.permute.xlu0 %6295 }
0x3ab8   :  { %7319 = vmatmul.msk.f32.vlgmr.msrb.gmra.mxu3 %vm245_vm1, %v5977_v20 }
0x3ab9   :  { %7333 = vmatpush.xpose.msk.msrb.mxu3 %vm245_vm1, %v8381_v42 }
0x3ac0   :  { %7326 = vmatmul.msk.f32.vlgmr.msra.gmra.mxu3 %vm245_vm1, %v6106_v5 }
0x3ac1   :  { %6422 = vmatpush.msra.mxu3 %v7304_v6 }
0x3ac8   :  { %7334 = vmatmul.msk.f32.vlgmr.msrb.gmra.mxu3 %vm245_vm1, %v9077_v58 }
0x3ac9   :  { %6551 = vmatpush.msrb.mxu3 %v7305_v2 }
0x3b33   :  { %v5894_v28 = vpop.f32.mrf.mxu3 }
0x3b34   :  { %7320 = vmatmul.msk.f32.vlgmr.msrb.gmra.mxu0 %vm245_vm1, %v5894_v28 }
0x3b35   :  { %6316 = vmatpush.msrb.mxu0 %v6296_v63 }
0x3b3b   :  { %v9082_v26 = vpop.f32.mrf.mxu3 }
0x3b3c   :  { %7328 = vmatmul.msk.f32.vlgmr.msra.gmra.mxu0 %vm245_vm1, %v6134_v4 }
0x3b3d   :  { %6445 = vmatpush.msra.mxu0 %v9055_v53 }
0x3b43   :  { %v9086_v12 = vpop.f32.mrf.mxu3 }
0x3b4b   :  { %v6263_v43 = vpop.f32.mrf.mxu3 }
0x3b4c   :  { %v7335_v0 = vclamps-f32 %v6263_v43, 10000.0 }
0x3b4e   :  { %v6268_v27 = vmul.f32 %v9038_v45, %v7335_v0 }
0x3b50   :  { %v7336_v8 = vclamps-f32 %v6268_v27, 10000.0 }
0x3b52   :  { %v6271_v31 = vsel %vm245_vm1, %v7336_v8, -inf }
0x3b53   :  { %6272 = vmax.xlane.f32.xlu1 %v6271_v31 }
0x3bb1   :  { %v9090_v9 = vpop.f32.mrf.mxu0 }
0x3bb9   :  { %v6158_v52 = vpop.f32.mrf.mxu0 }
0x3bba   :  { %v7329_v10 = vclamps-f32 %v6158_v52, 10000.0 }
0x3bbc   :  { %v6163_v11 = vmul.f32 %v9038_v45, %v7329_v10 }
0x3bbe   :  { %v7330_v37 = vclamps-f32 %v6163_v11, 10000.0 }
0x3bc0   :  { %v6166_v13 = vsel %vm245_vm1, %v7330_v37, -inf }
0x3bc1   :  { %6167 = vmax.xlane.f32.xlu0 %v6166_v13 }
0x3bc6   :  { %v6273_v53 = vpop.xlane.xlu1 %6272 }
0x3bc7   :  { %v6274_v50 = vsub.f32 %v7336_v8, %v6273_v53 }
0x3bc9   :  { %v6275_v59 = vmul.f32 1.442695, %v6274_v50 }
0x3bcb   :  { %7670 = vpow2.f32 %v6275_v59 }
0x3bd1   :  { %v7671_v14 = vpop.eup %7670 }
0x3bd2   :  { %v6277_v34 = vsel %vm245_vm1, %v7671_v14, 0.0 }
0x3bd3   :  { %6278 = vadd.xlane.f32.xlu2 %v6277_v34 }
0x3bd5   :  { %6321 = vrot.lane.b32.xlu0 %v9077_v58, %s7707_s20 }
0x3bdd   :  { %6557 = vrot.lane.b32.xlu0 %v9077_v58, %s7710_s26 }
0x3beb   :  { %6190 = vrot.lane.b32.xlu2 %v8379_v25, %s9243_s8 }
0x3bf3   :  { %6452 = vrot.lane.b32.xlu2 %v8381_v42, %s7705_s15 }
0x3bfb   :  { %6559 = vrot.lane.b32.xlu2 %v8381_v42, %s7710_s26  ;;  %s7745_s26 = smov 36  }
0x3bfc   :  { %s9220_s6 = sld [smem:[%s9240_s0 + %s7745_s26]]  }
0x3c34   :  { %v6168_v33 = vpop.xlane.xlu0 %6167 }
0x3c35   :  { %v6169_v40 = vsub.f32 %v7330_v37, %v6168_v33 }
0x3c37   :  { %v6170_v18 = vmul.f32 1.442695, %v6169_v40 }
0x3c39   :  { %7672 = vpow2.f32 %v6170_v18 }
0x3c3f   :  { %v7673_v60 = vpop.eup %7672 }
0x3c40   :  { %v6172_v19 = vsel %vm245_vm1, %v7673_v60, 0.0 }
0x3c41   :  { %6173 = vadd.xlane.f32.xlu1 %v6172_v19 }
0x3c46   :  { %v6279_v17 = vpop.xlane.xlu2 %6278 }
0x3c47   :  { %7674 = vrcp.f32 %v6279_v17  ;;  %v6291_v38 = vand.u32 2147483648, %v6279_v17  ;;  %v6289_v39 = vand.u32 2147483647, %v6279_v17  ;;  %vm6285_vm14 = vweird.f32 %v6279_v17  ;;  %v6322_v6 = vpop.permute.xlu0 %6321 }
0x3c49   :  { %v6292_v16 = vor.u32 1.1754944e-38, %v6291_v38  ;;  %vm6290_vm2 = vcmp.eq.f32.partialorder %v6289_v39, 8.507059e+37 }
0x3c4d   :  { %v7675_v36 = vpop.eup %7674 }
0x3c4e   :  { %v6281_v57 = vmul.f32 %v7675_v36, %v6279_v17  ;;  %v6191_v3 = vpop.permute.xlu2 %6190  ;;  %vm6286_vm13 = vweird.f32 %v7675_v36 }
0x3c4f   :  { %6211 = vmatpush.msrb.mxu1 %v6191_v3  ;;  %vm6287_vm15 = vmor %vm6285_vm14, %vm6286_vm13  ;;  %v6558_v5 = vpop.permute.xlu0 %6557 }
0x3c50   :  { %v6282_v25 = vsub.f32 1.0, %v6281_v57 }
0x3c52   :  { %v6283_v51 = vmul.f32 %v7675_v36, %v6282_v25 }
0x3c54   :  { %v6284_v21 = vadd.f32 %v7675_v36, %v6283_v51 }
0x3c56   :  { %v6288_v29 = vsel %vm6287_vm15, %v7675_v36, %v6284_v21  ;;  %v6453_v56 = vpop.permute.xlu2 %6452  ;;  %v6024_v21 = vadd.f32 %v9090_v9, %v9082_v26 }
0x3c57   :  { %v6293_v32 = vsel %vm6290_vm2, %v6292_v16, %v6288_v29 }
0x3c58   :  { %v6294_v7 = vmul.f32 %v7671_v14, %v6293_v32  ;;  %v6132_v29 = vadd.f32 %v9086_v12, %v6024_v21 }
0x3c5a   :  { %7337 = vmatmul.msk.f32.vlgmr.msrb.gmra.mxu0 %vm245_vm1, %v6294_v7  ;;  %6323 = vrot.lane.b32.xlu1 %v8381_v42, %s7707_s20 }
0x3c5e   :  { %v6560_v44 = vpop.permute.xlu2 %6559 }
0x3c5f   :  { %7351 = vmatpush.xpose.msk.msrb.mxu0 %vm245_vm1, %v6560_v44 }
0x3c62   :  { %6450 = vrot.lane.b32.xlu1 %v9077_v58, %s7705_s15  ;;  %v9120_v58 = vld [vmem:[%s8617_s5 + $0x38] sm:$0xff] }
0x3c63   :  { %6234 = vmatpush.msra.mxu2 %v9120_v58 }
0x3cb4   :  { %v6174_v30 = vpop.xlane.xlu1 %6173 }
0x3cb5   :  { %7676 = vrcp.f32 %v6174_v30  ;;  %v6186_v49 = vand.u32 2147483648, %v6174_v30  ;;  %v6184_v24 = vand.u32 2147483647, %v6174_v30  ;;  %vm6180_vm4 = vweird.f32 %v6174_v30 }
0x3cb7   :  { %v6187_v62 = vor.u32 1.1754944e-38, %v6186_v49  ;;  %vm6185_vm6 = vcmp.eq.f32.partialorder %v6184_v24, 8.507059e+37 }
0x3cbb   :  { %v7677_v46 = vpop.eup %7676 }
0x3cbc   :  { %v6176_v47 = vmul.f32 %v7677_v46, %v6174_v30  ;;  %vm6181_vm3 = vweird.f32 %v7677_v46 }
0x3cbd   :  { %vm6182_vm5 = vmor %vm6180_vm4, %vm6181_vm3 }
0x3cbe   :  { %v6177_v48 = vsub.f32 1.0, %v6176_v47 }
0x3cc0   :  { %v6178_v55 = vmul.f32 %v7677_v46, %v6177_v48 }
0x3cc2   :  { %v6179_v23 = vadd.f32 %v7677_v46, %v6178_v55 }
0x3cc4   :  { %v6183_v54 = vsel %vm6182_vm5, %v7677_v46, %v6179_v23 }
0x3cc5   :  { %v6188_v1 = vsel %vm6185_vm6, %v6187_v62, %v6183_v54 }
0x3cc6   :  { %v6189_v22 = vmul.f32 %v7673_v60, %v6188_v1 }
0x3cc8   :  { %7331 = vmatmul.msk.f32.vlgmr.msrb.gmra.mxu1 %vm245_vm1, %v6189_v22 }
0x3ccc   :  { %v6324_v41 = vpop.permute.xlu1 %6323 }
0x3ccd   :  { %7338 = vmatpush.xpose.msk.msra.mxu1 %vm245_vm1, %v6324_v41 }
0x3cd0   :  { %7339 = vmatmul.msk.f32.vlgmr.msra.gmra.mxu1 %vm245_vm1, %v6322_v6 }
0x3cd1   :  { %7345 = vmatpush.xpose.msk.msrb.mxu1 %vm245_vm1, %v6453_v56 }
0x3cd4   :  { %v6451_v2 = vpop.permute.xlu1 %6450 }
0x3cd7   :  { %v6318_v20 = vpop.f32.mrf.mxu0 }
0x3cd8   :  { %7344 = vmatmul.msk.f32.vlgmr.msra.gmra.mxu0 %vm245_vm1, %v6318_v20  ;;  %7346 = vmatmul.msk.f32.vlgmr.msrb.gmra.mxu1 %vm245_vm1, %v6451_v2 }
0x3ce0   :  { %7352 = vmatmul.msk.f32.vlgmr.msrb.gmra.mxu0 %vm245_vm1, %v6558_v5 }
0x3d45   :  { %v6213_v28 = vpop.f32.mrf.mxu1 }
0x3d46   :  { %7332 = vmatmul.msk.f32.vlgmr.msra.gmra.mxu2 %vm245_vm1, %v6213_v28 }
0x3d4d   :  { %v6346_v63 = vpop.f32.mrf.mxu1 }
0x3d4e   :  { %v7340_v4 = vclamps-f32 %v6346_v63, 10000.0 }
0x3d50   :  { %v6351_v43 = vmul.f32 %v9038_v45, %v7340_v4 }
0x3d52   :  { %v7341_v0 = vclamps-f32 %v6351_v43, 10000.0 }
0x3d54   :  { %v6354_v27 = vsel %vm245_vm1, %v7341_v0, -inf }
0x3d55   :  { %v9126_v8 = vpop.f32.mrf.mxu0  ;;  %v6475_v31 = vpop.f32.mrf.mxu1  ;;  %6355 = vmax.xlane.f32.xlu1 %v6354_v27 }
0x3d56   :  { %v7347_v52 = vclamps-f32 %v6475_v31, 10000.0 }
0x3d58   :  { %v6480_v10 = vmul.f32 %v9038_v45, %v7347_v52 }
0x3d5a   :  { %v7348_v11 = vclamps-f32 %v6480_v10, 10000.0 }
0x3d5c   :  { %v6483_v37 = vsel %vm245_vm1, %v7348_v11, -inf }
0x3d5d   :  { %6484 = vmax.xlane.f32.xlu2 %v6483_v37  ;;  %v6582_v13 = vpop.f32.mrf.mxu0 }
0x3d5e   :  { %v7353_v53 = vclamps-f32 %v6582_v13, 10000.0 }
0x3d60   :  { %v6587_v50 = vmul.f32 %v9038_v45, %v7353_v53 }
0x3d62   :  { %v7354_v59 = vclamps-f32 %v6587_v50, 10000.0 }
0x3d64   :  { %v6590_v14 = vsel %vm245_vm1, %v7354_v59, -inf }
0x3d65   :  { %6591 = vmax.xlane.f32.xlu0 %v6590_v14 }
0x3dc8   :  { %v6356_v34 = vpop.xlane.xlu1 %6355 }
0x3dc9   :  { %v6357_v33 = vsub.f32 %v7341_v0, %v6356_v34  ;;  %v6236_v16 = vpop.f32.mrf.mxu2 }
0x3dca   :  { %v6239_v56 = vadd.f32 %v6236_v16, %v6132_v29 }
0x3dcb   :  { %v6358_v40 = vmul.f32 1.442695, %v6357_v33 }
0x3dcc   :  { %v9151_v32 = vadd.f32 %v6239_v56, %v9015_v35 }
0x3dcd   :  { %7678 = vpow2.f32 %v6358_v40 }
0x3dce   :  { %v6670_v7 = vsel %vm172_vm0, %v9151_v32, 0.0 }
0x3dd0   :  { %v6485_v18 = vpop.xlane.xlu2 %6484 }
0x3dd1   :  { %v6486_v60 = vsub.f32 %v7348_v11, %v6485_v18 }
0x3dd3   :  { %v7679_v19 = vpop.eup %7678  ;;  %v6487_v17 = vmul.f32 1.442695, %v6486_v60 }
0x3dd4   :  { %v6360_v36 = vsel %vm245_vm1, %v7679_v19, 0.0 }
0x3dd5   :  { %7680 = vpow2.f32 %v6487_v17  ;;  %6361 = vadd.xlane.f32.xlu2 %v6360_v36  ;;  %v7362_v36 = vld [vmem:[%s8728_s17 + $0x38] sm:$0xff] }
0x3dd8   :  { %v6592_v57 = vpop.xlane.xlu0 %6591 }
0x3dd9   :  { %v6593_v3 = vsub.f32 %v7354_v59, %v6592_v57  ;;  %v7361_v57 = vld [vmem:[%s8728_s17 + $0x30] sm:$0xff] }
0x3ddb   :  { %v9133_v25 = vpop.eup %7680  ;;  %v6594_v45 = vmul.f32 1.442695, %v6593_v3  ;;  %v7360_v3 = vld [vmem:[%s8728_s17 + $0x28] sm:$0xff] }
0x3ddc   :  { %v6489_v38 = vsel %vm245_vm1, %v9133_v25, 0.0 }
0x3ddd   :  { %7682 = vpow2.f32 %v6594_v45  ;;  %6490 = vadd.xlane.f32.xlu1 %v6489_v38 }
0x3de3   :  { %v9137_v51 = vpop.eup %7682 }
0x3de4   :  { %v6596_v39 = vsel %vm245_vm1, %v9137_v51, 0.0 }
0x3de5   :  { %6597 = vadd.xlane.f32.xlu0 %v6596_v39 }
0x3ded   :  { %6378 = vrot.lane.b32.xlu2 %v8381_v42, %s7712_s1 }
0x3df6   :  { %6507 = vrot.lane.b32.xlu1 %v8381_v42, %s7709_s25  ;;  %s6951_s25 = sld [smem:[%s9240_s0 + %s7744_s10]]  }
0x3df9   :  { %6614 = vrot.lane.b32.xlu0 %v8381_v42, %s9243_s8 }
0x3e16   :  { %6671 = vadd.xlane.f32.xlu2 %v6670_v7  ;;  %v9173_v7 = vld [vmem:[%s8691_s18 + $0x1] ss:$0 sm:$0xff] }
0x3e48   :  { %v6362_v44 = vpop.xlane.xlu2 %6361 }
0x3e49   :  { %7684 = vrcp.f32 %v6362_v44  ;;  %v6374_v9 = vand.u32 2147483648, %v6362_v44  ;;  %v6372_v12 = vand.u32 2147483647, %v6362_v44  ;;  %vm6368_vm8 = vweird.f32 %v6362_v44 }
0x3e4b   :  { %v6375_v55 = vor.u32 1.1754944e-38, %v6374_v9  ;;  %vm6373_vm10 = vcmp.eq.f32.partialorder %v6372_v12, 8.507059e+37  ;;  %v7378_v9 = vld [vmem:[%s8717_s13 + $0xf0] sm:$0xff]  ;;  %v7376_v12 = vld [vmem:[%s8717_s13 + $0xe0] sm:$0xff] }
0x3e4f   :  { %v7685_v30 = vpop.eup %7684 }
0x3e50   :  { %v6364_v46 = vmul.f32 %v7685_v30, %v6362_v44  ;;  %v6379_v47 = vpop.permute.xlu2 %6378  ;;  %v6491_v42 = vpop.xlane.xlu1 %6490  ;;  %vm6369_vm7 = vweird.f32 %v7685_v30 }
0x3e51   :  { %7686 = vrcp.f32 %v6491_v42  ;;  %6399 = vmatpush.msrb.mxu2 %v6379_v47  ;;  %vm6370_vm9 = vmor %vm6368_vm8, %vm6369_vm7  ;;  %v6503_v20 = vand.u32 2147483648, %v6491_v42  ;;  %vm6497_vm12 = vweird.f32 %v6491_v42  ;;  %v6501_v5 = vand.u32 2147483647, %v6491_v42 }
0x3e52   :  { %v6365_v26 = vsub.f32 1.0, %v6364_v46 }
0x3e53   :  { %v6504_v43 = vor.u32 1.1754944e-38, %v6503_v20  ;;  %vm6502_vm14 = vcmp.eq.f32.partialorder %v6501_v5, 8.507059e+37 }
0x3e54   :  { %v6366_v48 = vmul.f32 %v7685_v30, %v6365_v26  ;;  %v7379_v26 = vld [vmem:[%s8717_s13 + $0xf8] sm:$0xff] }
0x3e55   :  { %6787 = vmatpush.msra.mxu0 %v7379_v26  ;;  %v6874_v26 = vld [vmem:[%s6951_s25] sm:$0xff] }
0x3e56   :  { %v6367_v49 = vadd.f32 %v7685_v30, %v6366_v48  ;;  %v7377_v48 = vld [vmem:[%s8717_s13 + $0xe8] sm:$0xff] }
0x3e57   :  { %v7687_v35 = vpop.eup %7686  ;;  %6788 = vmatpush.msra.mxu0 %v7378_v9 }
0x3e58   :  { %v6371_v24 = vsel %vm6370_vm9, %v7685_v30, %v6367_v49  ;;  %v6493_v23 = vmul.f32 %v7687_v35, %v6491_v42  ;;  %v6598_v62 = vpop.xlane.xlu0 %6597  ;;  %vm6498_vm11 = vweird.f32 %v7687_v35  ;;  %v9176_v30 = vld [vmem:[%s8696_s9 + $0x1] ss:$0 sm:$0xff]  ;;  %v7375_v49 = vld [vmem:[%s8717_s13 + $0xd8] sm:$0xff] }
0x3e59   :  { %v6376_v54 = vsel %vm6373_vm10, %v6375_v55, %v6371_v24  ;;  %7688 = vrcp.f32 %v6598_v62  ;;  %vm6499_vm13 = vmor %vm6497_vm12, %vm6498_vm11  ;;  %v6610_v0 = vand.u32 2147483648, %v6598_v62  ;;  %v6608_v31 = vand.u32 2147483647, %v6598_v62  ;;  %6789 = vmatpush.msra.mxu0 %v7377_v48  ;;  %v7373_v55 = vld [vmem:[%s8717_s13 + $0xc8] sm:$0xff]  ;;  %v7372_v24 = vld [vmem:[%s8717_s13 + $0xc0] sm:$0xff] }
0x3e5a   :  { %v6377_v1 = vmul.f32 %v7679_v19, %v6376_v54  ;;  %v6494_v22 = vsub.f32 1.0, %v6493_v23  ;;  %vm6604_vm2 = vweird.f32 %v6598_v62  ;;  %v7371_v23 = vld [vmem:[%s8717_s13 + $0xb8] sm:$0xff]  ;;  %v7370_v54 = vld [vmem:[%s8717_s13 + $0xb0] sm:$0xff] }
0x3e5b   :  { %v6611_v11 = vor.u32 1.1754944e-38, %v6610_v0  ;;  %vm6609_vm4 = vcmp.eq.f32.partialorder %v6608_v31, 8.507059e+37  ;;  %6790 = vmatpush.msra.mxu0 %v7376_v12  ;;  %v7365_v0 = vld [vmem:[%s8717_s13 + $0x88] sm:$0xff] }
0x3e5c   :  { %v6495_v41 = vmul.f32 %v7687_v35, %v6494_v22  ;;  %7342 = vmatmul.msk.f32.vlgmr.msrb.gmra.mxu2 %vm245_vm1, %v6377_v1  ;;  %v7369_v1 = vld [vmem:[%s8717_s13 + $0xa8] sm:$0xff]  ;;  %v7368_v22 = vld [vmem:[%s8717_s13 + $0xa0] sm:$0xff] }
0x3e5d   :  { %6791 = vmatpush.msra.mxu0 %v7375_v49 }
0x3e5e   :  { %v6496_v6 = vadd.f32 %v7687_v35, %v6495_v41  ;;  %v7367_v41 = vld [vmem:[%s8717_s13 + $0x98] sm:$0xff] }
0x3e5f   :  { %v7689_v2 = vpop.eup %7688 }
0x3e60   :  { %v6600_v28 = vmul.f32 %v7689_v2, %v6598_v62  ;;  %v6500_v63 = vsel %vm6499_vm13, %v7687_v35, %v6496_v6  ;;  %vm6605_vm15 = vweird.f32 %v7689_v2  ;;  %v7374_v35 = vld [vmem:[%s8717_s13 + $0xd0] sm:$0xff] }
0x3e61   :  { %v6505_v52 = vsel %vm6502_vm14, %v6504_v43, %v6500_v63  ;;  %vm6606_vm3 = vmor %vm6604_vm2, %vm6605_vm15  ;;  %6792 = vmatpush.msra.mxu0 %v7374_v35  ;;  %v7366_v43 = vld [vmem:[%s8717_s13 + $0x90] sm:$0xff] }
0x3e62   :  { %v6601_v4 = vsub.f32 1.0, %v6600_v28  ;;  %v6506_v37 = vmul.f32 %v9133_v25, %v6505_v52  ;;  %v7359_v25 = vld [vmem:[%s8728_s17 + $0x20] sm:$0xff] }
0x3e63   :  { %6793 = vmatpush.msra.mxu0 %v7373_v55 }
0x3e64   :  { %v6602_v27 = vmul.f32 %v7689_v2, %v6601_v4 }
0x3e65   :  { %6794 = vmatpush.msra.mxu0 %v7372_v24 }
0x3e66   :  { %v6603_v10 = vadd.f32 %v7689_v2, %v6602_v27  ;;  %v7364_v27 = vld [vmem:[%s8717_s13 + $0x80] sm:$0xff] }
0x3e67   :  { %6795 = vmatpush.msra.mxu0 %v7371_v23 }
0x3e68   :  { %v6607_v13 = vsel %vm6606_vm3, %v7689_v2, %v6603_v10  ;;  %v6508_v53 = vpop.permute.xlu1 %6507 }
0x3e69   :  { %v6612_v50 = vsel %vm6609_vm4, %v6611_v11, %v6607_v13  ;;  %6528 = vmatpush.msra.mxu2 %v6508_v53  ;;  %6796 = vmatpush.msra.mxu0 %v7370_v54  ;;  %v7461_v54 = vld [vmem:[%s8791_s3 + $0x1] ss:$0 sm:$0xff] }
0x3e6a   :  { %v6613_v59 = vmul.f32 %v9137_v51, %v6612_v50  ;;  %7349 = vmatmul.msk.f32.vlgmr.msra.gmra.mxu2 %vm245_vm1, %v6506_v37  ;;  %v9204_v50 = vld [vmem:[%s8775_s11 + $0x1] ss:$0 sm:$0xff] }
0x3e6b   :  { %v6615_v14 = vpop.permute.xlu0 %6614  ;;  %6658 = vmatpush.msrb.mxu2 %v9120_v58  ;;  %6797 = vmatpush.msra.mxu0 %v7369_v1 }
0x3e6c   :  { %6635 = vmatpush.msra.mxu1 %v6615_v14 }
0x3e6d   :  { %7355 = vmatmul.msk.f32.vlgmr.msra.gmra.mxu1 %vm245_vm1, %v6613_v59  ;;  %6798 = vmatpush.msra.mxu0 %v7368_v22  ;;  %v7462_v22 = vld [vmem:[%s8797_s2 + $0x1] ss:$0 sm:$0xff] }
0x3e6f   :  { %6799 = vmatpush.msra.mxu0 %v7367_v41 }
0x3e71   :  { %6800 = vmatpush.msra.mxu0 %v7366_v43  ;;  %v7463_v43 = vld [vmem:[%s9220_s6] ss:$0 sm:$0xff] }
0x3e73   :  { %6801 = vmatpush.msra.mxu0 %v7365_v0 }
0x3e75   :  { %6802 = vmatpush.msra.mxu0 %v7364_v27 }
0x3e89   :  { %v6672_v34 = vpop.xlane.xlu2 %6671 }
0x3e8a   :  { %v6676_v33 = vmul.f32 %v6672_v34, %v7954_v15 }
0x3e8c   :  { %v6678_v40 = vsub.f32 %v9151_v32, %v6676_v33 }
0x3e8e   :  { %v6680_v18 = vmul.f32 %v6678_v40, %v6678_v40 }
0x3e90   :  { %v6682_v60 = vsel %vm172_vm0, %v6680_v18, 0.0 }
0x3e91   :  { %6683 = vadd.xlane.f32.xlu1 %v6682_v60 }
0x3edf   :  { %v6401_v19 = vpop.f32.mrf.mxu2 }
0x3ee0   :  { %7343 = vmatmul.msk.f32.vlgmr.msra.gmra.mxu3 %vm245_vm1, %v6401_v19 }
0x3ee1   :  { %6771 = vmatpush.msra.mxu3 %v7362_v36 }
0x3ee3   :  { %6772 = vmatpush.msra.mxu3 %v7361_v57 }
0x3ee5   :  { %6773 = vmatpush.msra.mxu3 %v7360_v3 }
0x3ee7   :  { %6774 = vmatpush.msra.mxu3 %v7359_v25 }
0x3eea   :  { %v6637_v17 = vpop.f32.mrf.mxu1 }
0x3eeb   :  { %7356 = vmatmul.msk.f32.vlgmr.msrb.gmra.mxu2 %vm245_vm1, %v6637_v17 }
0x3eed   :  { %v6530_v58 = vpop.f32.mrf.mxu2 }
0x3eee   :  { %7350 = vmatmul.msk.f32.vlgmr.msrb.gmra.mxu3 %vm245_vm1, %v6530_v58 }
0x3f04   :  { %v6684_v45 = vpop.xlane.xlu1 %6683 }
0x3f05   :  { %v6688_v38 = vmul.f32 %v6684_v45, %v7954_v15 }
0x3f07   :  { %v6690_v51 = vadd.f32 1e-05, %v6688_v38 }
0x3f09   :  { %7690 = vrsqrt.f32 %v6690_v51  ;;  %vm6698_vm5 = vweird.f32 %v6690_v51 }
0x3f0f   :  { %v7691_v39 = vpop.eup %7690 }
0x3f10   :  { %v6693_v21 = vmul.f32 %v7691_v39, %v6690_v51  ;;  %vm6699_vm1 = vweird.f32 %v7691_v39 }
0x3f11   :  { %vm6700_vm6 = vmor %vm6698_vm5, %vm6699_vm1 }
0x3f12   :  { %v6694_v16 = vmul.f32 %v7691_v39, %v6693_v21 }
0x3f14   :  { %v6695_v29 = vmul.f32 0.5, %v6694_v16 }
0x3f16   :  { %v6696_v56 = vsub.f32 1.5, %v6695_v29 }
0x3f18   :  { %v6697_v32 = vmul.f32 %v7691_v39, %v6696_v56 }
0x3f1a   :  { %v6701_v44 = vsel %vm6700_vm6, %v7691_v39, %v6697_v32 }
0x3f1b   :  { %v6712_v46 = vmul.f32 %v6701_v44, %v6678_v40 }
0x3f1d   :  { %v6717_v47 = vmul.f32 %v9173_v7, %v6712_v46 }
0x3f1f   :  { %v6722_v42 = vadd.f32 %v9176_v30, %v6717_v47 }
0x3f21   :  { %7381 = vmatmul.msk.f32.vlgmr.msra.gmra.mxu3 %vm172_vm0, %v6722_v42 }
0x3f63   :  { %v6424_v62 = vpop.f32.mrf.mxu3 }
0x3f64   :  { %v6448_v6 = vadd.f32 %v9126_v8, %v6424_v62  ;;  %v7459_v8 = vld [vmem:[%s8744_s14 + $0x1] ss:$0 sm:$0xff] }
0x3f6e   :  { %v6660_v5 = vpop.f32.mrf.mxu2 }
0x3f71   :  { %v6553_v2 = vpop.f32.mrf.mxu3 }
0x3f72   :  { %v6556_v20 = vadd.f32 %v6553_v2, %v6448_v6 }
0x3f74   :  { %v6663_v28 = vadd.f32 %v6660_v5, %v6556_v20 }
0x3f76   :  { %v6665_v63 = vadd.f32 %v6663_v28, %v9032_v61 }
0x3f78   :  { %v6673_v4 = vsel %vm172_vm0, %v6665_v63, 0.0 }
0x3f79   :  { %6674 = vadd.xlane.f32.xlu0 %v6673_v4 }
0x3fa4   :  { %v6776_v31 = vpop.f32.mrf.mxu3 }
0x3fa5   :  { %v6777_v52 = vadd.f32 %v7459_v8, %v6776_v31 }
0x3fa7   :  { %v6782_v10 = vmax.f32 %v6777_v52, 0.0 }
0x3fa9   :  { %6803 = vmatmul.f32.vlgmr.msra.gmra.mxu0 %v6782_v10 }
0x3fec   :  { %v6675_v11 = vpop.xlane.xlu0 %6674 }
0x3fed   :  { %v6677_v37 = vmul.f32 %v6675_v11, %v7954_v15 }
0x3fef   :  { %v6679_v13 = vsub.f32 %v6665_v63, %v6677_v37 }
0x3ff1   :  { %v6681_v61 = vmul.f32 %v6679_v13, %v6679_v13 }
0x3ff3   :  { %v6685_v53 = vsel %vm172_vm0, %v6681_v61, 0.0 }
0x3ff4   :  { %6686 = vadd.xlane.f32.xlu2 %v6685_v53 }
0x4026   :  { %v6804_v59 = vpop.f32.mrf.mxu0 }
0x4027   :  { %v6805_v14 = vadd.f32 %v9204_v50, %v6804_v59 }
0x4029   :  { %v7383_v34 = vclamps-f32 %v6805_v14, 5.0 }
0x402b   :  { %v6814_v33 = vadd.f32 %v7383_v34, %v6722_v42  ;;  %v6875_v42 = vld [vmem:[%s6951_s25 + $0x8] sm:$0xff] }
0x402d   :  { %v6820_v40 = vsel %vm172_vm0, %v6814_v33, 0.0 }
0x402e   :  { %6821 = vadd.xlane.f32.xlu0 %v6820_v40 }
0x4067   :  { %v6687_v18 = vpop.xlane.xlu2 %6686 }
0x4068   :  { %v6689_v60 = vmul.f32 %v6687_v18, %v7954_v15 }
0x406a   :  { %v6691_v19 = vadd.f32 1e-05, %v6689_v60 }
0x406c   :  { %7692 = vrsqrt.f32 %v6691_v19  ;;  %vm6708_vm8 = vweird.f32 %v6691_v19 }
0x4072   :  { %v7693_v17 = vpop.eup %7692 }
0x4073   :  { %v6703_v58 = vmul.f32 %v7693_v17, %v6691_v19  ;;  %vm6709_vm7 = vweird.f32 %v7693_v17 }
0x4074   :  { %vm6710_vm9 = vmor %vm6708_vm8, %vm6709_vm7 }
0x4075   :  { %v6704_v36 = vmul.f32 %v7693_v17, %v6703_v58 }
0x4077   :  { %v6705_v57 = vmul.f32 0.5, %v6704_v36 }
0x4079   :  { %v6706_v3 = vsub.f32 1.5, %v6705_v57 }
0x407b   :  { %v6707_v25 = vmul.f32 %v7693_v17, %v6706_v3 }
0x407d   :  { %v6711_v45 = vsel %vm6710_vm9, %v7693_v17, %v6707_v25 }
0x407e   :  { %v6713_v38 = vmul.f32 %v6711_v45, %v6679_v13 }
0x4080   :  { %v6718_v51 = vmul.f32 %v9173_v7, %v6713_v38  ;;  %v6877_v7 = vld [vmem:[%s6951_s25 + $0x18] sm:$0xff] }
0x4081   :  { %6900 = vmatpush.msrb.mxu1 %v6877_v7 }
0x4082   :  { %v6723_v39 = vadd.f32 %v9176_v30, %v6718_v51  ;;  %v6876_v30 = vld [vmem:[%s6951_s25 + $0x10] sm:$0xff] }
0x4083   :  { %6901 = vmatpush.msrb.mxu1 %v6876_v30 }
0x4084   :  { %7382 = vmatmul.msk.f32.gmra.mxu3 %vm172_vm0, %v6723_v39 }
0x4085   :  { %6902 = vmatpush.msrb.mxu1 %v6875_v42 }
0x4087   :  { %6903 = vmatpush.msrb.mxu1 %v6874_v26 }
0x40a1   :  { %v6822_v21 = vpop.xlane.xlu0 %6821 }
0x40a2   :  { %v6826_v16 = vmul.f32 %v6822_v21, %v7954_v15 }
0x40a4   :  { %v6828_v29 = vsub.f32 %v6814_v33, %v6826_v16 }
0x40a6   :  { %v6830_v56 = vmul.f32 %v6828_v29, %v6828_v29 }
0x40a8   :  { %v6832_v32 = vsel %vm172_vm0, %v6830_v56, 0.0 }
0x40a9   :  { %6833 = vadd.xlane.f32.xlu2 %v6832_v32 }
0x4107   :  { %v6779_v44 = vpop.f32.mrf.mxu3 }
0x4108   :  { %v6780_v46 = vadd.f32 %v7459_v8, %v6779_v44 }
0x410a   :  { %v6783_v47 = vmax.f32 %v6780_v46, 0.0 }
0x410c   :  { %6806 = vmatmul.f32.gmra.mxu0 %v6783_v47 }
0x411c   :  { %v6834_v9 = vpop.xlane.xlu2 %6833 }
0x411d   :  { %v6838_v48 = vmul.f32 %v6834_v9, %v7954_v15 }
0x411f   :  { %v6840_v12 = vadd.f32 1e-05, %v6838_v48 }
0x4121   :  { %7694 = vrsqrt.f32 %v6840_v12  ;;  %vm6848_vm11 = vweird.f32 %v6840_v12 }
0x4127   :  { %v7695_v49 = vpop.eup %7694 }
0x4128   :  { %v6843_v35 = vmul.f32 %v7695_v49, %v6840_v12  ;;  %vm6849_vm10 = vweird.f32 %v7695_v49 }
0x4129   :  { %vm6850_vm12 = vmor %vm6848_vm11, %vm6849_vm10 }
0x412a   :  { %v6844_v55 = vmul.f32 %v7695_v49, %v6843_v35 }
0x412c   :  { %v6845_v24 = vmul.f32 0.5, %v6844_v55 }
0x412e   :  { %v6846_v23 = vsub.f32 1.5, %v6845_v24 }
0x4130   :  { %v6847_v62 = vmul.f32 %v7695_v49, %v6846_v23 }
0x4132   :  { %v6851_v1 = vsel %vm6850_vm12, %v7695_v49, %v6847_v62 }
0x4133   :  { %v6862_v41 = vmul.f32 %v6851_v1, %v6828_v29 }
0x4135   :  { %v6867_v6 = vmul.f32 %v7461_v54, %v6862_v41 }
0x4137   :  { %v6872_v2 = vadd.f32 %v7462_v22, %v6867_v6 }
0x4139   :  { %7387 = vmatmul.msk.f32.vlgmr.msrb.gmra.mxu1 %vm172_vm0, %v6872_v2 }
0x4189   :  { %v6807_v20 = vpop.f32.mrf.mxu0 }
0x418a   :  { %v6808_v5 = vadd.f32 %v9204_v50, %v6807_v20 }
0x418c   :  { %v7384_v28 = vclamps-f32 %v6808_v5, 5.0 }
0x418e   :  { %v6815_v63 = vadd.f32 %v7384_v28, %v6723_v39 }
0x4190   :  { %v6823_v4 = vsel %vm172_vm0, %v6815_v63, 0.0 }
0x4191   :  { %6824 = vadd.xlane.f32.xlu1 %v6823_v4 }
0x41b6   :  { %v6905_v0 = vpop.f32.mrf.mxu1 }
0x41b7   :  { %v6906_v27 = vadd.f32 %v7463_v43, %v6905_v0 }
0x41b9   :  { %6911 = vst [vmem:[%s9231_s22] sm:$0xff] %v6906_v27 }
0x4204   :  { %v6825_v8 = vpop.xlane.xlu1 %6824 }
0x4205   :  { %v6827_v31 = vmul.f32 %v6825_v8, %v7954_v15 }
0x4207   :  { %v6829_v52 = vsub.f32 %v6815_v63, %v6827_v31 }
0x4209   :  { %v6831_v10 = vmul.f32 %v6829_v52, %v6829_v52 }
0x420b   :  { %v6835_v11 = vsel %vm172_vm0, %v6831_v10, 0.0 }
0x420c   :  { %6836 = vadd.xlane.f32.xlu0 %v6835_v11 }
0x427f   :  { %v6837_v37 = vpop.xlane.xlu0 %6836 }
0x4280   :  { %v6839_v13 = vmul.f32 %v6837_v37, %v7954_v15 }
0x4282   :  { %v6841_v61 = vadd.f32 1e-05, %v6839_v13 }
0x4284   :  { %7696 = vrsqrt.f32 %v6841_v61  ;;  %vm6858_vm14 = vweird.f32 %v6841_v61 }
0x428a   :  { %v7697_v53 = vpop.eup %7696 }
0x428b   :  { %v6853_v50 = vmul.f32 %v7697_v53, %v6841_v61  ;;  %vm6859_vm13 = vweird.f32 %v7697_v53 }
0x428c   :  { %vm6860_vm15 = vmor %vm6858_vm14, %vm6859_vm13 }
0x428d   :  { %v6854_v59 = vmul.f32 %v7697_v53, %v6853_v50 }
0x428f   :  { %v6855_v14 = vmul.f32 0.5, %v6854_v59 }
0x4291   :  { %v6856_v34 = vsub.f32 1.5, %v6855_v14 }
0x4293   :  { %v6857_v33 = vmul.f32 %v7697_v53, %v6856_v34 }
0x4295   :  { %v6861_v40 = vsel %vm6860_vm15, %v7697_v53, %v6857_v33 }
0x4296   :  { %v6863_v18 = vmul.f32 %v6861_v40, %v6829_v52 }
0x4298   :  { %v6868_v60 = vmul.f32 %v7461_v54, %v6863_v18 }
0x429a   :  { %v6873_v19 = vadd.f32 %v7462_v22, %v6868_v60 }
0x429c   :  { %7388 = vmatmul.msk.f32.gmra.mxu1 %vm172_vm0, %v6873_v19 }
0x4319   :  { %v6908_v17 = vpop.f32.mrf.mxu1 }
0x431a   :  { %v6909_v15 = vadd.f32 %v7463_v43, %v6908_v17 }
0x431c   :  { %6912 = vst [vmem:[%s9231_s22 + $0x8] sm:$0xff] %v6909_v15 }

</bundles_post_ra>
